<compile_context>
chip_gen: v7x
topology: tpu7x:2x2x1
jax: 0.10.0
libtpu: 0.0.40
codegen_flags: <defaults>
</compile_context>

<pallas_src>
import numpy as np
import jax
import jax.numpy as jnp
from jax.experimental import pallas as pl
from jax.experimental.pallas import tpu as pltpu

EPS = 1e-5
TILE_P = 256                       # pixel rows per conv tile (multiple of 16)
VMEM_LIMIT = 48 * 1024 * 1024      # <= 64 MiB physical VMEM per core on v7x


# ----------------------------------------------------------------------------
# helpers
# ----------------------------------------------------------------------------
def _round_up(x, m):
    return (x + m - 1) // m * m


def _pix_pad(npix):
    """Pad the pixel count to a multiple of 16 and pick the row-tile size."""
    npad = _round_up(npix, 16)
    tile_p = min(TILE_P, npad)
    npad = _round_up(npad, tile_p)
    return npad, tile_p


# ----------------------------------------------------------------------------
# Pallas kernels
# ----------------------------------------------------------------------------
def _conv_stats_kernel(xcol_ref, w_ref, y_ref, s1_ref, s2_ref):
    """One pixel tile of the conv matmul + partial GroupNorm statistics."""
    # (tile_p, K) bf16 @ (K, C) bf16 -> f32 on the MXU
    y = jnp.dot(xcol_ref[0], w_ref[...], preferred_element_type=jnp.float32)
    y_ref[0] = y.astype(y_ref.dtype)

    # per-channel sum / sum-of-squares accumulated across the pixel-tile axis
    @pl.when(pl.program_id(1) == 0)
    def _init():
        s1_ref[...] = jnp.zeros_like(s1_ref)
        s2_ref[...] = jnp.zeros_like(s2_ref)

    s1_ref[0] += jnp.sum(y, axis=0, keepdims=True)
    s2_ref[0] += jnp.sum(y * y, axis=0, keepdims=True)


def _make_norm_kernel(has_skip, has_proj):
    """GroupNorm affine (y*A + B) + ReLU (+skip add) (+fused 1x1x1 projection)."""
    def kernel(*refs):
        i = 0
        y_ref = refs[i]; i += 1
        a_ref = refs[i]; i += 1
        b_ref = refs[i]; i += 1
        skip_ref = None
        proj_ref = None
        if has_skip:
            skip_ref = refs[i]; i += 1
        if has_proj:
            proj_ref = refs[i]; i += 1
        out_ref = refs[i]

        z = jnp.maximum(y_ref[0].astype(jnp.float32) * a_ref[0] + b_ref[0], 0.0)
        if has_skip:
            z = z + skip_ref[0].astype(jnp.float32)
        if has_proj:
            z = jnp.dot(z, proj_ref[...], preferred_element_type=jnp.float32)
        out_ref[0] = z.astype(out_ref.dtype)
    return kernel


# ----------------------------------------------------------------------------
# pallas_call wrappers
# ----------------------------------------------------------------------------
def _conv_pass(xcol, wmat, tile_p):
    """xcol: (B, npad, K) bf16 (K % 128 == 0, npad % tile_p == 0),
    wmat: (K, C) bf16. Returns y (B, npad, C) bf16 and per-channel sums (B, C)."""
    b, npad, k = xcol.shape
    c = wmat.shape[1]
    n_pt = npad // tile_p
    y, s1, s2 = pl.pallas_call(
        _conv_stats_kernel,
        out_shape=(jax.ShapeDtypeStruct((b, npad, c), jnp.bfloat16),
                   jax.ShapeDtypeStruct((b, 1, c), jnp.float32),
                   jax.ShapeDtypeStruct((b, 1, c), jnp.float32)),
        grid=(b, n_pt),
        in_specs=[pl.BlockSpec((1, tile_p, k), lambda bi, t: (bi, t, 0)),
                  pl.BlockSpec((k, c), lambda bi, t: (0, 0))],
        out_specs=(pl.BlockSpec((1, tile_p, c), lambda bi, t: (bi, t, 0)),
                   pl.BlockSpec((1, 1, c), lambda bi, t: (bi, 0, 0)),
                   pl.BlockSpec((1, 1, c), lambda bi, t: (bi, 0, 0))),
        compiler_params=pltpu.CompilerParams(
            dimension_semantics=("parallel", "arbitrary"),
            vmem_limit_bytes=VMEM_LIMIT),
    )(xcol, wmat)
    return y, s1[:, 0, :], s2[:, 0, :]


def _norm_pass(y, a, bshift, tile_r, skip=None, proj=None,
               out_dtype=jnp.bfloat16):
    """y: (B, R, Wd); a/bshift: (B, Wd) f32; skip: (B, R, Wd); proj: (Wd, P)."""
    b, r, wd = y.shape
    out_w = wd if proj is None else proj.shape[1]
    args = [y, a.reshape(b, 1, wd), bshift.reshape(b, 1, wd)]
    in_specs = [pl.BlockSpec((1, tile_r, wd), lambda bi, t: (bi, t, 0)),
                pl.BlockSpec((1, 1, wd), lambda bi, t: (bi, 0, 0)),
                pl.BlockSpec((1, 1, wd), lambda bi, t: (bi, 0, 0))]
    if skip is not None:
        args.append(skip)
        in_specs.append(pl.BlockSpec((1, tile_r, wd), lambda bi, t: (bi, t, 0)))
    if proj is not None:
        args.append(proj)
        in_specs.append(pl.BlockSpec((wd, out_w), lambda bi, t: (0, 0)))
    return pl.pallas_call(
        _make_norm_kernel(skip is not None, proj is not None),
        out_shape=jax.ShapeDtypeStruct((b, r, out_w), out_dtype),
        grid=(b, r // tile_r),
        in_specs=in_specs,
        out_specs=pl.BlockSpec((1, tile_r, out_w), lambda bi, t: (bi, t, 0)),
        compiler_params=pltpu.CompilerParams(
            dimension_semantics=("parallel", "parallel"),
            vmem_limit_bytes=VMEM_LIMIT),
    )(*args)


def _gn_relu_apply(y, s1, s2, layer, inv_cnt, tile_p, skip=None, proj=None,
                   out_dtype=jnp.bfloat16):
    """Finalize GroupNorm stats (tiny, plain XLA) then run the norm kernel."""
    b, npad, c = y.shape
    npar, g = layer["npar"], layer["ngroups"]
    cpg = c // (npar * g)

    g1 = jnp.sum(s1.reshape(b, npar, g, cpg), axis=(1, 3))
    g2 = jnp.sum(s2.reshape(b, npar, g, cpg), axis=(1, 3))
    mean = g1 * inv_cnt
    var = jnp.maximum(g2 * inv_cnt - mean * mean, 0.0)     # clamp >= 0
    rstd = jax.lax.rsqrt(var + EPS)
    mean_c = jnp.broadcast_to(mean[:, None, :, None], (b, npar, g, cpg)).reshape(b, c)
    rstd_c = jnp.broadcast_to(rstd[:, None, :, None], (b, npar, g, cpg)).reshape(b, c)
    a = layer["gamma"][None, :] * rstd_c
    bsh = layer["beta"][None, :] - mean_c * a

    if proj is None and skip is None and c < 128 and 128 % c == 0:
        # lane-dense presentation: flatten (npix, C) rows into 128-wide rows so
        # the epilogue loads/stores are unmasked.
        rep = 128 // c
        y2 = y.reshape(b, npad * c // 128, 128)
        a2 = jnp.tile(a, (1, rep))
        b2 = jnp.tile(bsh, (1, rep))
        tile_r = tile_p * c // 128
        out = _norm_pass(y2, a2, b2, tile_r, out_dtype=out_dtype)
        return out.reshape(b, npad, c)
    return _norm_pass(y, a, bsh, tile_p, skip=skip, proj=proj,
                      out_dtype=out_dtype)


# ----------------------------------------------------------------------------
# layer wrappers (im2col / sub-pixel deconv glue is plain XLA)
# ----------------------------------------------------------------------------
def _im2col27(xp, stride, do, ho, wo):
    b, _, _, _, c = xp.shape
    cols = []
    for kd in range(3):
        for kh in range(3):
            for kw in range(3):
                p = xp[:, kd:kd + stride * (do - 1) + 1:stride,
                       kh:kh + stride * (ho - 1) + 1:stride,
                       kw:kw + stride * (wo - 1) + 1:stride, :]
                cols.append(p.reshape(b, do * ho * wo, c))
    return jnp.concatenate(cols, axis=-1)


def conv_gn_relu(x, layer, stride=1):
    """Conv3d(k=3, pad=1, bias=False) + GroupNorm + ReLU.  NDHWC bf16 in/out."""
    b, d, h, w, cin = x.shape
    do, ho, wo = (d - 1) // stride + 1, (h - 1) // stride + 1, (w - 1) // stride + 1
    npix = do * ho * wo
    cout = layer["cout"]

    xp = jnp.pad(x, ((0, 0), (1, 1), (1, 1), (1, 1), (0, 0)))
    xcol = _im2col27(xp, stride, do, ho, wo)              # (B, npix, 27*cin) bf16
    k = 27 * cin
    kp = layer["w"].shape[0]                              # K padded to 128 multiple
    npad, tile_p = _pix_pad(npix)
    xcol = jnp.pad(xcol, ((0, 0), (0, npad - npix), (0, kp - k)))

    y, s1, s2 = _conv_pass(xcol, layer["w"], tile_p)
    out = _gn_relu_apply(y, s1, s2, layer, 1.0 / (npix * 8), tile_p)
    return out[:, :npix].reshape(b, do, ho, wo, cout)


def _pixel_unshuffle(s, d, h, w, c):
    b = s.shape[0]
    t = s.reshape(b, d, 2, h, 2, w, 2, c)
    t = jnp.transpose(t, (0, 1, 3, 5, 2, 4, 6, 7))
    return t.reshape(b, d * h * w, 8 * c)


def _pixel_shuffle(y, d, h, w, c):
    b = y.shape[0]
    t = y.reshape(b, d, h, w, 2, 2, 2, c)
    t = jnp.transpose(t, (0, 1, 4, 2, 5, 3, 6, 7))
    return t.reshape(b, 2 * d, 2 * h, 2 * w, c)


def convT_gn_relu(x, layer, skip, proj=None, out_dtype=jnp.bfloat16):
    """ConvTranspose3d(k=3, s=2, p=1, op=1, bias=False) + GroupNorm + ReLU + skip
    (+ optional fused 1x1x1 output projection), via an exact sub-pixel (parity)
    decomposition at input resolution — no zero-inserted volume, no wasted MXU
    FLOPs on structurally-zero taps."""
    b, d, h, w, cin = x.shape
    cout = layer["cout"]
    npix = d * h * w

    xp = jnp.pad(x, ((0, 0), (0, 1), (0, 1), (0, 1), (0, 0)))
    cols = []
    for nd in range(2):
        for nh in range(2):
            for nw in range(2):
                cols.append(xp[:, nd:nd + d, nh:nh + h, nw:nw + w, :]
                            .reshape(b, npix, cin))
    xcol = jnp.concatenate(cols, axis=-1)                 # (B, npix, 8*cin)
    npad, tile_p = _pix_pad(npix)
    xcol = jnp.pad(xcol, ((0, 0), (0, npad - npix), (0, 0)))

    y, s1, s2 = _conv_pass(xcol, layer["w"], tile_p)      # (B, npad, 8*cout)

    skip_u = _pixel_unshuffle(skip, d, h, w, cout)        # (B, npix, 8*cout)
    skip_u = jnp.pad(skip_u, ((0, 0), (0, npad - npix), (0, 0)))

    out = _gn_relu_apply(y, s1, s2, layer, 1.0 / (npix * 64), tile_p,
                         skip=skip_u, proj=proj, out_dtype=out_dtype)
    cpp = out.shape[-1] // 8                              # channels per parity
    return _pixel_shuffle(out[:, :npix], d, h, w, cpp)


# ----------------------------------------------------------------------------
# parameters (deterministic synthetic weights; GN gamma=1, beta=0)
# ----------------------------------------------------------------------------
def _subpixel_weight(wprime):
    """wprime: (3,3,3,cin,cout) conv-equivalent (flipped) transposed-conv kernel
    -> (8*cin, 8*cout) sub-pixel weight (output parity p only touches the
    taps that hit non-zero inputs)."""
    cin, cout = wprime.shape[3], wprime.shape[4]
    w8 = np.zeros((2, 2, 2, cin, 2, 2, 2, cout), np.float32)
    for pd in range(2):
        for ph in range(2):
            for pw in range(2):
                for nd in range(2):
                    for nh in range(2):
                        for nw in range(2):
                            ks, ok = [], True
                            for p, n in ((pd, nd), (ph, nh), (pw, nw)):
                                if p == 0:
                                    if n != 0:
                                        ok = False
                                        break
                                    ks.append(1)
                                else:
                                    ks.append(0 if n == 0 else 2)
                            if ok:
                                w8[nd, nh, nw, :, pd, ph, pw, :] = \
                                    wprime[ks[0], ks[1], ks[2]]
    return w8.reshape(8 * cin, 8 * cout)


def init_params(key):
    conv_defs = [("conv0", 32, 8), ("conv1", 32, 16), ("conv2", 16, 16),
                 ("conv3", 16, 32), ("conv4", 32, 32), ("conv5", 32, 64),
                 ("conv6", 64, 64)]
    deconv_defs = [("conv7", 64, 32), ("conv9", 32, 16), ("conv11", 16, 8)]
    params = {}
    keys = jax.random.split(key, len(conv_defs) + len(deconv_defs) + 1)
    ki = 0
    for name, cin, cout in conv_defs:
        k_ = keys[ki]; ki += 1
        scale = 1.0 / np.sqrt(27 * cin)
        w = scale * jax.random.normal(k_, (3, 3, 3, cin, cout), jnp.float32)
        kdim = 27 * cin
        kpad = _round_up(kdim, 128)
        wmat = jnp.pad(w.reshape(kdim, cout), ((0, kpad - kdim), (0, 0)))
        params[name] = dict(w=wmat.astype(jnp.bfloat16),
                            gamma=jnp.ones((cout,), jnp.float32),
                            beta=jnp.zeros((cout,), jnp.float32),
                            cout=cout, ngroups=max(1, cout // 8), npar=1)
    for name, cin, cout in deconv_defs:
        k_ = keys[ki]; ki += 1
        scale = 1.0 / np.sqrt(27 * cin)
        wprime = np.asarray(
            scale * jax.random.normal(k_, (3, 3, 3, cin, cout), jnp.float32))
        params[name] = dict(w=jnp.asarray(_subpixel_weight(wprime), jnp.bfloat16),
                            gamma=jnp.ones((8 * cout,), jnp.float32),
                            beta=jnp.zeros((8 * cout,), jnp.float32),
                            cout=cout, ngroups=max(1, cout // 8), npar=8)
    # 1x1x1 prob conv (8 -> 1), fused into conv11's epilogue as a block-diagonal
    # (64 -> 8) projection: one output channel per output parity.
    wp = np.asarray((1.0 / np.sqrt(8.0)) *
                    jax.random.normal(keys[ki], (8,), jnp.float32))
    p8 = np.zeros((8, 8, 8), np.float32)
    for p in range(8):
        p8[p, :, p] = wp
    params["prob_proj"] = jnp.asarray(p8.reshape(64, 8), jnp.float32)
    return params


# ----------------------------------------------------------------------------
# forward pass (origin_size=False, the module default)
# ----------------------------------------------------------------------------
def regnet_us0_gn_forward(x_ncdhw, params):
    x = jnp.transpose(x_ncdhw, (0, 2, 3, 4, 1)).astype(jnp.bfloat16)  # -> NDHWC

    conv0 = conv_gn_relu(x, params["conv0"], stride=1)
    conv1 = conv_gn_relu(x, params["conv1"], stride=2)
    conv2 = conv_gn_relu(conv1, params["conv2"], stride=1)
    conv3 = conv_gn_relu(conv1, params["conv3"], stride=2)
    conv4 = conv_gn_relu(conv3, params["conv4"], stride=1)
    conv5 = conv_gn_relu(conv3, params["conv5"], stride=2)
    conv6 = conv_gn_relu(conv5, params["conv6"], stride=1)

    h = convT_gn_relu(conv6, params["conv7"], skip=conv4)   # conv7(conv6)+conv4
    h = convT_gn_relu(h, params["conv9"], skip=conv2)       # conv9(h)+conv2
    out = convT_gn_relu(h, params["conv11"], skip=conv0,    # conv11(h)+conv0, then
                        proj=params["prob_proj"],           # fused 1x1x1 prob conv
                        out_dtype=jnp.float32)

    # TODO(synk): origin_size=True trilinear F.interpolate branch not implemented
    # (module default is origin_size=False).
    return jnp.transpose(out, (0, 4, 1, 2, 3))               # NDHWC -> NCDHW


# ----------------------------------------------------------------------------
# main
# ----------------------------------------------------------------------------
if __name__ == "__main__":
    key = jax.random.PRNGKey(0)
    kx, kp = jax.random.split(key)

    # Cost volume input: (batch, 32 feature channels, depth planes, H, W)
    B, C, D, H, W = 2, 32, 8, 8, 8
    x = jax.random.normal(kx, (B, C, D, H, W), jnp.float32)
    params = init_params(kp)

    fwd = jax.jit(lambda xx: regnet_us0_gn_forward(xx, params))
    out = jax.block_until_ready(fwd(x))

    assert out.shape == (B, 1, D, H, W), out.shape
    assert bool(jnp.all(jnp.isfinite(out)))
    print("KERNEL_OK")
</pallas_src>

<mosaic_0001>
module attributes {stable_mosaic.version = 11 : i64} {
  func.func @_conv_stats_kernel(%arg0: i32, %arg1: i32, %arg2: memref<1x64x896xbf16, #tpu.memory_space<vmem>>, %arg3: memref<896x16xbf16, #tpu.memory_space<vmem>>, %arg4: memref<1x64x16xbf16, #tpu.memory_space<vmem>>, %arg5: memref<1x1x16xf32, #tpu.memory_space<vmem>>, %arg6: memref<1x1x16xf32, #tpu.memory_space<vmem>>) attributes {dimension_semantics = [#tpu.dimension_semantics<parallel>, #tpu.dimension_semantics<arbitrary>], iteration_bounds = array<i64: 2, 1>, scalar_prefetch = 0 : i64, scratch_operands = 0 : i64, tpu.core_type = #tpu.core_type<tc>, window_params = [{transform_indices = @transform_0, window_bounds = array<i64: 1, 64, 896>}, {pipeline_mode = #tpu.pipeline_mode<synchronous>, transform_indices = @transform_1, window_bounds = array<i64: 896, 16>}, {transform_indices = @transform_2, window_bounds = array<i64: 1, 64, 16>}, {transform_indices = @transform_3, window_bounds = array<i64: 1, 1, 16>}, {transform_indices = @transform_4, window_bounds = array<i64: 1, 1, 16>}]} {
    %c0 = arith.constant 0 : index
    %c0_0 = arith.constant 0 : index
    %c0_1 = arith.constant 0 : index
    %0 = vector.load %arg2[%c0, %c0_0, %c0_1] : memref<1x64x896xbf16, #tpu.memory_space<vmem>>, vector<1x64x896xbf16>
    %1 = vector.shape_cast %0 : vector<1x64x896xbf16> to vector<64x896xbf16>
    %c0_2 = arith.constant 0 : index
    %c0_3 = arith.constant 0 : index
    %2 = vector.load %arg3[%c0_2, %c0_3] : memref<896x16xbf16, #tpu.memory_space<vmem>>, vector<896x16xbf16>
    %cst = arith.constant dense<0.000000e+00> : vector<64x16xf32>
    %3 = tpu.matmul %1, %2, %cst {dimension_numbers = #tpu.dot_dimension_numbers<[1], [0], [0], [1], [0, 0, 1, 1], [], []>} : vector<64x896xbf16>, vector<896x16xbf16>, vector<64x16xf32> -> vector<64x16xf32>
    %4 = arith.truncf %3 : vector<64x16xf32> to vector<64x16xbf16>
    %c0_4 = arith.constant 0 : index
    %c0_5 = arith.constant 0 : index
    %c0_6 = arith.constant 0 : index
    %5 = vector.load %arg4[%c0_4, %c0_5, %c0_6] : memref<1x64x16xbf16, #tpu.memory_space<vmem>>, vector<1x64x16xbf16>
    %6 = vector.shape_cast %5 : vector<1x64x16xbf16> to vector<64x16xbf16>
    %7 = vector.shape_cast %4 : vector<64x16xbf16> to vector<1x64x16xbf16>
    tpu.vector_store %arg4[%c0_4, %c0_5, %c0_6], %7 {strides = array<i32>} : memref<1x64x16xbf16, #tpu.memory_space<vmem>>, vector<1x64x16xbf16>,
    %c0_i32 = arith.constant 0 : i32
    %8 = arith.cmpi eq, %arg1, %c0_i32 : i32
    %9 = arith.extui %8 : i1 to i32
    %c0_i32_7 = arith.constant 0 : i32
    %10 = arith.cmpi ne, %9, %c0_i32_7 : i32
    scf.if %10 {
      %cst_22 = arith.constant 0.000000e+00 : f32
      %28 = vector.broadcast %cst_22 : f32 to vector<1x1x16xf32>
      %c0_23 = arith.constant 0 : index
      %c0_24 = arith.constant 0 : index
      %c0_25 = arith.constant 0 : index
      %29 = vector.load %arg5[%c0_23, %c0_24, %c0_25] : memref<1x1x16xf32, #tpu.memory_space<vmem>>, vector<1x1x16xf32>
      tpu.vector_store %arg5[%c0_23, %c0_24, %c0_25], %28 {strides = array<i32>} : memref<1x1x16xf32, #tpu.memory_space<vmem>>, vector<1x1x16xf32>,
      %cst_26 = arith.constant 0.000000e+00 : f32
      %30 = vector.broadcast %cst_26 : f32 to vector<1x1x16xf32>
      %c0_27 = arith.constant 0 : index
      %c0_28 = arith.constant 0 : index
      %c0_29 = arith.constant 0 : index
      %31 = vector.load %arg6[%c0_27, %c0_28, %c0_29] : memref<1x1x16xf32, #tpu.memory_space<vmem>>, vector<1x1x16xf32>
      tpu.vector_store %arg6[%c0_27, %c0_28, %c0_29], %30 {strides = array<i32>} : memref<1x1x16xf32, #tpu.memory_space<vmem>>, vector<1x1x16xf32>,
    } else {
    }
    %c0_8 = arith.constant 0 : index
    %c0_9 = arith.constant 0 : index
    %c0_10 = arith.constant 0 : index
    %11 = vector.load %arg5[%c0_8, %c0_9, %c0_10] : memref<1x1x16xf32, #tpu.memory_space<vmem>>, vector<1x1x16xf32>
    %12 = vector.shape_cast %11 : vector<1x1x16xf32> to vector<1x16xf32>
    %cst_11 = arith.constant dense<0.000000e+00> : vector<16xf32>
    %13 = vector.multi_reduction <add>, %3, %cst_11 [0] : vector<64x16xf32> to vector<16xf32>
    %14 = vector.shape_cast %13 : vector<16xf32> to vector<1x16xf32>
    %15 = arith.addf %12, %14 : vector<1x16xf32>
    %c0_12 = arith.constant 0 : index
    %c0_13 = arith.constant 0 : index
    %c0_14 = arith.constant 0 : index
    %16 = vector.load %arg5[%c0_12, %c0_13, %c0_14] : memref<1x1x16xf32, #tpu.memory_space<vmem>>, vector<1x1x16xf32>
    %17 = vector.shape_cast %16 : vector<1x1x16xf32> to vector<1x16xf32>
    %18 = vector.shape_cast %15 : vector<1x16xf32> to vector<1x1x16xf32>
    tpu.vector_store %arg5[%c0_12, %c0_13, %c0_14], %18 {strides = array<i32>} : memref<1x1x16xf32, #tpu.memory_space<vmem>>, vector<1x1x16xf32>,
    %c0_15 = arith.constant 0 : index
    %c0_16 = arith.constant 0 : index
    %c0_17 = arith.constant 0 : index
    %19 = vector.load %arg6[%c0_15, %c0_16, %c0_17] : memref<1x1x16xf32, #tpu.memory_space<vmem>>, vector<1x1x16xf32>
    %20 = vector.shape_cast %19 : vector<1x1x16xf32> to vector<1x16xf32>
    %21 = arith.mulf %3, %3 : vector<64x16xf32>
    %cst_18 = arith.constant dense<0.000000e+00> : vector<16xf32>
    %22 = vector.multi_reduction <add>, %21, %cst_18 [0] : vector<64x16xf32> to vector<16xf32>
    %23 = vector.shape_cast %22 : vector<16xf32> to vector<1x16xf32>
    %24 = arith.addf %20, %23 : vector<1x16xf32>
    %c0_19 = arith.constant 0 : index
    %c0_20 = arith.constant 0 : index
    %c0_21 = arith.constant 0 : index
    %25 = vector.load %arg6[%c0_19, %c0_20, %c0_21] : memref<1x1x16xf32, #tpu.memory_space<vmem>>, vector<1x1x16xf32>
    %26 = vector.shape_cast %25 : vector<1x1x16xf32> to vector<1x16xf32>
    %27 = vector.shape_cast %24 : vector<1x16xf32> to vector<1x1x16xf32>
    tpu.vector_store %arg6[%c0_19, %c0_20, %c0_21], %27 {strides = array<i32>} : memref<1x1x16xf32, #tpu.memory_space<vmem>>, vector<1x1x16xf32>,
    return
  }
  func.func @transform_0(%arg0: i32, %arg1: i32) -> (i32, i32, i32) {
    %c0_i32 = arith.constant 0 : i32
    %c0_i32_0 = arith.constant 0 : i32
    return %arg0, %arg1, %c0_i32 : i32, i32, i32
  }
  func.func @transform_1(%arg0: i32, %arg1: i32) -> (i32, i32) {
    %c0_i32 = arith.constant 0 : i32
    %c0_i32_0 = arith.constant 0 : i32
    %c0_i32_1 = arith.constant 0 : i32
    return %c0_i32, %c0_i32_0 : i32, i32
  }
  func.func @transform_2(%arg0: i32, %arg1: i32) -> (i32, i32, i32) {
    %c0_i32 = arith.constant 0 : i32
    %c0_i32_0 = arith.constant 0 : i32
    return %arg0, %arg1, %c0_i32 : i32, i32, i32
  }
  func.func @transform_3(%arg0: i32, %arg1: i32) -> (i32, i32, i32) {
    %c0_i32 = arith.constant 0 : i32
    %c0_i32_0 = arith.constant 0 : i32
    %c0_i32_1 = arith.constant 0 : i32
    return %arg0, %c0_i32, %c0_i32_0 : i32, i32, i32
  }
  func.func @transform_4(%arg0: i32, %arg1: i32) -> (i32, i32, i32) {
    %c0_i32 = arith.constant 0 : i32
    %c0_i32_0 = arith.constant 0 : i32
    %c0_i32_1 = arith.constant 0 : i32
    return %arg0, %c0_i32, %c0_i32_0 : i32, i32, i32
  }
}

module attributes {stable_mosaic.version = 11 : i64} {
  func.func @kernel(%arg0: i32, %arg1: i32, %arg2: memref<1x8x128xbf16, #tpu.memory_space<vmem>>, %arg3: memref<1x1x128xf32, #tpu.memory_space<vmem>>, %arg4: memref<1x1x128xf32, #tpu.memory_space<vmem>>, %arg5: memref<1x8x128xbf16, #tpu.memory_space<vmem>>) attributes {dimension_semantics = [#tpu.dimension_semantics<parallel>, #tpu.dimension_semantics<parallel>], iteration_bounds = array<i64: 2, 1>, scalar_prefetch = 0 : i64, scratch_operands = 0 : i64, tpu.core_type = #tpu.core_type<tc>, window_params = [{transform_indices = @transform_0, window_bounds = array<i64: 1, 8, 128>}, {transform_indices = @transform_1, window_bounds = array<i64: 1, 1, 128>}, {transform_indices = @transform_2, window_bounds = array<i64: 1, 1, 128>}, {transform_indices = @transform_3, window_bounds = array<i64: 1, 8, 128>}]} {
    %c0 = arith.constant 0 : index
    %c0_0 = arith.constant 0 : index
    %c0_1 = arith.constant 0 : index
    %0 = vector.load %arg2[%c0, %c0_0, %c0_1] : memref<1x8x128xbf16, #tpu.memory_space<vmem>>, vector<1x8x128xbf16>
    %1 = vector.shape_cast %0 : vector<1x8x128xbf16> to vector<8x128xbf16>
    %2 = arith.extf %1 : vector<8x128xbf16> to vector<8x128xf32>
    %c0_2 = arith.constant 0 : index
    %c0_3 = arith.constant 0 : index
    %c0_4 = arith.constant 0 : index
    %3 = vector.load %arg3[%c0_2, %c0_3, %c0_4] : memref<1x1x128xf32, #tpu.memory_space<vmem>>, vector<1x1x128xf32>
    %4 = vector.shape_cast %3 : vector<1x1x128xf32> to vector<1x128xf32>
    %5 = vector.broadcast %4 : vector<1x128xf32> to vector<8x128xf32>
    %6 = arith.mulf %2, %5 : vector<8x128xf32>
    %c0_5 = arith.constant 0 : index
    %c0_6 = arith.constant 0 : index
    %c0_7 = arith.constant 0 : index
    %7 = vector.load %arg4[%c0_5, %c0_6, %c0_7] : memref<1x1x128xf32, #tpu.memory_space<vmem>>, vector<1x1x128xf32>
    %8 = vector.shape_cast %7 : vector<1x1x128xf32> to vector<1x128xf32>
    %9 = vector.broadcast %8 : vector<1x128xf32> to vector<8x128xf32>
    %10 = arith.addf %6, %9 : vector<8x128xf32>
    %cst = arith.constant 0.000000e+00 : f32
    %11 = vector.broadcast %cst : f32 to vector<8x128xf32>
    %12 = arith.maximumf %10, %11 : vector<8x128xf32>
    %13 = arith.truncf %12 : vector<8x128xf32> to vector<8x128xbf16>
    %c0_8 = arith.constant 0 : index
    %c0_9 = arith.constant 0 : index
    %c0_10 = arith.constant 0 : index
    %14 = vector.load %arg5[%c0_8, %c0_9, %c0_10] : memref<1x8x128xbf16, #tpu.memory_space<vmem>>, vector<1x8x128xbf16>
    %15 = vector.shape_cast %14 : vector<1x8x128xbf16> to vector<8x128xbf16>
    %16 = vector.shape_cast %13 : vector<8x128xbf16> to vector<1x8x128xbf16>
    tpu.vector_store %arg5[%c0_8, %c0_9, %c0_10], %16 {strides = array<i32>} : memref<1x8x128xbf16, #tpu.memory_space<vmem>>, vector<1x8x128xbf16>,
    return
  }
  func.func @transform_0(%arg0: i32, %arg1: i32) -> (i32, i32, i32) {
    %c0_i32 = arith.constant 0 : i32
    %c0_i32_0 = arith.constant 0 : i32
    return %arg0, %arg1, %c0_i32 : i32, i32, i32
  }
  func.func @transform_1(%arg0: i32, %arg1: i32) -> (i32, i32, i32) {
    %c0_i32 = arith.constant 0 : i32
    %c0_i32_0 = arith.constant 0 : i32
    %c0_i32_1 = arith.constant 0 : i32
    return %arg0, %c0_i32, %c0_i32_0 : i32, i32, i32
  }
  func.func @transform_2(%arg0: i32, %arg1: i32) -> (i32, i32, i32) {
    %c0_i32 = arith.constant 0 : i32
    %c0_i32_0 = arith.constant 0 : i32
    %c0_i32_1 = arith.constant 0 : i32
    return %arg0, %c0_i32, %c0_i32_0 : i32, i32, i32
  }
  func.func @transform_3(%arg0: i32, %arg1: i32) -> (i32, i32, i32) {
    %c0_i32 = arith.constant 0 : i32
    %c0_i32_0 = arith.constant 0 : i32
    return %arg0, %arg1, %c0_i32 : i32, i32, i32
  }
}

module attributes {stable_mosaic.version = 11 : i64} {
  func.func @_conv_stats_kernel(%arg0: i32, %arg1: i32, %arg2: memref<1x16x512xbf16, #tpu.memory_space<vmem>>, %arg3: memref<512x32xbf16, #tpu.memory_space<vmem>>, %arg4: memref<1x16x32xbf16, #tpu.memory_space<vmem>>, %arg5: memref<1x1x32xf32, #tpu.memory_space<vmem>>, %arg6: memref<1x1x32xf32, #tpu.memory_space<vmem>>) attributes {dimension_semantics = [#tpu.dimension_semantics<parallel>, #tpu.dimension_semantics<arbitrary>], iteration_bounds = array<i64: 2, 1>, scalar_prefetch = 0 : i64, scratch_operands = 0 : i64, tpu.core_type = #tpu.core_type<tc>, window_params = [{transform_indices = @transform_0, window_bounds = array<i64: 1, 16, 512>}, {pipeline_mode = #tpu.pipeline_mode<synchronous>, transform_indices = @transform_1, window_bounds = array<i64: 512, 32>}, {transform_indices = @transform_2, window_bounds = array<i64: 1, 16, 32>}, {transform_indices = @transform_3, window_bounds = array<i64: 1, 1, 32>}, {transform_indices = @transform_4, window_bounds = array<i64: 1, 1, 32>}]} {
    %c0 = arith.constant 0 : index
    %c0_0 = arith.constant 0 : index
    %c0_1 = arith.constant 0 : index
    %0 = vector.load %arg2[%c0, %c0_0, %c0_1] : memref<1x16x512xbf16, #tpu.memory_space<vmem>>, vector<1x16x512xbf16>
    %1 = vector.shape_cast %0 : vector<1x16x512xbf16> to vector<16x512xbf16>
    %c0_2 = arith.constant 0 : index
    %c0_3 = arith.constant 0 : index
    %2 = vector.load %arg3[%c0_2, %c0_3] : memref<512x32xbf16, #tpu.memory_space<vmem>>, vector<512x32xbf16>
    %cst = arith.constant dense<0.000000e+00> : vector<16x32xf32>
    %3 = tpu.matmul %1, %2, %cst {dimension_numbers = #tpu.dot_dimension_numbers<[1], [0], [0], [1], [0, 0, 1, 1], [], []>} : vector<16x512xbf16>, vector<512x32xbf16>, vector<16x32xf32> -> vector<16x32xf32>
    %4 = arith.truncf %3 : vector<16x32xf32> to vector<16x32xbf16>
    %c0_4 = arith.constant 0 : index
    %c0_5 = arith.constant 0 : index
    %c0_6 = arith.constant 0 : index
    %5 = vector.load %arg4[%c0_4, %c0_5, %c0_6] : memref<1x16x32xbf16, #tpu.memory_space<vmem>>, vector<1x16x32xbf16>
    %6 = vector.shape_cast %5 : vector<1x16x32xbf16> to vector<16x32xbf16>
    %7 = vector.shape_cast %4 : vector<16x32xbf16> to vector<1x16x32xbf16>
    tpu.vector_store %arg4[%c0_4, %c0_5, %c0_6], %7 {strides = array<i32>} : memref<1x16x32xbf16, #tpu.memory_space<vmem>>, vector<1x16x32xbf16>,
    %c0_i32 = arith.constant 0 : i32
    %8 = arith.cmpi eq, %arg1, %c0_i32 : i32
    %9 = arith.extui %8 : i1 to i32
    %c0_i32_7 = arith.constant 0 : i32
    %10 = arith.cmpi ne, %9, %c0_i32_7 : i32
    scf.if %10 {
      %cst_22 = arith.constant 0.000000e+00 : f32
      %28 = vector.broadcast %cst_22 : f32 to vector<1x1x32xf32>
      %c0_23 = arith.constant 0 : index
      %c0_24 = arith.constant 0 : index
      %c0_25 = arith.constant 0 : index
      %29 = vector.load %arg5[%c0_23, %c0_24, %c0_25] : memref<1x1x32xf32, #tpu.memory_space<vmem>>, vector<1x1x32xf32>
      tpu.vector_store %arg5[%c0_23, %c0_24, %c0_25], %28 {strides = array<i32>} : memref<1x1x32xf32, #tpu.memory_space<vmem>>, vector<1x1x32xf32>,
      %cst_26 = arith.constant 0.000000e+00 : f32
      %30 = vector.broadcast %cst_26 : f32 to vector<1x1x32xf32>
      %c0_27 = arith.constant 0 : index
      %c0_28 = arith.constant 0 : index
      %c0_29 = arith.constant 0 : index
      %31 = vector.load %arg6[%c0_27, %c0_28, %c0_29] : memref<1x1x32xf32, #tpu.memory_space<vmem>>, vector<1x1x32xf32>
      tpu.vector_store %arg6[%c0_27, %c0_28, %c0_29], %30 {strides = array<i32>} : memref<1x1x32xf32, #tpu.memory_space<vmem>>, vector<1x1x32xf32>,
    } else {
    }
    %c0_8 = arith.constant 0 : index
    %c0_9 = arith.constant 0 : index
    %c0_10 = arith.constant 0 : index
    %11 = vector.load %arg5[%c0_8, %c0_9, %c0_10] : memref<1x1x32xf32, #tpu.memory_space<vmem>>, vector<1x1x32xf32>
    %12 = vector.shape_cast %11 : vector<1x1x32xf32> to vector<1x32xf32>
    %cst_11 = arith.constant dense<0.000000e+00> : vector<32xf32>
    %13 = vector.multi_reduction <add>, %3, %cst_11 [0] : vector<16x32xf32> to vector<32xf32>
    %14 = vector.shape_cast %13 : vector<32xf32> to vector<1x32xf32>
    %15 = arith.addf %12, %14 : vector<1x32xf32>
    %c0_12 = arith.constant 0 : index
    %c0_13 = arith.constant 0 : index
    %c0_14 = arith.constant 0 : index
    %16 = vector.load %arg5[%c0_12, %c0_13, %c0_14] : memref<1x1x32xf32, #tpu.memory_space<vmem>>, vector<1x1x32xf32>
    %17 = vector.shape_cast %16 : vector<1x1x32xf32> to vector<1x32xf32>
    %18 = vector.shape_cast %15 : vector<1x32xf32> to vector<1x1x32xf32>
    tpu.vector_store %arg5[%c0_12, %c0_13, %c0_14], %18 {strides = array<i32>} : memref<1x1x32xf32, #tpu.memory_space<vmem>>, vector<1x1x32xf32>,
    %c0_15 = arith.constant 0 : index
    %c0_16 = arith.constant 0 : index
    %c0_17 = arith.constant 0 : index
    %19 = vector.load %arg6[%c0_15, %c0_16, %c0_17] : memref<1x1x32xf32, #tpu.memory_space<vmem>>, vector<1x1x32xf32>
    %20 = vector.shape_cast %19 : vector<1x1x32xf32> to vector<1x32xf32>
    %21 = arith.mulf %3, %3 : vector<16x32xf32>
    %cst_18 = arith.constant dense<0.000000e+00> : vector<32xf32>
    %22 = vector.multi_reduction <add>, %21, %cst_18 [0] : vector<16x32xf32> to vector<32xf32>
    %23 = vector.shape_cast %22 : vector<32xf32> to vector<1x32xf32>
    %24 = arith.addf %20, %23 : vector<1x32xf32>
    %c0_19 = arith.constant 0 : index
    %c0_20 = arith.constant 0 : index
    %c0_21 = arith.constant 0 : index
    %25 = vector.load %arg6[%c0_19, %c0_20, %c0_21] : memref<1x1x32xf32, #tpu.memory_space<vmem>>, vector<1x1x32xf32>
    %26 = vector.shape_cast %25 : vector<1x1x32xf32> to vector<1x32xf32>
    %27 = vector.shape_cast %24 : vector<1x32xf32> to vector<1x1x32xf32>
    tpu.vector_store %arg6[%c0_19, %c0_20, %c0_21], %27 {strides = array<i32>} : memref<1x1x32xf32, #tpu.memory_space<vmem>>, vector<1x1x32xf32>,
    return
  }
  func.func @transform_0(%arg0: i32, %arg1: i32) -> (i32, i32, i32) {
    %c0_i32 = arith.constant 0 : i32
    %c0_i32_0 = arith.constant 0 : i32
    return %arg0, %arg1, %c0_i32 : i32, i32, i32
  }
  func.func @transform_1(%arg0: i32, %arg1: i32) -> (i32, i32) {
    %c0_i32 = arith.constant 0 : i32
    %c0_i32_0 = arith.constant 0 : i32
    %c0_i32_1 = arith.constant 0 : i32
    return %c0_i32, %c0_i32_0 : i32, i32
  }
  func.func @transform_2(%arg0: i32, %arg1: i32) -> (i32, i32, i32) {
    %c0_i32 = arith.constant 0 : i32
    %c0_i32_0 = arith.constant 0 : i32
    return %arg0, %arg1, %c0_i32 : i32, i32, i32
  }
  func.func @transform_3(%arg0: i32, %arg1: i32) -> (i32, i32, i32) {
    %c0_i32 = arith.constant 0 : i32
    %c0_i32_0 = arith.constant 0 : i32
    %c0_i32_1 = arith.constant 0 : i32
    return %arg0, %c0_i32, %c0_i32_0 : i32, i32, i32
  }
  func.func @transform_4(%arg0: i32, %arg1: i32) -> (i32, i32, i32) {
    %c0_i32 = arith.constant 0 : i32
    %c0_i32_0 = arith.constant 0 : i32
    %c0_i32_1 = arith.constant 0 : i32
    return %arg0, %c0_i32, %c0_i32_0 : i32, i32, i32
  }
}

module attributes {stable_mosaic.version = 11 : i64} {
  func.func @kernel(%arg0: i32, %arg1: i32, %arg2: memref<1x4x128xbf16, #tpu.memory_space<vmem>>, %arg3: memref<1x1x128xf32, #tpu.memory_space<vmem>>, %arg4: memref<1x1x128xf32, #tpu.memory_space<vmem>>, %arg5: memref<1x4x128xbf16, #tpu.memory_space<vmem>>) attributes {dimension_semantics = [#tpu.dimension_semantics<parallel>, #tpu.dimension_semantics<parallel>], iteration_bounds = array<i64: 2, 1>, scalar_prefetch = 0 : i64, scratch_operands = 0 : i64, tpu.core_type = #tpu.core_type<tc>, window_params = [{transform_indices = @transform_0, window_bounds = array<i64: 1, 4, 128>}, {transform_indices = @transform_1, window_bounds = array<i64: 1, 1, 128>}, {transform_indices = @transform_2, window_bounds = array<i64: 1, 1, 128>}, {transform_indices = @transform_3, window_bounds = array<i64: 1, 4, 128>}]} {
    %c0 = arith.constant 0 : index
    %c0_0 = arith.constant 0 : index
    %c0_1 = arith.constant 0 : index
    %0 = vector.load %arg2[%c0, %c0_0, %c0_1] : memref<1x4x128xbf16, #tpu.memory_space<vmem>>, vector<1x4x128xbf16>
    %1 = vector.shape_cast %0 : vector<1x4x128xbf16> to vector<4x128xbf16>
    %2 = arith.extf %1 : vector<4x128xbf16> to vector<4x128xf32>
    %c0_2 = arith.constant 0 : index
    %c0_3 = arith.constant 0 : index
    %c0_4 = arith.constant 0 : index
    %3 = vector.load %arg3[%c0_2, %c0_3, %c0_4] : memref<1x1x128xf32, #tpu.memory_space<vmem>>, vector<1x1x128xf32>
    %4 = vector.shape_cast %3 : vector<1x1x128xf32> to vector<1x128xf32>
    %5 = vector.broadcast %4 : vector<1x128xf32> to vector<4x128xf32>
    %6 = arith.mulf %2, %5 : vector<4x128xf32>
    %c0_5 = arith.constant 0 : index
    %c0_6 = arith.constant 0 : index
    %c0_7 = arith.constant 0 : index
    %7 = vector.load %arg4[%c0_5, %c0_6, %c0_7] : memref<1x1x128xf32, #tpu.memory_space<vmem>>, vector<1x1x128xf32>
    %8 = vector.shape_cast %7 : vector<1x1x128xf32> to vector<1x128xf32>
    %9 = vector.broadcast %8 : vector<1x128xf32> to vector<4x128xf32>
    %10 = arith.addf %6, %9 : vector<4x128xf32>
    %cst = arith.constant 0.000000e+00 : f32
    %11 = vector.broadcast %cst : f32 to vector<4x128xf32>
    %12 = arith.maximumf %10, %11 : vector<4x128xf32>
    %13 = arith.truncf %12 : vector<4x128xf32> to vector<4x128xbf16>
    %c0_8 = arith.constant 0 : index
    %c0_9 = arith.constant 0 : index
    %c0_10 = arith.constant 0 : index
    %14 = vector.load %arg5[%c0_8, %c0_9, %c0_10] : memref<1x4x128xbf16, #tpu.memory_space<vmem>>, vector<1x4x128xbf16>
    %15 = vector.shape_cast %14 : vector<1x4x128xbf16> to vector<4x128xbf16>
    %16 = vector.shape_cast %13 : vector<4x128xbf16> to vector<1x4x128xbf16>
    tpu.vector_store %arg5[%c0_8, %c0_9, %c0_10], %16 {strides = array<i32>} : memref<1x4x128xbf16, #tpu.memory_space<vmem>>, vector<1x4x128xbf16>,
    return
  }
  func.func @transform_0(%arg0: i32, %arg1: i32) -> (i32, i32, i32) {
    %c0_i32 = arith.constant 0 : i32
    %c0_i32_0 = arith.constant 0 : i32
    return %arg0, %arg1, %c0_i32 : i32, i32, i32
  }
  func.func @transform_1(%arg0: i32, %arg1: i32) -> (i32, i32, i32) {
    %c0_i32 = arith.constant 0 : i32
    %c0_i32_0 = arith.constant 0 : i32
    %c0_i32_1 = arith.constant 0 : i32
    return %arg0, %c0_i32, %c0_i32_0 : i32, i32, i32
  }
  func.func @transform_2(%arg0: i32, %arg1: i32) -> (i32, i32, i32) {
    %c0_i32 = arith.constant 0 : i32
    %c0_i32_0 = arith.constant 0 : i32
    %c0_i32_1 = arith.constant 0 : i32
    return %arg0, %c0_i32, %c0_i32_0 : i32, i32, i32
  }
  func.func @transform_3(%arg0: i32, %arg1: i32) -> (i32, i32, i32) {
    %c0_i32 = arith.constant 0 : i32
    %c0_i32_0 = arith.constant 0 : i32
    return %arg0, %arg1, %c0_i32 : i32, i32, i32
  }
}

module attributes {stable_mosaic.version = 11 : i64} {
  func.func @_conv_stats_kernel(%arg0: i32, %arg1: i32, %arg2: memref<1x16x896xbf16, #tpu.memory_space<vmem>>, %arg3: memref<896x64xbf16, #tpu.memory_space<vmem>>, %arg4: memref<1x16x64xbf16, #tpu.memory_space<vmem>>, %arg5: memref<1x1x64xf32, #tpu.memory_space<vmem>>, %arg6: memref<1x1x64xf32, #tpu.memory_space<vmem>>) attributes {dimension_semantics = [#tpu.dimension_semantics<parallel>, #tpu.dimension_semantics<arbitrary>], iteration_bounds = array<i64: 2, 1>, scalar_prefetch = 0 : i64, scratch_operands = 0 : i64, tpu.core_type = #tpu.core_type<tc>, window_params = [{transform_indices = @transform_0, window_bounds = array<i64: 1, 16, 896>}, {pipeline_mode = #tpu.pipeline_mode<synchronous>, transform_indices = @transform_1, window_bounds = array<i64: 896, 64>}, {transform_indices = @transform_2, window_bounds = array<i64: 1, 16, 64>}, {transform_indices = @transform_3, window_bounds = array<i64: 1, 1, 64>}, {transform_indices = @transform_4, window_bounds = array<i64: 1, 1, 64>}]} {
    %c0 = arith.constant 0 : index
    %c0_0 = arith.constant 0 : index
    %c0_1 = arith.constant 0 : index
    %0 = vector.load %arg2[%c0, %c0_0, %c0_1] : memref<1x16x896xbf16, #tpu.memory_space<vmem>>, vector<1x16x896xbf16>
    %1 = vector.shape_cast %0 : vector<1x16x896xbf16> to vector<16x896xbf16>
    %c0_2 = arith.constant 0 : index
    %c0_3 = arith.constant 0 : index
    %2 = vector.load %arg3[%c0_2, %c0_3] : memref<896x64xbf16, #tpu.memory_space<vmem>>, vector<896x64xbf16>
    %cst = arith.constant dense<0.000000e+00> : vector<16x64xf32>
    %3 = tpu.matmul %1, %2, %cst {dimension_numbers = #tpu.dot_dimension_numbers<[1], [0], [0], [1], [0, 0, 1, 1], [], []>} : vector<16x896xbf16>, vector<896x64xbf16>, vector<16x64xf32> -> vector<16x64xf32>
    %4 = arith.truncf %3 : vector<16x64xf32> to vector<16x64xbf16>
    %c0_4 = arith.constant 0 : index
    %c0_5 = arith.constant 0 : index
    %c0_6 = arith.constant 0 : index
    %5 = vector.load %arg4[%c0_4, %c0_5, %c0_6] : memref<1x16x64xbf16, #tpu.memory_space<vmem>>, vector<1x16x64xbf16>
    %6 = vector.shape_cast %5 : vector<1x16x64xbf16> to vector<16x64xbf16>
    %7 = vector.shape_cast %4 : vector<16x64xbf16> to vector<1x16x64xbf16>
    tpu.vector_store %arg4[%c0_4, %c0_5, %c0_6], %7 {strides = array<i32>} : memref<1x16x64xbf16, #tpu.memory_space<vmem>>, vector<1x16x64xbf16>,
    %c0_i32 = arith.constant 0 : i32
    %8 = arith.cmpi eq, %arg1, %c0_i32 : i32
    %9 = arith.extui %8 : i1 to i32
    %c0_i32_7 = arith.constant 0 : i32
    %10 = arith.cmpi ne, %9, %c0_i32_7 : i32
    scf.if %10 {
      %cst_22 = arith.constant 0.000000e+00 : f32
      %28 = vector.broadcast %cst_22 : f32 to vector<1x1x64xf32>
      %c0_23 = arith.constant 0 : index
      %c0_24 = arith.constant 0 : index
      %c0_25 = arith.constant 0 : index
      %29 = vector.load %arg5[%c0_23, %c0_24, %c0_25] : memref<1x1x64xf32, #tpu.memory_space<vmem>>, vector<1x1x64xf32>
      tpu.vector_store %arg5[%c0_23, %c0_24, %c0_25], %28 {strides = array<i32>} : memref<1x1x64xf32, #tpu.memory_space<vmem>>, vector<1x1x64xf32>,
      %cst_26 = arith.constant 0.000000e+00 : f32
      %30 = vector.broadcast %cst_26 : f32 to vector<1x1x64xf32>
      %c0_27 = arith.constant 0 : index
      %c0_28 = arith.constant 0 : index
      %c0_29 = arith.constant 0 : index
      %31 = vector.load %arg6[%c0_27, %c0_28, %c0_29] : memref<1x1x64xf32, #tpu.memory_space<vmem>>, vector<1x1x64xf32>
      tpu.vector_store %arg6[%c0_27, %c0_28, %c0_29], %30 {strides = array<i32>} : memref<1x1x64xf32, #tpu.memory_space<vmem>>, vector<1x1x64xf32>,
    } else {
    }
    %c0_8 = arith.constant 0 : index
    %c0_9 = arith.constant 0 : index
    %c0_10 = arith.constant 0 : index
    %11 = vector.load %arg5[%c0_8, %c0_9, %c0_10] : memref<1x1x64xf32, #tpu.memory_space<vmem>>, vector<1x1x64xf32>
    %12 = vector.shape_cast %11 : vector<1x1x64xf32> to vector<1x64xf32>
    %cst_11 = arith.constant dense<0.000000e+00> : vector<64xf32>
    %13 = vector.multi_reduction <add>, %3, %cst_11 [0] : vector<16x64xf32> to vector<64xf32>
    %14 = vector.shape_cast %13 : vector<64xf32> to vector<1x64xf32>
    %15 = arith.addf %12, %14 : vector<1x64xf32>
    %c0_12 = arith.constant 0 : index
    %c0_13 = arith.constant 0 : index
    %c0_14 = arith.constant 0 : index
    %16 = vector.load %arg5[%c0_12, %c0_13, %c0_14] : memref<1x1x64xf32, #tpu.memory_space<vmem>>, vector<1x1x64xf32>
    %17 = vector.shape_cast %16 : vector<1x1x64xf32> to vector<1x64xf32>
    %18 = vector.shape_cast %15 : vector<1x64xf32> to vector<1x1x64xf32>
    tpu.vector_store %arg5[%c0_12, %c0_13, %c0_14], %18 {strides = array<i32>} : memref<1x1x64xf32, #tpu.memory_space<vmem>>, vector<1x1x64xf32>,
    %c0_15 = arith.constant 0 : index
    %c0_16 = arith.constant 0 : index
    %c0_17 = arith.constant 0 : index
    %19 = vector.load %arg6[%c0_15, %c0_16, %c0_17] : memref<1x1x64xf32, #tpu.memory_space<vmem>>, vector<1x1x64xf32>
    %20 = vector.shape_cast %19 : vector<1x1x64xf32> to vector<1x64xf32>
    %21 = arith.mulf %3, %3 : vector<16x64xf32>
    %cst_18 = arith.constant dense<0.000000e+00> : vector<64xf32>
    %22 = vector.multi_reduction <add>, %21, %cst_18 [0] : vector<16x64xf32> to vector<64xf32>
    %23 = vector.shape_cast %22 : vector<64xf32> to vector<1x64xf32>
    %24 = arith.addf %20, %23 : vector<1x64xf32>
    %c0_19 = arith.constant 0 : index
    %c0_20 = arith.constant 0 : index
    %c0_21 = arith.constant 0 : index
    %25 = vector.load %arg6[%c0_19, %c0_20, %c0_21] : memref<1x1x64xf32, #tpu.memory_space<vmem>>, vector<1x1x64xf32>
    %26 = vector.shape_cast %25 : vector<1x1x64xf32> to vector<1x64xf32>
    %27 = vector.shape_cast %24 : vector<1x64xf32> to vector<1x1x64xf32>
    tpu.vector_store %arg6[%c0_19, %c0_20, %c0_21], %27 {strides = array<i32>} : memref<1x1x64xf32, #tpu.memory_space<vmem>>, vector<1x1x64xf32>,
    return
  }
  func.func @transform_0(%arg0: i32, %arg1: i32) -> (i32, i32, i32) {
    %c0_i32 = arith.constant 0 : i32
    %c0_i32_0 = arith.constant 0 : i32
    return %arg0, %arg1, %c0_i32 : i32, i32, i32
  }
  func.func @transform_1(%arg0: i32, %arg1: i32) -> (i32, i32) {
    %c0_i32 = arith.constant 0 : i32
    %c0_i32_0 = arith.constant 0 : i32
    %c0_i32_1 = arith.constant 0 : i32
    return %c0_i32, %c0_i32_0 : i32, i32
  }
  func.func @transform_2(%arg0: i32, %arg1: i32) -> (i32, i32, i32) {
    %c0_i32 = arith.constant 0 : i32
    %c0_i32_0 = arith.constant 0 : i32
    return %arg0, %arg1, %c0_i32 : i32, i32, i32
  }
  func.func @transform_3(%arg0: i32, %arg1: i32) -> (i32, i32, i32) {
    %c0_i32 = arith.constant 0 : i32
    %c0_i32_0 = arith.constant 0 : i32
    %c0_i32_1 = arith.constant 0 : i32
    return %arg0, %c0_i32, %c0_i32_0 : i32, i32, i32
  }
  func.func @transform_4(%arg0: i32, %arg1: i32) -> (i32, i32, i32) {
    %c0_i32 = arith.constant 0 : i32
    %c0_i32_0 = arith.constant 0 : i32
    %c0_i32_1 = arith.constant 0 : i32
    return %arg0, %c0_i32, %c0_i32_0 : i32, i32, i32
  }
}

module attributes {stable_mosaic.version = 11 : i64} {
  func.func @_conv_stats_kernel(%arg0: i32, %arg1: i32, %arg2: memref<1x16x896xbf16, #tpu.memory_space<vmem>>, %arg3: memref<896x32xbf16, #tpu.memory_space<vmem>>, %arg4: memref<1x16x32xbf16, #tpu.memory_space<vmem>>, %arg5: memref<1x1x32xf32, #tpu.memory_space<vmem>>, %arg6: memref<1x1x32xf32, #tpu.memory_space<vmem>>) attributes {dimension_semantics = [#tpu.dimension_semantics<parallel>, #tpu.dimension_semantics<arbitrary>], iteration_bounds = array<i64: 2, 1>, scalar_prefetch = 0 : i64, scratch_operands = 0 : i64, tpu.core_type = #tpu.core_type<tc>, window_params = [{transform_indices = @transform_0, window_bounds = array<i64: 1, 16, 896>}, {pipeline_mode = #tpu.pipeline_mode<synchronous>, transform_indices = @transform_1, window_bounds = array<i64: 896, 32>}, {transform_indices = @transform_2, window_bounds = array<i64: 1, 16, 32>}, {transform_indices = @transform_3, window_bounds = array<i64: 1, 1, 32>}, {transform_indices = @transform_4, window_bounds = array<i64: 1, 1, 32>}]} {
    %c0 = arith.constant 0 : index
    %c0_0 = arith.constant 0 : index
    %c0_1 = arith.constant 0 : index
    %0 = vector.load %arg2[%c0, %c0_0, %c0_1] : memref<1x16x896xbf16, #tpu.memory_space<vmem>>, vector<1x16x896xbf16>
    %1 = vector.shape_cast %0 : vector<1x16x896xbf16> to vector<16x896xbf16>
    %c0_2 = arith.constant 0 : index
    %c0_3 = arith.constant 0 : index
    %2 = vector.load %arg3[%c0_2, %c0_3] : memref<896x32xbf16, #tpu.memory_space<vmem>>, vector<896x32xbf16>
    %cst = arith.constant dense<0.000000e+00> : vector<16x32xf32>
    %3 = tpu.matmul %1, %2, %cst {dimension_numbers = #tpu.dot_dimension_numbers<[1], [0], [0], [1], [0, 0, 1, 1], [], []>} : vector<16x896xbf16>, vector<896x32xbf16>, vector<16x32xf32> -> vector<16x32xf32>
    %4 = arith.truncf %3 : vector<16x32xf32> to vector<16x32xbf16>
    %c0_4 = arith.constant 0 : index
    %c0_5 = arith.constant 0 : index
    %c0_6 = arith.constant 0 : index
    %5 = vector.load %arg4[%c0_4, %c0_5, %c0_6] : memref<1x16x32xbf16, #tpu.memory_space<vmem>>, vector<1x16x32xbf16>
    %6 = vector.shape_cast %5 : vector<1x16x32xbf16> to vector<16x32xbf16>
    %7 = vector.shape_cast %4 : vector<16x32xbf16> to vector<1x16x32xbf16>
    tpu.vector_store %arg4[%c0_4, %c0_5, %c0_6], %7 {strides = array<i32>} : memref<1x16x32xbf16, #tpu.memory_space<vmem>>, vector<1x16x32xbf16>,
    %c0_i32 = arith.constant 0 : i32
    %8 = arith.cmpi eq, %arg1, %c0_i32 : i32
    %9 = arith.extui %8 : i1 to i32
    %c0_i32_7 = arith.constant 0 : i32
    %10 = arith.cmpi ne, %9, %c0_i32_7 : i32
    scf.if %10 {
      %cst_22 = arith.constant 0.000000e+00 : f32
      %28 = vector.broadcast %cst_22 : f32 to vector<1x1x32xf32>
      %c0_23 = arith.constant 0 : index
      %c0_24 = arith.constant 0 : index
      %c0_25 = arith.constant 0 : index
      %29 = vector.load %arg5[%c0_23, %c0_24, %c0_25] : memref<1x1x32xf32, #tpu.memory_space<vmem>>, vector<1x1x32xf32>
      tpu.vector_store %arg5[%c0_23, %c0_24, %c0_25], %28 {strides = array<i32>} : memref<1x1x32xf32, #tpu.memory_space<vmem>>, vector<1x1x32xf32>,
      %cst_26 = arith.constant 0.000000e+00 : f32
      %30 = vector.broadcast %cst_26 : f32 to vector<1x1x32xf32>
      %c0_27 = arith.constant 0 : index
      %c0_28 = arith.constant 0 : index
      %c0_29 = arith.constant 0 : index
      %31 = vector.load %arg6[%c0_27, %c0_28, %c0_29] : memref<1x1x32xf32, #tpu.memory_space<vmem>>, vector<1x1x32xf32>
      tpu.vector_store %arg6[%c0_27, %c0_28, %c0_29], %30 {strides = array<i32>} : memref<1x1x32xf32, #tpu.memory_space<vmem>>, vector<1x1x32xf32>,
    } else {
    }
    %c0_8 = arith.constant 0 : index
    %c0_9 = arith.constant 0 : index
    %c0_10 = arith.constant 0 : index
    %11 = vector.load %arg5[%c0_8, %c0_9, %c0_10] : memref<1x1x32xf32, #tpu.memory_space<vmem>>, vector<1x1x32xf32>
    %12 = vector.shape_cast %11 : vector<1x1x32xf32> to vector<1x32xf32>
    %cst_11 = arith.constant dense<0.000000e+00> : vector<32xf32>
    %13 = vector.multi_reduction <add>, %3, %cst_11 [0] : vector<16x32xf32> to vector<32xf32>
    %14 = vector.shape_cast %13 : vector<32xf32> to vector<1x32xf32>
    %15 = arith.addf %12, %14 : vector<1x32xf32>
    %c0_12 = arith.constant 0 : index
    %c0_13 = arith.constant 0 : index
    %c0_14 = arith.constant 0 : index
    %16 = vector.load %arg5[%c0_12, %c0_13, %c0_14] : memref<1x1x32xf32, #tpu.memory_space<vmem>>, vector<1x1x32xf32>
    %17 = vector.shape_cast %16 : vector<1x1x32xf32> to vector<1x32xf32>
    %18 = vector.shape_cast %15 : vector<1x32xf32> to vector<1x1x32xf32>
    tpu.vector_store %arg5[%c0_12, %c0_13, %c0_14], %18 {strides = array<i32>} : memref<1x1x32xf32, #tpu.memory_space<vmem>>, vector<1x1x32xf32>,
    %c0_15 = arith.constant 0 : index
    %c0_16 = arith.constant 0 : index
    %c0_17 = arith.constant 0 : index
    %19 = vector.load %arg6[%c0_15, %c0_16, %c0_17] : memref<1x1x32xf32, #tpu.memory_space<vmem>>, vector<1x1x32xf32>
    %20 = vector.shape_cast %19 : vector<1x1x32xf32> to vector<1x32xf32>
    %21 = arith.mulf %3, %3 : vector<16x32xf32>
    %cst_18 = arith.constant dense<0.000000e+00> : vector<32xf32>
    %22 = vector.multi_reduction <add>, %21, %cst_18 [0] : vector<16x32xf32> to vector<32xf32>
    %23 = vector.shape_cast %22 : vector<32xf32> to vector<1x32xf32>
    %24 = arith.addf %20, %23 : vector<1x32xf32>
    %c0_19 = arith.constant 0 : index
    %c0_20 = arith.constant 0 : index
    %c0_21 = arith.constant 0 : index
    %25 = vector.load %arg6[%c0_19, %c0_20, %c0_21] : memref<1x1x32xf32, #tpu.memory_space<vmem>>, vector<1x1x32xf32>
    %26 = vector.shape_cast %25 : vector<1x1x32xf32> to vector<1x32xf32>
    %27 = vector.shape_cast %24 : vector<1x32xf32> to vector<1x1x32xf32>
    tpu.vector_store %arg6[%c0_19, %c0_20, %c0_21], %27 {strides = array<i32>} : memref<1x1x32xf32, #tpu.memory_space<vmem>>, vector<1x1x32xf32>,
    return
  }
  func.func @transform_0(%arg0: i32, %arg1: i32) -> (i32, i32, i32) {
    %c0_i32 = arith.constant 0 : i32
    %c0_i32_0 = arith.constant 0 : i32
    return %arg0, %arg1, %c0_i32 : i32, i32, i32
  }
  func.func @transform_1(%arg0: i32, %arg1: i32) -> (i32, i32) {
    %c0_i32 = arith.constant 0 : i32
    %c0_i32_0 = arith.constant 0 : i32
    %c0_i32_1 = arith.constant 0 : i32
    return %c0_i32, %c0_i32_0 : i32, i32
  }
  func.func @transform_2(%arg0: i32, %arg1: i32) -> (i32, i32, i32) {
    %c0_i32 = arith.constant 0 : i32
    %c0_i32_0 = arith.constant 0 : i32
    return %arg0, %arg1, %c0_i32 : i32, i32, i32
  }
  func.func @transform_3(%arg0: i32, %arg1: i32) -> (i32, i32, i32) {
    %c0_i32 = arith.constant 0 : i32
    %c0_i32_0 = arith.constant 0 : i32
    %c0_i32_1 = arith.constant 0 : i32
    return %arg0, %c0_i32, %c0_i32_0 : i32, i32, i32
  }
  func.func @transform_4(%arg0: i32, %arg1: i32) -> (i32, i32, i32) {
    %c0_i32 = arith.constant 0 : i32
    %c0_i32_0 = arith.constant 0 : i32
    %c0_i32_1 = arith.constant 0 : i32
    return %arg0, %c0_i32, %c0_i32_0 : i32, i32, i32
  }
}

module attributes {stable_mosaic.version = 11 : i64} {
  func.func @_conv_stats_kernel(%arg0: i32, %arg1: i32, %arg2: memref<1x16x1792xbf16, #tpu.memory_space<vmem>>, %arg3: memref<1792x64xbf16, #tpu.memory_space<vmem>>, %arg4: memref<1x16x64xbf16, #tpu.memory_space<vmem>>, %arg5: memref<1x1x64xf32, #tpu.memory_space<vmem>>, %arg6: memref<1x1x64xf32, #tpu.memory_space<vmem>>) attributes {dimension_semantics = [#tpu.dimension_semantics<parallel>, #tpu.dimension_semantics<arbitrary>], iteration_bounds = array<i64: 2, 1>, scalar_prefetch = 0 : i64, scratch_operands = 0 : i64, tpu.core_type = #tpu.core_type<tc>, window_params = [{transform_indices = @transform_0, window_bounds = array<i64: 1, 16, 1792>}, {pipeline_mode = #tpu.pipeline_mode<synchronous>, transform_indices = @transform_1, window_bounds = array<i64: 1792, 64>}, {transform_indices = @transform_2, window_bounds = array<i64: 1, 16, 64>}, {transform_indices = @transform_3, window_bounds = array<i64: 1, 1, 64>}, {transform_indices = @transform_4, window_bounds = array<i64: 1, 1, 64>}]} {
    %c0 = arith.constant 0 : index
    %c0_0 = arith.constant 0 : index
    %c0_1 = arith.constant 0 : index
    %0 = vector.load %arg2[%c0, %c0_0, %c0_1] : memref<1x16x1792xbf16, #tpu.memory_space<vmem>>, vector<1x16x1792xbf16>
    %1 = vector.shape_cast %0 : vector<1x16x1792xbf16> to vector<16x1792xbf16>
    %c0_2 = arith.constant 0 : index
    %c0_3 = arith.constant 0 : index
    %2 = vector.load %arg3[%c0_2, %c0_3] : memref<1792x64xbf16, #tpu.memory_space<vmem>>, vector<1792x64xbf16>
    %cst = arith.constant dense<0.000000e+00> : vector<16x64xf32>
    %3 = tpu.matmul %1, %2, %cst {dimension_numbers = #tpu.dot_dimension_numbers<[1], [0], [0], [1], [0, 0, 1, 1], [], []>} : vector<16x1792xbf16>, vector<1792x64xbf16>, vector<16x64xf32> -> vector<16x64xf32>
    %4 = arith.truncf %3 : vector<16x64xf32> to vector<16x64xbf16>
    %c0_4 = arith.constant 0 : index
    %c0_5 = arith.constant 0 : index
    %c0_6 = arith.constant 0 : index
    %5 = vector.load %arg4[%c0_4, %c0_5, %c0_6] : memref<1x16x64xbf16, #tpu.memory_space<vmem>>, vector<1x16x64xbf16>
    %6 = vector.shape_cast %5 : vector<1x16x64xbf16> to vector<16x64xbf16>
    %7 = vector.shape_cast %4 : vector<16x64xbf16> to vector<1x16x64xbf16>
    tpu.vector_store %arg4[%c0_4, %c0_5, %c0_6], %7 {strides = array<i32>} : memref<1x16x64xbf16, #tpu.memory_space<vmem>>, vector<1x16x64xbf16>,
    %c0_i32 = arith.constant 0 : i32
    %8 = arith.cmpi eq, %arg1, %c0_i32 : i32
    %9 = arith.extui %8 : i1 to i32
    %c0_i32_7 = arith.constant 0 : i32
    %10 = arith.cmpi ne, %9, %c0_i32_7 : i32
    scf.if %10 {
      %cst_22 = arith.constant 0.000000e+00 : f32
      %28 = vector.broadcast %cst_22 : f32 to vector<1x1x64xf32>
      %c0_23 = arith.constant 0 : index
      %c0_24 = arith.constant 0 : index
      %c0_25 = arith.constant 0 : index
      %29 = vector.load %arg5[%c0_23, %c0_24, %c0_25] : memref<1x1x64xf32, #tpu.memory_space<vmem>>, vector<1x1x64xf32>
      tpu.vector_store %arg5[%c0_23, %c0_24, %c0_25], %28 {strides = array<i32>} : memref<1x1x64xf32, #tpu.memory_space<vmem>>, vector<1x1x64xf32>,
      %cst_26 = arith.constant 0.000000e+00 : f32
      %30 = vector.broadcast %cst_26 : f32 to vector<1x1x64xf32>
      %c0_27 = arith.constant 0 : index
      %c0_28 = arith.constant 0 : index
      %c0_29 = arith.constant 0 : index
      %31 = vector.load %arg6[%c0_27, %c0_28, %c0_29] : memref<1x1x64xf32, #tpu.memory_space<vmem>>, vector<1x1x64xf32>
      tpu.vector_store %arg6[%c0_27, %c0_28, %c0_29], %30 {strides = array<i32>} : memref<1x1x64xf32, #tpu.memory_space<vmem>>, vector<1x1x64xf32>,
    } else {
    }
    %c0_8 = arith.constant 0 : index
    %c0_9 = arith.constant 0 : index
    %c0_10 = arith.constant 0 : index
    %11 = vector.load %arg5[%c0_8, %c0_9, %c0_10] : memref<1x1x64xf32, #tpu.memory_space<vmem>>, vector<1x1x64xf32>
    %12 = vector.shape_cast %11 : vector<1x1x64xf32> to vector<1x64xf32>
    %cst_11 = arith.constant dense<0.000000e+00> : vector<64xf32>
    %13 = vector.multi_reduction <add>, %3, %cst_11 [0] : vector<16x64xf32> to vector<64xf32>
    %14 = vector.shape_cast %13 : vector<64xf32> to vector<1x64xf32>
    %15 = arith.addf %12, %14 : vector<1x64xf32>
    %c0_12 = arith.constant 0 : index
    %c0_13 = arith.constant 0 : index
    %c0_14 = arith.constant 0 : index
    %16 = vector.load %arg5[%c0_12, %c0_13, %c0_14] : memref<1x1x64xf32, #tpu.memory_space<vmem>>, vector<1x1x64xf32>
    %17 = vector.shape_cast %16 : vector<1x1x64xf32> to vector<1x64xf32>
    %18 = vector.shape_cast %15 : vector<1x64xf32> to vector<1x1x64xf32>
    tpu.vector_store %arg5[%c0_12, %c0_13, %c0_14], %18 {strides = array<i32>} : memref<1x1x64xf32, #tpu.memory_space<vmem>>, vector<1x1x64xf32>,
    %c0_15 = arith.constant 0 : index
    %c0_16 = arith.constant 0 : index
    %c0_17 = arith.constant 0 : index
    %19 = vector.load %arg6[%c0_15, %c0_16, %c0_17] : memref<1x1x64xf32, #tpu.memory_space<vmem>>, vector<1x1x64xf32>
    %20 = vector.shape_cast %19 : vector<1x1x64xf32> to vector<1x64xf32>
    %21 = arith.mulf %3, %3 : vector<16x64xf32>
    %cst_18 = arith.constant dense<0.000000e+00> : vector<64xf32>
    %22 = vector.multi_reduction <add>, %21, %cst_18 [0] : vector<16x64xf32> to vector<64xf32>
    %23 = vector.shape_cast %22 : vector<64xf32> to vector<1x64xf32>
    %24 = arith.addf %20, %23 : vector<1x64xf32>
    %c0_19 = arith.constant 0 : index
    %c0_20 = arith.constant 0 : index
    %c0_21 = arith.constant 0 : index
    %25 = vector.load %arg6[%c0_19, %c0_20, %c0_21] : memref<1x1x64xf32, #tpu.memory_space<vmem>>, vector<1x1x64xf32>
    %26 = vector.shape_cast %25 : vector<1x1x64xf32> to vector<1x64xf32>
    %27 = vector.shape_cast %24 : vector<1x64xf32> to vector<1x1x64xf32>
    tpu.vector_store %arg6[%c0_19, %c0_20, %c0_21], %27 {strides = array<i32>} : memref<1x1x64xf32, #tpu.memory_space<vmem>>, vector<1x1x64xf32>,
    return
  }
  func.func @transform_0(%arg0: i32, %arg1: i32) -> (i32, i32, i32) {
    %c0_i32 = arith.constant 0 : i32
    %c0_i32_0 = arith.constant 0 : i32
    return %arg0, %arg1, %c0_i32 : i32, i32, i32
  }
  func.func @transform_1(%arg0: i32, %arg1: i32) -> (i32, i32) {
    %c0_i32 = arith.constant 0 : i32
    %c0_i32_0 = arith.constant 0 : i32
    %c0_i32_1 = arith.constant 0 : i32
    return %c0_i32, %c0_i32_0 : i32, i32
  }
  func.func @transform_2(%arg0: i32, %arg1: i32) -> (i32, i32, i32) {
    %c0_i32 = arith.constant 0 : i32
    %c0_i32_0 = arith.constant 0 : i32
    return %arg0, %arg1, %c0_i32 : i32, i32, i32
  }
  func.func @transform_3(%arg0: i32, %arg1: i32) -> (i32, i32, i32) {
    %c0_i32 = arith.constant 0 : i32
    %c0_i32_0 = arith.constant 0 : i32
    %c0_i32_1 = arith.constant 0 : i32
    return %arg0, %c0_i32, %c0_i32_0 : i32, i32, i32
  }
  func.func @transform_4(%arg0: i32, %arg1: i32) -> (i32, i32, i32) {
    %c0_i32 = arith.constant 0 : i32
    %c0_i32_0 = arith.constant 0 : i32
    %c0_i32_1 = arith.constant 0 : i32
    return %arg0, %c0_i32, %c0_i32_0 : i32, i32, i32
  }
}

module attributes {stable_mosaic.version = 11 : i64} {
  func.func @_conv_stats_kernel(%arg0: i32, %arg1: i32, %arg2: memref<1x16x512xbf16, #tpu.memory_space<vmem>>, %arg3: memref<512x256xbf16, #tpu.memory_space<vmem>>, %arg4: memref<1x16x256xbf16, #tpu.memory_space<vmem>>, %arg5: memref<1x1x256xf32, #tpu.memory_space<vmem>>, %arg6: memref<1x1x256xf32, #tpu.memory_space<vmem>>) attributes {dimension_semantics = [#tpu.dimension_semantics<parallel>, #tpu.dimension_semantics<arbitrary>], iteration_bounds = array<i64: 2, 1>, scalar_prefetch = 0 : i64, scratch_operands = 0 : i64, tpu.core_type = #tpu.core_type<tc>, window_params = [{transform_indices = @transform_0, window_bounds = array<i64: 1, 16, 512>}, {pipeline_mode = #tpu.pipeline_mode<synchronous>, transform_indices = @transform_1, window_bounds = array<i64: 512, 256>}, {transform_indices = @transform_2, window_bounds = array<i64: 1, 16, 256>}, {transform_indices = @transform_3, window_bounds = array<i64: 1, 1, 256>}, {transform_indices = @transform_4, window_bounds = array<i64: 1, 1, 256>}]} {
    %c0 = arith.constant 0 : index
    %c0_0 = arith.constant 0 : index
    %c0_1 = arith.constant 0 : index
    %0 = vector.load %arg2[%c0, %c0_0, %c0_1] : memref<1x16x512xbf16, #tpu.memory_space<vmem>>, vector<1x16x512xbf16>
    %1 = vector.shape_cast %0 : vector<1x16x512xbf16> to vector<16x512xbf16>
    %c0_2 = arith.constant 0 : index
    %c0_3 = arith.constant 0 : index
    %2 = vector.load %arg3[%c0_2, %c0_3] : memref<512x256xbf16, #tpu.memory_space<vmem>>, vector<512x256xbf16>
    %cst = arith.constant dense<0.000000e+00> : vector<16x256xf32>
    %3 = tpu.matmul %1, %2, %cst {dimension_numbers = #tpu.dot_dimension_numbers<[1], [0], [0], [1], [0, 0, 1, 1], [], []>} : vector<16x512xbf16>, vector<512x256xbf16>, vector<16x256xf32> -> vector<16x256xf32>
    %4 = arith.truncf %3 : vector<16x256xf32> to vector<16x256xbf16>
    %c0_4 = arith.constant 0 : index
    %c0_5 = arith.constant 0 : index
    %c0_6 = arith.constant 0 : index
    %5 = vector.load %arg4[%c0_4, %c0_5, %c0_6] : memref<1x16x256xbf16, #tpu.memory_space<vmem>>, vector<1x16x256xbf16>
    %6 = vector.shape_cast %5 : vector<1x16x256xbf16> to vector<16x256xbf16>
    %7 = vector.shape_cast %4 : vector<16x256xbf16> to vector<1x16x256xbf16>
    tpu.vector_store %arg4[%c0_4, %c0_5, %c0_6], %7 {strides = array<i32>} : memref<1x16x256xbf16, #tpu.memory_space<vmem>>, vector<1x16x256xbf16>,
    %c0_i32 = arith.constant 0 : i32
    %8 = arith.cmpi eq, %arg1, %c0_i32 : i32
    %9 = arith.extui %8 : i1 to i32
    %c0_i32_7 = arith.constant 0 : i32
    %10 = arith.cmpi ne, %9, %c0_i32_7 : i32
    scf.if %10 {
      %cst_22 = arith.constant 0.000000e+00 : f32
      %28 = vector.broadcast %cst_22 : f32 to vector<1x1x256xf32>
      %c0_23 = arith.constant 0 : index
      %c0_24 = arith.constant 0 : index
      %c0_25 = arith.constant 0 : index
      %29 = vector.load %arg5[%c0_23, %c0_24, %c0_25] : memref<1x1x256xf32, #tpu.memory_space<vmem>>, vector<1x1x256xf32>
      tpu.vector_store %arg5[%c0_23, %c0_24, %c0_25], %28 {strides = array<i32>} : memref<1x1x256xf32, #tpu.memory_space<vmem>>, vector<1x1x256xf32>,
      %cst_26 = arith.constant 0.000000e+00 : f32
      %30 = vector.broadcast %cst_26 : f32 to vector<1x1x256xf32>
      %c0_27 = arith.constant 0 : index
      %c0_28 = arith.constant 0 : index
      %c0_29 = arith.constant 0 : index
      %31 = vector.load %arg6[%c0_27, %c0_28, %c0_29] : memref<1x1x256xf32, #tpu.memory_space<vmem>>, vector<1x1x256xf32>
      tpu.vector_store %arg6[%c0_27, %c0_28, %c0_29], %30 {strides = array<i32>} : memref<1x1x256xf32, #tpu.memory_space<vmem>>, vector<1x1x256xf32>,
    } else {
    }
    %c0_8 = arith.constant 0 : index
    %c0_9 = arith.constant 0 : index
    %c0_10 = arith.constant 0 : index
    %11 = vector.load %arg5[%c0_8, %c0_9, %c0_10] : memref<1x1x256xf32, #tpu.memory_space<vmem>>, vector<1x1x256xf32>
    %12 = vector.shape_cast %11 : vector<1x1x256xf32> to vector<1x256xf32>
    %cst_11 = arith.constant dense<0.000000e+00> : vector<256xf32>
    %13 = vector.multi_reduction <add>, %3, %cst_11 [0] : vector<16x256xf32> to vector<256xf32>
    %14 = vector.shape_cast %13 : vector<256xf32> to vector<1x256xf32>
    %15 = arith.addf %12, %14 : vector<1x256xf32>
    %c0_12 = arith.constant 0 : index
    %c0_13 = arith.constant 0 : index
    %c0_14 = arith.constant 0 : index
    %16 = vector.load %arg5[%c0_12, %c0_13, %c0_14] : memref<1x1x256xf32, #tpu.memory_space<vmem>>, vector<1x1x256xf32>
    %17 = vector.shape_cast %16 : vector<1x1x256xf32> to vector<1x256xf32>
    %18 = vector.shape_cast %15 : vector<1x256xf32> to vector<1x1x256xf32>
    tpu.vector_store %arg5[%c0_12, %c0_13, %c0_14], %18 {strides = array<i32>} : memref<1x1x256xf32, #tpu.memory_space<vmem>>, vector<1x1x256xf32>,
    %c0_15 = arith.constant 0 : index
    %c0_16 = arith.constant 0 : index
    %c0_17 = arith.constant 0 : index
    %19 = vector.load %arg6[%c0_15, %c0_16, %c0_17] : memref<1x1x256xf32, #tpu.memory_space<vmem>>, vector<1x1x256xf32>
    %20 = vector.shape_cast %19 : vector<1x1x256xf32> to vector<1x256xf32>
    %21 = arith.mulf %3, %3 : vector<16x256xf32>
    %cst_18 = arith.constant dense<0.000000e+00> : vector<256xf32>
    %22 = vector.multi_reduction <add>, %21, %cst_18 [0] : vector<16x256xf32> to vector<256xf32>
    %23 = vector.shape_cast %22 : vector<256xf32> to vector<1x256xf32>
    %24 = arith.addf %20, %23 : vector<1x256xf32>
    %c0_19 = arith.constant 0 : index
    %c0_20 = arith.constant 0 : index
    %c0_21 = arith.constant 0 : index
    %25 = vector.load %arg6[%c0_19, %c0_20, %c0_21] : memref<1x1x256xf32, #tpu.memory_space<vmem>>, vector<1x1x256xf32>
    %26 = vector.shape_cast %25 : vector<1x1x256xf32> to vector<1x256xf32>
    %27 = vector.shape_cast %24 : vector<1x256xf32> to vector<1x1x256xf32>
    tpu.vector_store %arg6[%c0_19, %c0_20, %c0_21], %27 {strides = array<i32>} : memref<1x1x256xf32, #tpu.memory_space<vmem>>, vector<1x1x256xf32>,
    return
  }
  func.func @transform_0(%arg0: i32, %arg1: i32) -> (i32, i32, i32) {
    %c0_i32 = arith.constant 0 : i32
    %c0_i32_0 = arith.constant 0 : i32
    return %arg0, %arg1, %c0_i32 : i32, i32, i32
  }
  func.func @transform_1(%arg0: i32, %arg1: i32) -> (i32, i32) {
    %c0_i32 = arith.constant 0 : i32
    %c0_i32_0 = arith.constant 0 : i32
    %c0_i32_1 = arith.constant 0 : i32
    return %c0_i32, %c0_i32_0 : i32, i32
  }
  func.func @transform_2(%arg0: i32, %arg1: i32) -> (i32, i32, i32) {
    %c0_i32 = arith.constant 0 : i32
    %c0_i32_0 = arith.constant 0 : i32
    return %arg0, %arg1, %c0_i32 : i32, i32, i32
  }
  func.func @transform_3(%arg0: i32, %arg1: i32) -> (i32, i32, i32) {
    %c0_i32 = arith.constant 0 : i32
    %c0_i32_0 = arith.constant 0 : i32
    %c0_i32_1 = arith.constant 0 : i32
    return %arg0, %c0_i32, %c0_i32_0 : i32, i32, i32
  }
  func.func @transform_4(%arg0: i32, %arg1: i32) -> (i32, i32, i32) {
    %c0_i32 = arith.constant 0 : i32
    %c0_i32_0 = arith.constant 0 : i32
    %c0_i32_1 = arith.constant 0 : i32
    return %arg0, %c0_i32, %c0_i32_0 : i32, i32, i32
  }
}

module attributes {stable_mosaic.version = 11 : i64} {
  func.func @kernel(%arg0: i32, %arg1: i32, %arg2: memref<1x16x256xbf16, #tpu.memory_space<vmem>>, %arg3: memref<1x1x256xf32, #tpu.memory_space<vmem>>, %arg4: memref<1x1x256xf32, #tpu.memory_space<vmem>>, %arg5: memref<1x16x256xbf16, #tpu.memory_space<vmem>>, %arg6: memref<1x16x256xbf16, #tpu.memory_space<vmem>>) attributes {dimension_semantics = [#tpu.dimension_semantics<parallel>, #tpu.dimension_semantics<parallel>], iteration_bounds = array<i64: 2, 1>, scalar_prefetch = 0 : i64, scratch_operands = 0 : i64, tpu.core_type = #tpu.core_type<tc>, window_params = [{transform_indices = @transform_0, window_bounds = array<i64: 1, 16, 256>}, {transform_indices = @transform_1, window_bounds = array<i64: 1, 1, 256>}, {transform_indices = @transform_2, window_bounds = array<i64: 1, 1, 256>}, {transform_indices = @transform_3, window_bounds = array<i64: 1, 16, 256>}, {transform_indices = @transform_4, window_bounds = array<i64: 1, 16, 256>}]} {
    %c0 = arith.constant 0 : index
    %c0_0 = arith.constant 0 : index
    %c0_1 = arith.constant 0 : index
    %0 = vector.load %arg2[%c0, %c0_0, %c0_1] : memref<1x16x256xbf16, #tpu.memory_space<vmem>>, vector<1x16x256xbf16>
    %1 = vector.shape_cast %0 : vector<1x16x256xbf16> to vector<16x256xbf16>
    %2 = arith.extf %1 : vector<16x256xbf16> to vector<16x256xf32>
    %c0_2 = arith.constant 0 : index
    %c0_3 = arith.constant 0 : index
    %c0_4 = arith.constant 0 : index
    %3 = vector.load %arg3[%c0_2, %c0_3, %c0_4] : memref<1x1x256xf32, #tpu.memory_space<vmem>>, vector<1x1x256xf32>
    %4 = vector.shape_cast %3 : vector<1x1x256xf32> to vector<1x256xf32>
    %5 = vector.broadcast %4 : vector<1x256xf32> to vector<16x256xf32>
    %6 = arith.mulf %2, %5 : vector<16x256xf32>
    %c0_5 = arith.constant 0 : index
    %c0_6 = arith.constant 0 : index
    %c0_7 = arith.constant 0 : index
    %7 = vector.load %arg4[%c0_5, %c0_6, %c0_7] : memref<1x1x256xf32, #tpu.memory_space<vmem>>, vector<1x1x256xf32>
    %8 = vector.shape_cast %7 : vector<1x1x256xf32> to vector<1x256xf32>
    %9 = vector.broadcast %8 : vector<1x256xf32> to vector<16x256xf32>
    %10 = arith.addf %6, %9 : vector<16x256xf32>
    %cst = arith.constant 0.000000e+00 : f32
    %11 = vector.broadcast %cst : f32 to vector<16x256xf32>
    %12 = arith.maximumf %10, %11 : vector<16x256xf32>
    %c0_8 = arith.constant 0 : index
    %c0_9 = arith.constant 0 : index
    %c0_10 = arith.constant 0 : index
    %13 = vector.load %arg5[%c0_8, %c0_9, %c0_10] : memref<1x16x256xbf16, #tpu.memory_space<vmem>>, vector<1x16x256xbf16>
    %14 = vector.shape_cast %13 : vector<1x16x256xbf16> to vector<16x256xbf16>
    %15 = arith.extf %14 : vector<16x256xbf16> to vector<16x256xf32>
    %16 = arith.addf %12, %15 : vector<16x256xf32>
    %17 = arith.truncf %16 : vector<16x256xf32> to vector<16x256xbf16>
    %c0_11 = arith.constant 0 : index
    %c0_12 = arith.constant 0 : index
    %c0_13 = arith.constant 0 : index
    %18 = vector.load %arg6[%c0_11, %c0_12, %c0_13] : memref<1x16x256xbf16, #tpu.memory_space<vmem>>, vector<1x16x256xbf16>
    %19 = vector.shape_cast %18 : vector<1x16x256xbf16> to vector<16x256xbf16>
    %20 = vector.shape_cast %17 : vector<16x256xbf16> to vector<1x16x256xbf16>
    tpu.vector_store %arg6[%c0_11, %c0_12, %c0_13], %20 {strides = array<i32>} : memref<1x16x256xbf16, #tpu.memory_space<vmem>>, vector<1x16x256xbf16>,
    return
  }
  func.func @transform_0(%arg0: i32, %arg1: i32) -> (i32, i32, i32) {
    %c0_i32 = arith.constant 0 : i32
    %c0_i32_0 = arith.constant 0 : i32
    return %arg0, %arg1, %c0_i32 : i32, i32, i32
  }
  func.func @transform_1(%arg0: i32, %arg1: i32) -> (i32, i32, i32) {
    %c0_i32 = arith.constant 0 : i32
    %c0_i32_0 = arith.constant 0 : i32
    %c0_i32_1 = arith.constant 0 : i32
    return %arg0, %c0_i32, %c0_i32_0 : i32, i32, i32
  }
  func.func @transform_2(%arg0: i32, %arg1: i32) -> (i32, i32, i32) {
    %c0_i32 = arith.constant 0 : i32
    %c0_i32_0 = arith.constant 0 : i32
    %c0_i32_1 = arith.constant 0 : i32
    return %arg0, %c0_i32, %c0_i32_0 : i32, i32, i32
  }
  func.func @transform_3(%arg0: i32, %arg1: i32) -> (i32, i32, i32) {
    %c0_i32 = arith.constant 0 : i32
    %c0_i32_0 = arith.constant 0 : i32
    return %arg0, %arg1, %c0_i32 : i32, i32, i32
  }
  func.func @transform_4(%arg0: i32, %arg1: i32) -> (i32, i32, i32) {
    %c0_i32 = arith.constant 0 : i32
    %c0_i32_0 = arith.constant 0 : i32
    return %arg0, %arg1, %c0_i32 : i32, i32, i32
  }
}

module attributes {stable_mosaic.version = 11 : i64} {
  func.func @_conv_stats_kernel(%arg0: i32, %arg1: i32, %arg2: memref<1x16x256xbf16, #tpu.memory_space<vmem>>, %arg3: memref<256x128xbf16, #tpu.memory_space<vmem>>, %arg4: memref<1x16x128xbf16, #tpu.memory_space<vmem>>, %arg5: memref<1x1x128xf32, #tpu.memory_space<vmem>>, %arg6: memref<1x1x128xf32, #tpu.memory_space<vmem>>) attributes {dimension_semantics = [#tpu.dimension_semantics<parallel>, #tpu.dimension_semantics<arbitrary>], iteration_bounds = array<i64: 2, 1>, scalar_prefetch = 0 : i64, scratch_operands = 0 : i64, tpu.core_type = #tpu.core_type<tc>, window_params = [{transform_indices = @transform_0, window_bounds = array<i64: 1, 16, 256>}, {pipeline_mode = #tpu.pipeline_mode<synchronous>, transform_indices = @transform_1, window_bounds = array<i64: 256, 128>}, {transform_indices = @transform_2, window_bounds = array<i64: 1, 16, 128>}, {transform_indices = @transform_3, window_bounds = array<i64: 1, 1, 128>}, {transform_indices = @transform_4, window_bounds = array<i64: 1, 1, 128>}]} {
    %c0 = arith.constant 0 : index
    %c0_0 = arith.constant 0 : index
    %c0_1 = arith.constant 0 : index
    %0 = vector.load %arg2[%c0, %c0_0, %c0_1] : memref<1x16x256xbf16, #tpu.memory_space<vmem>>, vector<1x16x256xbf16>
    %1 = vector.shape_cast %0 : vector<1x16x256xbf16> to vector<16x256xbf16>
    %c0_2 = arith.constant 0 : index
    %c0_3 = arith.constant 0 : index
    %2 = vector.load %arg3[%c0_2, %c0_3] : memref<256x128xbf16, #tpu.memory_space<vmem>>, vector<256x128xbf16>
    %cst = arith.constant dense<0.000000e+00> : vector<16x128xf32>
    %3 = tpu.matmul %1, %2, %cst {dimension_numbers = #tpu.dot_dimension_numbers<[1], [0], [0], [1], [0, 0, 1, 1], [], []>} : vector<16x256xbf16>, vector<256x128xbf16>, vector<16x128xf32> -> vector<16x128xf32>
    %4 = arith.truncf %3 : vector<16x128xf32> to vector<16x128xbf16>
    %c0_4 = arith.constant 0 : index
    %c0_5 = arith.constant 0 : index
    %c0_6 = arith.constant 0 : index
    %5 = vector.load %arg4[%c0_4, %c0_5, %c0_6] : memref<1x16x128xbf16, #tpu.memory_space<vmem>>, vector<1x16x128xbf16>
    %6 = vector.shape_cast %5 : vector<1x16x128xbf16> to vector<16x128xbf16>
    %7 = vector.shape_cast %4 : vector<16x128xbf16> to vector<1x16x128xbf16>
    tpu.vector_store %arg4[%c0_4, %c0_5, %c0_6], %7 {strides = array<i32>} : memref<1x16x128xbf16, #tpu.memory_space<vmem>>, vector<1x16x128xbf16>,
    %c0_i32 = arith.constant 0 : i32
    %8 = arith.cmpi eq, %arg1, %c0_i32 : i32
    %9 = arith.extui %8 : i1 to i32
    %c0_i32_7 = arith.constant 0 : i32
    %10 = arith.cmpi ne, %9, %c0_i32_7 : i32
    scf.if %10 {
      %cst_22 = arith.constant 0.000000e+00 : f32
      %28 = vector.broadcast %cst_22 : f32 to vector<1x1x128xf32>
      %c0_23 = arith.constant 0 : index
      %c0_24 = arith.constant 0 : index
      %c0_25 = arith.constant 0 : index
      %29 = vector.load %arg5[%c0_23, %c0_24, %c0_25] : memref<1x1x128xf32, #tpu.memory_space<vmem>>, vector<1x1x128xf32>
      tpu.vector_store %arg5[%c0_23, %c0_24, %c0_25], %28 {strides = array<i32>} : memref<1x1x128xf32, #tpu.memory_space<vmem>>, vector<1x1x128xf32>,
      %cst_26 = arith.constant 0.000000e+00 : f32
      %30 = vector.broadcast %cst_26 : f32 to vector<1x1x128xf32>
      %c0_27 = arith.constant 0 : index
      %c0_28 = arith.constant 0 : index
      %c0_29 = arith.constant 0 : index
      %31 = vector.load %arg6[%c0_27, %c0_28, %c0_29] : memref<1x1x128xf32, #tpu.memory_space<vmem>>, vector<1x1x128xf32>
      tpu.vector_store %arg6[%c0_27, %c0_28, %c0_29], %30 {strides = array<i32>} : memref<1x1x128xf32, #tpu.memory_space<vmem>>, vector<1x1x128xf32>,
    } else {
    }
    %c0_8 = arith.constant 0 : index
    %c0_9 = arith.constant 0 : index
    %c0_10 = arith.constant 0 : index
    %11 = vector.load %arg5[%c0_8, %c0_9, %c0_10] : memref<1x1x128xf32, #tpu.memory_space<vmem>>, vector<1x1x128xf32>
    %12 = vector.shape_cast %11 : vector<1x1x128xf32> to vector<1x128xf32>
    %cst_11 = arith.constant dense<0.000000e+00> : vector<128xf32>
    %13 = vector.multi_reduction <add>, %3, %cst_11 [0] : vector<16x128xf32> to vector<128xf32>
    %14 = vector.shape_cast %13 : vector<128xf32> to vector<1x128xf32>
    %15 = arith.addf %12, %14 : vector<1x128xf32>
    %c0_12 = arith.constant 0 : index
    %c0_13 = arith.constant 0 : index
    %c0_14 = arith.constant 0 : index
    %16 = vector.load %arg5[%c0_12, %c0_13, %c0_14] : memref<1x1x128xf32, #tpu.memory_space<vmem>>, vector<1x1x128xf32>
    %17 = vector.shape_cast %16 : vector<1x1x128xf32> to vector<1x128xf32>
    %18 = vector.shape_cast %15 : vector<1x128xf32> to vector<1x1x128xf32>
    tpu.vector_store %arg5[%c0_12, %c0_13, %c0_14], %18 {strides = array<i32>} : memref<1x1x128xf32, #tpu.memory_space<vmem>>, vector<1x1x128xf32>,
    %c0_15 = arith.constant 0 : index
    %c0_16 = arith.constant 0 : index
    %c0_17 = arith.constant 0 : index
    %19 = vector.load %arg6[%c0_15, %c0_16, %c0_17] : memref<1x1x128xf32, #tpu.memory_space<vmem>>, vector<1x1x128xf32>
    %20 = vector.shape_cast %19 : vector<1x1x128xf32> to vector<1x128xf32>
    %21 = arith.mulf %3, %3 : vector<16x128xf32>
    %cst_18 = arith.constant dense<0.000000e+00> : vector<128xf32>
    %22 = vector.multi_reduction <add>, %21, %cst_18 [0] : vector<16x128xf32> to vector<128xf32>
    %23 = vector.shape_cast %22 : vector<128xf32> to vector<1x128xf32>
    %24 = arith.addf %20, %23 : vector<1x128xf32>
    %c0_19 = arith.constant 0 : index
    %c0_20 = arith.constant 0 : index
    %c0_21 = arith.constant 0 : index
    %25 = vector.load %arg6[%c0_19, %c0_20, %c0_21] : memref<1x1x128xf32, #tpu.memory_space<vmem>>, vector<1x1x128xf32>
    %26 = vector.shape_cast %25 : vector<1x1x128xf32> to vector<1x128xf32>
    %27 = vector.shape_cast %24 : vector<1x128xf32> to vector<1x1x128xf32>
    tpu.vector_store %arg6[%c0_19, %c0_20, %c0_21], %27 {strides = array<i32>} : memref<1x1x128xf32, #tpu.memory_space<vmem>>, vector<1x1x128xf32>,
    return
  }
  func.func @transform_0(%arg0: i32, %arg1: i32) -> (i32, i32, i32) {
    %c0_i32 = arith.constant 0 : i32
    %c0_i32_0 = arith.constant 0 : i32
    return %arg0, %arg1, %c0_i32 : i32, i32, i32
  }
  func.func @transform_1(%arg0: i32, %arg1: i32) -> (i32, i32) {
    %c0_i32 = arith.constant 0 : i32
    %c0_i32_0 = arith.constant 0 : i32
    %c0_i32_1 = arith.constant 0 : i32
    return %c0_i32, %c0_i32_0 : i32, i32
  }
  func.func @transform_2(%arg0: i32, %arg1: i32) -> (i32, i32, i32) {
    %c0_i32 = arith.constant 0 : i32
    %c0_i32_0 = arith.constant 0 : i32
    return %arg0, %arg1, %c0_i32 : i32, i32, i32
  }
  func.func @transform_3(%arg0: i32, %arg1: i32) -> (i32, i32, i32) {
    %c0_i32 = arith.constant 0 : i32
    %c0_i32_0 = arith.constant 0 : i32
    %c0_i32_1 = arith.constant 0 : i32
    return %arg0, %c0_i32, %c0_i32_0 : i32, i32, i32
  }
  func.func @transform_4(%arg0: i32, %arg1: i32) -> (i32, i32, i32) {
    %c0_i32 = arith.constant 0 : i32
    %c0_i32_0 = arith.constant 0 : i32
    %c0_i32_1 = arith.constant 0 : i32
    return %arg0, %c0_i32, %c0_i32_0 : i32, i32, i32
  }
}

module attributes {stable_mosaic.version = 11 : i64} {
  func.func @_conv_stats_kernel(%arg0: i32, %arg1: i32, %arg2: memref<1x64x512xbf16, #tpu.memory_space<vmem>>, %arg3: memref<512x16xbf16, #tpu.memory_space<vmem>>, %arg4: memref<1x64x16xbf16, #tpu.memory_space<vmem>>, %arg5: memref<1x1x16xf32, #tpu.memory_space<vmem>>, %arg6: memref<1x1x16xf32, #tpu.memory_space<vmem>>) attributes {dimension_semantics = [#tpu.dimension_semantics<parallel>, #tpu.dimension_semantics<arbitrary>], iteration_bounds = array<i64: 2, 1>, scalar_prefetch = 0 : i64, scratch_operands = 0 : i64, tpu.core_type = #tpu.core_type<tc>, window_params = [{transform_indices = @transform_0, window_bounds = array<i64: 1, 64, 512>}, {pipeline_mode = #tpu.pipeline_mode<synchronous>, transform_indices = @transform_1, window_bounds = array<i64: 512, 16>}, {transform_indices = @transform_2, window_bounds = array<i64: 1, 64, 16>}, {transform_indices = @transform_3, window_bounds = array<i64: 1, 1, 16>}, {transform_indices = @transform_4, window_bounds = array<i64: 1, 1, 16>}]} {
    %c0 = arith.constant 0 : index
    %c0_0 = arith.constant 0 : index
    %c0_1 = arith.constant 0 : index
    %0 = vector.load %arg2[%c0, %c0_0, %c0_1] : memref<1x64x512xbf16, #tpu.memory_space<vmem>>, vector<1x64x512xbf16>
    %1 = vector.shape_cast %0 : vector<1x64x512xbf16> to vector<64x512xbf16>
    %c0_2 = arith.constant 0 : index
    %c0_3 = arith.constant 0 : index
    %2 = vector.load %arg3[%c0_2, %c0_3] : memref<512x16xbf16, #tpu.memory_space<vmem>>, vector<512x16xbf16>
    %cst = arith.constant dense<0.000000e+00> : vector<64x16xf32>
    %3 = tpu.matmul %1, %2, %cst {dimension_numbers = #tpu.dot_dimension_numbers<[1], [0], [0], [1], [0, 0, 1, 1], [], []>} : vector<64x512xbf16>, vector<512x16xbf16>, vector<64x16xf32> -> vector<64x16xf32>
    %4 = arith.truncf %3 : vector<64x16xf32> to vector<64x16xbf16>
    %c0_4 = arith.constant 0 : index
    %c0_5 = arith.constant 0 : index
    %c0_6 = arith.constant 0 : index
    %5 = vector.load %arg4[%c0_4, %c0_5, %c0_6] : memref<1x64x16xbf16, #tpu.memory_space<vmem>>, vector<1x64x16xbf16>
    %6 = vector.shape_cast %5 : vector<1x64x16xbf16> to vector<64x16xbf16>
    %7 = vector.shape_cast %4 : vector<64x16xbf16> to vector<1x64x16xbf16>
    tpu.vector_store %arg4[%c0_4, %c0_5, %c0_6], %7 {strides = array<i32>} : memref<1x64x16xbf16, #tpu.memory_space<vmem>>, vector<1x64x16xbf16>,
    %c0_i32 = arith.constant 0 : i32
    %8 = arith.cmpi eq, %arg1, %c0_i32 : i32
    %9 = arith.extui %8 : i1 to i32
    %c0_i32_7 = arith.constant 0 : i32
    %10 = arith.cmpi ne, %9, %c0_i32_7 : i32
    scf.if %10 {
      %cst_22 = arith.constant 0.000000e+00 : f32
      %28 = vector.broadcast %cst_22 : f32 to vector<1x1x16xf32>
      %c0_23 = arith.constant 0 : index
      %c0_24 = arith.constant 0 : index
      %c0_25 = arith.constant 0 : index
      %29 = vector.load %arg5[%c0_23, %c0_24, %c0_25] : memref<1x1x16xf32, #tpu.memory_space<vmem>>, vector<1x1x16xf32>
      tpu.vector_store %arg5[%c0_23, %c0_24, %c0_25], %28 {strides = array<i32>} : memref<1x1x16xf32, #tpu.memory_space<vmem>>, vector<1x1x16xf32>,
      %cst_26 = arith.constant 0.000000e+00 : f32
      %30 = vector.broadcast %cst_26 : f32 to vector<1x1x16xf32>
      %c0_27 = arith.constant 0 : index
      %c0_28 = arith.constant 0 : index
      %c0_29 = arith.constant 0 : index
      %31 = vector.load %arg6[%c0_27, %c0_28, %c0_29] : memref<1x1x16xf32, #tpu.memory_space<vmem>>, vector<1x1x16xf32>
      tpu.vector_store %arg6[%c0_27, %c0_28, %c0_29], %30 {strides = array<i32>} : memref<1x1x16xf32, #tpu.memory_space<vmem>>, vector<1x1x16xf32>,
    } else {
    }
    %c0_8 = arith.constant 0 : index
    %c0_9 = arith.constant 0 : index
    %c0_10 = arith.constant 0 : index
    %11 = vector.load %arg5[%c0_8, %c0_9, %c0_10] : memref<1x1x16xf32, #tpu.memory_space<vmem>>, vector<1x1x16xf32>
    %12 = vector.shape_cast %11 : vector<1x1x16xf32> to vector<1x16xf32>
    %cst_11 = arith.constant dense<0.000000e+00> : vector<16xf32>
    %13 = vector.multi_reduction <add>, %3, %cst_11 [0] : vector<64x16xf32> to vector<16xf32>
    %14 = vector.shape_cast %13 : vector<16xf32> to vector<1x16xf32>
    %15 = arith.addf %12, %14 : vector<1x16xf32>
    %c0_12 = arith.constant 0 : index
    %c0_13 = arith.constant 0 : index
    %c0_14 = arith.constant 0 : index
    %16 = vector.load %arg5[%c0_12, %c0_13, %c0_14] : memref<1x1x16xf32, #tpu.memory_space<vmem>>, vector<1x1x16xf32>
    %17 = vector.shape_cast %16 : vector<1x1x16xf32> to vector<1x16xf32>
    %18 = vector.shape_cast %15 : vector<1x16xf32> to vector<1x1x16xf32>
    tpu.vector_store %arg5[%c0_12, %c0_13, %c0_14], %18 {strides = array<i32>} : memref<1x1x16xf32, #tpu.memory_space<vmem>>, vector<1x1x16xf32>,
    %c0_15 = arith.constant 0 : index
    %c0_16 = arith.constant 0 : index
    %c0_17 = arith.constant 0 : index
    %19 = vector.load %arg6[%c0_15, %c0_16, %c0_17] : memref<1x1x16xf32, #tpu.memory_space<vmem>>, vector<1x1x16xf32>
    %20 = vector.shape_cast %19 : vector<1x1x16xf32> to vector<1x16xf32>
    %21 = arith.mulf %3, %3 : vector<64x16xf32>
    %cst_18 = arith.constant dense<0.000000e+00> : vector<16xf32>
    %22 = vector.multi_reduction <add>, %21, %cst_18 [0] : vector<64x16xf32> to vector<16xf32>
    %23 = vector.shape_cast %22 : vector<16xf32> to vector<1x16xf32>
    %24 = arith.addf %20, %23 : vector<1x16xf32>
    %c0_19 = arith.constant 0 : index
    %c0_20 = arith.constant 0 : index
    %c0_21 = arith.constant 0 : index
    %25 = vector.load %arg6[%c0_19, %c0_20, %c0_21] : memref<1x1x16xf32, #tpu.memory_space<vmem>>, vector<1x1x16xf32>
    %26 = vector.shape_cast %25 : vector<1x1x16xf32> to vector<1x16xf32>
    %27 = vector.shape_cast %24 : vector<1x16xf32> to vector<1x1x16xf32>
    tpu.vector_store %arg6[%c0_19, %c0_20, %c0_21], %27 {strides = array<i32>} : memref<1x1x16xf32, #tpu.memory_space<vmem>>, vector<1x1x16xf32>,
    return
  }
  func.func @transform_0(%arg0: i32, %arg1: i32) -> (i32, i32, i32) {
    %c0_i32 = arith.constant 0 : i32
    %c0_i32_0 = arith.constant 0 : i32
    return %arg0, %arg1, %c0_i32 : i32, i32, i32
  }
  func.func @transform_1(%arg0: i32, %arg1: i32) -> (i32, i32) {
    %c0_i32 = arith.constant 0 : i32
    %c0_i32_0 = arith.constant 0 : i32
    %c0_i32_1 = arith.constant 0 : i32
    return %c0_i32, %c0_i32_0 : i32, i32
  }
  func.func @transform_2(%arg0: i32, %arg1: i32) -> (i32, i32, i32) {
    %c0_i32 = arith.constant 0 : i32
    %c0_i32_0 = arith.constant 0 : i32
    return %arg0, %arg1, %c0_i32 : i32, i32, i32
  }
  func.func @transform_3(%arg0: i32, %arg1: i32) -> (i32, i32, i32) {
    %c0_i32 = arith.constant 0 : i32
    %c0_i32_0 = arith.constant 0 : i32
    %c0_i32_1 = arith.constant 0 : i32
    return %arg0, %c0_i32, %c0_i32_0 : i32, i32, i32
  }
  func.func @transform_4(%arg0: i32, %arg1: i32) -> (i32, i32, i32) {
    %c0_i32 = arith.constant 0 : i32
    %c0_i32_0 = arith.constant 0 : i32
    %c0_i32_1 = arith.constant 0 : i32
    return %arg0, %c0_i32, %c0_i32_0 : i32, i32, i32
  }
}

module attributes {stable_mosaic.version = 11 : i64} {
  func.func @kernel(%arg0: i32, %arg1: i32, %arg2: memref<1x16x128xbf16, #tpu.memory_space<vmem>>, %arg3: memref<1x1x128xf32, #tpu.memory_space<vmem>>, %arg4: memref<1x1x128xf32, #tpu.memory_space<vmem>>, %arg5: memref<1x16x128xbf16, #tpu.memory_space<vmem>>, %arg6: memref<1x16x128xbf16, #tpu.memory_space<vmem>>) attributes {dimension_semantics = [#tpu.dimension_semantics<parallel>, #tpu.dimension_semantics<parallel>], iteration_bounds = array<i64: 2, 1>, scalar_prefetch = 0 : i64, scratch_operands = 0 : i64, tpu.core_type = #tpu.core_type<tc>, window_params = [{transform_indices = @transform_0, window_bounds = array<i64: 1, 16, 128>}, {transform_indices = @transform_1, window_bounds = array<i64: 1, 1, 128>}, {transform_indices = @transform_2, window_bounds = array<i64: 1, 1, 128>}, {transform_indices = @transform_3, window_bounds = array<i64: 1, 16, 128>}, {transform_indices = @transform_4, window_bounds = array<i64: 1, 16, 128>}]} {
    %c0 = arith.constant 0 : index
    %c0_0 = arith.constant 0 : index
    %c0_1 = arith.constant 0 : index
    %0 = vector.load %arg2[%c0, %c0_0, %c0_1] : memref<1x16x128xbf16, #tpu.memory_space<vmem>>, vector<1x16x128xbf16>
    %1 = vector.shape_cast %0 : vector<1x16x128xbf16> to vector<16x128xbf16>
    %2 = arith.extf %1 : vector<16x128xbf16> to vector<16x128xf32>
    %c0_2 = arith.constant 0 : index
    %c0_3 = arith.constant 0 : index
    %c0_4 = arith.constant 0 : index
    %3 = vector.load %arg3[%c0_2, %c0_3, %c0_4] : memref<1x1x128xf32, #tpu.memory_space<vmem>>, vector<1x1x128xf32>
    %4 = vector.shape_cast %3 : vector<1x1x128xf32> to vector<1x128xf32>
    %5 = vector.broadcast %4 : vector<1x128xf32> to vector<16x128xf32>
    %6 = arith.mulf %2, %5 : vector<16x128xf32>
    %c0_5 = arith.constant 0 : index
    %c0_6 = arith.constant 0 : index
    %c0_7 = arith.constant 0 : index
    %7 = vector.load %arg4[%c0_5, %c0_6, %c0_7] : memref<1x1x128xf32, #tpu.memory_space<vmem>>, vector<1x1x128xf32>
    %8 = vector.shape_cast %7 : vector<1x1x128xf32> to vector<1x128xf32>
    %9 = vector.broadcast %8 : vector<1x128xf32> to vector<16x128xf32>
    %10 = arith.addf %6, %9 : vector<16x128xf32>
    %cst = arith.constant 0.000000e+00 : f32
    %11 = vector.broadcast %cst : f32 to vector<16x128xf32>
    %12 = arith.maximumf %10, %11 : vector<16x128xf32>
    %c0_8 = arith.constant 0 : index
    %c0_9 = arith.constant 0 : index
    %c0_10 = arith.constant 0 : index
    %13 = vector.load %arg5[%c0_8, %c0_9, %c0_10] : memref<1x16x128xbf16, #tpu.memory_space<vmem>>, vector<1x16x128xbf16>
    %14 = vector.shape_cast %13 : vector<1x16x128xbf16> to vector<16x128xbf16>
    %15 = arith.extf %14 : vector<16x128xbf16> to vector<16x128xf32>
    %16 = arith.addf %12, %15 : vector<16x128xf32>
    %17 = arith.truncf %16 : vector<16x128xf32> to vector<16x128xbf16>
    %c0_11 = arith.constant 0 : index
    %c0_12 = arith.constant 0 : index
    %c0_13 = arith.constant 0 : index
    %18 = vector.load %arg6[%c0_11, %c0_12, %c0_13] : memref<1x16x128xbf16, #tpu.memory_space<vmem>>, vector<1x16x128xbf16>
    %19 = vector.shape_cast %18 : vector<1x16x128xbf16> to vector<16x128xbf16>
    %20 = vector.shape_cast %17 : vector<16x128xbf16> to vector<1x16x128xbf16>
    tpu.vector_store %arg6[%c0_11, %c0_12, %c0_13], %20 {strides = array<i32>} : memref<1x16x128xbf16, #tpu.memory_space<vmem>>, vector<1x16x128xbf16>,
    return
  }
  func.func @transform_0(%arg0: i32, %arg1: i32) -> (i32, i32, i32) {
    %c0_i32 = arith.constant 0 : i32
    %c0_i32_0 = arith.constant 0 : i32
    return %arg0, %arg1, %c0_i32 : i32, i32, i32
  }
  func.func @transform_1(%arg0: i32, %arg1: i32) -> (i32, i32, i32) {
    %c0_i32 = arith.constant 0 : i32
    %c0_i32_0 = arith.constant 0 : i32
    %c0_i32_1 = arith.constant 0 : i32
    return %arg0, %c0_i32, %c0_i32_0 : i32, i32, i32
  }
  func.func @transform_2(%arg0: i32, %arg1: i32) -> (i32, i32, i32) {
    %c0_i32 = arith.constant 0 : i32
    %c0_i32_0 = arith.constant 0 : i32
    %c0_i32_1 = arith.constant 0 : i32
    return %arg0, %c0_i32, %c0_i32_0 : i32, i32, i32
  }
  func.func @transform_3(%arg0: i32, %arg1: i32) -> (i32, i32, i32) {
    %c0_i32 = arith.constant 0 : i32
    %c0_i32_0 = arith.constant 0 : i32
    return %arg0, %arg1, %c0_i32 : i32, i32, i32
  }
  func.func @transform_4(%arg0: i32, %arg1: i32) -> (i32, i32, i32) {
    %c0_i32 = arith.constant 0 : i32
    %c0_i32_0 = arith.constant 0 : i32
    return %arg0, %arg1, %c0_i32 : i32, i32, i32
  }
}

module attributes {stable_mosaic.version = 11 : i64} {
  func.func @_conv_stats_kernel(%arg0: i32, %arg1: i32, %arg2: memref<1x64x128xbf16, #tpu.memory_space<vmem>>, %arg3: memref<128x64xbf16, #tpu.memory_space<vmem>>, %arg4: memref<1x64x64xbf16, #tpu.memory_space<vmem>>, %arg5: memref<1x1x64xf32, #tpu.memory_space<vmem>>, %arg6: memref<1x1x64xf32, #tpu.memory_space<vmem>>) attributes {dimension_semantics = [#tpu.dimension_semantics<parallel>, #tpu.dimension_semantics<arbitrary>], iteration_bounds = array<i64: 2, 1>, scalar_prefetch = 0 : i64, scratch_operands = 0 : i64, tpu.core_type = #tpu.core_type<tc>, window_params = [{transform_indices = @transform_0, window_bounds = array<i64: 1, 64, 128>}, {pipeline_mode = #tpu.pipeline_mode<synchronous>, transform_indices = @transform_1, window_bounds = array<i64: 128, 64>}, {transform_indices = @transform_2, window_bounds = array<i64: 1, 64, 64>}, {transform_indices = @transform_3, window_bounds = array<i64: 1, 1, 64>}, {transform_indices = @transform_4, window_bounds = array<i64: 1, 1, 64>}]} {
    %c0 = arith.constant 0 : index
    %c0_0 = arith.constant 0 : index
    %c0_1 = arith.constant 0 : index
    %0 = vector.load %arg2[%c0, %c0_0, %c0_1] : memref<1x64x128xbf16, #tpu.memory_space<vmem>>, vector<1x64x128xbf16>
    %1 = vector.shape_cast %0 : vector<1x64x128xbf16> to vector<64x128xbf16>
    %c0_2 = arith.constant 0 : index
    %c0_3 = arith.constant 0 : index
    %2 = vector.load %arg3[%c0_2, %c0_3] : memref<128x64xbf16, #tpu.memory_space<vmem>>, vector<128x64xbf16>
    %cst = arith.constant dense<0.000000e+00> : vector<64x64xf32>
    %3 = tpu.matmul %1, %2, %cst {dimension_numbers = #tpu.dot_dimension_numbers<[1], [0], [0], [1], [0, 0, 1, 1], [], []>} : vector<64x128xbf16>, vector<128x64xbf16>, vector<64x64xf32> -> vector<64x64xf32>
    %4 = arith.truncf %3 : vector<64x64xf32> to vector<64x64xbf16>
    %c0_4 = arith.constant 0 : index
    %c0_5 = arith.constant 0 : index
    %c0_6 = arith.constant 0 : index
    %5 = vector.load %arg4[%c0_4, %c0_5, %c0_6] : memref<1x64x64xbf16, #tpu.memory_space<vmem>>, vector<1x64x64xbf16>
    %6 = vector.shape_cast %5 : vector<1x64x64xbf16> to vector<64x64xbf16>
    %7 = vector.shape_cast %4 : vector<64x64xbf16> to vector<1x64x64xbf16>
    tpu.vector_store %arg4[%c0_4, %c0_5, %c0_6], %7 {strides = array<i32>} : memref<1x64x64xbf16, #tpu.memory_space<vmem>>, vector<1x64x64xbf16>,
    %c0_i32 = arith.constant 0 : i32
    %8 = arith.cmpi eq, %arg1, %c0_i32 : i32
    %9 = arith.extui %8 : i1 to i32
    %c0_i32_7 = arith.constant 0 : i32
    %10 = arith.cmpi ne, %9, %c0_i32_7 : i32
    scf.if %10 {
      %cst_22 = arith.constant 0.000000e+00 : f32
      %28 = vector.broadcast %cst_22 : f32 to vector<1x1x64xf32>
      %c0_23 = arith.constant 0 : index
      %c0_24 = arith.constant 0 : index
      %c0_25 = arith.constant 0 : index
      %29 = vector.load %arg5[%c0_23, %c0_24, %c0_25] : memref<1x1x64xf32, #tpu.memory_space<vmem>>, vector<1x1x64xf32>
      tpu.vector_store %arg5[%c0_23, %c0_24, %c0_25], %28 {strides = array<i32>} : memref<1x1x64xf32, #tpu.memory_space<vmem>>, vector<1x1x64xf32>,
      %cst_26 = arith.constant 0.000000e+00 : f32
      %30 = vector.broadcast %cst_26 : f32 to vector<1x1x64xf32>
      %c0_27 = arith.constant 0 : index
      %c0_28 = arith.constant 0 : index
      %c0_29 = arith.constant 0 : index
      %31 = vector.load %arg6[%c0_27, %c0_28, %c0_29] : memref<1x1x64xf32, #tpu.memory_space<vmem>>, vector<1x1x64xf32>
      tpu.vector_store %arg6[%c0_27, %c0_28, %c0_29], %30 {strides = array<i32>} : memref<1x1x64xf32, #tpu.memory_space<vmem>>, vector<1x1x64xf32>,
    } else {
    }
    %c0_8 = arith.constant 0 : index
    %c0_9 = arith.constant 0 : index
    %c0_10 = arith.constant 0 : index
    %11 = vector.load %arg5[%c0_8, %c0_9, %c0_10] : memref<1x1x64xf32, #tpu.memory_space<vmem>>, vector<1x1x64xf32>
    %12 = vector.shape_cast %11 : vector<1x1x64xf32> to vector<1x64xf32>
    %cst_11 = arith.constant dense<0.000000e+00> : vector<64xf32>
    %13 = vector.multi_reduction <add>, %3, %cst_11 [0] : vector<64x64xf32> to vector<64xf32>
    %14 = vector.shape_cast %13 : vector<64xf32> to vector<1x64xf32>
    %15 = arith.addf %12, %14 : vector<1x64xf32>
    %c0_12 = arith.constant 0 : index
    %c0_13 = arith.constant 0 : index
    %c0_14 = arith.constant 0 : index
    %16 = vector.load %arg5[%c0_12, %c0_13, %c0_14] : memref<1x1x64xf32, #tpu.memory_space<vmem>>, vector<1x1x64xf32>
    %17 = vector.shape_cast %16 : vector<1x1x64xf32> to vector<1x64xf32>
    %18 = vector.shape_cast %15 : vector<1x64xf32> to vector<1x1x64xf32>
    tpu.vector_store %arg5[%c0_12, %c0_13, %c0_14], %18 {strides = array<i32>} : memref<1x1x64xf32, #tpu.memory_space<vmem>>, vector<1x1x64xf32>,
    %c0_15 = arith.constant 0 : index
    %c0_16 = arith.constant 0 : index
    %c0_17 = arith.constant 0 : index
    %19 = vector.load %arg6[%c0_15, %c0_16, %c0_17] : memref<1x1x64xf32, #tpu.memory_space<vmem>>, vector<1x1x64xf32>
    %20 = vector.shape_cast %19 : vector<1x1x64xf32> to vector<1x64xf32>
    %21 = arith.mulf %3, %3 : vector<64x64xf32>
    %cst_18 = arith.constant dense<0.000000e+00> : vector<64xf32>
    %22 = vector.multi_reduction <add>, %21, %cst_18 [0] : vector<64x64xf32> to vector<64xf32>
    %23 = vector.shape_cast %22 : vector<64xf32> to vector<1x64xf32>
    %24 = arith.addf %20, %23 : vector<1x64xf32>
    %c0_19 = arith.constant 0 : index
    %c0_20 = arith.constant 0 : index
    %c0_21 = arith.constant 0 : index
    %25 = vector.load %arg6[%c0_19, %c0_20, %c0_21] : memref<1x1x64xf32, #tpu.memory_space<vmem>>, vector<1x1x64xf32>
    %26 = vector.shape_cast %25 : vector<1x1x64xf32> to vector<1x64xf32>
    %27 = vector.shape_cast %24 : vector<1x64xf32> to vector<1x1x64xf32>
    tpu.vector_store %arg6[%c0_19, %c0_20, %c0_21], %27 {strides = array<i32>} : memref<1x1x64xf32, #tpu.memory_space<vmem>>, vector<1x1x64xf32>,
    return
  }
  func.func @transform_0(%arg0: i32, %arg1: i32) -> (i32, i32, i32) {
    %c0_i32 = arith.constant 0 : i32
    %c0_i32_0 = arith.constant 0 : i32
    return %arg0, %arg1, %c0_i32 : i32, i32, i32
  }
  func.func @transform_1(%arg0: i32, %arg1: i32) -> (i32, i32) {
    %c0_i32 = arith.constant 0 : i32
    %c0_i32_0 = arith.constant 0 : i32
    %c0_i32_1 = arith.constant 0 : i32
    return %c0_i32, %c0_i32_0 : i32, i32
  }
  func.func @transform_2(%arg0: i32, %arg1: i32) -> (i32, i32, i32) {
    %c0_i32 = arith.constant 0 : i32
    %c0_i32_0 = arith.constant 0 : i32
    return %arg0, %arg1, %c0_i32 : i32, i32, i32
  }
  func.func @transform_3(%arg0: i32, %arg1: i32) -> (i32, i32, i32) {
    %c0_i32 = arith.constant 0 : i32
    %c0_i32_0 = arith.constant 0 : i32
    %c0_i32_1 = arith.constant 0 : i32
    return %arg0, %c0_i32, %c0_i32_0 : i32, i32, i32
  }
  func.func @transform_4(%arg0: i32, %arg1: i32) -> (i32, i32, i32) {
    %c0_i32 = arith.constant 0 : i32
    %c0_i32_0 = arith.constant 0 : i32
    %c0_i32_1 = arith.constant 0 : i32
    return %arg0, %c0_i32, %c0_i32_0 : i32, i32, i32
  }
}

module attributes {stable_mosaic.version = 11 : i64} {
  func.func @_conv_stats_kernel(%arg0: i32, %arg1: i32, %arg2: memref<1x256x896xbf16, #tpu.memory_space<vmem>>, %arg3: memref<896x8xbf16, #tpu.memory_space<vmem>>, %arg4: memref<1x256x8xbf16, #tpu.memory_space<vmem>>, %arg5: memref<1x1x8xf32, #tpu.memory_space<vmem>>, %arg6: memref<1x1x8xf32, #tpu.memory_space<vmem>>) attributes {dimension_semantics = [#tpu.dimension_semantics<parallel>, #tpu.dimension_semantics<arbitrary>], iteration_bounds = array<i64: 2, 2>, scalar_prefetch = 0 : i64, scratch_operands = 0 : i64, tpu.core_type = #tpu.core_type<tc>, window_params = [{transform_indices = @transform_0, window_bounds = array<i64: 1, 256, 896>}, {pipeline_mode = #tpu.pipeline_mode<synchronous>, transform_indices = @transform_1, window_bounds = array<i64: 896, 8>}, {transform_indices = @transform_2, window_bounds = array<i64: 1, 256, 8>}, {transform_indices = @transform_3, window_bounds = array<i64: 1, 1, 8>}, {transform_indices = @transform_4, window_bounds = array<i64: 1, 1, 8>}]} {
    %c0 = arith.constant 0 : index
    %c0_0 = arith.constant 0 : index
    %c0_1 = arith.constant 0 : index
    %0 = vector.load %arg2[%c0, %c0_0, %c0_1] : memref<1x256x896xbf16, #tpu.memory_space<vmem>>, vector<1x256x896xbf16>
    %1 = vector.shape_cast %0 : vector<1x256x896xbf16> to vector<256x896xbf16>
    %c0_2 = arith.constant 0 : index
    %c0_3 = arith.constant 0 : index
    %2 = vector.load %arg3[%c0_2, %c0_3] : memref<896x8xbf16, #tpu.memory_space<vmem>>, vector<896x8xbf16>
    %cst = arith.constant dense<0.000000e+00> : vector<256x8xf32>
    %3 = tpu.matmul %1, %2, %cst {dimension_numbers = #tpu.dot_dimension_numbers<[1], [0], [0], [1], [0, 0, 1, 1], [], []>} : vector<256x896xbf16>, vector<896x8xbf16>, vector<256x8xf32> -> vector<256x8xf32>
    %4 = arith.truncf %3 : vector<256x8xf32> to vector<256x8xbf16>
    %c0_4 = arith.constant 0 : index
    %c0_5 = arith.constant 0 : index
    %c0_6 = arith.constant 0 : index
    %5 = vector.load %arg4[%c0_4, %c0_5, %c0_6] : memref<1x256x8xbf16, #tpu.memory_space<vmem>>, vector<1x256x8xbf16>
    %6 = vector.shape_cast %5 : vector<1x256x8xbf16> to vector<256x8xbf16>
    %7 = vector.shape_cast %4 : vector<256x8xbf16> to vector<1x256x8xbf16>
    tpu.vector_store %arg4[%c0_4, %c0_5, %c0_6], %7 {strides = array<i32>} : memref<1x256x8xbf16, #tpu.memory_space<vmem>>, vector<1x256x8xbf16>,
    %c0_i32 = arith.constant 0 : i32
    %8 = arith.cmpi eq, %arg1, %c0_i32 : i32
    %9 = arith.extui %8 : i1 to i32
    %c0_i32_7 = arith.constant 0 : i32
    %10 = arith.cmpi ne, %9, %c0_i32_7 : i32
    scf.if %10 {
      %cst_22 = arith.constant 0.000000e+00 : f32
      %28 = vector.broadcast %cst_22 : f32 to vector<1x1x8xf32>
      %c0_23 = arith.constant 0 : index
      %c0_24 = arith.constant 0 : index
      %c0_25 = arith.constant 0 : index
      %29 = vector.load %arg5[%c0_23, %c0_24, %c0_25] : memref<1x1x8xf32, #tpu.memory_space<vmem>>, vector<1x1x8xf32>
      tpu.vector_store %arg5[%c0_23, %c0_24, %c0_25], %28 {strides = array<i32>} : memref<1x1x8xf32, #tpu.memory_space<vmem>>, vector<1x1x8xf32>,
      %cst_26 = arith.constant 0.000000e+00 : f32
      %30 = vector.broadcast %cst_26 : f32 to vector<1x1x8xf32>
      %c0_27 = arith.constant 0 : index
      %c0_28 = arith.constant 0 : index
      %c0_29 = arith.constant 0 : index
      %31 = vector.load %arg6[%c0_27, %c0_28, %c0_29] : memref<1x1x8xf32, #tpu.memory_space<vmem>>, vector<1x1x8xf32>
      tpu.vector_store %arg6[%c0_27, %c0_28, %c0_29], %30 {strides = array<i32>} : memref<1x1x8xf32, #tpu.memory_space<vmem>>, vector<1x1x8xf32>,
    } else {
    }
    %c0_8 = arith.constant 0 : index
    %c0_9 = arith.constant 0 : index
    %c0_10 = arith.constant 0 : index
    %11 = vector.load %arg5[%c0_8, %c0_9, %c0_10] : memref<1x1x8xf32, #tpu.memory_space<vmem>>, vector<1x1x8xf32>
    %12 = vector.shape_cast %11 : vector<1x1x8xf32> to vector<1x8xf32>
    %cst_11 = arith.constant dense<0.000000e+00> : vector<8xf32>
    %13 = vector.multi_reduction <add>, %3, %cst_11 [0] : vector<256x8xf32> to vector<8xf32>
    %14 = vector.shape_cast %13 : vector<8xf32> to vector<1x8xf32>
    %15 = arith.addf %12, %14 : vector<1x8xf32>
    %c0_12 = arith.constant 0 : index
    %c0_13 = arith.constant 0 : index
    %c0_14 = arith.constant 0 : index
    %16 = vector.load %arg5[%c0_12, %c0_13, %c0_14] : memref<1x1x8xf32, #tpu.memory_space<vmem>>, vector<1x1x8xf32>
    %17 = vector.shape_cast %16 : vector<1x1x8xf32> to vector<1x8xf32>
    %18 = vector.shape_cast %15 : vector<1x8xf32> to vector<1x1x8xf32>
    tpu.vector_store %arg5[%c0_12, %c0_13, %c0_14], %18 {strides = array<i32>} : memref<1x1x8xf32, #tpu.memory_space<vmem>>, vector<1x1x8xf32>,
    %c0_15 = arith.constant 0 : index
    %c0_16 = arith.constant 0 : index
    %c0_17 = arith.constant 0 : index
    %19 = vector.load %arg6[%c0_15, %c0_16, %c0_17] : memref<1x1x8xf32, #tpu.memory_space<vmem>>, vector<1x1x8xf32>
    %20 = vector.shape_cast %19 : vector<1x1x8xf32> to vector<1x8xf32>
    %21 = arith.mulf %3, %3 : vector<256x8xf32>
    %cst_18 = arith.constant dense<0.000000e+00> : vector<8xf32>
    %22 = vector.multi_reduction <add>, %21, %cst_18 [0] : vector<256x8xf32> to vector<8xf32>
    %23 = vector.shape_cast %22 : vector<8xf32> to vector<1x8xf32>
    %24 = arith.addf %20, %23 : vector<1x8xf32>
    %c0_19 = arith.constant 0 : index
    %c0_20 = arith.constant 0 : index
    %c0_21 = arith.constant 0 : index
    %25 = vector.load %arg6[%c0_19, %c0_20, %c0_21] : memref<1x1x8xf32, #tpu.memory_space<vmem>>, vector<1x1x8xf32>
    %26 = vector.shape_cast %25 : vector<1x1x8xf32> to vector<1x8xf32>
    %27 = vector.shape_cast %24 : vector<1x8xf32> to vector<1x1x8xf32>
    tpu.vector_store %arg6[%c0_19, %c0_20, %c0_21], %27 {strides = array<i32>} : memref<1x1x8xf32, #tpu.memory_space<vmem>>, vector<1x1x8xf32>,
    return
  }
  func.func @transform_0(%arg0: i32, %arg1: i32) -> (i32, i32, i32) {
    %c0_i32 = arith.constant 0 : i32
    %c0_i32_0 = arith.constant 0 : i32
    return %arg0, %arg1, %c0_i32 : i32, i32, i32
  }
  func.func @transform_1(%arg0: i32, %arg1: i32) -> (i32, i32) {
    %c0_i32 = arith.constant 0 : i32
    %c0_i32_0 = arith.constant 0 : i32
    %c0_i32_1 = arith.constant 0 : i32
    return %c0_i32, %c0_i32_0 : i32, i32
  }
  func.func @transform_2(%arg0: i32, %arg1: i32) -> (i32, i32, i32) {
    %c0_i32 = arith.constant 0 : i32
    %c0_i32_0 = arith.constant 0 : i32
    return %arg0, %arg1, %c0_i32 : i32, i32, i32
  }
  func.func @transform_3(%arg0: i32, %arg1: i32) -> (i32, i32, i32) {
    %c0_i32 = arith.constant 0 : i32
    %c0_i32_0 = arith.constant 0 : i32
    %c0_i32_1 = arith.constant 0 : i32
    return %arg0, %c0_i32, %c0_i32_0 : i32, i32, i32
  }
  func.func @transform_4(%arg0: i32, %arg1: i32) -> (i32, i32, i32) {
    %c0_i32 = arith.constant 0 : i32
    %c0_i32_0 = arith.constant 0 : i32
    %c0_i32_1 = arith.constant 0 : i32
    return %arg0, %c0_i32, %c0_i32_0 : i32, i32, i32
  }
}

module attributes {stable_mosaic.version = 11 : i64} {
  func.func @kernel(%arg0: i32, %arg1: i32, %arg2: memref<1x16x128xbf16, #tpu.memory_space<vmem>>, %arg3: memref<1x1x128xf32, #tpu.memory_space<vmem>>, %arg4: memref<1x1x128xf32, #tpu.memory_space<vmem>>, %arg5: memref<1x16x128xbf16, #tpu.memory_space<vmem>>) attributes {dimension_semantics = [#tpu.dimension_semantics<parallel>, #tpu.dimension_semantics<parallel>], iteration_bounds = array<i64: 2, 2>, scalar_prefetch = 0 : i64, scratch_operands = 0 : i64, tpu.core_type = #tpu.core_type<tc>, window_params = [{transform_indices = @transform_0, window_bounds = array<i64: 1, 16, 128>}, {transform_indices = @transform_1, window_bounds = array<i64: 1, 1, 128>}, {transform_indices = @transform_2, window_bounds = array<i64: 1, 1, 128>}, {transform_indices = @transform_3, window_bounds = array<i64: 1, 16, 128>}]} {
    %c0 = arith.constant 0 : index
    %c0_0 = arith.constant 0 : index
    %c0_1 = arith.constant 0 : index
    %0 = vector.load %arg2[%c0, %c0_0, %c0_1] : memref<1x16x128xbf16, #tpu.memory_space<vmem>>, vector<1x16x128xbf16>
    %1 = vector.shape_cast %0 : vector<1x16x128xbf16> to vector<16x128xbf16>
    %2 = arith.extf %1 : vector<16x128xbf16> to vector<16x128xf32>
    %c0_2 = arith.constant 0 : index
    %c0_3 = arith.constant 0 : index
    %c0_4 = arith.constant 0 : index
    %3 = vector.load %arg3[%c0_2, %c0_3, %c0_4] : memref<1x1x128xf32, #tpu.memory_space<vmem>>, vector<1x1x128xf32>
    %4 = vector.shape_cast %3 : vector<1x1x128xf32> to vector<1x128xf32>
    %5 = vector.broadcast %4 : vector<1x128xf32> to vector<16x128xf32>
    %6 = arith.mulf %2, %5 : vector<16x128xf32>
    %c0_5 = arith.constant 0 : index
    %c0_6 = arith.constant 0 : index
    %c0_7 = arith.constant 0 : index
    %7 = vector.load %arg4[%c0_5, %c0_6, %c0_7] : memref<1x1x128xf32, #tpu.memory_space<vmem>>, vector<1x1x128xf32>
    %8 = vector.shape_cast %7 : vector<1x1x128xf32> to vector<1x128xf32>
    %9 = vector.broadcast %8 : vector<1x128xf32> to vector<16x128xf32>
    %10 = arith.addf %6, %9 : vector<16x128xf32>
    %cst = arith.constant 0.000000e+00 : f32
    %11 = vector.broadcast %cst : f32 to vector<16x128xf32>
    %12 = arith.maximumf %10, %11 : vector<16x128xf32>
    %13 = arith.truncf %12 : vector<16x128xf32> to vector<16x128xbf16>
    %c0_8 = arith.constant 0 : index
    %c0_9 = arith.constant 0 : index
    %c0_10 = arith.constant 0 : index
    %14 = vector.load %arg5[%c0_8, %c0_9, %c0_10] : memref<1x16x128xbf16, #tpu.memory_space<vmem>>, vector<1x16x128xbf16>
    %15 = vector.shape_cast %14 : vector<1x16x128xbf16> to vector<16x128xbf16>
    %16 = vector.shape_cast %13 : vector<16x128xbf16> to vector<1x16x128xbf16>
    tpu.vector_store %arg5[%c0_8, %c0_9, %c0_10], %16 {strides = array<i32>} : memref<1x16x128xbf16, #tpu.memory_space<vmem>>, vector<1x16x128xbf16>,
    return
  }
  func.func @transform_0(%arg0: i32, %arg1: i32) -> (i32, i32, i32) {
    %c0_i32 = arith.constant 0 : i32
    %c0_i32_0 = arith.constant 0 : i32
    return %arg0, %arg1, %c0_i32 : i32, i32, i32
  }
  func.func @transform_1(%arg0: i32, %arg1: i32) -> (i32, i32, i32) {
    %c0_i32 = arith.constant 0 : i32
    %c0_i32_0 = arith.constant 0 : i32
    %c0_i32_1 = arith.constant 0 : i32
    return %arg0, %c0_i32, %c0_i32_0 : i32, i32, i32
  }
  func.func @transform_2(%arg0: i32, %arg1: i32) -> (i32, i32, i32) {
    %c0_i32 = arith.constant 0 : i32
    %c0_i32_0 = arith.constant 0 : i32
    %c0_i32_1 = arith.constant 0 : i32
    return %arg0, %c0_i32, %c0_i32_0 : i32, i32, i32
  }
  func.func @transform_3(%arg0: i32, %arg1: i32) -> (i32, i32, i32) {
    %c0_i32 = arith.constant 0 : i32
    %c0_i32_0 = arith.constant 0 : i32
    return %arg0, %arg1, %c0_i32 : i32, i32, i32
  }
}

module attributes {stable_mosaic.version = 11 : i64} {
  func.func @kernel(%arg0: i32, %arg1: i32, %arg2: memref<1x64x64xbf16, #tpu.memory_space<vmem>>, %arg3: memref<1x1x64xf32, #tpu.memory_space<vmem>>, %arg4: memref<1x1x64xf32, #tpu.memory_space<vmem>>, %arg5: memref<1x64x64xbf16, #tpu.memory_space<vmem>>, %arg6: memref<64x8xf32, #tpu.memory_space<vmem>>, %arg7: memref<1x64x8xf32, #tpu.memory_space<vmem>>) attributes {dimension_semantics = [#tpu.dimension_semantics<parallel>, #tpu.dimension_semantics<parallel>], iteration_bounds = array<i64: 2, 1>, scalar_prefetch = 0 : i64, scratch_operands = 0 : i64, tpu.core_type = #tpu.core_type<tc>, window_params = [{transform_indices = @transform_0, window_bounds = array<i64: 1, 64, 64>}, {transform_indices = @transform_1, window_bounds = array<i64: 1, 1, 64>}, {transform_indices = @transform_2, window_bounds = array<i64: 1, 1, 64>}, {transform_indices = @transform_3, window_bounds = array<i64: 1, 64, 64>}, {pipeline_mode = #tpu.pipeline_mode<synchronous>, transform_indices = @transform_4, window_bounds = array<i64: 64, 8>}, {transform_indices = @transform_5, window_bounds = array<i64: 1, 64, 8>}]} {
    %c0 = arith.constant 0 : index
    %c0_0 = arith.constant 0 : index
    %c0_1 = arith.constant 0 : index
    %0 = vector.load %arg2[%c0, %c0_0, %c0_1] : memref<1x64x64xbf16, #tpu.memory_space<vmem>>, vector<1x64x64xbf16>
    %1 = vector.shape_cast %0 : vector<1x64x64xbf16> to vector<64x64xbf16>
    %2 = arith.extf %1 : vector<64x64xbf16> to vector<64x64xf32>
    %c0_2 = arith.constant 0 : index
    %c0_3 = arith.constant 0 : index
    %c0_4 = arith.constant 0 : index
    %3 = vector.load %arg3[%c0_2, %c0_3, %c0_4] : memref<1x1x64xf32, #tpu.memory_space<vmem>>, vector<1x1x64xf32>
    %4 = vector.shape_cast %3 : vector<1x1x64xf32> to vector<1x64xf32>
    %5 = vector.broadcast %4 : vector<1x64xf32> to vector<64x64xf32>
    %6 = arith.mulf %2, %5 : vector<64x64xf32>
    %c0_5 = arith.constant 0 : index
    %c0_6 = arith.constant 0 : index
    %c0_7 = arith.constant 0 : index
    %7 = vector.load %arg4[%c0_5, %c0_6, %c0_7] : memref<1x1x64xf32, #tpu.memory_space<vmem>>, vector<1x1x64xf32>
    %8 = vector.shape_cast %7 : vector<1x1x64xf32> to vector<1x64xf32>
    %9 = vector.broadcast %8 : vector<1x64xf32> to vector<64x64xf32>
    %10 = arith.addf %6, %9 : vector<64x64xf32>
    %cst = arith.constant 0.000000e+00 : f32
    %11 = vector.broadcast %cst : f32 to vector<64x64xf32>
    %12 = arith.maximumf %10, %11 : vector<64x64xf32>
    %c0_8 = arith.constant 0 : index
    %c0_9 = arith.constant 0 : index
    %c0_10 = arith.constant 0 : index
    %13 = vector.load %arg5[%c0_8, %c0_9, %c0_10] : memref<1x64x64xbf16, #tpu.memory_space<vmem>>, vector<1x64x64xbf16>
    %14 = vector.shape_cast %13 : vector<1x64x64xbf16> to vector<64x64xbf16>
    %15 = arith.extf %14 : vector<64x64xbf16> to vector<64x64xf32>
    %16 = arith.addf %12, %15 : vector<64x64xf32>
    %c0_11 = arith.constant 0 : index
    %c0_12 = arith.constant 0 : index
    %17 = vector.load %arg6[%c0_11, %c0_12] : memref<64x8xf32, #tpu.memory_space<vmem>>, vector<64x8xf32>
    %cst_13 = arith.constant dense<0.000000e+00> : vector<64x8xf32>
    %18 = tpu.matmul %16, %17, %cst_13 {dimension_numbers = #tpu.dot_dimension_numbers<[1], [0], [0], [1], [0, 0, 1, 1], [], []>} : vector<64x64xf32>, vector<64x8xf32>, vector<64x8xf32> -> vector<64x8xf32>
    %c0_14 = arith.constant 0 : index
    %c0_15 = arith.constant 0 : index
    %c0_16 = arith.constant 0 : index
    %19 = vector.load %arg7[%c0_14, %c0_15, %c0_16] : memref<1x64x8xf32, #tpu.memory_space<vmem>>, vector<1x64x8xf32>
    %20 = vector.shape_cast %19 : vector<1x64x8xf32> to vector<64x8xf32>
    %21 = vector.shape_cast %18 : vector<64x8xf32> to vector<1x64x8xf32>
    tpu.vector_store %arg7[%c0_14, %c0_15, %c0_16], %21 {strides = array<i32>} : memref<1x64x8xf32, #tpu.memory_space<vmem>>, vector<1x64x8xf32>,
    return
  }
  func.func @transform_0(%arg0: i32, %arg1: i32) -> (i32, i32, i32) {
    %c0_i32 = arith.constant 0 : i32
    %c0_i32_0 = arith.constant 0 : i32
    return %arg0, %arg1, %c0_i32 : i32, i32, i32
  }
  func.func @transform_1(%arg0: i32, %arg1: i32) -> (i32, i32, i32) {
    %c0_i32 = arith.constant 0 : i32
    %c0_i32_0 = arith.constant 0 : i32
    %c0_i32_1 = arith.constant 0 : i32
    return %arg0, %c0_i32, %c0_i32_0 : i32, i32, i32
  }
  func.func @transform_2(%arg0: i32, %arg1: i32) -> (i32, i32, i32) {
    %c0_i32 = arith.constant 0 : i32
    %c0_i32_0 = arith.constant 0 : i32
    %c0_i32_1 = arith.constant 0 : i32
    return %arg0, %c0_i32, %c0_i32_0 : i32, i32, i32
  }
  func.func @transform_3(%arg0: i32, %arg1: i32) -> (i32, i32, i32) {
    %c0_i32 = arith.constant 0 : i32
    %c0_i32_0 = arith.constant 0 : i32
    return %arg0, %arg1, %c0_i32 : i32, i32, i32
  }
  func.func @transform_4(%arg0: i32, %arg1: i32) -> (i32, i32) {
    %c0_i32 = arith.constant 0 : i32
    %c0_i32_0 = arith.constant 0 : i32
    %c0_i32_1 = arith.constant 0 : i32
    return %c0_i32, %c0_i32_0 : i32, i32
  }
  func.func @transform_5(%arg0: i32, %arg1: i32) -> (i32, i32, i32) {
    %c0_i32 = arith.constant 0 : i32
    %c0_i32_0 = arith.constant 0 : i32
    return %arg0, %arg1, %c0_i32 : i32, i32, i32
  }
}

</mosaic_0001>

<bundles_post_ra>
// kernel: squeeze.23
= control target key start
LH: loop header
LB: loop body
LE: loop exit
PB: predicated region body
PF: predicated region fallthrough
CT: control target
= control target key end

     0   :  { %vm7_vm0 = vcmask 64512   ;;  %s48_s0 = inlined_call_operand.vmem [shape: f32[2,16], index: 0, kind: input, shape index: {}]   ;;  %s49_s1 = inlined_call_operand.vmem [shape: f32[2,2,8], index: 1, kind: output, shape index: {}]  }
   0x1   :  { %v4_v0 = vld [vmem:[%s48_s0] sm:$0x3]  ;;  %s28_s0 = smov 120  }
   0x2   :  { %5 = vst [vmem:[#allocation1] sm:$0x3] %v4_v0 }
   0x9   :  { %v9_v1 = vld [vmem:[#allocation1] sm:$0x3]  }
   0xa   :  { %v6_v2 = vld [vmem:[#allocation1] sm:$0x3]   ;;  %10 = vrot.lane.b32.xlu0 %v9_v1, %s28_s0 }
   0xb   :  { %8 = vst.msk [vmem:[#allocation0] ss:$8 sm:$0x3] %vm7_vm0, %v6_v2  }
  0x7c   :  { %v11_v3 = vpop.permute.xlu0 %10  }
  0x7d   :  { %14 = vst.msk [vmem:[#allocation0 + $0x1] ss:$8 sm:$0x3] %vm7_vm0, %v11_v3  }
  0x84   :  { %v18_v4 = vld [vmem:[#allocation0] sm:$0x3]  ;;  %v22_v5 = vld [vmem:[#allocation0 + $0x8] sm:$0x3] }
  0x85   :  { %20 = vst [vmem:[%s49_s1] sm:$0x3] %v18_v4  ;;  %26 = vst [vmem:[%s49_s1 + $0x2] sm:$0x3] %v22_v5 }

// kernel: _lambda_.23
= control target key start
LH: loop header
LB: loop body
LE: loop exit
PB: predicated region body
PF: predicated region fallthrough
CT: control target
= control target key end

     0   :  { %s417_s12 = smov 0   ;;  %s419_s13 = smov 0   ;;  %s449_s0 = inlined_call_operand.vmem [shape: bf16[2,8,128], index: 0, kind: input, shape index: {}]   ;;  %s450_s1 = inlined_call_operand.vmem [shape: f32[2,1,128], index: 1, kind: input, shape index: {}]   ;;  %s451_s2 = inlined_call_operand.vmem [shape: f32[2,1,128], index: 2, kind: input, shape index: {}]   ;;  %s452_s3 = inlined_call_operand.vmem [shape: bf16[2,8,128], index: 3, kind: output, shape index: {}]  }
   0x1   :  { %s421_s14 = smov 0  }
   0x2 LB: > { %s25_s15 = sadd.s32 1, %s391_s13  ;;  %p342_p0 = scmp.ge.s32.totalorder %s395_s14, 1  ;;  %s395_s14 = sphi %s421_s14, %s13_s14   ;;  %s391_s13 = sphi %s419_s13, %s454_s13   ;;  %s387_s12 = sphi %s417_s12, %s453_s12  }
   0x3   : > { %p27_p1 = scmp.ge.s32.totalorder %s25_s15, 2  ;;  %p171_p2 = scmp.lt.s32.totalorder %s395_s14, 3 }
   0x5   : > { %s456_s15 = smov (%p27_p1, %s25_s15), 0  ;;  %p172_p3 = pnand %p342_p0, %p171_p2 }
   0x6   : > { %p205_p4 = scmp.lt.s32.totalorder (!%p172_p3), %s387_s12, 1 }
   0x7   : > { %175 = sbr.rel (%p172_p3) target bundleno = 29 (0x1d), region = 32 }
   0xe   : > { %s458_s12 = smov (!%p205_p4, %s387_s12), 1 }
   0xf   : > { %s343_s16 = sshll.u32 %s458_s12, 2  ;;  %s214_s19 = scalar_lea.vmem %s450_s1, %s458_s12 }
  0x10   : > { %s211_s22 = scalar_lea.vmem %s449_s0, %s343_s16  ;;  %s217_s25 = scalar_lea.vmem %s451_s2, %s458_s12  ;;  %v345_v1 = vld [vmem:[%s214_s19] ss:$0 sm:$0xff] }
  0x11   : > { %v225_v0 = vld [vmem:[%s211_s22] sm:$0xf]  ;;  %s224_s28 = scalar_lea.vmem %s452_s3, %s343_s16 }
  0x12   : > { %v226_v2 = vunpack.c.l.bf16 %v225_v0  ;;  %v346_v3 = vld [vmem:[%s217_s25] ss:$0 sm:$0xff] }
  0x14   : > { %v234_v4 = vmul.f32 %v345_v1, %v226_v2 }
  0x16   : > { %v242_v5 = vadd.f32 %v346_v3, %v234_v4 }
  0x18   : > { %v243_v6 = vmax.f32 %v242_v5, 0.0 }
  0x1a   : > { %v244_v7 = vpack.c.bf16 %v243_v6, %v243_v6 }
  0x1c   : > { %245 = vst [vmem:[%s224_s28] sm:$0xf] %v244_v7 }
  0x1d PF: > { %s13_s14 = sadd.s32 1, %s395_s14   ;;  %s453_s12 = smov %s391_s13 }
  0x1e   : > { %p10_p5 = scmp.ge.s32.totalorder %s13_s14, 4   ;;  %s454_s13 = smov %s456_s15 }
  0x20   :  { %12 = sbr.rel (!%p10_p5) target bundleno = 2 (0x2), region = 68 }

// kernel: _lambda_.22
= control target key start
LH: loop header
LB: loop body
LE: loop exit
PB: predicated region body
PF: predicated region fallthrough
CT: control target
= control target key end

     0   :  { %s1827_s15 = smov 0   ;;  %s1829_s16 = smov 0   ;;  %s2140_s0 = inlined_call_operand.vmem [shape: bf16[2,64,896], index: 0, kind: input, shape index: {}]   ;;  %s2141_s1 = inlined_call_operand.vmem [shape: bf16[896,16], index: 1, kind: input, shape index: {}]   ;;  %s2142_s2 = inlined_call_operand.vmem [shape: bf16[2,64,16], index: 2, kind: output, shape index: {0}]   ;;  %s2143_s3 = inlined_call_operand.vmem [shape: f32[2,1,16], index: 3, kind: output, shape index: {1}]   ;;  %s2144_s4 = inlined_call_operand.vmem [shape: f32[2,1,16], index: 4, kind: output, shape index: {2}]  }
   0x1   :  { %s1831_s17 = smov 0  }
   0x2 LB: > { %s27_s18 = sadd.s32 1, %s1795_s16  ;;  %p1392_p0 = scmp.ge.s32.totalorder %s1799_s17, 1  ;;  %s1799_s17 = sphi %s1831_s17, %s15_s17   ;;  %s1795_s16 = sphi %s1829_s16, %s2146_s16   ;;  %s1791_s15 = sphi %s1827_s15, %s2145_s15  }
   0x3   : > { %p29_p1 = scmp.ge.s32.totalorder %s27_s18, 2  ;;  %p189_p2 = scmp.lt.s32.totalorder %s1799_s17, 3 }
   0x5   : > { %s2148_s18 = smov (%p29_p1, %s27_s18), 0  ;;  %p190_p3 = pnand %p1392_p0, %p189_p2 }
   0x6   : > { %v1681_v0 = vld [vmem:[%s2141_s1 + $0x40] sm:$0xff] (!%p190_p3)   ;;  %v1685_v4 = vld [vmem:[%s2141_s1 + $0x48] sm:$0xff] (!%p190_p3)   ;;  %v1689_v8 = vld [vmem:[%s2141_s1 + $0x50] sm:$0xff] (!%p190_p3)   ;;  %p231_p4 = scmp.lt.s32.totalorder (!%p190_p3), %s1791_s15, 1  ;;  %vm1187_vm0 = vcmask (!%p190_p3), 122880   ;;  %vm1174_vm1 = vcmask (!%p190_p3), 125952  }
   0x7   : > { %193 = sbr.rel (%p190_p3) target bundleno = 338 (0x152), region = 28  ;;  %v1682_v1 = vld [vmem:[%s2141_s1 + $0xc0] sm:$0xff] (!%p190_p3)   ;;  %1499 = vmatprep.subr.bf16.mxu0 (!%p190_p3), %v1681_v0  ;;  %v1686_v5 = vld [vmem:[%s2141_s1 + $0xc8] sm:$0xff] (!%p190_p3)   ;;  %v1690_v9 = vld [vmem:[%s2141_s1 + $0xd0] sm:$0xff] (!%p190_p3)   ;;  %vm1191_vm2 = vcmask (!%p190_p3), 130048  }
   0x8   : > { %v1683_v2 = vld [vmem:[%s2141_s1] sm:$0xff] (!%p190_p3)   ;;  %1539 = vmatprep.subr.bf16.mxu1 (!%p190_p3), %v1682_v1  ;;  %v1687_v6 = vld [vmem:[%s2141_s1 + $0x8] sm:$0xff] (!%p190_p3)   ;;  %v1691_v10 = vld [vmem:[%s2141_s1 + $0x10] sm:$0xff] (!%p190_p3)  }
   0x9   : > { %v1684_v3 = vld [vmem:[%s2141_s1 + $0x80] sm:$0xff] (!%p190_p3)   ;;  %1500 = vmatpush3.bf16.msra.mxu0 (!%p190_p3), %v1683_v2  ;;  %v1688_v7 = vld [vmem:[%s2141_s1 + $0x88] sm:$0xff] (!%p190_p3)   ;;  %v1692_v11 = vld [vmem:[%s2141_s1 + $0x90] sm:$0xff] (!%p190_p3)  }
   0xa   : > { %1540 = vmatpush3.bf16.msra.mxu1 (!%p190_p3), %v1684_v3  ;;  %1501 = vmatprep.subr.bf16.mxu0 (!%p190_p3), %v1685_v4  ;;  %v1693_v12 = vld [vmem:[%s2141_s1 + $0x58] sm:$0xff] (!%p190_p3)   ;;  %v1697_v16 = vld [vmem:[%s2141_s1 + $0x60] sm:$0xff] (!%p190_p3)   ;;  %v1701_v20 = vld [vmem:[%s2141_s1 + $0x68] sm:$0xff] (!%p190_p3)  }
   0xb   : > { %1541 = vmatprep.subr.bf16.mxu1 (!%p190_p3), %v1686_v5  ;;  %v1694_v13 = vld [vmem:[%s2141_s1 + $0xd8] sm:$0xff] (!%p190_p3)   ;;  %v1698_v17 = vld [vmem:[%s2141_s1 + $0xe0] sm:$0xff] (!%p190_p3)   ;;  %v1702_v21 = vld [vmem:[%s2141_s1 + $0xe8] sm:$0xff] (!%p190_p3)  }
   0xc   : > { %v1695_v14 = vld [vmem:[%s2141_s1 + $0x18] sm:$0xff] (!%p190_p3)   ;;  %v1699_v18 = vld [vmem:[%s2141_s1 + $0x20] sm:$0xff] (!%p190_p3)   ;;  %v1703_v22 = vld [vmem:[%s2141_s1 + $0x28] sm:$0xff] (!%p190_p3)  }
   0xd   : > { %1502 = vmatpush3.bf16.msra.mxu0 (!%p190_p3), %v1687_v6  ;;  %v1696_v15 = vld [vmem:[%s2141_s1 + $0x98] sm:$0xff] (!%p190_p3)   ;;  %v1700_v19 = vld [vmem:[%s2141_s1 + $0xa0] sm:$0xff] (!%p190_p3)   ;;  %v1704_v23 = vld [vmem:[%s2141_s1 + $0xa8] sm:$0xff] (!%p190_p3)  }
   0xe   : > { %1542 = vmatpush3.bf16.msra.mxu1 %v1688_v7  ;;  %1503 = vmatprep.subr.bf16.mxu0 %v1689_v8  ;;  %s2150_s15 = smov (!%p231_p4, %s1791_s15), 1  ;;  %v1705_v24 = vld [vmem:[%s2141_s1 + $0x70] sm:$0xff]   ;;  %v1709_v28 = vld [vmem:[%s2141_s1 + $0x78] sm:$0xff]   ;;  %v1719_v36 = vld [vmem:[%s2141_s1 + $0x140] sm:$0xff]  }
   0xf   : > { %1543 = vmatprep.subr.bf16.mxu1 %v1690_v9  ;;  %v1706_v25 = vld [vmem:[%s2141_s1 + $0xf0] sm:$0xff]   ;;  %s1655_s27 = smul.u32 224, %s2150_s15  ;;  %v1710_v29 = vld [vmem:[%s2141_s1 + $0xf8] sm:$0xff]   ;;  %v1720_v37 = vld [vmem:[%s2141_s1 + $0x100] sm:$0xff]   ;;  %s2057_s29 = scalar_lea.vmem %s2143_s3, %s2150_s15 }
  0x10   : > { %v1707_v26 = vld [vmem:[%s2141_s1 + $0x30] sm:$0xff]   ;;  %v1711_v30 = vld [vmem:[%s2141_s1 + $0x38] sm:$0xff]   ;;  %v1721_v38 = vld [vmem:[%s2141_s1 + $0x148] sm:$0xff]   ;;  %s2063_s6 = scalar_lea.vmem %s2144_s4, %s2150_s15 }
  0x11   : > { %1504 = vmatpush3.bf16.msra.mxu0 %v1691_v10  ;;  %v1708_v27 = vld [vmem:[%s2141_s1 + $0xb0] sm:$0xff]   ;;  %s1945_s12 = scalar_lea.vmem %s2140_s0, %s1655_s27  ;;  %v1712_v31 = vld [vmem:[%s2141_s1 + $0xb8] sm:$0xff]   ;;  %v1722_v39 = vld [vmem:[%s2141_s1 + $0x180] sm:$0xff]  }
  0x12   : > { %1544 = vmatpush3.bf16.msra.mxu1 %v1692_v11  ;;  %1505 = vmatprep.subr.bf16.mxu0 %v1693_v12  ;;  %v1713_v32 = vld [vmem:[%s1945_s12] ss:$28 sps:$4 sm:$0xff]   ;;  %v1716_v34 = vld [vmem:[%s1945_s12 + $0x8] ss:$28 sps:$4 sm:$0xff]   ;;  %v1728_v43 = vld [vmem:[%s1945_s12 + $0x38] ss:$28 sps:$4 sm:$0xff]  }
  0x13   : > { %1545 = vmatprep.subr.bf16.mxu1 %v1694_v13  ;;  %v1715_v33 = vld [vmem:[%s1945_s12 + $0x4] ss:$28 sps:$4 sm:$0xff]   ;;  %v1718_v35 = vld [vmem:[%s1945_s12 + $0xc] ss:$28 sps:$4 sm:$0xff]   ;;  %v1724_v41 = vld [vmem:[%s1945_s12 + $0x3c] ss:$28 sps:$4 sm:$0xff]  }
  0x14   : > { %914 = vmatprep.mubr.bf16.mxu0 %v1715_v33  ;;  %979 = vmatprep.mubr.bf16.mxu1 %v1718_v35  ;;  %v1723_v40 = vld [vmem:[%s2141_s1 + $0x108] sm:$0xff]   ;;  %v1726_v42 = vld [vmem:[%s1945_s12 + $0x44] ss:$28 sps:$4 sm:$0xff]   ;;  %v1730_v45 = vld [vmem:[%s2141_s1 + $0x150] sm:$0xff]  }
  0x15   : > { %1506 = vmatpush3.bf16.msra.mxu0 %v1695_v14  ;;  %v1729_v44 = vld [vmem:[%s1945_s12 + $0x40] ss:$28 sps:$4 sm:$0xff]   ;;  %v1731_v46 = vld [vmem:[%s2141_s1 + $0x188] sm:$0xff]   ;;  %v1732_v47 = vld [vmem:[%s2141_s1 + $0x110] sm:$0xff]  }
  0x16   : > { %1546 = vmatpush3.bf16.msra.mxu1 %v1696_v15  ;;  %1507 = vmatprep.subr.bf16.mxu0 %v1697_v16  ;;  %v1733_v48 = vld [vmem:[%s2141_s1 + $0x158] sm:$0xff]   ;;  %v1734_v49 = vld [vmem:[%s2141_s1 + $0x190] sm:$0xff]   ;;  %v1742_v55 = vld [vmem:[%s2141_s1 + $0x160] sm:$0xff]  }
  0x17   : > { %1547 = vmatprep.subr.bf16.mxu1 %v1698_v17  ;;  %v1735_v50 = vld [vmem:[%s2141_s1 + $0x118] sm:$0xff]   ;;  %v1736_v51 = vld [vmem:[%s1945_s12 + $0x74] ss:$28 sps:$4 sm:$0xff]   ;;  %v1744_v57 = vld [vmem:[%s2141_s1 + $0x120] sm:$0xff]  }
  0x18   : > { %v1738_v52 = vld [vmem:[%s1945_s12 + $0x7c] ss:$28 sps:$4 sm:$0xff]   ;;  %v1740_v53 = vld [vmem:[%s1945_s12 + $0x70] ss:$28 sps:$4 sm:$0xff]   ;;  %v1746_v59 = vld [vmem:[%s2141_s1 + $0x1a0] sm:$0xff]  }
  0x19   : > { %1508 = vmatpush3.bf16.msra.mxu0 %v1699_v18  ;;  %v1741_v54 = vld [vmem:[%s1945_s12 + $0x78] ss:$28 sps:$4 sm:$0xff]   ;;  %v1745_v58 = vld [vmem:[%s2141_s1 + $0x168] sm:$0xff]   ;;  %v1769_v15 = vld [vmem:[%s1945_s12 + $0x84] ss:$28 sps:$4 sm:$0xff]  }
  0x1a   : > { %1548 = vmatpush3.bf16.msra.mxu1 %v1700_v19  ;;  %1509 = vmatprep.subr.bf16.mxu0 %v1701_v20  ;;  %v1743_v56 = vld [vmem:[%s2141_s1 + $0x198] sm:$0xff]   ;;  %v1747_v60 = vld [vmem:[%s2141_s1 + $0x128] sm:$0xff]   ;;  %v1750_v62 = vld [vmem:[%s1945_s12 + $0xb4] ss:$28 sps:$4 sm:$0xff]   ;;  %v1801_v20 = vmov 0.0  }
  0x1b   : > { %1549 = vmatprep.subr.bf16.mxu1 %v1702_v21  ;;  %v1748_v61 = vld [vmem:[%s1945_s12 + $0xac] ss:$28 sps:$4 sm:$0xff]   ;;  %v1754_v1 = vld [vmem:[%s2141_s1 + $0x170] sm:$0xff]   ;;  %v1757_v4 = vld [vmem:[%s2141_s1 + $0x178] sm:$0xff]   ;;  %1188 = vst.msk [vmem:[%s2057_s29] sm:$0x1] %vm1187_vm0, %v1801_v20 }
  0x1c   : > { %v1752_v63 = vld [vmem:[%s1945_s12 + $0xa8] ss:$28 sps:$4 sm:$0xff]   ;;  %v1753_v0 = vld [vmem:[%s1945_s12 + $0xb0] ss:$28 sps:$4 sm:$0xff]   ;;  %v1759_v6 = vld [vmem:[%s2141_s1 + $0x138] sm:$0xff]  }
  0x1d   : > { %1510 = vmatpush3.bf16.msra.mxu0 %v1703_v22  ;;  %v1755_v2 = vld [vmem:[%s2141_s1 + $0x1a8] sm:$0xff]   ;;  %v1756_v3 = vld [vmem:[%s2141_s1 + $0x130] sm:$0xff]   ;;  %v1763_v9 = vld [vmem:[%s2141_s1 + $0x1b8] sm:$0xff]   ;;  %1189 = vst.msk [vmem:[%s2063_s6] sm:$0x1] %vm1187_vm0, %v1801_v20 }
  0x1e   : > { %1550 = vmatpush3.bf16.msra.mxu1 %v1704_v23  ;;  %1511 = vmatprep.subr.bf16.mxu0 %v1705_v24  ;;  %v1758_v5 = vld [vmem:[%s2141_s1 + $0x1b0] sm:$0xff]   ;;  %v1766_v11 = vld [vmem:[%s1945_s12 + $0x4c] ss:$28 sps:$4 sm:$0xff]   ;;  %v1773_v16 = vld [vmem:[%s1945_s12 + $0xc0] ss:$28 sps:$4 sm:$0xff]  }
  0x1f   : > { %1551 = vmatprep.subr.bf16.mxu1 %v1706_v25  ;;  %v1760_v7 = vld [vmem:[%s1945_s12 + $0x10] ss:$28 sps:$4 sm:$0xff]   ;;  %v1764_v10 = vld [vmem:[%s1945_s12 + $0x18] ss:$28 sps:$4 sm:$0xff]   ;;  %v1772_v13 = vld [vmem:[%s1945_s12 + $0x88] ss:$28 sps:$4 sm:$0xff]  }
  0x20   : > { %v1762_v8 = vld [vmem:[%s1945_s12 + $0x14] ss:$28 sps:$4 sm:$0xff]   ;;  %v1768_v14 = vld [vmem:[%s1945_s12 + $0x48] ss:$28 sps:$4 sm:$0xff]   ;;  %v1771_v17 = vld [vmem:[%s1945_s12 + $0x80] ss:$28 sps:$4 sm:$0xff]  }
  0x21   : > { %1512 = vmatpush3.bf16.msra.mxu0 %v1707_v26  ;;  %v1765_v12 = vld [vmem:[%s1945_s12 + $0x50] ss:$28 sps:$4 sm:$0xff]   ;;  %v1774_v18 = vld [vmem:[%s1945_s12 + $0xbc] ss:$28 sps:$4 sm:$0xff]  }
  0x22   : > { %1552 = vmatpush3.bf16.msra.mxu1 %v1708_v27  ;;  %1513 = vmatprep.subr.bf16.mxu0 %v1709_v28  ;;  %v1776_v19 = vld [vmem:[%s1945_s12 + $0xb8] ss:$28 sps:$4 sm:$0xff]   ;;  %s1490_s12 = sshll.u32 %s2150_s15, 5 }
  0x23   : > { %1553 = vmatprep.subr.bf16.mxu1 %v1710_v29  ;;  %s2085_s9 = scalar_lea.vmem %s2142_s2, %s1490_s12 }
  0x25   : > { %1514 = vmatpush3.bf16.msra.mxu0 %v1711_v30 }
  0x26   : > { %1554 = vmatpush3.bf16.msra.mxu1 %v1712_v31  ;;  %1579 = vmatprep.subr.bf16.mxu0 %v1719_v36 }
  0x27   : > { %1631 = vmatprep.subr.bf16.mxu1 %v1722_v39 }
  0x28   : > { %915 = vmatmul.mubr.bf16.vlgmr.msra.gmra.mrb[0].mxu0 %v1713_v32 }
  0x29   : > { %980 = vmatmul.mubr.bf16.vlgmr.msra.gmra.mrb[0].mxu1 %v1716_v34  ;;  %1580 = vmatpush3.bf16.msra.mxu0 %v1720_v37 }
  0x2a   : > { %1581 = vmatprep.subr.bf16.mxu0 %v1721_v38  ;;  %1632 = vmatpush3.bf16.msra.mxu1 %v1722_v39 }
  0x2b   : > { %922 = vmatprep.mubr.bf16.mxu0 %v1724_v41  ;;  %987 = vmatprep.mubr.bf16.mxu1 %v1726_v42 }
  0x2c   : > { %1633 = vmatprep.subr.bf16.mxu1 %v1731_v46 }
  0x2d   : > { %1582 = vmatpush3.bf16.msra.mxu0 %v1723_v40 }
  0x2e   : > { %1583 = vmatprep.subr.bf16.mxu0 %v1730_v45  ;;  %1634 = vmatpush3.bf16.msra.mxu1 %v1731_v46 }
  0x2f   : > { %1635 = vmatprep.subr.bf16.mxu1 %v1734_v49 }
  0x30   : > { %923 = vmatmul.mubr.bf16.gmra.mrb[4].mxu0 %v1728_v43 }
  0x31   : > { %988 = vmatmul.mubr.bf16.gmra.mrb[4].mxu1 %v1729_v44  ;;  %1584 = vmatpush3.bf16.msra.mxu0 %v1732_v47 }
  0x32   : > { %1585 = vmatprep.subr.bf16.mxu0 %v1733_v48  ;;  %1636 = vmatpush3.bf16.msra.mxu1 %v1734_v49 }
  0x33   : > { %930 = vmatprep.mubr.bf16.mxu0 %v1736_v51  ;;  %995 = vmatprep.mubr.bf16.mxu1 %v1738_v52 }
  0x34   : > { %1637 = vmatprep.subr.bf16.mxu1 %v1743_v56 }
  0x35   : > { %1586 = vmatpush3.bf16.msra.mxu0 %v1735_v50 }
  0x36   : > { %1587 = vmatprep.subr.bf16.mxu0 %v1742_v55  ;;  %1638 = vmatpush3.bf16.msra.mxu1 %v1743_v56 }
  0x37   : > { %1639 = vmatprep.subr.bf16.mxu1 %v1746_v59 }
  0x38   : > { %931 = vmatmul.mubr.bf16.gmra.mrb[8].mxu0 %v1740_v53 }
  0x39   : > { %996 = vmatmul.mubr.bf16.gmra.mrb[8].mxu1 %v1741_v54  ;;  %1588 = vmatpush3.bf16.msra.mxu0 %v1744_v57 }
  0x3a   : > { %1589 = vmatprep.subr.bf16.mxu0 %v1745_v58  ;;  %1640 = vmatpush3.bf16.msra.mxu1 %v1746_v59 }
  0x3b   : > { %938 = vmatprep.mubr.bf16.mxu0 %v1748_v61  ;;  %1003 = vmatprep.mubr.bf16.mxu1 %v1750_v62 }
  0x3c   : > { %1641 = vmatprep.subr.bf16.mxu1 %v1755_v2 }
  0x3d   : > { %1590 = vmatpush3.bf16.msra.mxu0 %v1747_v60 }
  0x3e   : > { %1591 = vmatprep.subr.bf16.mxu0 %v1754_v1  ;;  %1642 = vmatpush3.bf16.msra.mxu1 %v1755_v2 }
  0x3f   : > { %1643 = vmatprep.subr.bf16.mxu1 %v1758_v5 }
  0x40   : > { %939 = vmatmul.mubr.bf16.gmra.mrb[12].mxu0 %v1752_v63 }
  0x41   : > { %1004 = vmatmul.mubr.bf16.gmra.mrb[12].mxu1 %v1753_v0  ;;  %1592 = vmatpush3.bf16.msra.mxu0 %v1756_v3 }
  0x42   : > { %1593 = vmatprep.subr.bf16.mxu0 %v1757_v4  ;;  %1644 = vmatpush3.bf16.msra.mxu1 %v1758_v5 }
  0x43   : > { %1044 = vmatprep.mubr.bf16.mxu0 %v1762_v8  ;;  %1645 = vmatprep.subr.bf16.mxu1 %v1763_v9 }
  0x44   : > { %1647 = vmatprep.mubr.bf16.mxu1 %v1764_v10 }
  0x45   : > { %1594 = vmatpush3.bf16.msra.mxu0 %v1759_v6 }
  0x46   : > { %1646 = vmatpush3.bf16.msra.mxu1 %v1763_v9 }
  0x48   : > { %1045 = vmatmul.mubr.bf16.vlgmr.msra.gmra.mrb[16].mxu0 %v1760_v7 }
  0x49   : > { %1052 = vmatprep.mubr.bf16.mxu0 %v1766_v11  ;;  %1648 = vmatmul.mubr.bf16.vlgmr.msra.gmra.mrb[16].mxu1 %v1765_v12 }
  0x4a   : > { %1651 = vmatprep.mubr.bf16.mxu1 %v1772_v13 }
  0x50   : > { %1053 = vmatmul.mubr.bf16.gmra.mrb[20].mxu0 %v1768_v14 }
  0x51   : > { %1060 = vmatprep.mubr.bf16.mxu0 %v1769_v15  ;;  %1652 = vmatmul.mubr.bf16.gmra.mrb[20].mxu1 %v1773_v16 }
  0x58   : > { %1061 = vmatmul.mubr.bf16.gmra.mrb[24].mxu0 %v1771_v17 }
  0x59   : > { %1068 = vmatprep.mubr.bf16.mxu0 %v1774_v18 }
  0x60   : > { %1069 = vmatmul.mubr.bf16.gmra.mrb[28].mxu0 %v1776_v19 }
  0xfb   : > { %v1515_v21 = vpop.f32.mrb[0].mxu0 }
  0xfc   : > { %v1555_v22 = vpop.f32.mrb[0].mxu1  ;;  %v1516_v23 = vpop.f32.mrb[1].mxu0 }
  0xfd   : > { %v1517_v24 = vadd.f32 %v1516_v23, %v1515_v21  ;;  %v1556_v25 = vpop.f32.mrb[1].mxu1  ;;  %v1518_v26 = vpop.f32.mrb[2].mxu0 }
  0xfe   : > { %v1557_v27 = vadd.f32 %v1556_v25, %v1555_v22  ;;  %v1558_v28 = vpop.f32.mrb[2].mxu1  ;;  %v1519_v29 = vpop.f32.mrb[3].mxu0 }
  0xff   : > { %v1520_v30 = vadd.f32 %v1519_v29, %v1518_v26  ;;  %v1559_v31 = vpop.f32.mrb[3].mxu1 }
 0x100   : > { %v982_v32 = vadd.f32 %v1557_v27, %v1517_v24  ;;  %v1560_v33 = vadd.f32 %v1559_v31, %v1558_v28 }
 0x102   : > { %v985_v34 = vadd.f32 %v1560_v33, %v1520_v30 }
 0x103   : > { %v1521_v35 = vpop.f32.mrb[4].mxu0 }
 0x104   : > { %v1561_v36 = vpop.f32.mrb[4].mxu1  ;;  %v1522_v37 = vpop.f32.mrb[5].mxu0 }
 0x105   : > { %v1523_v38 = vadd.f32 %v1522_v37, %v1521_v35  ;;  %v1562_v39 = vpop.f32.mrb[5].mxu1  ;;  %v1524_v40 = vpop.f32.mrb[6].mxu0 }
 0x106   : > { %v1563_v41 = vadd.f32 %v1562_v39, %v1561_v36  ;;  %v1564_v42 = vpop.f32.mrb[6].mxu1  ;;  %v1525_v43 = vpop.f32.mrb[7].mxu0 }
 0x107   : > { %v1526_v44 = vadd.f32 %v1525_v43, %v1524_v40  ;;  %v1565_v45 = vpop.f32.mrb[7].mxu1 }
 0x108   : > { %v2069_v46 = vadd.f32 %v1563_v41, %v1523_v38  ;;  %v1566_v47 = vadd.f32 %v1565_v45, %v1564_v42 }
 0x10a   : > { %v2071_v48 = vadd.f32 %v1566_v47, %v1526_v44 }
 0x10b   : > { %v1527_v49 = vpop.f32.mrb[8].mxu0 }
 0x10c   : > { %v1567_v50 = vpop.f32.mrb[8].mxu1  ;;  %v1528_v51 = vpop.f32.mrb[9].mxu0 }
 0x10d   : > { %v1568_v52 = vpop.f32.mrb[9].mxu1  ;;  %v1529_v53 = vadd.f32 %v1528_v51, %v1527_v49  ;;  %v1530_v55 = vpop.f32.mrb[10].mxu0 }
 0x10e   : > { %v1569_v54 = vadd.f32 %v1568_v52, %v1567_v50  ;;  %v1570_v56 = vpop.f32.mrb[10].mxu1  ;;  %v1531_v57 = vpop.f32.mrb[11].mxu0 }
 0x10f   : > { %v1571_v58 = vpop.f32.mrb[11].mxu1  ;;  %v1532_v60 = vadd.f32 %v1531_v57, %v1530_v55 }
 0x110   : > { %v2073_v59 = vadd.f32 %v1569_v54, %v1529_v53  ;;  %v1572_v61 = vadd.f32 %v1571_v58, %v1570_v56 }
 0x112   : > { %v2075_v62 = vadd.f32 %v1572_v61, %v1532_v60 }
 0x113   : > { %v1533_v63 = vpop.f32.mrb[12].mxu0 }
 0x114   : > { %v1573_v0 = vpop.f32.mrb[12].mxu1  ;;  %v1534_v1 = vpop.f32.mrb[13].mxu0 }
 0x115   : > { %v1574_v2 = vpop.f32.mrb[13].mxu1  ;;  %v1535_v3 = vadd.f32 %v1534_v1, %v1533_v63  ;;  %v1536_v5 = vpop.f32.mrb[14].mxu0 }
 0x116   : > { %v1575_v4 = vadd.f32 %v1574_v2, %v1573_v0  ;;  %v1576_v6 = vpop.f32.mrb[14].mxu1  ;;  %v1537_v7 = vpop.f32.mrb[15].mxu0 }
 0x117   : > { %v1577_v8 = vpop.f32.mrb[15].mxu1  ;;  %v1538_v10 = vadd.f32 %v1537_v7, %v1536_v5 }
 0x118   : > { %v2077_v9 = vadd.f32 %v1575_v4, %v1535_v3  ;;  %v1578_v11 = vadd.f32 %v1577_v8, %v1576_v6 }
 0x11a   : > { %v2079_v12 = vadd.f32 %v1578_v11, %v1538_v10 }
 0x11b   : > { %v1595_v13 = vpop.f32.mrb[16].mxu0 }
 0x11c   : > { %v1596_v14 = vpop.f32.mrb[17].mxu0  ;;  %v1649_v19 = vpop.f32.mrb[16].mxu1 }
 0x11d   : > { %v1597_v15 = vadd.f32 %v1596_v14, %v1595_v13  ;;  %v1598_v16 = vpop.f32.mrb[18].mxu0  ;;  %v1111_v21 = vpop.f32.mrb[17].mxu1 }
 0x11e   : > { %v1599_v17 = vpop.f32.mrb[19].mxu0  ;;  %v1650_v23 = vpop.f32.mrb[18].mxu1 }
 0x11f   : > { %v1600_v18 = vadd.f32 %v1599_v17, %v1598_v16  ;;  %v1047_v20 = vadd.f32 %v1597_v15, %v982_v32  ;;  %v1114_v25 = vpop.f32.mrb[19].mxu1 }
 0x121   : > { %v1112_v22 = vadd.f32 %v1111_v21, %v1047_v20  ;;  %v1050_v24 = vadd.f32 %v1600_v18, %v985_v34 }
 0x123   : > { %v1491_v26 = vpack.c.bf16 %v1112_v22, %v1112_v22  ;;  %v1217_v27 = vmul.f32 %v1112_v22, %v1112_v22  ;;  %v1115_v28 = vadd.f32 %v1114_v25, %v1050_v24  ;;  %v1601_v29 = vpop.f32.mrb[20].mxu0  ;;  %v1192_v31 = vsel %vm1191_vm2, %v1112_v22, 0.0 }
 0x124   : > { %v1602_v30 = vpop.f32.mrb[21].mxu0  ;;  %v1653_v42 = vpop.f32.mrb[20].mxu1 }
 0x125   : > { %1175 = vst.msk [vmem:[%s2085_s9] sm:$0xf] %vm1174_vm1, %v1491_v26  ;;  %v1492_v32 = vpack.c.bf16 %v1115_v28, %v1115_v28  ;;  %v1193_v33 = vsel %vm1191_vm2, %v1115_v28, 0.0  ;;  %v1218_v34 = vmul.f32 %v1115_v28, %v1115_v28  ;;  %v1604_v35 = vpop.f32.mrb[22].mxu0  ;;  %v1603_v37 = vadd.f32 %v1602_v30, %v1601_v29  ;;  %v1127_v45 = vpop.f32.mrb[21].mxu1 }
 0x126   : > { %v1194_v36 = vadd.f32 %v1193_v33, %v1192_v31  ;;  %v1605_v38 = vpop.f32.mrb[23].mxu0  ;;  %v1225_v39 = vsel %vm1191_vm2, %v1217_v27, 0.0  ;;  %v1654_v49 = vpop.f32.mrb[22].mxu1 }
 0x127   : > { %1176 = vst.msk [vmem:[%s2085_s9 + $0x4] sm:$0xf] %vm1174_vm1, %v1492_v32  ;;  %v1226_v40 = vsel %vm1191_vm2, %v1218_v34, 0.0  ;;  %v1606_v41 = vadd.f32 %v1605_v38, %v1604_v35  ;;  %v1055_v44 = vadd.f32 %v1603_v37, %v2069_v46  ;;  %v1130_v51 = vpop.f32.mrb[23].mxu1 }
 0x128   : > { %v1227_v43 = vadd.f32 %v1226_v40, %v1225_v39 }
 0x129   : > { %v1058_v47 = vadd.f32 %v1606_v41, %v2071_v48  ;;  %v1120_v50 = vadd.f32 %v1649_v19, %v1055_v44 }
 0x12b   : > { %v1123_v52 = vadd.f32 %v1650_v23, %v1058_v47  ;;  %v1607_v53 = vpop.f32.mrb[24].mxu0  ;;  %v1493_v54 = vpack.c.bf16 %v1120_v50, %v1120_v50  ;;  %v1195_v55 = vsel %vm1191_vm2, %v1120_v50, 0.0  ;;  %v1219_v56 = vmul.f32 %v1120_v50, %v1120_v50 }
 0x12c   : > { %v1608_v57 = vpop.f32.mrb[25].mxu0  ;;  %v1196_v46 = vadd.f32 %v1195_v55, %v1194_v36 }
 0x12d   : > { %v1494_v58 = vpack.c.bf16 %v1123_v52, %v1123_v52  ;;  %v1220_v60 = vmul.f32 %v1123_v52, %v1123_v52  ;;  %v1609_v61 = vadd.f32 %v1608_v57, %v1607_v53  ;;  %v1610_v63 = vpop.f32.mrb[26].mxu0  ;;  %1177 = vst.msk [vmem:[%s2085_s9 + $0x8] sm:$0xf] %vm1174_vm1, %v1493_v54  ;;  %v1228_v48 = vsel %vm1191_vm2, %v1219_v56, 0.0  ;;  %v1190_v54 = vld [vmem:[%s2057_s29] sm:$0x1] }
 0x12e   : > { %v1611_v0 = vpop.f32.mrb[27].mxu0  ;;  %v1197_v1 = vsel %vm1191_vm2, %v1123_v52, 0.0  ;;  %v1229_v5 = vadd.f32 %v1228_v48, %v1227_v43  ;;  %v1216_v57 = vld [vmem:[%s2063_s6] sm:$0x1] }
 0x12f   : > { %1178 = vst.msk [vmem:[%s2085_s9 + $0xc] sm:$0xf] %vm1174_vm1, %v1494_v58  ;;  %v1612_v2 = vadd.f32 %v1611_v0, %v1610_v63  ;;  %v1063_v3 = vadd.f32 %v1609_v61, %v2073_v59  ;;  %v1198_v4 = vadd.f32 %v1197_v1, %v1196_v46  ;;  %v1230_v6 = vsel %vm1191_vm2, %v1220_v60, 0.0 }
 0x130   : > { %v1231_v8 = vadd.f32 %v1230_v6, %v1229_v5 }
 0x131   : > { %v1128_v7 = vadd.f32 %v1127_v45, %v1063_v3  ;;  %v1066_v10 = vadd.f32 %v1612_v2, %v2075_v62 }
 0x133   : > { %v1495_v11 = vpack.c.bf16 %v1128_v7, %v1128_v7  ;;  %v1199_v13 = vsel %vm1191_vm2, %v1128_v7, 0.0  ;;  %v1221_v14 = vmul.f32 %v1128_v7, %v1128_v7  ;;  %v1131_v15 = vadd.f32 %v1130_v51, %v1066_v10  ;;  %v1613_v16 = vpop.f32.mrb[28].mxu0 }
 0x134   : > { %v1200_v17 = vadd.f32 %v1199_v13, %v1198_v4  ;;  %v1614_v18 = vpop.f32.mrb[29].mxu0 }
 0x135   : > { %1179 = vst.msk [vmem:[%s2085_s9 + $0x10] sm:$0xf] %vm1174_vm1, %v1495_v11  ;;  %v1232_v59 = vsel %vm1191_vm2, %v1221_v14, 0.0  ;;  %v1496_v19 = vpack.c.bf16 %v1131_v15, %v1131_v15  ;;  %v1201_v20 = vsel %vm1191_vm2, %v1131_v15, 0.0  ;;  %v1222_v21 = vmul.f32 %v1131_v15, %v1131_v15  ;;  %v1616_v22 = vpop.f32.mrb[30].mxu0 }
 0x136   : > { %v1233_v23 = vadd.f32 %v1232_v59, %v1231_v8  ;;  %v1202_v62 = vadd.f32 %v1201_v20, %v1200_v17  ;;  %v1615_v24 = vadd.f32 %v1614_v18, %v1613_v16  ;;  %v1617_v25 = vpop.f32.mrb[31].mxu0 }
 0x137   : > { %1180 = vst.msk [vmem:[%s2085_s9 + $0x14] sm:$0xf] %vm1174_vm1, %v1496_v19  ;;  %v1234_v26 = vsel %vm1191_vm2, %v1222_v21, 0.0  ;;  %v1618_v27 = vadd.f32 %v1617_v25, %v1616_v22 }
 0x138   : > { %v1235_v28 = vadd.f32 %v1234_v26, %v1233_v23  ;;  %v1071_v29 = vadd.f32 %v1615_v24, %v2077_v9 }
 0x139   : > { %v1074_v30 = vadd.f32 %v1618_v27, %v2079_v12 }
 0x13a   : > { %v1136_v31 = vadd.f32 %v1653_v42, %v1071_v29 }
 0x13b   : > { %v1139_v32 = vadd.f32 %v1654_v49, %v1074_v30 }
 0x13c   : > { %v1497_v33 = vpack.c.bf16 %v1136_v31, %v1136_v31  ;;  %v1203_v34 = vsel %vm1191_vm2, %v1136_v31, 0.0  ;;  %v1223_v35 = vmul.f32 %v1136_v31, %v1136_v31 }
 0x13d   : > { %v1204_v36 = vadd.f32 %v1203_v34, %v1202_v62  ;;  %v1498_v37 = vpack.c.bf16 %v1139_v32, %v1139_v32  ;;  %v1205_v38 = vsel %vm1191_vm2, %v1139_v32, 0.0  ;;  %v1224_v39 = vmul.f32 %v1139_v32, %v1139_v32 }
 0x13e   : > { %1181 = vst.msk [vmem:[%s2085_s9 + $0x18] sm:$0xf] %vm1174_vm1, %v1497_v33  ;;  %v1236_v40 = vsel %vm1191_vm2, %v1223_v35, 0.0 }
 0x13f   : > { %v1237_v41 = vadd.f32 %v1236_v40, %v1235_v28  ;;  %1182 = vst.msk [vmem:[%s2085_s9 + $0x1c] sm:$0xf] %vm1174_vm1, %v1498_v37  ;;  %v1206_v9 = vadd.f32 %v1205_v38, %v1204_v36  ;;  %v1238_v12 = vsel %vm1191_vm2, %v1224_v39, 0.0 }
 0x141   : > { %v1207_v42 = vrot.slane %v1206_v9, 4  ;;  %v1239_v43 = vadd.f32 %v1238_v12, %v1237_v41 }
 0x143   : > { %v1208_v44 = vadd.f32 %v1207_v42, %v1206_v9  ;;  %v1240_v45 = vrot.slane %v1239_v43, 4 }
 0x145   : > { %v1209_v47 = vrot.slane %v1208_v44, 2  ;;  %v1241_v49 = vadd.f32 %v1240_v45, %v1239_v43 }
 0x147   : > { %v1210_v50 = vadd.f32 %v1209_v47, %v1208_v44  ;;  %v1242_v51 = vrot.slane %v1241_v49, 2 }
 0x149   : > { %v1211_v52 = vrot.slane %v1210_v50, 1  ;;  %v1243_v53 = vadd.f32 %v1242_v51, %v1241_v49 }
 0x14b   : > { %v1212_v55 = vadd.f32 %v1211_v52, %v1210_v50  ;;  %v1244_v56 = vrot.slane %v1243_v53, 1 }
 0x14d   : > { %v1213_v58 = vadd.f32 %v1212_v55, %v1190_v54  ;;  %v1245_v60 = vadd.f32 %v1244_v56, %v1243_v53 }
 0x14f   : > { %1215 = vst.msk [vmem:[%s2057_s29] sm:$0x1] %vm1187_vm0, %v1213_v58  ;;  %v1246_v61 = vadd.f32 %v1245_v60, %v1216_v57 }
 0x151   : > { %1247 = vst.msk [vmem:[%s2063_s6] sm:$0x1] %vm1187_vm0, %v1246_v61 }
 0x152 PF: > { %s15_s17 = sadd.s32 1, %s1799_s17   ;;  %s2145_s15 = smov %s1795_s16 }
 0x153   : > { %p12_p5 = scmp.ge.s32.totalorder %s15_s17, 4   ;;  %s2146_s16 = smov %s2148_s18 }
 0x155   :  { %14 = sbr.rel (!%p12_p5) target bundleno = 2 (0x2), region = 86 }

// kernel: squeeze.26
= control target key start
LH: loop header
LB: loop body
LE: loop exit
PB: predicated region body
PF: predicated region fallthrough
CT: control target
= control target key end

     0   :  { %s43_s8 = smov 104   ;;  %vm7_vm0 = vcmask 64512   ;;  %s44_s9 = smov 112   ;;  %s64_s0 = inlined_call_operand.vmem [shape: f32[2,32], index: 0, kind: input, shape index: {}]   ;;  %s65_s1 = inlined_call_operand.vmem [shape: f32[2,4,8], index: 1, kind: output, shape index: {}]  }
   0x1   :  { %v4_v0 = vld [vmem:[%s64_s0] sm:$0x3]  ;;  %s42_s0 = smov 120  }
   0x2   :  { %5 = vst [vmem:[#allocation1] sm:$0x3] %v4_v0 }
   0x9   :  { %v9_v1 = vld [vmem:[#allocation1] sm:$0x3]  }
   0xa   :  { %v21_v2 = vld [vmem:[#allocation1] sm:$0x3]   ;;  %10 = vrot.lane.b32.xlu0 %v9_v1, %s42_s0 }
   0xb   :  { %22 = vrot.lane.b32.xlu1 %v21_v2, %s43_s8  ;;  %v6_v3 = vld [vmem:[#allocation1] sm:$0x3]  }
   0xc   :  { %v15_v4 = vld [vmem:[#allocation1] sm:$0x3]   ;;  %8 = vst.msk [vmem:[#allocation0] ss:$8 sm:$0x3] %vm7_vm0, %v6_v3  }
   0xe   :  { %16 = vrot.lane.b32.xlu0 %v15_v4, %s44_s9 }
  0x7c   :  { %v11_v5 = vpop.permute.xlu0 %10  }
  0x7d   :  { %v23_v6 = vpop.permute.xlu1 %22   ;;  %14 = vst.msk [vmem:[#allocation0 + $0x1] ss:$8 sm:$0x3] %vm7_vm0, %v11_v5  }
  0x7e   :  { %26 = vst.msk [vmem:[#allocation0 + $0x3] ss:$8 sm:$0x3] %vm7_vm0, %v23_v6  }
  0x80   :  { %v17_v7 = vpop.permute.xlu0 %16  }
  0x81   :  { %20 = vst.msk [vmem:[#allocation0 + $0x2] ss:$8 sm:$0x3] %vm7_vm0, %v17_v7  }
  0x88   :  { %v30_v8 = vld [vmem:[#allocation0] sm:$0xf]  ;;  %v34_v9 = vld [vmem:[#allocation0 + $0x8] sm:$0xf] }
  0x89   :  { %32 = vst [vmem:[%s65_s1] sm:$0xf] %v30_v8  ;;  %38 = vst [vmem:[%s65_s1 + $0x4] sm:$0xf] %v34_v9 }

// kernel: _lambda_.27
= control target key start
LH: loop header
LB: loop body
LE: loop exit
PB: predicated region body
PF: predicated region fallthrough
CT: control target
= control target key end

     0   :  { %s417_s12 = smov 0   ;;  %s419_s13 = smov 0   ;;  %s449_s0 = inlined_call_operand.vmem [shape: bf16[2,4,128], index: 0, kind: input, shape index: {}]   ;;  %s450_s1 = inlined_call_operand.vmem [shape: f32[2,1,128], index: 1, kind: input, shape index: {}]   ;;  %s451_s2 = inlined_call_operand.vmem [shape: f32[2,1,128], index: 2, kind: input, shape index: {}]   ;;  %s452_s3 = inlined_call_operand.vmem [shape: bf16[2,4,128], index: 3, kind: output, shape index: {}]  }
   0x1   :  { %s421_s14 = smov 0  }
   0x2 LB: > { %s25_s15 = sadd.s32 1, %s391_s13  ;;  %p342_p0 = scmp.ge.s32.totalorder %s395_s14, 1  ;;  %s395_s14 = sphi %s421_s14, %s13_s14   ;;  %s391_s13 = sphi %s419_s13, %s454_s13   ;;  %s387_s12 = sphi %s417_s12, %s453_s12  }
   0x3   : > { %p27_p1 = scmp.ge.s32.totalorder %s25_s15, 2  ;;  %p171_p2 = scmp.lt.s32.totalorder %s395_s14, 3 }
   0x5   : > { %s456_s15 = smov (%p27_p1, %s25_s15), 0  ;;  %p172_p3 = pnand %p342_p0, %p171_p2 }
   0x6   : > { %p205_p4 = scmp.lt.s32.totalorder (!%p172_p3), %s387_s12, 1 }
   0x7   : > { %175 = sbr.rel (%p172_p3) target bundleno = 29 (0x1d), region = 32 }
   0xe   : > { %s458_s12 = smov (!%p205_p4, %s387_s12), 1 }
   0xf   : > { %s343_s16 = sshll.u32 %s458_s12, 1  ;;  %s214_s19 = scalar_lea.vmem %s450_s1, %s458_s12 }
  0x10   : > { %s211_s22 = scalar_lea.vmem %s449_s0, %s343_s16  ;;  %s217_s25 = scalar_lea.vmem %s451_s2, %s458_s12  ;;  %v345_v1 = vld [vmem:[%s214_s19] ss:$0 sm:$0xff] }
  0x11   : > { %v225_v0 = vld [vmem:[%s211_s22] sm:$0x3]  ;;  %s224_s28 = scalar_lea.vmem %s452_s3, %s343_s16 }
  0x12   : > { %v226_v2 = vunpack.c.l.bf16 %v225_v0  ;;  %v346_v3 = vld [vmem:[%s217_s25] ss:$0 sm:$0xff] }
  0x14   : > { %v234_v4 = vmul.f32 %v345_v1, %v226_v2 }
  0x16   : > { %v242_v5 = vadd.f32 %v346_v3, %v234_v4 }
  0x18   : > { %v243_v6 = vmax.f32 %v242_v5, 0.0 }
  0x1a   : > { %v244_v7 = vpack.c.bf16 %v243_v6, %v243_v6 }
  0x1c   : > { %245 = vst [vmem:[%s224_s28] sm:$0x3] %v244_v7 }
  0x1d PF: > { %s13_s14 = sadd.s32 1, %s395_s14   ;;  %s453_s12 = smov %s391_s13 }
  0x1e   : > { %p10_p5 = scmp.ge.s32.totalorder %s13_s14, 4   ;;  %s454_s13 = smov %s456_s15 }
  0x20   :  { %12 = sbr.rel (!%p10_p5) target bundleno = 2 (0x2), region = 68 }

// kernel: squeeze.30
= control target key start
LH: loop header
LB: loop body
LE: loop exit
PB: predicated region body
PF: predicated region fallthrough
CT: control target
= control target key end

     0   :  { %s66_s8 = smov 104   ;;  %vm7_vm0 = vcmask 64512   ;;  %s67_s11 = smov 112   ;;  %s117_s0 = inlined_call_operand.vmem [shape: f32[2,64], index: 0, kind: input, shape index: {}]   ;;  %s118_s1 = inlined_call_operand.vmem [shape: f32[2,8,8], index: 1, kind: output, shape index: {}]  }
   0x1   :  { %v4_v0 = vld [vmem:[%s117_s0] sm:$0x3]  ;;  %s65_s0 = smov 120   ;;  %s68_s12 = smov 96  }
   0x2   :  { %5 = vst [vmem:[#allocation0] sm:$0x3] %v4_v0  ;;  %s69_s13 = smov 88   ;;  %s70_s14 = smov 80  }
   0x3   :  { %s71_s15 = smov 72  }
   0x9   :  { %v9_v1 = vld [vmem:[#allocation0] sm:$0x3]  }
   0xa   :  { %v21_v2 = vld [vmem:[#allocation0] sm:$0x3]   ;;  %10 = vrot.lane.b32.xlu0 %v9_v1, %s65_s0 }
   0xb   :  { %22 = vrot.lane.b32.xlu1 %v21_v2, %s66_s8  ;;  %v15_v3 = vld [vmem:[#allocation0] sm:$0x3]  }
   0xc   :  { %v27_v4 = vld [vmem:[#allocation0] sm:$0x3]  }
   0xd   :  { %v6_v5 = vld [vmem:[#allocation0] sm:$0x3]  }
   0xe   :  { %8 = vst.msk [vmem:[%s118_s1] ss:$8 sm:$0x3] %vm7_vm0, %v6_v5   ;;  %16 = vrot.lane.b32.xlu0 %v15_v3, %s67_s11  ;;  %v33_v6 = vld [vmem:[#allocation0] sm:$0x3]  }
   0xf   :  { %28 = vrot.lane.b32.xlu1 %v27_v4, %s68_s12  ;;  %v39_v7 = vld [vmem:[#allocation0] sm:$0x3]  }
  0x10   :  { %v45_v8 = vld [vmem:[#allocation0] sm:$0x3]  }
  0x12   :  { %34 = vrot.lane.b32.xlu0 %v33_v6, %s69_s13 }
  0x13   :  { %40 = vrot.lane.b32.xlu1 %v39_v7, %s70_s14 }
  0x16   :  { %46 = vrot.lane.b32.xlu0 %v45_v8, %s71_s15 }
  0x7c   :  { %v11_v9 = vpop.permute.xlu0 %10  }
  0x7d   :  { %v23_v10 = vpop.permute.xlu1 %22   ;;  %51 = vst.msk [vmem:[%s118_s1 + $0x1] ss:$8 sm:$0x3] %vm7_vm0, %v11_v9  }
  0x7e   :  { %53 = vst.msk [vmem:[%s118_s1 + $0x3] ss:$8 sm:$0x3] %vm7_vm0, %v23_v10  }
  0x80   :  { %v17_v11 = vpop.permute.xlu0 %16  }
  0x81   :  { %v29_v12 = vpop.permute.xlu1 %28   ;;  %52 = vst.msk [vmem:[%s118_s1 + $0x2] ss:$8 sm:$0x3] %vm7_vm0, %v17_v11  }
  0x82   :  { %54 = vst.msk [vmem:[%s118_s1 + $0x4] ss:$8 sm:$0x3] %vm7_vm0, %v29_v12  }
  0x84   :  { %v35_v13 = vpop.permute.xlu0 %34  }
  0x85   :  { %v41_v14 = vpop.permute.xlu1 %40   ;;  %55 = vst.msk [vmem:[%s118_s1 + $0x5] ss:$8 sm:$0x3] %vm7_vm0, %v35_v13  }
  0x86   :  { %56 = vst.msk [vmem:[%s118_s1 + $0x6] ss:$8 sm:$0x3] %vm7_vm0, %v41_v14  }
  0x88   :  { %v47_v15 = vpop.permute.xlu0 %46  }
  0x89   :  { %57 = vst.msk [vmem:[%s118_s1 + $0x7] ss:$8 sm:$0x3] %vm7_vm0, %v47_v15  }

// kernel: _lambda_.26
= control target key start
LH: loop header
LB: loop body
LE: loop exit
PB: predicated region body
PF: predicated region fallthrough
CT: control target
= control target key end

     0   :  { %s1016_s15 = smov 0   ;;  %s1018_s16 = smov 0   ;;  %s1175_s0 = inlined_call_operand.vmem [shape: bf16[2,16,512], index: 0, kind: input, shape index: {}]   ;;  %s1176_s1 = inlined_call_operand.vmem [shape: bf16[512,32], index: 1, kind: input, shape index: {}]   ;;  %s1177_s2 = inlined_call_operand.vmem [shape: bf16[2,16,32], index: 2, kind: output, shape index: {0}]   ;;  %s1178_s3 = inlined_call_operand.vmem [shape: f32[2,1,32], index: 3, kind: output, shape index: {1}]   ;;  %s1179_s4 = inlined_call_operand.vmem [shape: f32[2,1,32], index: 4, kind: output, shape index: {2}]  }
   0x1   :  { %s1020_s17 = smov 0  }
   0x2 LB: > { %s27_s18 = sadd.s32 1, %s984_s16  ;;  %p810_p0 = scmp.ge.s32.totalorder %s988_s17, 1  ;;  %s988_s17 = sphi %s1020_s17, %s15_s17   ;;  %s984_s16 = sphi %s1018_s16, %s1181_s16   ;;  %s980_s15 = sphi %s1016_s15, %s1180_s15  }
   0x3   : > { %p29_p1 = scmp.ge.s32.totalorder %s27_s18, 2  ;;  %p189_p2 = scmp.lt.s32.totalorder %s988_s17, 3 }
   0x5   : > { %s1183_s18 = smov (%p29_p1, %s27_s18), 0  ;;  %p190_p3 = pnand %p810_p0, %p189_p2 }
   0x6   : > { %v928_v0 = vld [vmem:[%s1176_s1 + $0x40] sm:$0xff] (!%p190_p3)   ;;  %v932_v4 = vld [vmem:[%s1176_s1 + $0x48] sm:$0xff] (!%p190_p3)   ;;  %v936_v8 = vld [vmem:[%s1176_s1 + $0x50] sm:$0xff] (!%p190_p3)   ;;  %p231_p4 = scmp.lt.s32.totalorder (!%p190_p3), %s980_s15, 1  ;;  %vm635_vm0 = vcmask (!%p190_p3), 253952   ;;  %v990_v36 = vmov (!%p190_p3), 0.0  }
   0x7   : > { %193 = sbr.rel (%p190_p3) target bundleno = 280 (0x118), region = 28  ;;  %v929_v1 = vld [vmem:[%s1176_s1 + $0xc0] sm:$0xff] (!%p190_p3)   ;;  %859 = vmatprep.subr.bf16.mxu0 (!%p190_p3), %v928_v0  ;;  %v933_v5 = vld [vmem:[%s1176_s1 + $0xc8] sm:$0xff] (!%p190_p3)   ;;  %v937_v9 = vld [vmem:[%s1176_s1 + $0xd0] sm:$0xff] (!%p190_p3)   ;;  %vm628_vm1 = vcmask (!%p190_p3), 257024   ;;  %vm639_vm2 = vcmask (!%p190_p3), 261120  }
   0x8   : > { %v930_v2 = vld [vmem:[%s1176_s1] sm:$0xff] (!%p190_p3)   ;;  %881 = vmatprep.subr.bf16.mxu1 (!%p190_p3), %v929_v1  ;;  %v934_v6 = vld [vmem:[%s1176_s1 + $0x8] sm:$0xff] (!%p190_p3)   ;;  %v938_v10 = vld [vmem:[%s1176_s1 + $0x10] sm:$0xff] (!%p190_p3)  }
   0x9   : > { %v931_v3 = vld [vmem:[%s1176_s1 + $0x80] sm:$0xff] (!%p190_p3)   ;;  %860 = vmatpush3.bf16.msra.mxu0 (!%p190_p3), %v930_v2  ;;  %v935_v7 = vld [vmem:[%s1176_s1 + $0x88] sm:$0xff] (!%p190_p3)   ;;  %v939_v11 = vld [vmem:[%s1176_s1 + $0x90] sm:$0xff] (!%p190_p3)  }
   0xa   : > { %882 = vmatpush3.bf16.msra.mxu1 (!%p190_p3), %v931_v3  ;;  %861 = vmatprep.subr.bf16.mxu0 (!%p190_p3), %v932_v4  ;;  %v940_v12 = vld [vmem:[%s1176_s1 + $0x58] sm:$0xff] (!%p190_p3)   ;;  %v944_v16 = vld [vmem:[%s1176_s1 + $0x60] sm:$0xff] (!%p190_p3)   ;;  %v948_v20 = vld [vmem:[%s1176_s1 + $0x68] sm:$0xff] (!%p190_p3)  }
   0xb   : > { %883 = vmatprep.subr.bf16.mxu1 (!%p190_p3), %v933_v5  ;;  %v941_v13 = vld [vmem:[%s1176_s1 + $0xd8] sm:$0xff] (!%p190_p3)   ;;  %v945_v17 = vld [vmem:[%s1176_s1 + $0xe0] sm:$0xff] (!%p190_p3)   ;;  %v949_v21 = vld [vmem:[%s1176_s1 + $0xe8] sm:$0xff] (!%p190_p3)  }
   0xc   : > { %v942_v14 = vld [vmem:[%s1176_s1 + $0x18] sm:$0xff] (!%p190_p3)   ;;  %v946_v18 = vld [vmem:[%s1176_s1 + $0x20] sm:$0xff] (!%p190_p3)   ;;  %v950_v22 = vld [vmem:[%s1176_s1 + $0x28] sm:$0xff] (!%p190_p3)  }
   0xd   : > { %862 = vmatpush3.bf16.msra.mxu0 (!%p190_p3), %v934_v6  ;;  %v943_v15 = vld [vmem:[%s1176_s1 + $0x98] sm:$0xff] (!%p190_p3)   ;;  %v947_v19 = vld [vmem:[%s1176_s1 + $0xa0] sm:$0xff] (!%p190_p3)   ;;  %v951_v23 = vld [vmem:[%s1176_s1 + $0xa8] sm:$0xff] (!%p190_p3)  }
   0xe   : > { %884 = vmatpush3.bf16.msra.mxu1 %v935_v7  ;;  %863 = vmatprep.subr.bf16.mxu0 %v936_v8  ;;  %s1185_s15 = smov (!%p231_p4, %s980_s15), 1  ;;  %v952_v24 = vld [vmem:[%s1176_s1 + $0x70] sm:$0xff]   ;;  %v956_v28 = vld [vmem:[%s1176_s1 + $0x78] sm:$0xff]  }
   0xf   : > { %885 = vmatprep.subr.bf16.mxu1 %v937_v9  ;;  %v953_v25 = vld [vmem:[%s1176_s1 + $0xf0] sm:$0xff]   ;;  %s855_s29 = sshll.u32 %s1185_s15, 5  ;;  %v957_v29 = vld [vmem:[%s1176_s1 + $0xf8] sm:$0xff]   ;;  %s1144_s23 = scalar_lea.vmem %s1178_s3, %s1185_s15 }
  0x10   : > { %v954_v26 = vld [vmem:[%s1176_s1 + $0x30] sm:$0xff]   ;;  %s239_s12 = scalar_lea.vmem %s1175_s0, %s855_s29  ;;  %v958_v30 = vld [vmem:[%s1176_s1 + $0x38] sm:$0xff]   ;;  %s1150_s26 = scalar_lea.vmem %s1179_s4, %s1185_s15  ;;  %636 = vst.msk [vmem:[%s1144_s23] sm:$0x1] %vm635_vm0, %v990_v36 }
  0x11   : > { %864 = vmatpush3.bf16.msra.mxu0 %v938_v10  ;;  %v955_v27 = vld [vmem:[%s1176_s1 + $0xb0] sm:$0xff]   ;;  %v959_v31 = vld [vmem:[%s1176_s1 + $0xb8] sm:$0xff]   ;;  %637 = vst.msk [vmem:[%s1150_s26] sm:$0x1] %vm635_vm0, %v990_v36  ;;  %s856_s27 = sshll.u32 %s1185_s15, 3 }
  0x12   : > { %886 = vmatpush3.bf16.msra.mxu1 %v939_v11  ;;  %865 = vmatprep.subr.bf16.mxu0 %v940_v12  ;;  %v960_v32 = vld [vmem:[%s239_s12] ss:$16 sps:$4 sm:$0xff]   ;;  %v962_v33 = vld [vmem:[%s239_s12 + $0x4] ss:$16 sps:$4 sm:$0xff]   ;;  %v963_v34 = vld [vmem:[%s239_s12 + $0x8] ss:$16 sps:$4 sm:$0xff]   ;;  %s249_s30 = scalar_lea.vmem %s1177_s2, %s856_s27 }
  0x13   : > { %887 = vmatprep.subr.bf16.mxu1 %v941_v13  ;;  %v965_v35 = vld [vmem:[%s239_s12 + $0xc] ss:$16 sps:$4 sm:$0xff]   ;;  %570 = vmatprep.mubr.bf16.mxu0 %v962_v33 }
  0x14   : > { %611 = vmatprep.mubr.bf16.mxu1 %v965_v35 }
  0x15   : > { %866 = vmatpush3.bf16.msra.mxu0 %v942_v14 }
  0x16   : > { %888 = vmatpush3.bf16.msra.mxu1 %v943_v15  ;;  %867 = vmatprep.subr.bf16.mxu0 %v944_v16 }
  0x17   : > { %889 = vmatprep.subr.bf16.mxu1 %v945_v17  ;;  %v638_v6 = vld [vmem:[%s1144_s23] sm:$0x1] }
  0x18   : > { %v652_v9 = vld [vmem:[%s1150_s26] sm:$0x1] }
  0x19   : > { %868 = vmatpush3.bf16.msra.mxu0 %v946_v18 }
  0x1a   : > { %890 = vmatpush3.bf16.msra.mxu1 %v947_v19  ;;  %869 = vmatprep.subr.bf16.mxu0 %v948_v20 }
  0x1b   : > { %891 = vmatprep.subr.bf16.mxu1 %v949_v21 }
  0x1d   : > { %870 = vmatpush3.bf16.msra.mxu0 %v950_v22 }
  0x1e   : > { %892 = vmatpush3.bf16.msra.mxu1 %v951_v23  ;;  %871 = vmatprep.subr.bf16.mxu0 %v952_v24 }
  0x1f   : > { %893 = vmatprep.subr.bf16.mxu1 %v953_v25 }
  0x21   : > { %872 = vmatpush3.bf16.msra.mxu0 %v954_v26 }
  0x22   : > { %894 = vmatpush3.bf16.msra.mxu1 %v955_v27  ;;  %873 = vmatprep.subr.bf16.mxu0 %v956_v28 }
  0x23   : > { %895 = vmatprep.subr.bf16.mxu1 %v957_v29 }
  0x25   : > { %874 = vmatpush3.bf16.msra.mxu0 %v958_v30 }
  0x26   : > { %896 = vmatpush3.bf16.msra.mxu1 %v959_v31 }
  0x28   : > { %571 = vmatmul.mubr.bf16.vlgmr.msra.gmra.mrb[0].mxu0 %v960_v32 }
  0x29   : > { %612 = vmatmul.mubr.bf16.vlgmr.msra.gmra.mrb[0].mxu1 %v963_v34 }
  0xfb   : > { %v875_v37 = vpop.f32.mrb[0].mxu0 }
  0xfc   : > { %v897_v38 = vpop.f32.mrb[0].mxu1  ;;  %v876_v39 = vpop.f32.mrb[1].mxu0 }
  0xfd   : > { %v877_v40 = vadd.f32 %v876_v39, %v875_v37  ;;  %v898_v41 = vpop.f32.mrb[1].mxu1  ;;  %v878_v42 = vpop.f32.mrb[2].mxu0 }
  0xfe   : > { %v899_v43 = vadd.f32 %v898_v41, %v897_v38  ;;  %v900_v44 = vpop.f32.mrb[2].mxu1  ;;  %v879_v45 = vpop.f32.mrb[3].mxu0 }
  0xff   : > { %v880_v46 = vadd.f32 %v879_v45, %v878_v42  ;;  %v901_v47 = vpop.f32.mrb[3].mxu1 }
 0x100   : > { %v614_v48 = vadd.f32 %v899_v43, %v877_v40  ;;  %v902_v49 = vadd.f32 %v901_v47, %v900_v44 }
 0x102   : > { %v857_v50 = vpack.c.bf16 %v614_v48, %v614_v48  ;;  %v653_v51 = vmul.f32 %v614_v48, %v614_v48  ;;  %v617_v52 = vadd.f32 %v902_v49, %v880_v46  ;;  %v640_v53 = vsel %vm639_vm2, %v614_v48, 0.0 }
 0x104   : > { %629 = vst.msk [vmem:[%s249_s30] sm:$0xf] %vm628_vm1, %v857_v50  ;;  %v858_v54 = vpack.c.bf16 %v617_v52, %v617_v52  ;;  %v641_v55 = vsel %vm639_vm2, %v617_v52, 0.0  ;;  %v654_v56 = vmul.f32 %v617_v52, %v617_v52  ;;  %v655_v58 = vsel %vm639_vm2, %v653_v51, 0.0 }
 0x105   : > { %v642_v57 = vadd.f32 %v641_v55, %v640_v53 }
 0x106   : > { %630 = vst.msk [vmem:[%s249_s30 + $0x4] sm:$0xf] %vm628_vm1, %v858_v54  ;;  %v656_v59 = vsel %vm639_vm2, %v654_v56, 0.0 }
 0x107   : > { %v643_v60 = vrot.slane %v642_v57, 4  ;;  %v657_v61 = vadd.f32 %v656_v59, %v655_v58 }
 0x109   : > { %v644_v62 = vadd.f32 %v643_v60, %v642_v57  ;;  %v658_v63 = vrot.slane %v657_v61, 4 }
 0x10b   : > { %v645_v0 = vrot.slane %v644_v62, 2  ;;  %v659_v1 = vadd.f32 %v658_v63, %v657_v61 }
 0x10d   : > { %v646_v2 = vadd.f32 %v645_v0, %v644_v62  ;;  %v660_v3 = vrot.slane %v659_v1, 2 }
 0x10f   : > { %v647_v4 = vrot.slane %v646_v2, 1  ;;  %v661_v5 = vadd.f32 %v660_v3, %v659_v1 }
 0x111   : > { %v648_v7 = vadd.f32 %v647_v4, %v646_v2  ;;  %v662_v8 = vrot.slane %v661_v5, 1 }
 0x113   : > { %v649_v10 = vadd.f32 %v648_v7, %v638_v6  ;;  %v663_v11 = vadd.f32 %v662_v8, %v661_v5 }
 0x115   : > { %651 = vst.msk [vmem:[%s1144_s23] sm:$0x1] %vm635_vm0, %v649_v10  ;;  %v664_v12 = vadd.f32 %v663_v11, %v652_v9 }
 0x117   : > { %665 = vst.msk [vmem:[%s1150_s26] sm:$0x1] %vm635_vm0, %v664_v12 }
 0x118 PF: > { %s15_s17 = sadd.s32 1, %s988_s17   ;;  %s1180_s15 = smov %s984_s16 }
 0x119   : > { %p12_p5 = scmp.ge.s32.totalorder %s15_s17, 4   ;;  %s1181_s16 = smov %s1183_s18 }
 0x11b   :  { %14 = sbr.rel (!%p12_p5) target bundleno = 2 (0x2), region = 86 }

// kernel: _lambda_.30
= control target key start
LH: loop header
LB: loop body
LE: loop exit
PB: predicated region body
PF: predicated region fallthrough
CT: control target
= control target key end

     0   :  { %s1417_s15 = smov 0   ;;  %s1419_s16 = smov 0   ;;  %s1668_s0 = inlined_call_operand.vmem [shape: bf16[2,16,896], index: 0, kind: input, shape index: {}]   ;;  %s1669_s1 = inlined_call_operand.vmem [shape: bf16[896,64], index: 1, kind: input, shape index: {}]   ;;  %s1670_s2 = inlined_call_operand.vmem [shape: bf16[2,16,64], index: 2, kind: output, shape index: {0}]   ;;  %s1671_s3 = inlined_call_operand.vmem [shape: f32[2,1,64], index: 3, kind: output, shape index: {1}]   ;;  %s1672_s4 = inlined_call_operand.vmem [shape: f32[2,1,64], index: 4, kind: output, shape index: {2}]  }
   0x1   :  { %s1421_s17 = smov 0  }
   0x2 LB: > { %s27_s18 = sadd.s32 1, %s1384_s16  ;;  %p1104_p0 = scmp.ge.s32.totalorder %s1388_s17, 1  ;;  %s1388_s17 = sphi %s1421_s17, %s15_s17   ;;  %s1384_s16 = sphi %s1419_s16, %s1674_s16   ;;  %s1380_s15 = sphi %s1417_s15, %s1673_s15  }
   0x3   : > { %p29_p1 = scmp.ge.s32.totalorder %s27_s18, 2  ;;  %p189_p2 = scmp.lt.s32.totalorder %s1388_s17, 3 }
   0x5   : > { %s1676_s18 = smov (%p29_p1, %s27_s18), 0  ;;  %p190_p3 = pnand %p1104_p0, %p189_p2 }
   0x6   : > { %v1300_v0 = vld [vmem:[%s1669_s1 + $0x40] sm:$0xff] (!%p190_p3)   ;;  %v1304_v4 = vld [vmem:[%s1669_s1 + $0x48] sm:$0xff] (!%p190_p3)   ;;  %v1308_v8 = vld [vmem:[%s1669_s1 + $0x50] sm:$0xff] (!%p190_p3)   ;;  %p231_p4 = scmp.lt.s32.totalorder (!%p190_p3), %s1380_s15, 1  ;;  %v1390_v36 = vmov (!%p190_p3), 0.0   ;;  %vm1391_vm0 = vmmov (!%p190_p3), 0  }
   0x7   : > { %193 = sbr.rel (%p190_p3) target bundleno = 313 (0x139), region = 28  ;;  %v1301_v1 = vld [vmem:[%s1669_s1 + $0xc0] sm:$0xff] (!%p190_p3)   ;;  %1178 = vmatprep.subr.bf16.mxu0 (!%p190_p3), %v1300_v0  ;;  %v1305_v5 = vld [vmem:[%s1669_s1 + $0xc8] sm:$0xff] (!%p190_p3)   ;;  %v1309_v9 = vld [vmem:[%s1669_s1 + $0xd0] sm:$0xff] (!%p190_p3)   ;;  %vm929_vm1 = vcmask (!%p190_p3), 516096   ;;  %vm922_vm2 = vcmask (!%p190_p3), 519168  }
   0x8   : > { %v1302_v2 = vld [vmem:[%s1669_s1] sm:$0xff] (!%p190_p3)   ;;  %1200 = vmatprep.subr.bf16.mxu1 (!%p190_p3), %v1301_v1  ;;  %v1306_v6 = vld [vmem:[%s1669_s1 + $0x8] sm:$0xff] (!%p190_p3)   ;;  %v1310_v10 = vld [vmem:[%s1669_s1 + $0x10] sm:$0xff] (!%p190_p3)   ;;  %vm933_vm3 = vcmask (!%p190_p3), 523264  }
   0x9   : > { %v1303_v3 = vld [vmem:[%s1669_s1 + $0x80] sm:$0xff] (!%p190_p3)   ;;  %1179 = vmatpush3.bf16.msra.mxu0 (!%p190_p3), %v1302_v2  ;;  %v1307_v7 = vld [vmem:[%s1669_s1 + $0x88] sm:$0xff] (!%p190_p3)   ;;  %v1311_v11 = vld [vmem:[%s1669_s1 + $0x90] sm:$0xff] (!%p190_p3)  }
   0xa   : > { %1201 = vmatpush3.bf16.msra.mxu1 (!%p190_p3), %v1303_v3  ;;  %1180 = vmatprep.subr.bf16.mxu0 (!%p190_p3), %v1304_v4  ;;  %v1312_v12 = vld [vmem:[%s1669_s1 + $0x58] sm:$0xff] (!%p190_p3)   ;;  %v1316_v16 = vld [vmem:[%s1669_s1 + $0x60] sm:$0xff] (!%p190_p3)   ;;  %v1320_v20 = vld [vmem:[%s1669_s1 + $0x68] sm:$0xff] (!%p190_p3)  }
   0xb   : > { %1202 = vmatprep.subr.bf16.mxu1 (!%p190_p3), %v1305_v5  ;;  %v1313_v13 = vld [vmem:[%s1669_s1 + $0xd8] sm:$0xff] (!%p190_p3)   ;;  %v1317_v17 = vld [vmem:[%s1669_s1 + $0xe0] sm:$0xff] (!%p190_p3)   ;;  %v1321_v21 = vld [vmem:[%s1669_s1 + $0xe8] sm:$0xff] (!%p190_p3)  }
   0xc   : > { %v1314_v14 = vld [vmem:[%s1669_s1 + $0x18] sm:$0xff] (!%p190_p3)   ;;  %v1318_v18 = vld [vmem:[%s1669_s1 + $0x20] sm:$0xff] (!%p190_p3)   ;;  %v1322_v22 = vld [vmem:[%s1669_s1 + $0x28] sm:$0xff] (!%p190_p3)  }
   0xd   : > { %1181 = vmatpush3.bf16.msra.mxu0 (!%p190_p3), %v1306_v6  ;;  %v1315_v15 = vld [vmem:[%s1669_s1 + $0x98] sm:$0xff] (!%p190_p3)   ;;  %v1319_v19 = vld [vmem:[%s1669_s1 + $0xa0] sm:$0xff] (!%p190_p3)   ;;  %v1323_v23 = vld [vmem:[%s1669_s1 + $0xa8] sm:$0xff] (!%p190_p3)  }
   0xe   : > { %1203 = vmatpush3.bf16.msra.mxu1 %v1307_v7  ;;  %1182 = vmatprep.subr.bf16.mxu0 %v1308_v8  ;;  %s1678_s15 = smov (!%p231_p4, %s1380_s15), 1  ;;  %v1324_v24 = vld [vmem:[%s1669_s1 + $0x70] sm:$0xff]   ;;  %v1328_v28 = vld [vmem:[%s1669_s1 + $0x78] sm:$0xff]   ;;  %v1338_v37 = vld [vmem:[%s1669_s1 + $0x140] sm:$0xff]  }
   0xf   : > { %1204 = vmatprep.subr.bf16.mxu1 %v1309_v9  ;;  %v1325_v25 = vld [vmem:[%s1669_s1 + $0xf0] sm:$0xff]   ;;  %s1273_s27 = smul.u32 56, %s1678_s15  ;;  %v1329_v29 = vld [vmem:[%s1669_s1 + $0xf8] sm:$0xff]   ;;  %v1339_v38 = vld [vmem:[%s1669_s1 + $0x100] sm:$0xff]   ;;  %s1635_s29 = scalar_lea.vmem %s1671_s3, %s1678_s15 }
  0x10   : > { %v1326_v26 = vld [vmem:[%s1669_s1 + $0x30] sm:$0xff]   ;;  %v1330_v30 = vld [vmem:[%s1669_s1 + $0x38] sm:$0xff]   ;;  %v1340_v39 = vld [vmem:[%s1669_s1 + $0x180] sm:$0xff]   ;;  %s1641_s6 = scalar_lea.vmem %s1672_s4, %s1678_s15  ;;  %930 = vst.msk [vmem:[%s1635_s29] sm:$0x1] %vm929_vm1, %v1390_v36 }
  0x11   : > { %1183 = vmatpush3.bf16.msra.mxu0 %v1310_v10  ;;  %v1327_v27 = vld [vmem:[%s1669_s1 + $0xb0] sm:$0xff]   ;;  %s1535_s12 = scalar_lea.vmem %s1668_s0, %s1273_s27  ;;  %v1331_v31 = vld [vmem:[%s1669_s1 + $0xb8] sm:$0xff]   ;;  %v1341_v40 = vld [vmem:[%s1669_s1 + $0x148] sm:$0xff]   ;;  %931 = vst.msk [vmem:[%s1641_s6] sm:$0x1] %vm929_vm1, %v1390_v36 }
  0x12   : > { %1205 = vmatpush3.bf16.msra.mxu1 %v1311_v11  ;;  %1184 = vmatprep.subr.bf16.mxu0 %v1312_v12  ;;  %v1332_v32 = vld [vmem:[%s1535_s12] ss:$28 sps:$4 sm:$0xff]   ;;  %v1335_v34 = vld [vmem:[%s1535_s12 + $0x8] ss:$28 sps:$4 sm:$0xff]   ;;  %v1344_v43 = vld [vmem:[%s1669_s1 + $0x150] sm:$0xff]  }
  0x13   : > { %1206 = vmatprep.subr.bf16.mxu1 %v1313_v13  ;;  %v1334_v33 = vld [vmem:[%s1535_s12 + $0x4] ss:$28 sps:$4 sm:$0xff]   ;;  %v1337_v35 = vld [vmem:[%s1535_s12 + $0xc] ss:$28 sps:$4 sm:$0xff]   ;;  %v1345_v44 = vld [vmem:[%s1669_s1 + $0x110] sm:$0xff]  }
  0x14   : > { %782 = vmatprep.mubr.bf16.mxu0 %v1334_v33  ;;  %823 = vmatprep.mubr.bf16.mxu1 %v1337_v35  ;;  %v1342_v41 = vld [vmem:[%s1669_s1 + $0x108] sm:$0xff]   ;;  %v1346_v45 = vld [vmem:[%s1669_s1 + $0x190] sm:$0xff]   ;;  %v1347_v46 = vld [vmem:[%s1669_s1 + $0x158] sm:$0xff]  }
  0x15   : > { %1185 = vmatpush3.bf16.msra.mxu0 %v1314_v14  ;;  %v1343_v42 = vld [vmem:[%s1669_s1 + $0x188] sm:$0xff]   ;;  %v1348_v47 = vld [vmem:[%s1669_s1 + $0x118] sm:$0xff]   ;;  %v1350_v49 = vld [vmem:[%s1669_s1 + $0x160] sm:$0xff]  }
  0x16   : > { %1207 = vmatpush3.bf16.msra.mxu1 %v1315_v15  ;;  %1186 = vmatprep.subr.bf16.mxu0 %v1316_v16  ;;  %v1349_v48 = vld [vmem:[%s1669_s1 + $0x198] sm:$0xff]   ;;  %v1351_v50 = vld [vmem:[%s1669_s1 + $0x120] sm:$0xff]   ;;  %v1353_v52 = vld [vmem:[%s1669_s1 + $0x168] sm:$0xff]  }
  0x17   : > { %1208 = vmatprep.subr.bf16.mxu1 %v1317_v17  ;;  %v1352_v51 = vld [vmem:[%s1669_s1 + $0x1a0] sm:$0xff]   ;;  %v1354_v53 = vld [vmem:[%s1669_s1 + $0x128] sm:$0xff]   ;;  %v1356_v55 = vld [vmem:[%s1669_s1 + $0x170] sm:$0xff]  }
  0x18   : > { %v1355_v54 = vld [vmem:[%s1669_s1 + $0x1a8] sm:$0xff]   ;;  %v1357_v56 = vld [vmem:[%s1669_s1 + $0x130] sm:$0xff]   ;;  %v1359_v59 = vld [vmem:[%s1669_s1 + $0x178] sm:$0xff]  }
  0x19   : > { %1187 = vmatpush3.bf16.msra.mxu0 %v1318_v18  ;;  %v1358_v57 = vld [vmem:[%s1669_s1 + $0x1b0] sm:$0xff]   ;;  %v1360_v60 = vld [vmem:[%s1669_s1 + $0x138] sm:$0xff]  }
  0x1a   : > { %1209 = vmatpush3.bf16.msra.mxu1 %v1319_v19  ;;  %1188 = vmatprep.subr.bf16.mxu0 %v1320_v20  ;;  %v1363_v58 = vld [vmem:[%s1535_s12 + $0x14] ss:$28 sps:$4 sm:$0xff]   ;;  %v1364_v61 = vld [vmem:[%s1669_s1 + $0x1b8] sm:$0xff]  }
  0x1b   : > { %1210 = vmatprep.subr.bf16.mxu1 %v1321_v21  ;;  %v1361_v62 = vld [vmem:[%s1535_s12 + $0x10] ss:$28 sps:$4 sm:$0xff]   ;;  %v1365_v63 = vld [vmem:[%s1535_s12 + $0x18] ss:$28 sps:$4 sm:$0xff]   ;;  %s1175_s12 = sshll.u32 %s1678_s15, 3 }
  0x1c   : > { %s249_s9 = scalar_lea.vmem %s1670_s2, %s1175_s12 }
  0x1d   : > { %1189 = vmatpush3.bf16.msra.mxu0 %v1322_v22 }
  0x1e   : > { %1211 = vmatpush3.bf16.msra.mxu1 %v1323_v23  ;;  %1190 = vmatprep.subr.bf16.mxu0 %v1324_v24 }
  0x1f   : > { %1212 = vmatprep.subr.bf16.mxu1 %v1325_v25 }
  0x21   : > { %1191 = vmatpush3.bf16.msra.mxu0 %v1326_v26 }
  0x22   : > { %1213 = vmatpush3.bf16.msra.mxu1 %v1327_v27  ;;  %1192 = vmatprep.subr.bf16.mxu0 %v1328_v28 }
  0x23   : > { %1214 = vmatprep.subr.bf16.mxu1 %v1329_v29 }
  0x25   : > { %1193 = vmatpush3.bf16.msra.mxu0 %v1330_v30 }
  0x26   : > { %1215 = vmatpush3.bf16.msra.mxu1 %v1331_v31  ;;  %1222 = vmatprep.subr.bf16.mxu0 %v1338_v37 }
  0x27   : > { %1253 = vmatprep.subr.bf16.mxu1 %v1390_v36 }
  0x28   : > { %783 = vmatmul.mubr.bf16.vlgmr.msra.gmra.mrb[0].mxu0 %v1332_v32 }
  0x29   : > { %824 = vmatmul.mubr.bf16.vlgmr.msra.gmra.mrb[0].mxu1 %v1335_v34  ;;  %1223 = vmatpush3.bf16.msra.mxu0 %v1339_v38 }
  0x2a   : > { %1269 = vmatprep.mubr.msk.bf16.mxu1 %vm1391_vm0, %v1390_v36  ;;  %1254 = vmatpush3.bf16.msra.mxu1 %v1340_v39 }
  0x2b   : > { %1224 = vmatprep.subr.bf16.mxu0 %v1341_v40  ;;  %1255 = vmatprep.subr.bf16.mxu1 %v1390_v36 }
  0x2c   : > { %864 = vmatprep.mubr.bf16.mxu0 %v1363_v58 }
  0x2d   : > { %1225 = vmatpush3.bf16.msra.mxu0 %v1342_v41 }
  0x2e   : > { %1256 = vmatpush3.bf16.msra.mxu1 %v1343_v42  ;;  %1226 = vmatprep.subr.bf16.mxu0 %v1344_v43 }
  0x2f   : > { %1257 = vmatprep.subr.bf16.mxu1 %v1390_v36 }
  0x31   : > { %1227 = vmatpush3.bf16.msra.mxu0 %v1345_v44 }
  0x32   : > { %1258 = vmatpush3.bf16.msra.mxu1 %v1346_v45  ;;  %1228 = vmatprep.subr.bf16.mxu0 %v1347_v46 }
  0x33   : > { %1259 = vmatprep.subr.bf16.mxu1 %v1390_v36 }
  0x35   : > { %1229 = vmatpush3.bf16.msra.mxu0 %v1348_v47  ;;  %v932_v47 = vld [vmem:[%s1635_s29] sm:$0x1] }
  0x36   : > { %1260 = vmatpush3.bf16.msra.mxu1 %v1349_v48  ;;  %1230 = vmatprep.subr.bf16.mxu0 %v1350_v49 }
  0x37   : > { %1261 = vmatprep.subr.bf16.mxu1 %v1390_v36 }
  0x39   : > { %1231 = vmatpush3.bf16.msra.mxu0 %v1351_v50  ;;  %v946_v50 = vld [vmem:[%s1641_s6] sm:$0x1] }
  0x3a   : > { %1262 = vmatpush3.bf16.msra.mxu1 %v1352_v51  ;;  %1232 = vmatprep.subr.bf16.mxu0 %v1353_v52 }
  0x3b   : > { %1263 = vmatprep.subr.bf16.mxu1 %v1390_v36 }
  0x3d   : > { %1233 = vmatpush3.bf16.msra.mxu0 %v1354_v53 }
  0x3e   : > { %1264 = vmatpush3.bf16.msra.mxu1 %v1355_v54  ;;  %1234 = vmatprep.subr.bf16.mxu0 %v1356_v55 }
  0x3f   : > { %1265 = vmatprep.subr.bf16.mxu1 %v1390_v36 }
  0x41   : > { %1235 = vmatpush3.bf16.msra.mxu0 %v1357_v56 }
  0x42   : > { %1266 = vmatpush3.bf16.msra.mxu1 %v1358_v57  ;;  %1236 = vmatprep.subr.bf16.mxu0 %v1359_v59 }
  0x43   : > { %1267 = vmatprep.subr.bf16.mxu1 %v1390_v36 }
  0x45   : > { %1237 = vmatpush3.bf16.msra.mxu0 %v1360_v60 }
  0x46   : > { %1268 = vmatpush3.bf16.msra.mxu1 %v1364_v61 }
  0x48   : > { %865 = vmatmul.mubr.bf16.vlgmr.msra.gmra.mrb[4].mxu0 %v1361_v62 }
  0x49   : > { %1270 = vmatmul.mubr.bf16.vlgmr.msra.gmra.mrb[4].mxu1 %v1365_v63 }
  0xfb   : > { %v1194_v0 = vpop.f32.mrb[0].mxu0 }
  0xfc   : > { %v1216_v1 = vpop.f32.mrb[0].mxu1  ;;  %v1195_v2 = vpop.f32.mrb[1].mxu0 }
  0xfd   : > { %v1196_v3 = vadd.f32 %v1195_v2, %v1194_v0  ;;  %v1217_v4 = vpop.f32.mrb[1].mxu1  ;;  %v1197_v5 = vpop.f32.mrb[2].mxu0 }
  0xfe   : > { %v1218_v6 = vadd.f32 %v1217_v4, %v1216_v1  ;;  %v1219_v7 = vpop.f32.mrb[2].mxu1  ;;  %v1198_v8 = vpop.f32.mrb[3].mxu0 }
  0xff   : > { %v1199_v9 = vadd.f32 %v1198_v8, %v1197_v5  ;;  %v1220_v10 = vpop.f32.mrb[3].mxu1 }
 0x100   : > { %v826_v11 = vadd.f32 %v1218_v6, %v1196_v3  ;;  %v1221_v12 = vadd.f32 %v1220_v10, %v1219_v7 }
 0x102   : > { %v829_v13 = vadd.f32 %v1221_v12, %v1199_v9 }
 0x11b   : > { %v1238_v14 = vpop.f32.mrb[4].mxu0 }
 0x11c   : > { %v1239_v15 = vpop.f32.mrb[5].mxu0  ;;  %v907_v16 = vpop.f32.mrb[4].mxu1 }
 0x11d   : > { %v1240_v17 = vadd.f32 %v1239_v15, %v1238_v14  ;;  %v1241_v18 = vpop.f32.mrb[6].mxu0  ;;  %v1271_v19 = vpop.f32.mrb[5].mxu1 }
 0x11e   : > { %v1242_v20 = vpop.f32.mrb[7].mxu0  ;;  %v910_v21 = vpop.f32.mrb[6].mxu1 }
 0x11f   : > { %v867_v22 = vadd.f32 %v1240_v17, %v826_v11  ;;  %v1243_v23 = vadd.f32 %v1242_v20, %v1241_v18  ;;  %v1272_v24 = vpop.f32.mrb[7].mxu1 }
 0x121   : > { %v908_v25 = vadd.f32 %v907_v16, %v867_v22  ;;  %v870_v26 = vadd.f32 %v1243_v23, %v829_v13 }
 0x123   : > { %v1176_v27 = vpack.c.bf16 %v908_v25, %v908_v25  ;;  %v947_v28 = vmul.f32 %v908_v25, %v908_v25  ;;  %v911_v29 = vadd.f32 %v910_v21, %v870_v26  ;;  %v934_v30 = vsel %vm933_vm3, %v908_v25, 0.0 }
 0x125   : > { %923 = vst.msk [vmem:[%s249_s9] sm:$0xf] %vm922_vm2, %v1176_v27  ;;  %v1177_v31 = vpack.c.bf16 %v911_v29, %v911_v29  ;;  %v935_v32 = vsel %vm933_vm3, %v911_v29, 0.0  ;;  %v948_v33 = vmul.f32 %v911_v29, %v911_v29  ;;  %v949_v35 = vsel %vm933_vm3, %v947_v28, 0.0 }
 0x126   : > { %v936_v34 = vadd.f32 %v935_v32, %v934_v30 }
 0x127   : > { %924 = vst.msk [vmem:[%s249_s9 + $0x4] sm:$0xf] %vm922_vm2, %v1177_v31  ;;  %v950_v36 = vsel %vm933_vm3, %v948_v33, 0.0 }
 0x128   : > { %v937_v37 = vrot.slane %v936_v34, 4  ;;  %v951_v38 = vadd.f32 %v950_v36, %v949_v35 }
 0x12a   : > { %v938_v39 = vadd.f32 %v937_v37, %v936_v34  ;;  %v952_v40 = vrot.slane %v951_v38, 4 }
 0x12c   : > { %v939_v41 = vrot.slane %v938_v39, 2  ;;  %v953_v42 = vadd.f32 %v952_v40, %v951_v38 }
 0x12e   : > { %v940_v43 = vadd.f32 %v939_v41, %v938_v39  ;;  %v954_v44 = vrot.slane %v953_v42, 2 }
 0x130   : > { %v941_v45 = vrot.slane %v940_v43, 1  ;;  %v955_v46 = vadd.f32 %v954_v44, %v953_v42 }
 0x132   : > { %v942_v48 = vadd.f32 %v941_v45, %v940_v43  ;;  %v956_v49 = vrot.slane %v955_v46, 1 }
 0x134   : > { %v943_v51 = vadd.f32 %v942_v48, %v932_v47  ;;  %v957_v52 = vadd.f32 %v956_v49, %v955_v46 }
 0x136   : > { %945 = vst.msk [vmem:[%s1635_s29] sm:$0x1] %vm929_vm1, %v943_v51  ;;  %v958_v53 = vadd.f32 %v957_v52, %v946_v50 }
 0x138   : > { %959 = vst.msk [vmem:[%s1641_s6] sm:$0x1] %vm929_vm1, %v958_v53 }
 0x139 PF: > { %s15_s17 = sadd.s32 1, %s1388_s17   ;;  %s1673_s15 = smov %s1384_s16 }
 0x13a   : > { %p12_p5 = scmp.ge.s32.totalorder %s15_s17, 4   ;;  %s1674_s16 = smov %s1676_s18 }
 0x13c   :  { %14 = sbr.rel (!%p12_p5) target bundleno = 2 (0x2), region = 86 }

// kernel: squeeze.34
= control target key start
LH: loop header
LB: loop body
LE: loop exit
PB: predicated region body
PF: predicated region fallthrough
CT: control target
= control target key end

     0   :  { %vm11_vm0 = vcmask 64512   ;;  %s343_s10 = smov 104   ;;  %s344_s11 = smov 112   ;;  %s485_s0 = inlined_call_operand.vmem [shape: f32[2,256], index: 0, kind: input, shape index: {}]   ;;  %s486_s1 = inlined_call_operand.vmem [shape: f32[2,8,4,8], index: 1, kind: output, shape index: {}]  }
   0x1   :  { %v311_v0 = vld [vmem:[%s485_s0 + $0x2] sm:$0x3]  ;;  %v8_v1 = vld [vmem:[%s485_s0] sm:$0x3]  ;;  %s342_s0 = smov 120   ;;  %s345_s12 = smov 96  }
   0x2   :  { %7 = vst [vmem:[#allocation1 + $0x8] sm:$0x3] %v311_v0  ;;  %9 = vst [vmem:[#allocation1] sm:$0x3] %v8_v1  ;;  %s346_s13 = smov 88   ;;  %s347_s14 = smov 80  }
   0x3   :  { %s348_s15 = smov 72   ;;  %s349_s16 = smov 64  }
   0x4   :  { %s350_s17 = smov 56   ;;  %s351_s18 = smov 48  }
   0x5   :  { %s352_s19 = smov 40   ;;  %s353_s20 = smov 32  }
   0x6   :  { %s354_s21 = smov 24   ;;  %s355_s22 = smov 16  }
   0x7   :  { %s356_s23 = smov 8  }
   0x9   :  { %v22_v2 = vld.sshfl [vmem:[#allocation1] sm:$0xff pattern:$0x99999810]  }
   0xa   :  { %v16_v3 = vld [vmem:[#allocation1 + $0x8] sm:$0x3]   ;;  %23 = vrot.lane.b32.xlu0 %v22_v2, %s342_s0  ;;  %47 = vrot.lane.b32.xlu1 %v22_v2, %s343_s10  ;;  %v10_v4 = vld [vmem:[#allocation1] sm:$0x3]  }
   0xb   :  { %19 = vst.msk [vmem:[#allocation0 + $0x20] sm:$0x1] %vm11_vm0, %v16_v3   ;;  %21 = vst.msk [vmem:[#allocation0 + $0x5f] sm:$0x2] %vm11_vm0, %v16_v3  }
   0xc   :  { %14 = vst.msk [vmem:[#allocation0 + $0x3f] sm:$0x2] %vm11_vm0, %v10_v4   ;;  %12 = vst.msk [vmem:[#allocation0] sm:$0x1] %vm11_vm0, %v10_v4  }
   0xe   :  { %35 = vrot.lane.b32.xlu0 %v22_v2, %s344_s11  ;;  %59 = vrot.lane.b32.xlu1 %v22_v2, %s345_s12 }
  0x12   :  { %71 = vrot.lane.b32.xlu0 %v22_v2, %s346_s13  ;;  %83 = vrot.lane.b32.xlu1 %v22_v2, %s347_s14 }
  0x16   :  { %95 = vrot.lane.b32.xlu0 %v22_v2, %s348_s15  ;;  %107 = vrot.lane.b32.xlu1 %v22_v2, %s349_s16 }
  0x1a   :  { %119 = vrot.lane.b32.xlu0 %v22_v2, %s350_s17  ;;  %131 = vrot.lane.b32.xlu1 %v22_v2, %s351_s18 }
  0x1e   :  { %143 = vrot.lane.b32.xlu0 %v22_v2, %s352_s19  ;;  %155 = vrot.lane.b32.xlu1 %v22_v2, %s353_s20 }
  0x22   :  { %167 = vrot.lane.b32.xlu0 %v22_v2, %s354_s21  ;;  %179 = vrot.lane.b32.xlu1 %v22_v2, %s355_s22 }
  0x26   :  { %191 = vrot.lane.b32.xlu0 %v22_v2, %s356_s23 }
  0x7c   :  { %v24_v5 = vpop.permute.xlu0 %23   ;;  %v48_v6 = vpop.permute.xlu1 %47  }
  0x7d   :  { %27 = vst.msk [vmem:[#allocation0 + $0x1] sm:$0x1] %vm11_vm0, %v24_v5   ;;  %29 = vst.msk [vmem:[#allocation0 + $0x40] sm:$0x2] %vm11_vm0, %v24_v5  }
  0x7e   :  { %31 = vst.msk [vmem:[#allocation0 + $0x1f] sm:$0x4] %vm11_vm0, %v24_v5   ;;  %33 = vst.msk [vmem:[#allocation0 + $0x5e] sm:$0x8] %vm11_vm0, %v24_v5  }
  0x7f   :  { %51 = vst.msk [vmem:[#allocation0 + $0x3] sm:$0x1] %vm11_vm0, %v48_v6   ;;  %53 = vst.msk [vmem:[#allocation0 + $0x42] sm:$0x2] %vm11_vm0, %v48_v6  }
  0x80   :  { %55 = vst.msk [vmem:[#allocation0 + $0x21] sm:$0x4] %vm11_vm0, %v48_v6   ;;  %57 = vst.msk [vmem:[#allocation0 + $0x60] sm:$0x8] %vm11_vm0, %v48_v6   ;;  %v36_v7 = vpop.permute.xlu0 %35   ;;  %v60_v8 = vpop.permute.xlu1 %59  }
  0x81   :  { %39 = vst.msk [vmem:[#allocation0 + $0x2] sm:$0x1] %vm11_vm0, %v36_v7   ;;  %41 = vst.msk [vmem:[#allocation0 + $0x41] sm:$0x2] %vm11_vm0, %v36_v7  }
  0x82   :  { %43 = vst.msk [vmem:[#allocation0 + $0x20] sm:$0x4] %vm11_vm0, %v36_v7   ;;  %45 = vst.msk [vmem:[#allocation0 + $0x5f] sm:$0x8] %vm11_vm0, %v36_v7  }
  0x83   :  { %63 = vst.msk [vmem:[#allocation0 + $0x8] sm:$0x1] %vm11_vm0, %v60_v8   ;;  %65 = vst.msk [vmem:[#allocation0 + $0x47] sm:$0x2] %vm11_vm0, %v60_v8  }
  0x84   :  { %67 = vst.msk [vmem:[#allocation0 + $0x26] sm:$0x4] %vm11_vm0, %v60_v8   ;;  %69 = vst.msk [vmem:[#allocation0 + $0x65] sm:$0x8] %vm11_vm0, %v60_v8   ;;  %v72_v9 = vpop.permute.xlu0 %71   ;;  %v84_v10 = vpop.permute.xlu1 %83  }
  0x85   :  { %75 = vst.msk [vmem:[#allocation0 + $0x9] sm:$0x1] %vm11_vm0, %v72_v9   ;;  %77 = vst.msk [vmem:[#allocation0 + $0x48] sm:$0x2] %vm11_vm0, %v72_v9  }
  0x86   :  { %79 = vst.msk [vmem:[#allocation0 + $0x27] sm:$0x4] %vm11_vm0, %v72_v9   ;;  %81 = vst.msk [vmem:[#allocation0 + $0x66] sm:$0x8] %vm11_vm0, %v72_v9  }
  0x87   :  { %87 = vst.msk [vmem:[#allocation0 + $0xa] sm:$0x1] %vm11_vm0, %v84_v10   ;;  %89 = vst.msk [vmem:[#allocation0 + $0x49] sm:$0x2] %vm11_vm0, %v84_v10  }
  0x88   :  { %91 = vst.msk [vmem:[#allocation0 + $0x28] sm:$0x4] %vm11_vm0, %v84_v10   ;;  %93 = vst.msk [vmem:[#allocation0 + $0x67] sm:$0x8] %vm11_vm0, %v84_v10   ;;  %v205_v11 = vld [vmem:[#allocation0] sm:$0xf]  ;;  %v96_v14 = vpop.permute.xlu0 %95   ;;  %v108_v15 = vpop.permute.xlu1 %107  }
  0x89   :  { %v226_v12 = vld [vmem:[#allocation0 + $0x20] sm:$0xf]  ;;  %207 = vst [vmem:[%s486_s1] sm:$0xf] %v205_v11  ;;  %99 = vst.msk [vmem:[#allocation0 + $0xb] sm:$0x1] %vm11_vm0, %v96_v14  }
  0x8a   :  { %v250_v13 = vld [vmem:[#allocation0 + $0x40] sm:$0xf]  ;;  %315 = vst [vmem:[%s486_s1 + $0x10] sm:$0xf] %v226_v12  ;;  %101 = vst.msk [vmem:[#allocation0 + $0x4a] sm:$0x2] %vm11_vm0, %v96_v14  }
  0x8b   :  { %v274_v16 = vld [vmem:[#allocation0 + $0x60] sm:$0xf]  ;;  %319 = vst [vmem:[%s486_s1 + $0x20] sm:$0xf] %v250_v13  ;;  %103 = vst.msk [vmem:[#allocation0 + $0x29] sm:$0x4] %vm11_vm0, %v96_v14  }
  0x8c   :  { %105 = vst.msk [vmem:[#allocation0 + $0x68] sm:$0x8] %vm11_vm0, %v96_v14   ;;  %111 = vst.msk [vmem:[#allocation0 + $0x10] sm:$0x1] %vm11_vm0, %v108_v15   ;;  %v120_v17 = vpop.permute.xlu0 %119   ;;  %v132_v18 = vpop.permute.xlu1 %131  }
  0x8d   :  { %113 = vst.msk [vmem:[#allocation0 + $0x4f] sm:$0x2] %vm11_vm0, %v108_v15   ;;  %115 = vst.msk [vmem:[#allocation0 + $0x2e] sm:$0x4] %vm11_vm0, %v108_v15  }
  0x8e   :  { %117 = vst.msk [vmem:[#allocation0 + $0x6d] sm:$0x8] %vm11_vm0, %v108_v15   ;;  %323 = vst [vmem:[%s486_s1 + $0x30] sm:$0xf] %v274_v16 }
  0x8f   :  { %123 = vst.msk [vmem:[#allocation0 + $0x11] sm:$0x1] %vm11_vm0, %v120_v17   ;;  %125 = vst.msk [vmem:[#allocation0 + $0x50] sm:$0x2] %vm11_vm0, %v120_v17  }
  0x90   :  { %127 = vst.msk [vmem:[#allocation0 + $0x2f] sm:$0x4] %vm11_vm0, %v120_v17   ;;  %129 = vst.msk [vmem:[#allocation0 + $0x6e] sm:$0x8] %vm11_vm0, %v120_v17   ;;  %v209_v20 = vld [vmem:[#allocation0 + $0x8] sm:$0xf]  ;;  %v144_v22 = vpop.permute.xlu0 %143   ;;  %v156_v23 = vpop.permute.xlu1 %155  }
  0x91   :  { %135 = vst.msk [vmem:[#allocation0 + $0x12] sm:$0x1] %vm11_vm0, %v132_v18   ;;  %137 = vst.msk [vmem:[#allocation0 + $0x51] sm:$0x2] %vm11_vm0, %v132_v18   ;;  %v256_v19 = vld [vmem:[#allocation0 + $0x48] sm:$0xf] }
  0x92   :  { %139 = vst.msk [vmem:[#allocation0 + $0x30] sm:$0x4] %vm11_vm0, %v132_v18   ;;  %141 = vst.msk [vmem:[#allocation0 + $0x6f] sm:$0x8] %vm11_vm0, %v132_v18   ;;  %v232_v21 = vld [vmem:[#allocation0 + $0x28] sm:$0xf] }
  0x93   :  { %320 = vst [vmem:[%s486_s1 + $0x24] sm:$0xf] %v256_v19  ;;  %v280_v24 = vld [vmem:[#allocation0 + $0x68] sm:$0xf]  ;;  %312 = vst [vmem:[%s486_s1 + $0x4] sm:$0xf] %v209_v20 }
  0x94   :  { %316 = vst [vmem:[%s486_s1 + $0x14] sm:$0xf] %v232_v21  ;;  %147 = vst.msk [vmem:[#allocation0 + $0x13] sm:$0x1] %vm11_vm0, %v144_v22   ;;  %v168_v25 = vpop.permute.xlu0 %167   ;;  %v180_v26 = vpop.permute.xlu1 %179  }
  0x95   :  { %149 = vst.msk [vmem:[#allocation0 + $0x52] sm:$0x2] %vm11_vm0, %v144_v22   ;;  %151 = vst.msk [vmem:[#allocation0 + $0x31] sm:$0x4] %vm11_vm0, %v144_v22  }
  0x96   :  { %153 = vst.msk [vmem:[#allocation0 + $0x70] sm:$0x8] %vm11_vm0, %v144_v22   ;;  %159 = vst.msk [vmem:[#allocation0 + $0x18] sm:$0x1] %vm11_vm0, %v156_v23  }
  0x97   :  { %161 = vst.msk [vmem:[#allocation0 + $0x57] sm:$0x2] %vm11_vm0, %v156_v23   ;;  %163 = vst.msk [vmem:[#allocation0 + $0x36] sm:$0x4] %vm11_vm0, %v156_v23  }
  0x98   :  { %165 = vst.msk [vmem:[#allocation0 + $0x75] sm:$0x8] %vm11_vm0, %v156_v23   ;;  %324 = vst [vmem:[%s486_s1 + $0x34] sm:$0xf] %v280_v24  ;;  %v192_v30 = vpop.permute.xlu0 %191  }
  0x99   :  { %171 = vst.msk [vmem:[#allocation0 + $0x19] sm:$0x1] %vm11_vm0, %v168_v25   ;;  %173 = vst.msk [vmem:[#allocation0 + $0x58] sm:$0x2] %vm11_vm0, %v168_v25  }
  0x9a   :  { %175 = vst.msk [vmem:[#allocation0 + $0x37] sm:$0x4] %vm11_vm0, %v168_v25   ;;  %177 = vst.msk [vmem:[#allocation0 + $0x76] sm:$0x8] %vm11_vm0, %v168_v25  }
  0x9b   :  { %183 = vst.msk [vmem:[#allocation0 + $0x1a] sm:$0x1] %vm11_vm0, %v180_v26   ;;  %185 = vst.msk [vmem:[#allocation0 + $0x59] sm:$0x2] %vm11_vm0, %v180_v26   ;;  %v214_v28 = vld [vmem:[#allocation0 + $0x10] sm:$0xf] }
  0x9c   :  { %187 = vst.msk [vmem:[#allocation0 + $0x38] sm:$0x4] %vm11_vm0, %v180_v26   ;;  %189 = vst.msk [vmem:[#allocation0 + $0x77] sm:$0x8] %vm11_vm0, %v180_v26   ;;  %v238_v27 = vld [vmem:[#allocation0 + $0x30] sm:$0xf] }
  0x9d   :  { %v262_v29 = vld [vmem:[#allocation0 + $0x50] sm:$0xf]  ;;  %317 = vst [vmem:[%s486_s1 + $0x18] sm:$0xf] %v238_v27  ;;  %313 = vst [vmem:[%s486_s1 + $0x8] sm:$0xf] %v214_v28 }
  0x9e   :  { %v286_v31 = vld [vmem:[#allocation0 + $0x70] sm:$0xf]  ;;  %321 = vst [vmem:[%s486_s1 + $0x28] sm:$0xf] %v262_v29  ;;  %195 = vst.msk [vmem:[#allocation0 + $0x1b] sm:$0x1] %vm11_vm0, %v192_v30  }
  0x9f   :  { %197 = vst.msk [vmem:[#allocation0 + $0x5a] sm:$0x2] %vm11_vm0, %v192_v30   ;;  %199 = vst.msk [vmem:[#allocation0 + $0x39] sm:$0x4] %vm11_vm0, %v192_v30  }
  0xa0   :  { %201 = vst.msk [vmem:[#allocation0 + $0x78] sm:$0x8] %vm11_vm0, %v192_v30   ;;  %325 = vst [vmem:[%s486_s1 + $0x38] sm:$0xf] %v286_v31 }
  0xa5   :  { %v220_v32 = vld [vmem:[#allocation0 + $0x18] sm:$0xf] }
  0xa6   :  { %v244_v33 = vld [vmem:[#allocation0 + $0x38] sm:$0xf]  ;;  %314 = vst [vmem:[%s486_s1 + $0xc] sm:$0xf] %v220_v32 }
  0xa7   :  { %v268_v34 = vld [vmem:[#allocation0 + $0x58] sm:$0xf]  ;;  %318 = vst [vmem:[%s486_s1 + $0x1c] sm:$0xf] %v244_v33 }
  0xa8   :  { %322 = vst [vmem:[%s486_s1 + $0x2c] sm:$0xf] %v268_v34  ;;  %v292_v35 = vld [vmem:[#allocation0 + $0x78] sm:$0xf] }
  0xa9   :  { %326 = vst [vmem:[%s486_s1 + $0x3c] sm:$0xf] %v292_v35 }

// kernel: _lambda_.28
= control target key start
LH: loop header
LB: loop body
LE: loop exit
PB: predicated region body
PF: predicated region fallthrough
CT: control target
= control target key end

     0   :  { %s1417_s15 = smov 0   ;;  %s1419_s16 = smov 0   ;;  %s1668_s0 = inlined_call_operand.vmem [shape: bf16[2,16,896], index: 0, kind: input, shape index: {}]   ;;  %s1669_s1 = inlined_call_operand.vmem [shape: bf16[896,32], index: 1, kind: input, shape index: {}]   ;;  %s1670_s2 = inlined_call_operand.vmem [shape: bf16[2,16,32], index: 2, kind: output, shape index: {0}]   ;;  %s1671_s3 = inlined_call_operand.vmem [shape: f32[2,1,32], index: 3, kind: output, shape index: {1}]   ;;  %s1672_s4 = inlined_call_operand.vmem [shape: f32[2,1,32], index: 4, kind: output, shape index: {2}]  }
   0x1   :  { %s1421_s17 = smov 0  }
   0x2 LB: > { %s27_s18 = sadd.s32 1, %s1384_s16  ;;  %p1104_p0 = scmp.ge.s32.totalorder %s1388_s17, 1  ;;  %s1388_s17 = sphi %s1421_s17, %s15_s17   ;;  %s1384_s16 = sphi %s1419_s16, %s1674_s16   ;;  %s1380_s15 = sphi %s1417_s15, %s1673_s15  }
   0x3   : > { %p29_p1 = scmp.ge.s32.totalorder %s27_s18, 2  ;;  %p189_p2 = scmp.lt.s32.totalorder %s1388_s17, 3 }
   0x5   : > { %s1676_s18 = smov (%p29_p1, %s27_s18), 0  ;;  %p190_p3 = pnand %p1104_p0, %p189_p2 }
   0x6   : > { %v1300_v0 = vld [vmem:[%s1669_s1 + $0x40] sm:$0xff] (!%p190_p3)   ;;  %v1304_v4 = vld [vmem:[%s1669_s1 + $0x48] sm:$0xff] (!%p190_p3)   ;;  %v1308_v8 = vld [vmem:[%s1669_s1 + $0x50] sm:$0xff] (!%p190_p3)   ;;  %p231_p4 = scmp.lt.s32.totalorder (!%p190_p3), %s1380_s15, 1  ;;  %v1390_v36 = vmov (!%p190_p3), 0.0   ;;  %vm1391_vm0 = vmmov (!%p190_p3), 0  }
   0x7   : > { %193 = sbr.rel (%p190_p3) target bundleno = 313 (0x139), region = 28  ;;  %v1301_v1 = vld [vmem:[%s1669_s1 + $0xc0] sm:$0xff] (!%p190_p3)   ;;  %1178 = vmatprep.subr.bf16.mxu0 (!%p190_p3), %v1300_v0  ;;  %v1305_v5 = vld [vmem:[%s1669_s1 + $0xc8] sm:$0xff] (!%p190_p3)   ;;  %v1309_v9 = vld [vmem:[%s1669_s1 + $0xd0] sm:$0xff] (!%p190_p3)   ;;  %vm929_vm1 = vcmask (!%p190_p3), 253952   ;;  %vm922_vm2 = vcmask (!%p190_p3), 257024  }
   0x8   : > { %v1302_v2 = vld [vmem:[%s1669_s1] sm:$0xff] (!%p190_p3)   ;;  %1200 = vmatprep.subr.bf16.mxu1 (!%p190_p3), %v1301_v1  ;;  %v1306_v6 = vld [vmem:[%s1669_s1 + $0x8] sm:$0xff] (!%p190_p3)   ;;  %v1310_v10 = vld [vmem:[%s1669_s1 + $0x10] sm:$0xff] (!%p190_p3)   ;;  %vm933_vm3 = vcmask (!%p190_p3), 261120  }
   0x9   : > { %v1303_v3 = vld [vmem:[%s1669_s1 + $0x80] sm:$0xff] (!%p190_p3)   ;;  %1179 = vmatpush3.bf16.msra.mxu0 (!%p190_p3), %v1302_v2  ;;  %v1307_v7 = vld [vmem:[%s1669_s1 + $0x88] sm:$0xff] (!%p190_p3)   ;;  %v1311_v11 = vld [vmem:[%s1669_s1 + $0x90] sm:$0xff] (!%p190_p3)  }
   0xa   : > { %1201 = vmatpush3.bf16.msra.mxu1 (!%p190_p3), %v1303_v3  ;;  %1180 = vmatprep.subr.bf16.mxu0 (!%p190_p3), %v1304_v4  ;;  %v1312_v12 = vld [vmem:[%s1669_s1 + $0x58] sm:$0xff] (!%p190_p3)   ;;  %v1316_v16 = vld [vmem:[%s1669_s1 + $0x60] sm:$0xff] (!%p190_p3)   ;;  %v1320_v20 = vld [vmem:[%s1669_s1 + $0x68] sm:$0xff] (!%p190_p3)  }
   0xb   : > { %1202 = vmatprep.subr.bf16.mxu1 (!%p190_p3), %v1305_v5  ;;  %v1313_v13 = vld [vmem:[%s1669_s1 + $0xd8] sm:$0xff] (!%p190_p3)   ;;  %v1317_v17 = vld [vmem:[%s1669_s1 + $0xe0] sm:$0xff] (!%p190_p3)   ;;  %v1321_v21 = vld [vmem:[%s1669_s1 + $0xe8] sm:$0xff] (!%p190_p3)  }
   0xc   : > { %v1314_v14 = vld [vmem:[%s1669_s1 + $0x18] sm:$0xff] (!%p190_p3)   ;;  %v1318_v18 = vld [vmem:[%s1669_s1 + $0x20] sm:$0xff] (!%p190_p3)   ;;  %v1322_v22 = vld [vmem:[%s1669_s1 + $0x28] sm:$0xff] (!%p190_p3)  }
   0xd   : > { %1181 = vmatpush3.bf16.msra.mxu0 (!%p190_p3), %v1306_v6  ;;  %v1315_v15 = vld [vmem:[%s1669_s1 + $0x98] sm:$0xff] (!%p190_p3)   ;;  %v1319_v19 = vld [vmem:[%s1669_s1 + $0xa0] sm:$0xff] (!%p190_p3)   ;;  %v1323_v23 = vld [vmem:[%s1669_s1 + $0xa8] sm:$0xff] (!%p190_p3)  }
   0xe   : > { %1203 = vmatpush3.bf16.msra.mxu1 %v1307_v7  ;;  %1182 = vmatprep.subr.bf16.mxu0 %v1308_v8  ;;  %s1678_s15 = smov (!%p231_p4, %s1380_s15), 1  ;;  %v1324_v24 = vld [vmem:[%s1669_s1 + $0x70] sm:$0xff]   ;;  %v1328_v28 = vld [vmem:[%s1669_s1 + $0x78] sm:$0xff]   ;;  %v1338_v37 = vld [vmem:[%s1669_s1 + $0x140] sm:$0xff]  }
   0xf   : > { %1204 = vmatprep.subr.bf16.mxu1 %v1309_v9  ;;  %v1325_v25 = vld [vmem:[%s1669_s1 + $0xf0] sm:$0xff]   ;;  %s1273_s27 = smul.u32 56, %s1678_s15  ;;  %v1329_v29 = vld [vmem:[%s1669_s1 + $0xf8] sm:$0xff]   ;;  %v1339_v38 = vld [vmem:[%s1669_s1 + $0x100] sm:$0xff]   ;;  %s1635_s29 = scalar_lea.vmem %s1671_s3, %s1678_s15 }
  0x10   : > { %v1326_v26 = vld [vmem:[%s1669_s1 + $0x30] sm:$0xff]   ;;  %v1330_v30 = vld [vmem:[%s1669_s1 + $0x38] sm:$0xff]   ;;  %v1340_v39 = vld [vmem:[%s1669_s1 + $0x180] sm:$0xff]   ;;  %s1641_s6 = scalar_lea.vmem %s1672_s4, %s1678_s15  ;;  %930 = vst.msk [vmem:[%s1635_s29] sm:$0x1] %vm929_vm1, %v1390_v36 }
  0x11   : > { %1183 = vmatpush3.bf16.msra.mxu0 %v1310_v10  ;;  %v1327_v27 = vld [vmem:[%s1669_s1 + $0xb0] sm:$0xff]   ;;  %s1535_s12 = scalar_lea.vmem %s1668_s0, %s1273_s27  ;;  %v1331_v31 = vld [vmem:[%s1669_s1 + $0xb8] sm:$0xff]   ;;  %v1341_v40 = vld [vmem:[%s1669_s1 + $0x148] sm:$0xff]   ;;  %931 = vst.msk [vmem:[%s1641_s6] sm:$0x1] %vm929_vm1, %v1390_v36 }
  0x12   : > { %1205 = vmatpush3.bf16.msra.mxu1 %v1311_v11  ;;  %1184 = vmatprep.subr.bf16.mxu0 %v1312_v12  ;;  %v1332_v32 = vld [vmem:[%s1535_s12] ss:$28 sps:$4 sm:$0xff]   ;;  %v1335_v34 = vld [vmem:[%s1535_s12 + $0x8] ss:$28 sps:$4 sm:$0xff]   ;;  %v1344_v43 = vld [vmem:[%s1669_s1 + $0x150] sm:$0xff]  }
  0x13   : > { %1206 = vmatprep.subr.bf16.mxu1 %v1313_v13  ;;  %v1334_v33 = vld [vmem:[%s1535_s12 + $0x4] ss:$28 sps:$4 sm:$0xff]   ;;  %v1337_v35 = vld [vmem:[%s1535_s12 + $0xc] ss:$28 sps:$4 sm:$0xff]   ;;  %v1345_v44 = vld [vmem:[%s1669_s1 + $0x110] sm:$0xff]  }
  0x14   : > { %782 = vmatprep.mubr.bf16.mxu0 %v1334_v33  ;;  %823 = vmatprep.mubr.bf16.mxu1 %v1337_v35  ;;  %v1342_v41 = vld [vmem:[%s1669_s1 + $0x108] sm:$0xff]   ;;  %v1346_v45 = vld [vmem:[%s1669_s1 + $0x190] sm:$0xff]   ;;  %v1347_v46 = vld [vmem:[%s1669_s1 + $0x158] sm:$0xff]  }
  0x15   : > { %1185 = vmatpush3.bf16.msra.mxu0 %v1314_v14  ;;  %v1343_v42 = vld [vmem:[%s1669_s1 + $0x188] sm:$0xff]   ;;  %v1348_v47 = vld [vmem:[%s1669_s1 + $0x118] sm:$0xff]   ;;  %v1350_v49 = vld [vmem:[%s1669_s1 + $0x160] sm:$0xff]  }
  0x16   : > { %1207 = vmatpush3.bf16.msra.mxu1 %v1315_v15  ;;  %1186 = vmatprep.subr.bf16.mxu0 %v1316_v16  ;;  %v1349_v48 = vld [vmem:[%s1669_s1 + $0x198] sm:$0xff]   ;;  %v1351_v50 = vld [vmem:[%s1669_s1 + $0x120] sm:$0xff]   ;;  %v1353_v52 = vld [vmem:[%s1669_s1 + $0x168] sm:$0xff]  }
  0x17   : > { %1208 = vmatprep.subr.bf16.mxu1 %v1317_v17  ;;  %v1352_v51 = vld [vmem:[%s1669_s1 + $0x1a0] sm:$0xff]   ;;  %v1354_v53 = vld [vmem:[%s1669_s1 + $0x128] sm:$0xff]   ;;  %v1356_v55 = vld [vmem:[%s1669_s1 + $0x170] sm:$0xff]  }
  0x18   : > { %v1355_v54 = vld [vmem:[%s1669_s1 + $0x1a8] sm:$0xff]   ;;  %v1357_v56 = vld [vmem:[%s1669_s1 + $0x130] sm:$0xff]   ;;  %v1359_v59 = vld [vmem:[%s1669_s1 + $0x178] sm:$0xff]  }
  0x19   : > { %1187 = vmatpush3.bf16.msra.mxu0 %v1318_v18  ;;  %v1358_v57 = vld [vmem:[%s1669_s1 + $0x1b0] sm:$0xff]   ;;  %v1360_v60 = vld [vmem:[%s1669_s1 + $0x138] sm:$0xff]  }
  0x1a   : > { %1209 = vmatpush3.bf16.msra.mxu1 %v1319_v19  ;;  %1188 = vmatprep.subr.bf16.mxu0 %v1320_v20  ;;  %v1363_v58 = vld [vmem:[%s1535_s12 + $0x14] ss:$28 sps:$4 sm:$0xff]   ;;  %v1364_v61 = vld [vmem:[%s1669_s1 + $0x1b8] sm:$0xff]  }
  0x1b   : > { %1210 = vmatprep.subr.bf16.mxu1 %v1321_v21  ;;  %v1361_v62 = vld [vmem:[%s1535_s12 + $0x10] ss:$28 sps:$4 sm:$0xff]   ;;  %v1365_v63 = vld [vmem:[%s1535_s12 + $0x18] ss:$28 sps:$4 sm:$0xff]   ;;  %s1175_s12 = sshll.u32 %s1678_s15, 3 }
  0x1c   : > { %s249_s9 = scalar_lea.vmem %s1670_s2, %s1175_s12 }
  0x1d   : > { %1189 = vmatpush3.bf16.msra.mxu0 %v1322_v22 }
  0x1e   : > { %1211 = vmatpush3.bf16.msra.mxu1 %v1323_v23  ;;  %1190 = vmatprep.subr.bf16.mxu0 %v1324_v24 }
  0x1f   : > { %1212 = vmatprep.subr.bf16.mxu1 %v1325_v25 }
  0x21   : > { %1191 = vmatpush3.bf16.msra.mxu0 %v1326_v26 }
  0x22   : > { %1213 = vmatpush3.bf16.msra.mxu1 %v1327_v27  ;;  %1192 = vmatprep.subr.bf16.mxu0 %v1328_v28 }
  0x23   : > { %1214 = vmatprep.subr.bf16.mxu1 %v1329_v29 }
  0x25   : > { %1193 = vmatpush3.bf16.msra.mxu0 %v1330_v30 }
  0x26   : > { %1215 = vmatpush3.bf16.msra.mxu1 %v1331_v31  ;;  %1222 = vmatprep.subr.bf16.mxu0 %v1338_v37 }
  0x27   : > { %1253 = vmatprep.subr.bf16.mxu1 %v1390_v36 }
  0x28   : > { %783 = vmatmul.mubr.bf16.vlgmr.msra.gmra.mrb[0].mxu0 %v1332_v32 }
  0x29   : > { %824 = vmatmul.mubr.bf16.vlgmr.msra.gmra.mrb[0].mxu1 %v1335_v34  ;;  %1223 = vmatpush3.bf16.msra.mxu0 %v1339_v38 }
  0x2a   : > { %1269 = vmatprep.mubr.msk.bf16.mxu1 %vm1391_vm0, %v1390_v36  ;;  %1254 = vmatpush3.bf16.msra.mxu1 %v1340_v39 }
  0x2b   : > { %1224 = vmatprep.subr.bf16.mxu0 %v1341_v40  ;;  %1255 = vmatprep.subr.bf16.mxu1 %v1390_v36 }
  0x2c   : > { %864 = vmatprep.mubr.bf16.mxu0 %v1363_v58 }
  0x2d   : > { %1225 = vmatpush3.bf16.msra.mxu0 %v1342_v41 }
  0x2e   : > { %1256 = vmatpush3.bf16.msra.mxu1 %v1343_v42  ;;  %1226 = vmatprep.subr.bf16.mxu0 %v1344_v43 }
  0x2f   : > { %1257 = vmatprep.subr.bf16.mxu1 %v1390_v36 }
  0x31   : > { %1227 = vmatpush3.bf16.msra.mxu0 %v1345_v44 }
  0x32   : > { %1258 = vmatpush3.bf16.msra.mxu1 %v1346_v45  ;;  %1228 = vmatprep.subr.bf16.mxu0 %v1347_v46 }
  0x33   : > { %1259 = vmatprep.subr.bf16.mxu1 %v1390_v36 }
  0x35   : > { %1229 = vmatpush3.bf16.msra.mxu0 %v1348_v47  ;;  %v932_v47 = vld [vmem:[%s1635_s29] sm:$0x1] }
  0x36   : > { %1260 = vmatpush3.bf16.msra.mxu1 %v1349_v48  ;;  %1230 = vmatprep.subr.bf16.mxu0 %v1350_v49 }
  0x37   : > { %1261 = vmatprep.subr.bf16.mxu1 %v1390_v36 }
  0x39   : > { %1231 = vmatpush3.bf16.msra.mxu0 %v1351_v50  ;;  %v946_v50 = vld [vmem:[%s1641_s6] sm:$0x1] }
  0x3a   : > { %1262 = vmatpush3.bf16.msra.mxu1 %v1352_v51  ;;  %1232 = vmatprep.subr.bf16.mxu0 %v1353_v52 }
  0x3b   : > { %1263 = vmatprep.subr.bf16.mxu1 %v1390_v36 }
  0x3d   : > { %1233 = vmatpush3.bf16.msra.mxu0 %v1354_v53 }
  0x3e   : > { %1264 = vmatpush3.bf16.msra.mxu1 %v1355_v54  ;;  %1234 = vmatprep.subr.bf16.mxu0 %v1356_v55 }
  0x3f   : > { %1265 = vmatprep.subr.bf16.mxu1 %v1390_v36 }
  0x41   : > { %1235 = vmatpush3.bf16.msra.mxu0 %v1357_v56 }
  0x42   : > { %1266 = vmatpush3.bf16.msra.mxu1 %v1358_v57  ;;  %1236 = vmatprep.subr.bf16.mxu0 %v1359_v59 }
  0x43   : > { %1267 = vmatprep.subr.bf16.mxu1 %v1390_v36 }
  0x45   : > { %1237 = vmatpush3.bf16.msra.mxu0 %v1360_v60 }
  0x46   : > { %1268 = vmatpush3.bf16.msra.mxu1 %v1364_v61 }
  0x48   : > { %865 = vmatmul.mubr.bf16.vlgmr.msra.gmra.mrb[4].mxu0 %v1361_v62 }
  0x49   : > { %1270 = vmatmul.mubr.bf16.vlgmr.msra.gmra.mrb[4].mxu1 %v1365_v63 }
  0xfb   : > { %v1194_v0 = vpop.f32.mrb[0].mxu0 }
  0xfc   : > { %v1216_v1 = vpop.f32.mrb[0].mxu1  ;;  %v1195_v2 = vpop.f32.mrb[1].mxu0 }
  0xfd   : > { %v1196_v3 = vadd.f32 %v1195_v2, %v1194_v0  ;;  %v1217_v4 = vpop.f32.mrb[1].mxu1  ;;  %v1197_v5 = vpop.f32.mrb[2].mxu0 }
  0xfe   : > { %v1218_v6 = vadd.f32 %v1217_v4, %v1216_v1  ;;  %v1219_v7 = vpop.f32.mrb[2].mxu1  ;;  %v1198_v8 = vpop.f32.mrb[3].mxu0 }
  0xff   : > { %v1199_v9 = vadd.f32 %v1198_v8, %v1197_v5  ;;  %v1220_v10 = vpop.f32.mrb[3].mxu1 }
 0x100   : > { %v826_v11 = vadd.f32 %v1218_v6, %v1196_v3  ;;  %v1221_v12 = vadd.f32 %v1220_v10, %v1219_v7 }
 0x102   : > { %v829_v13 = vadd.f32 %v1221_v12, %v1199_v9 }
 0x11b   : > { %v1238_v14 = vpop.f32.mrb[4].mxu0 }
 0x11c   : > { %v1239_v15 = vpop.f32.mrb[5].mxu0  ;;  %v907_v16 = vpop.f32.mrb[4].mxu1 }
 0x11d   : > { %v1240_v17 = vadd.f32 %v1239_v15, %v1238_v14  ;;  %v1241_v18 = vpop.f32.mrb[6].mxu0  ;;  %v1271_v19 = vpop.f32.mrb[5].mxu1 }
 0x11e   : > { %v1242_v20 = vpop.f32.mrb[7].mxu0  ;;  %v910_v21 = vpop.f32.mrb[6].mxu1 }
 0x11f   : > { %v867_v22 = vadd.f32 %v1240_v17, %v826_v11  ;;  %v1243_v23 = vadd.f32 %v1242_v20, %v1241_v18  ;;  %v1272_v24 = vpop.f32.mrb[7].mxu1 }
 0x121   : > { %v908_v25 = vadd.f32 %v907_v16, %v867_v22  ;;  %v870_v26 = vadd.f32 %v1243_v23, %v829_v13 }
 0x123   : > { %v1176_v27 = vpack.c.bf16 %v908_v25, %v908_v25  ;;  %v947_v28 = vmul.f32 %v908_v25, %v908_v25  ;;  %v911_v29 = vadd.f32 %v910_v21, %v870_v26  ;;  %v934_v30 = vsel %vm933_vm3, %v908_v25, 0.0 }
 0x125   : > { %923 = vst.msk [vmem:[%s249_s9] sm:$0xf] %vm922_vm2, %v1176_v27  ;;  %v1177_v31 = vpack.c.bf16 %v911_v29, %v911_v29  ;;  %v935_v32 = vsel %vm933_vm3, %v911_v29, 0.0  ;;  %v948_v33 = vmul.f32 %v911_v29, %v911_v29  ;;  %v949_v35 = vsel %vm933_vm3, %v947_v28, 0.0 }
 0x126   : > { %v936_v34 = vadd.f32 %v935_v32, %v934_v30 }
 0x127   : > { %924 = vst.msk [vmem:[%s249_s9 + $0x4] sm:$0xf] %vm922_vm2, %v1177_v31  ;;  %v950_v36 = vsel %vm933_vm3, %v948_v33, 0.0 }
 0x128   : > { %v937_v37 = vrot.slane %v936_v34, 4  ;;  %v951_v38 = vadd.f32 %v950_v36, %v949_v35 }
 0x12a   : > { %v938_v39 = vadd.f32 %v937_v37, %v936_v34  ;;  %v952_v40 = vrot.slane %v951_v38, 4 }
 0x12c   : > { %v939_v41 = vrot.slane %v938_v39, 2  ;;  %v953_v42 = vadd.f32 %v952_v40, %v951_v38 }
 0x12e   : > { %v940_v43 = vadd.f32 %v939_v41, %v938_v39  ;;  %v954_v44 = vrot.slane %v953_v42, 2 }
 0x130   : > { %v941_v45 = vrot.slane %v940_v43, 1  ;;  %v955_v46 = vadd.f32 %v954_v44, %v953_v42 }
 0x132   : > { %v942_v48 = vadd.f32 %v941_v45, %v940_v43  ;;  %v956_v49 = vrot.slane %v955_v46, 1 }
 0x134   : > { %v943_v51 = vadd.f32 %v942_v48, %v932_v47  ;;  %v957_v52 = vadd.f32 %v956_v49, %v955_v46 }
 0x136   : > { %945 = vst.msk [vmem:[%s1635_s29] sm:$0x1] %vm929_vm1, %v943_v51  ;;  %v958_v53 = vadd.f32 %v957_v52, %v946_v50 }
 0x138   : > { %959 = vst.msk [vmem:[%s1641_s6] sm:$0x1] %vm929_vm1, %v958_v53 }
 0x139 PF: > { %s15_s17 = sadd.s32 1, %s1388_s17   ;;  %s1673_s15 = smov %s1384_s16 }
 0x13a   : > { %p12_p5 = scmp.ge.s32.totalorder %s15_s17, 4   ;;  %s1674_s16 = smov %s1676_s18 }
 0x13c   :  { %14 = sbr.rel (!%p12_p5) target bundleno = 2 (0x2), region = 86 }

// kernel: _lambda_.34
= control target key start
LH: loop header
LB: loop body
LE: loop exit
PB: predicated region body
PF: predicated region fallthrough
CT: control target
= control target key end

     0   :  { %s1287_s15 = smov 0   ;;  %s1289_s16 = smov 0   ;;  %s1553_s0 = inlined_call_operand.vmem [shape: bf16[2,16,512], index: 0, kind: input, shape index: {}]   ;;  %s1554_s1 = inlined_call_operand.vmem [shape: bf16[512,256], index: 1, kind: input, shape index: {}]   ;;  %s1555_s2 = inlined_call_operand.vmem [shape: bf16[2,16,256], index: 2, kind: output, shape index: {0}]   ;;  %s1556_s3 = inlined_call_operand.vmem [shape: f32[2,1,256], index: 3, kind: output, shape index: {1}]   ;;  %s1557_s4 = inlined_call_operand.vmem [shape: f32[2,1,256], index: 4, kind: output, shape index: {2}]  }
   0x1   :  { %s1291_s17 = smov 0  }
   0x2 LB: > { %s27_s18 = sadd.s32 1, %s1254_s16  ;;  %p1021_p0 = scmp.ge.s32.totalorder %s1258_s17, 1  ;;  %s1258_s17 = sphi %s1291_s17, %s15_s17   ;;  %s1254_s16 = sphi %s1289_s16, %s1561_s16   ;;  %s1250_s15 = sphi %s1287_s15, %s1560_s15  }
   0x3   : > { %p29_p1 = scmp.ge.s32.totalorder %s27_s18, 2  ;;  %p189_p2 = scmp.lt.s32.totalorder %s1258_s17, 3 }
   0x5   : > { %s1563_s18 = smov (%p29_p1, %s27_s18), 0  ;;  %p190_p3 = pnand %p1021_p0, %p189_p2 }
   0x6   : > { %v1134_v0 = vld [vmem:[%s1554_s1 + $0x4] ss:$8 sps:$4 sm:$0xff] (!%p190_p3)   ;;  %p234_p4 = scmp.lt.s32.totalorder (!%p190_p3), %s1250_s15, 1  ;;  %v775_v1 = vlaneseq (!%p190_p3)  ;;  %v1138_v3 = vld [vmem:[%s1554_s1] ss:$8 sps:$4 sm:$0xff] (!%p190_p3)   ;;  %v1260_v14 = vmov (!%p190_p3), 0.0  }
   0x7   : > { %193 = sbr.rel (%p190_p3) target bundleno = 314 (0x13a), region = 28  ;;  %v1136_v2 = vld [vmem:[%s1554_s1 + $0x104] ss:$8 sps:$4 sm:$0xff] (!%p190_p3)   ;;  %671 = vmatprep.subr.bf16.mxu1 (!%p190_p3), %v1134_v0  ;;  %v1139_v4 = vld [vmem:[%s1554_s1 + $0x100] ss:$8 sps:$4 sm:$0xff] (!%p190_p3)  }
   0x8   : > { %714 = vmatprep.subr.bf16.mxu0 (!%p190_p3), %v1136_v2  ;;  %v1140_v5 = vld [vmem:[%s1554_s1 + $0x14] ss:$8 sps:$4 sm:$0xff] (!%p190_p3)   ;;  %672 = vmatpush1.bf16.msra.mxu1 (!%p190_p3), %v1138_v3  ;;  %v1144_v7 = vld [vmem:[%s1554_s1 + $0x10] ss:$8 sps:$4 sm:$0xff] (!%p190_p3)   ;;  %vm1329_vm0 = vcmp.lt.s32.totalorder (!%p190_p3), %v775_v1, 256 }
   0x9   : > { %715 = vmatpush1.bf16.msra.mxu0 (!%p190_p3), %v1139_v4  ;;  %v1142_v6 = vld [vmem:[%s1554_s1 + $0x114] ss:$8 sps:$4 sm:$0xff] (!%p190_p3)   ;;  %673 = vmatprep.subr.bf16.mxu1 (!%p190_p3), %v1140_v5  ;;  %v1145_v9 = vld [vmem:[%s1554_s1 + $0x110] ss:$8 sps:$4 sm:$0xff] (!%p190_p3)   ;;  %v1146_v10 = vld [vmem:[%s1554_s1 + $0x24] ss:$8 sps:$4 sm:$0xff] (!%p190_p3)  }
   0xa   : > { %716 = vmatprep.subr.bf16.mxu0 (!%p190_p3), %v1142_v6  ;;  %v1148_v11 = vld [vmem:[%s1554_s1 + $0x124] ss:$8 sps:$4 sm:$0xff] (!%p190_p3)   ;;  %v1150_v12 = vld [vmem:[%s1554_s1 + $0x20] ss:$8 sps:$4 sm:$0xff] (!%p190_p3)   ;;  %v1152_v15 = vld [vmem:[%s1554_s1 + $0x34] ss:$8 sps:$4 sm:$0xff] (!%p190_p3)  }
   0xb   : > { %v1151_v13 = vld [vmem:[%s1554_s1 + $0x120] ss:$8 sps:$4 sm:$0xff] (!%p190_p3)   ;;  %v1154_v16 = vld [vmem:[%s1554_s1 + $0x134] ss:$8 sps:$4 sm:$0xff] (!%p190_p3)   ;;  %v1156_v17 = vld [vmem:[%s1554_s1 + $0x30] ss:$8 sps:$4 sm:$0xff] (!%p190_p3)  }
   0xc   : > { %674 = vmatpush1.bf16.msra.mxu1 (!%p190_p3), %v1144_v7  ;;  %v1157_v18 = vld [vmem:[%s1554_s1 + $0x130] ss:$8 sps:$4 sm:$0xff] (!%p190_p3)   ;;  %v1158_v19 = vld [vmem:[%s1554_s1 + $0x44] ss:$8 sps:$4 sm:$0xff] (!%p190_p3)   ;;  %v1162_v21 = vld [vmem:[%s1554_s1 + $0x40] ss:$8 sps:$4 sm:$0xff] (!%p190_p3)  }
   0xd   : > { %717 = vmatpush1.bf16.msra.mxu0 (!%p190_p3), %v1145_v9  ;;  %675 = vmatprep.subr.bf16.mxu1 (!%p190_p3), %v1146_v10  ;;  %v1160_v20 = vld [vmem:[%s1554_s1 + $0x144] ss:$8 sps:$4 sm:$0xff] (!%p190_p3)   ;;  %v1163_v22 = vld [vmem:[%s1554_s1 + $0x140] ss:$8 sps:$4 sm:$0xff] (!%p190_p3)   ;;  %v1164_v23 = vld [vmem:[%s1554_s1 + $0x54] ss:$8 sps:$4 sm:$0xff] (!%p190_p3)  }
   0xe   : > { %s1565_s15 = smov (!%p234_p4, %s1250_s15), 1  ;;  %718 = vmatprep.subr.bf16.mxu0 %v1148_v11  ;;  %v1166_v24 = vld [vmem:[%s1554_s1 + $0x154] ss:$8 sps:$4 sm:$0xff]   ;;  %v1168_v25 = vld [vmem:[%s1554_s1 + $0x50] ss:$8 sps:$4 sm:$0xff]  }
   0xf   : > { %s1026_s9 = sshll.u32 %s1565_s15, 1  ;;  %v1169_v26 = vld [vmem:[%s1554_s1 + $0x150] ss:$8 sps:$4 sm:$0xff]   ;;  %v1170_v27 = vld [vmem:[%s1554_s1 + $0x64] ss:$8 sps:$4 sm:$0xff]   ;;  %s1100_s28 = sshll.u32 %s1565_s15, 5 }
  0x10   : > { %s1343_s14 = scalar_lea.vmem %s1556_s3, %s1026_s9  ;;  %s1348_s21 = scalar_lea.vmem %s1557_s4, %s1026_s9  ;;  %676 = vmatpush1.bf16.msra.mxu1 %v1150_v12  ;;  %v1172_v28 = vld [vmem:[%s1554_s1 + $0x164] ss:$8 sps:$4 sm:$0xff]   ;;  %v1174_v29 = vld [vmem:[%s1554_s1 + $0x60] ss:$8 sps:$4 sm:$0xff]   ;;  %v1176_v31 = vld [vmem:[%s1554_s1 + $0x74] ss:$8 sps:$4 sm:$0xff]  }
  0x11   : > { %779 = vst.msk [vmem:[%s1343_s14] sm:$0x3] %vm1329_vm0, %v1260_v14  ;;  %780 = vst.msk [vmem:[%s1348_s21] sm:$0x3] %vm1329_vm0, %v1260_v14  ;;  %719 = vmatpush1.bf16.msra.mxu0 %v1151_v13  ;;  %677 = vmatprep.subr.bf16.mxu1 %v1152_v15  ;;  %v1175_v30 = vld [vmem:[%s1554_s1 + $0x160] ss:$8 sps:$4 sm:$0xff]   ;;  %s1468_s11 = scalar_lea.vmem %s1553_s0, %s1100_s28 }
  0x12   : > { %720 = vmatprep.subr.bf16.mxu0 %v1154_v16  ;;  %v1178_v32 = vld [vmem:[%s1554_s1 + $0x174] ss:$8 sps:$4 sm:$0xff]   ;;  %v1180_v33 = vld [vmem:[%s1554_s1 + $0x70] ss:$8 sps:$4 sm:$0xff]   ;;  %v1182_v35 = vld [vmem:[%s1554_s1 + $0x84] ss:$8 sps:$4 sm:$0xff]  }
  0x13   : > { %v1181_v34 = vld [vmem:[%s1554_s1 + $0x170] ss:$8 sps:$4 sm:$0xff]   ;;  %v1184_v36 = vld [vmem:[%s1554_s1 + $0x184] ss:$8 sps:$4 sm:$0xff]   ;;  %v1186_v37 = vld [vmem:[%s1554_s1 + $0x80] ss:$8 sps:$4 sm:$0xff]  }
  0x14   : > { %678 = vmatpush1.bf16.msra.mxu1 %v1156_v17  ;;  %v1187_v38 = vld [vmem:[%s1554_s1 + $0x180] ss:$8 sps:$4 sm:$0xff]   ;;  %v1188_v39 = vld [vmem:[%s1554_s1 + $0x94] ss:$8 sps:$4 sm:$0xff]   ;;  %v1192_v41 = vld [vmem:[%s1554_s1 + $0x90] ss:$8 sps:$4 sm:$0xff]  }
  0x15   : > { %721 = vmatpush1.bf16.msra.mxu0 %v1157_v18  ;;  %679 = vmatprep.subr.bf16.mxu1 %v1158_v19  ;;  %v1190_v40 = vld [vmem:[%s1554_s1 + $0x194] ss:$8 sps:$4 sm:$0xff]   ;;  %v1193_v42 = vld [vmem:[%s1554_s1 + $0x190] ss:$8 sps:$4 sm:$0xff]   ;;  %v1194_v43 = vld [vmem:[%s1554_s1 + $0xa4] ss:$8 sps:$4 sm:$0xff]  }
  0x16   : > { %722 = vmatprep.subr.bf16.mxu0 %v1160_v20  ;;  %v1196_v44 = vld [vmem:[%s1554_s1 + $0x1a4] ss:$8 sps:$4 sm:$0xff]   ;;  %v1198_v45 = vld [vmem:[%s1554_s1 + $0xa0] ss:$8 sps:$4 sm:$0xff]   ;;  %v1200_v47 = vld [vmem:[%s1554_s1 + $0xb4] ss:$8 sps:$4 sm:$0xff]  }
  0x17   : > { %v1199_v46 = vld [vmem:[%s1554_s1 + $0x1a0] ss:$8 sps:$4 sm:$0xff]   ;;  %v1202_v48 = vld [vmem:[%s1554_s1 + $0x1b4] ss:$8 sps:$4 sm:$0xff]   ;;  %v1204_v49 = vld [vmem:[%s1554_s1 + $0xb0] ss:$8 sps:$4 sm:$0xff]  }
  0x18   : > { %680 = vmatpush1.bf16.msra.mxu1 %v1162_v21  ;;  %v1232_v50 = vld [vmem:[%s1468_s11 + $0x4] ss:$16 sps:$4 sm:$0xff]   ;;  %v1205_v51 = vld [vmem:[%s1554_s1 + $0x1b0] ss:$8 sps:$4 sm:$0xff]   ;;  %v1235_v54 = vld [vmem:[%s1468_s11 + $0xc] ss:$16 sps:$4 sm:$0xff]  }
  0x19   : > { %723 = vmatpush1.bf16.msra.mxu0 %v1163_v22  ;;  %681 = vmatprep.subr.bf16.mxu1 %v1164_v23  ;;  %v1206_v52 = vld [vmem:[%s1554_s1 + $0xc4] ss:$8 sps:$4 sm:$0xff]   ;;  %v1210_v55 = vld [vmem:[%s1554_s1 + $0xc0] ss:$8 sps:$4 sm:$0xff]   ;;  %v1212_v57 = vld [vmem:[%s1554_s1 + $0xd4] ss:$8 sps:$4 sm:$0xff]  }
  0x1a   : > { %724 = vmatprep.subr.bf16.mxu0 %v1166_v24  ;;  %v1208_v53 = vld [vmem:[%s1554_s1 + $0x1c4] ss:$8 sps:$4 sm:$0xff]   ;;  %703 = vmatprep.mubr.bf16.mxu1 %v1232_v50  ;;  %v1211_v56 = vld [vmem:[%s1554_s1 + $0x1c0] ss:$8 sps:$4 sm:$0xff]   ;;  %v1214_v58 = vld [vmem:[%s1554_s1 + $0x1d4] ss:$8 sps:$4 sm:$0xff]  }
  0x1b   : > { %746 = vmatprep.mubr.bf16.mxu0 %v1235_v54  ;;  %v1216_v59 = vld [vmem:[%s1554_s1 + $0xd0] ss:$8 sps:$4 sm:$0xff]   ;;  %v1218_v61 = vld [vmem:[%s1554_s1 + $0xe4] ss:$8 sps:$4 sm:$0xff]   ;;  %v1222_v63 = vld [vmem:[%s1554_s1 + $0xe0] ss:$8 sps:$4 sm:$0xff]  }
  0x1c   : > { %682 = vmatpush1.bf16.msra.mxu1 %v1168_v25  ;;  %v1217_v60 = vld [vmem:[%s1554_s1 + $0x1d0] ss:$8 sps:$4 sm:$0xff]   ;;  %v1220_v62 = vld [vmem:[%s1554_s1 + $0x1e4] ss:$8 sps:$4 sm:$0xff]   ;;  %v1223_v0 = vld [vmem:[%s1554_s1 + $0x1e0] ss:$8 sps:$4 sm:$0xff]  }
  0x1d   : > { %725 = vmatpush1.bf16.msra.mxu0 %v1169_v26  ;;  %683 = vmatprep.subr.bf16.mxu1 %v1170_v27  ;;  %v1224_v2 = vld [vmem:[%s1554_s1 + $0xf4] ss:$8 sps:$4 sm:$0xff]   ;;  %v1228_v4 = vld [vmem:[%s1554_s1 + $0xf0] ss:$8 sps:$4 sm:$0xff]   ;;  %s1101_s12 = sshll.u32 %s1565_s15, 4 }
  0x1e   : > { %726 = vmatprep.subr.bf16.mxu0 %v1172_v28  ;;  %v1226_v3 = vld [vmem:[%s1554_s1 + $0x1f4] ss:$8 sps:$4 sm:$0xff]   ;;  %v1229_v5 = vld [vmem:[%s1554_s1 + $0x1f0] ss:$8 sps:$4 sm:$0xff]   ;;  %s253_s20 = scalar_lea.vmem %s1555_s2, %s1101_s12 }
  0x1f   : > { %v1230_v6 = vld [vmem:[%s1468_s11] ss:$16 sps:$4 sm:$0xff]   ;;  %v1233_v7 = vld [vmem:[%s1468_s11 + $0x8] ss:$16 sps:$4 sm:$0xff]  }
  0x20   : > { %684 = vmatpush1.bf16.msra.mxu1 %v1174_v29 }
  0x21   : > { %727 = vmatpush1.bf16.msra.mxu0 %v1175_v30  ;;  %685 = vmatprep.subr.bf16.mxu1 %v1176_v31 }
  0x22   : > { %728 = vmatprep.subr.bf16.mxu0 %v1178_v32 }
  0x24   : > { %686 = vmatpush1.bf16.msra.mxu1 %v1180_v33 }
  0x25   : > { %729 = vmatpush1.bf16.msra.mxu0 %v1181_v34  ;;  %687 = vmatprep.subr.bf16.mxu1 %v1182_v35 }
  0x26   : > { %730 = vmatprep.subr.bf16.mxu0 %v1184_v36  ;;  %v1261_v36 = vmov 1966171168  }
  0x28   : > { %688 = vmatpush1.bf16.msra.mxu1 %v1186_v37  ;;  %v800_v37 = vunpack.c.l.s4 %v1261_v36 }
  0x29   : > { %731 = vmatpush1.bf16.msra.mxu0 %v1187_v38  ;;  %689 = vmatprep.subr.bf16.mxu1 %v1188_v39 }
  0x2a   : > { %732 = vmatprep.subr.bf16.mxu0 %v1190_v40 }
  0x2c   : > { %690 = vmatpush1.bf16.msra.mxu1 %v1192_v41 }
  0x2d   : > { %733 = vmatpush1.bf16.msra.mxu0 %v1193_v42  ;;  %691 = vmatprep.subr.bf16.mxu1 %v1194_v43 }
  0x2e   : > { %734 = vmatprep.subr.bf16.mxu0 %v1196_v44 }
  0x30   : > { %692 = vmatpush1.bf16.msra.mxu1 %v1198_v45 }
  0x31   : > { %735 = vmatpush1.bf16.msra.mxu0 %v1199_v46  ;;  %693 = vmatprep.subr.bf16.mxu1 %v1200_v47  ;;  %v801_v46 = vunpack.c.0.s8 %v800_v37  ;;  %v803_v47 = vshrl.u32 %v775_v1, 7  ;;  %v781_v1 = vld [vmem:[%s1343_s14] sm:$0x3] }
  0x32   : > { %736 = vmatprep.subr.bf16.mxu0 %v1202_v48 }
  0x34   : > { %694 = vmatpush1.bf16.msra.mxu1 %v1204_v49 }
  0x35   : > { %737 = vmatpush1.bf16.msra.mxu0 %v1205_v51  ;;  %695 = vmatprep.subr.bf16.mxu1 %v1206_v52 }
  0x36   : > { %738 = vmatprep.subr.bf16.mxu0 %v1208_v53 }
  0x38   : > { %696 = vmatpush1.bf16.msra.mxu1 %v1210_v55 }
  0x39   : > { %739 = vmatpush1.bf16.msra.mxu0 %v1211_v56  ;;  %697 = vmatprep.subr.bf16.mxu1 %v1212_v57  ;;  %v804_v56 = vsub.s32 %v801_v46, %v803_v47 }
  0x3a   : > { %740 = vmatprep.subr.bf16.mxu0 %v1214_v58 }
  0x3c   : > { %698 = vmatpush1.bf16.msra.mxu1 %v1216_v59 }
  0x3d   : > { %741 = vmatpush1.bf16.msra.mxu0 %v1217_v60  ;;  %699 = vmatprep.subr.bf16.mxu1 %v1218_v61 }
  0x3e   : > { %742 = vmatprep.subr.bf16.mxu0 %v1220_v62 }
  0x40   : > { %700 = vmatpush1.bf16.msra.mxu1 %v1222_v63 }
  0x41   : > { %743 = vmatpush1.bf16.msra.mxu0 %v1223_v0  ;;  %701 = vmatprep.subr.bf16.mxu1 %v1224_v2  ;;  %v820_v2 = vld [vmem:[%s1348_s21] sm:$0x3] }
  0x42   : > { %744 = vmatprep.subr.bf16.mxu0 %v1226_v3 }
  0x44   : > { %702 = vmatpush1.bf16.msra.mxu1 %v1228_v4 }
  0x45   : > { %745 = vmatpush1.bf16.msra.mxu0 %v1229_v5 }
  0x47   : > { %704 = vmatmul.mubr.bf16.vlgmr.msra.gmra.mrb[0].mxu1 %v1230_v6 }
  0x48   : > { %747 = vmatmul.mubr.bf16.vlgmr.msra.gmra.mrb[0].mxu0 %v1233_v7 }
 0x11a   : > { %v705_v9 = vpop.f32.mrb[0].mxu1 }
 0x11b   : > { %v748_v10 = vpop.f32.mrb[0].mxu0  ;;  %v707_v12 = vpop.f32.mrb[1].mxu1 }
 0x11c   : > { %v749_v11 = vadd.f32 %v748_v10, %v705_v9  ;;  %v750_v13 = vpop.f32.mrb[1].mxu0  ;;  %v709_v15 = vpop.f32.mrb[2].mxu1 }
 0x11d   : > { %v751_v14 = vadd.f32 %v750_v13, %v707_v12  ;;  %v752_v16 = vpop.f32.mrb[2].mxu0  ;;  %v711_v18 = vpop.f32.mrb[3].mxu1 }
 0x11e   : > { %v753_v17 = vadd.f32 %v752_v16, %v709_v15  ;;  %v754_v19 = vpop.f32.mrb[3].mxu0  ;;  %v821_v22 = vmul.f32 %v749_v11, %v749_v11 }
 0x11f   : > { %v1102_v20 = vpack.c.bf16 %v751_v14, %v749_v11  ;;  %v755_v21 = vadd.f32 %v754_v19, %v711_v18  ;;  %v822_v25 = vmul.f32 %v751_v14, %v751_v14 }
 0x120   : > { %v782_v23 = vadd.f32 %v753_v17, %v749_v11  ;;  %v823_v24 = vmul.f32 %v753_v17, %v753_v17 }
 0x121   : > { %769 = vst [vmem:[%s253_s20] sm:$0xff] %v1102_v20  ;;  %v1103_v26 = vpack.c.bf16 %v755_v21, %v753_v17  ;;  %v789_v27 = vadd.f32 %v755_v21, %v751_v14  ;;  %v824_v28 = vmul.f32 %v755_v21, %v755_v21 }
 0x122   : > { %v783_v29 = vrot.slane %v782_v23, 4  ;;  %v825_v30 = vadd.f32 %v823_v24, %v821_v22 }
 0x123   : > { %770 = vst [vmem:[%s253_s20 + $0x8] sm:$0xff] %v1103_v26  ;;  %v790_v31 = vrot.slane %v789_v27, 4  ;;  %v832_v32 = vadd.f32 %v824_v28, %v822_v25 }
 0x124   : > { %v784_v33 = vadd.f32 %v783_v29, %v782_v23  ;;  %v826_v34 = vrot.slane %v825_v30, 4 }
 0x125   : > { %v791_v35 = vadd.f32 %v790_v31, %v789_v27  ;;  %v833_v38 = vrot.slane %v832_v32, 4 }
 0x126   : > { %v785_v39 = vrot.slane %v784_v33, 2  ;;  %v827_v40 = vadd.f32 %v826_v34, %v825_v30 }
 0x127   : > { %v792_v41 = vrot.slane %v791_v35, 2  ;;  %v834_v42 = vadd.f32 %v833_v38, %v832_v32 }
 0x128   : > { %v786_v43 = vadd.f32 %v785_v39, %v784_v33  ;;  %v828_v44 = vrot.slane %v827_v40, 2 }
 0x129   : > { %v793_v45 = vadd.f32 %v792_v41, %v791_v35  ;;  %v835_v48 = vrot.slane %v834_v42, 2 }
 0x12a   : > { %v787_v49 = vrot.slane %v786_v43, 1  ;;  %v829_v50 = vadd.f32 %v828_v44, %v827_v40 }
 0x12b   : > { %v794_v51 = vrot.slane %v793_v45, 1  ;;  %v836_v52 = vadd.f32 %v835_v48, %v834_v42 }
 0x12c   : > { %v788_v53 = vadd.f32 %v787_v49, %v786_v43  ;;  %v830_v54 = vrot.slane %v829_v50, 1 }
 0x12d   : > { %v795_v55 = vadd.f32 %v794_v51, %v793_v45  ;;  %v837_v57 = vrot.slane %v836_v52, 1 }
 0x12e   : > { %v831_v58 = vadd.f32 %v830_v54, %v829_v50 }
 0x12f   : > { %v798_v59 = vcombine.low %v788_v53, %v795_v55  ;;  %v838_v60 = vadd.f32 %v837_v57, %v836_v52 }
 0x131   : > { %v805_v61 = vrot.slane %v798_v59, %v804_v56  ;;  %v841_v62 = vcombine.low %v831_v58, %v838_v60 }
 0x133   : > { %v812_v63 = vrot.slane %v805_v61, %v804_v56  ;;  %v848_v0 = vrot.slane %v841_v62, %v804_v56 }
 0x135   : > { %v814_v3 = vadd.f32 %v812_v63, %v781_v1  ;;  %v855_v4 = vrot.slane %v848_v0, %v804_v56 }
 0x137   : > { %819 = vst.msk [vmem:[%s1343_s14] sm:$0x3] %vm1329_vm0, %v814_v3  ;;  %v857_v5 = vadd.f32 %v855_v4, %v820_v2 }
 0x139   : > { %858 = vst.msk [vmem:[%s1348_s21] sm:$0x3] %vm1329_vm0, %v857_v5 }
 0x13a PF: > { %s15_s17 = sadd.s32 1, %s1258_s17   ;;  %s1560_s15 = smov %s1254_s16 }
 0x13b   : > { %p12_p5 = scmp.ge.s32.totalorder %s15_s17, 4   ;;  %s1561_s16 = smov %s1563_s18 }
 0x13d   :  { %14 = sbr.rel (!%p12_p5) target bundleno = 2 (0x2), region = 86 }

// kernel: _lambda_.35
= control target key start
LH: loop header
LB: loop body
LE: loop exit
PB: predicated region body
PF: predicated region fallthrough
CT: control target
= control target key end

     0   :  { %s617_s15 = smov 0   ;;  %s619_s16 = smov 0   ;;  %s664_s0 = inlined_call_operand.vmem [shape: bf16[2,16,256], index: 0, kind: input, shape index: {}]   ;;  %s665_s1 = inlined_call_operand.vmem [shape: f32[2,1,256], index: 1, kind: input, shape index: {}]   ;;  %s666_s2 = inlined_call_operand.vmem [shape: f32[2,1,256], index: 2, kind: input, shape index: {}]   ;;  %s667_s3 = inlined_call_operand.vmem [shape: bf16[2,16,256], index: 3, kind: input, shape index: {}]   ;;  %s668_s4 = inlined_call_operand.vmem [shape: bf16[2,16,256], index: 4, kind: output, shape index: {}]  }
   0x1   :  { %s621_s17 = smov 0  }
   0x2 LB: > { %s26_s18 = sadd.s32 1, %s586_s16  ;;  %p526_p0 = scmp.ge.s32.totalorder %s590_s17, 1  ;;  %s590_s17 = sphi %s621_s17, %s14_s17   ;;  %s586_s16 = sphi %s619_s16, %s670_s16   ;;  %s582_s15 = sphi %s617_s15, %s669_s15  }
   0x3   : > { %p28_p1 = scmp.ge.s32.totalorder %s26_s18, 2  ;;  %p220_p2 = scmp.lt.s32.totalorder %s590_s17, 3 }
   0x5   : > { %s672_s18 = smov (%p28_p1, %s26_s18), 0  ;;  %p221_p3 = pnand %p526_p0, %p220_p2 }
   0x6   : > { %p275_p4 = scmp.lt.s32.totalorder (!%p221_p3), %s582_s15, 1  ;;  %v323_v0 = vlaneseq (!%p221_p3) }
   0x7   : > { %224 = sbr.rel (%p221_p3) target bundleno = 32 (0x20), region = 36 }
   0x8   : > { %v324_v1 = vshrl.u32 (!%p221_p3), %v323_v0, 7 }
   0xa   : > { %v325_v2 = vsub.s32 (!%p221_p3), 0, %v324_v1  ;;  %v329_v3 = vsub.s32 (!%p221_p3), 1, %v324_v1 }
   0xe   : > { %s674_s15 = smov (!%p275_p4, %s582_s15), 1 }
   0xf   : > { %s635_s19 = sshll.u32 %s674_s15, 4  ;;  %s529_s20 = sshll.u32 %s674_s15, 1 }
  0x10   : > { %s283_s23 = scalar_lea.vmem %s664_s0, %s635_s19  ;;  %s288_s26 = scalar_lea.vmem %s665_s1, %s529_s20 }
  0x11   : > { %s292_s29 = scalar_lea.vmem %s666_s2, %s529_s20  ;;  %s302_s6 = scalar_lea.vmem %s667_s3, %s635_s19  ;;  %v315_v4 = vld [vmem:[%s283_s23] sm:$0xff]  ;;  %v316_v5 = vld [vmem:[%s283_s23 + $0x8] sm:$0xff] }
  0x12   : > { %v321_v6 = vld [vmem:[%s288_s26] sm:$0x3]  ;;  %v317_v7 = vunpack.c.l.bf16 %v315_v4  ;;  %v318_v8 = vunpack.c.h.bf16 %v315_v4  ;;  %v319_v9 = vunpack.c.l.bf16 %v316_v5  ;;  %v320_v10 = vunpack.c.h.bf16 %v316_v5  ;;  %v358_v17 = vld [vmem:[%s302_s6 + $0x8] sm:$0xff]  ;;  %s313_s9 = scalar_lea.vmem %s668_s4, %s635_s19 }
  0x13   : > { %v337_v11 = vld [vmem:[%s292_s29] sm:$0x3]  ;;  %v326_v12 = vrot.slane %v321_v6, %v325_v2  ;;  %v330_v13 = vrot.slane %v321_v6, %v329_v3  ;;  %v361_v24 = vunpack.c.l.bf16 %v358_v17  ;;  %v362_v25 = vunpack.c.h.bf16 %v358_v17 }
  0x14   : > { %v342_v14 = vrot.slane %v337_v11, %v325_v2  ;;  %v346_v15 = vrot.slane %v337_v11, %v329_v3  ;;  %v357_v16 = vld [vmem:[%s302_s6] sm:$0xff] }
  0x15   : > { %v333_v18 = vmul.f32 %v326_v12, %v317_v7  ;;  %v334_v19 = vmul.f32 %v330_v13, %v318_v8  ;;  %v335_v20 = vmul.f32 %v326_v12, %v319_v9  ;;  %v336_v21 = vmul.f32 %v330_v13, %v320_v10 }
  0x16   : > { %v359_v22 = vunpack.c.l.bf16 %v357_v16  ;;  %v360_v23 = vunpack.c.h.bf16 %v357_v16 }
  0x17   : > { %v349_v26 = vadd.f32 %v342_v14, %v333_v18  ;;  %v350_v27 = vadd.f32 %v346_v15, %v334_v19  ;;  %v351_v28 = vadd.f32 %v342_v14, %v335_v20  ;;  %v352_v29 = vadd.f32 %v346_v15, %v336_v21 }
  0x19   : > { %v353_v30 = vmax.f32 %v349_v26, 0.0  ;;  %v354_v31 = vmax.f32 %v350_v27, 0.0  ;;  %v355_v32 = vmax.f32 %v351_v28, 0.0  ;;  %v356_v33 = vmax.f32 %v352_v29, 0.0 }
  0x1b   : > { %v363_v34 = vadd.f32 %v359_v22, %v353_v30  ;;  %v364_v35 = vadd.f32 %v360_v23, %v354_v31  ;;  %v365_v36 = vadd.f32 %v361_v24, %v355_v32  ;;  %v366_v37 = vadd.f32 %v362_v25, %v356_v33 }
  0x1d   : > { %v542_v38 = vpack.c.bf16 %v364_v35, %v363_v34  ;;  %v543_v39 = vpack.c.bf16 %v366_v37, %v365_v36 }
  0x1f   : > { %379 = vst [vmem:[%s313_s9] sm:$0xff] %v542_v38  ;;  %380 = vst [vmem:[%s313_s9 + $0x8] sm:$0xff] %v543_v39 }
  0x20 PF: > { %s14_s17 = sadd.s32 1, %s590_s17   ;;  %s669_s15 = smov %s586_s16 }
  0x21   : > { %p11_p5 = scmp.ge.s32.totalorder %s14_s17, 4   ;;  %s670_s16 = smov %s672_s18 }
  0x23   :  { %13 = sbr.rel (!%p11_p5) target bundleno = 2 (0x2), region = 75 }

// kernel: squeeze.36
= control target key start
LH: loop header
LB: loop body
LE: loop exit
PB: predicated region body
PF: predicated region fallthrough
CT: control target
= control target key end

     0   :  { %s271_s8 = smov 104   ;;  %vm7_vm0 = vcmask 64512   ;;  %s272_s9 = smov 112   ;;  %s378_s0 = inlined_call_operand.vmem [shape: f32[2,128], index: 0, kind: input, shape index: {}]   ;;  %s379_s1 = inlined_call_operand.vmem [shape: f32[2,8,2,8], index: 1, kind: output, shape index: {}]  }
   0x1   :  { %v4_v0 = vld [vmem:[%s378_s0] sm:$0x3]  ;;  %s270_s0 = smov 120   ;;  %s273_s10 = smov 96  }
   0x2   :  { %5 = vst [vmem:[#allocation1] sm:$0x3] %v4_v0  ;;  %s274_s11 = smov 88   ;;  %s275_s12 = smov 80  }
   0x3   :  { %s276_s13 = smov 72   ;;  %s277_s14 = smov 64  }
   0x4   :  { %s278_s15 = smov 56   ;;  %s279_s16 = smov 48  }
   0x5   :  { %s280_s17 = smov 40   ;;  %s281_s18 = smov 32  }
   0x6   :  { %s282_s19 = smov 24   ;;  %s283_s20 = smov 16  }
   0x7   :  { %s284_s21 = smov 8  }
   0x9   :  { %v11_v1 = vld [vmem:[#allocation1] sm:$0x3]  }
   0xa   :  { %v27_v2 = vld [vmem:[#allocation1] sm:$0x3]   ;;  %12 = vrot.lane.b32.xlu0 %v11_v1, %s270_s0 }
   0xb   :  { %28 = vrot.lane.b32.xlu1 %v27_v2, %s271_s8  ;;  %v19_v3 = vld [vmem:[#allocation1] sm:$0x3]  }
   0xc   :  { %v35_v4 = vld [vmem:[#allocation1] sm:$0x3]  }
   0xd   :  { %v6_v5 = vld [vmem:[#allocation1] sm:$0x3]  }
   0xe   :  { %20 = vrot.lane.b32.xlu0 %v19_v3, %s272_s9  ;;  %v43_v6 = vld [vmem:[#allocation1] sm:$0x3]   ;;  %8 = vst.msk [vmem:[#allocation0] sm:$0x1] %vm7_vm0, %v6_v5   ;;  %10 = vst.msk [vmem:[#allocation0 + $0x3f] sm:$0x2] %vm7_vm0, %v6_v5  }
   0xf   :  { %36 = vrot.lane.b32.xlu1 %v35_v4, %s273_s10  ;;  %v51_v7 = vld [vmem:[#allocation1] sm:$0x3]  }
  0x10   :  { %v59_v8 = vld [vmem:[#allocation1] sm:$0x3]  }
  0x11   :  { %v67_v9 = vld [vmem:[#allocation1] sm:$0x3]  }
  0x12   :  { %44 = vrot.lane.b32.xlu0 %v43_v6, %s274_s11  ;;  %v75_v10 = vld [vmem:[#allocation1] sm:$0x3]  }
  0x13   :  { %52 = vrot.lane.b32.xlu1 %v51_v7, %s275_s12  ;;  %v83_v11 = vld [vmem:[#allocation1] sm:$0x3]  }
  0x14   :  { %v91_v12 = vld [vmem:[#allocation1] sm:$0x3]  }
  0x15   :  { %v99_v13 = vld [vmem:[#allocation1] sm:$0x3]  }
  0x16   :  { %60 = vrot.lane.b32.xlu0 %v59_v8, %s276_s13  ;;  %v107_v14 = vld [vmem:[#allocation1] sm:$0x3]  }
  0x17   :  { %68 = vrot.lane.b32.xlu1 %v67_v9, %s277_s14  ;;  %v115_v15 = vld [vmem:[#allocation1] sm:$0x3]  }
  0x18   :  { %v123_v16 = vld [vmem:[#allocation1] sm:$0x3]  }
  0x1a   :  { %76 = vrot.lane.b32.xlu0 %v75_v10, %s278_s15 }
  0x1b   :  { %84 = vrot.lane.b32.xlu1 %v83_v11, %s279_s16 }
  0x1e   :  { %92 = vrot.lane.b32.xlu0 %v91_v12, %s280_s17 }
  0x1f   :  { %100 = vrot.lane.b32.xlu1 %v99_v13, %s281_s18 }
  0x22   :  { %108 = vrot.lane.b32.xlu0 %v107_v14, %s282_s19 }
  0x23   :  { %116 = vrot.lane.b32.xlu1 %v115_v15, %s283_s20 }
  0x26   :  { %124 = vrot.lane.b32.xlu0 %v123_v16, %s284_s21 }
  0x7c   :  { %v13_v17 = vpop.permute.xlu0 %12  }
  0x7d   :  { %v29_v18 = vpop.permute.xlu1 %28   ;;  %16 = vst.msk [vmem:[#allocation0 + $0x1] sm:$0x1] %vm7_vm0, %v13_v17   ;;  %18 = vst.msk [vmem:[#allocation0 + $0x40] sm:$0x2] %vm7_vm0, %v13_v17  }
  0x7e   :  { %32 = vst.msk [vmem:[#allocation0 + $0x9] sm:$0x1] %vm7_vm0, %v29_v18   ;;  %34 = vst.msk [vmem:[#allocation0 + $0x48] sm:$0x2] %vm7_vm0, %v29_v18  }
  0x80   :  { %v21_v19 = vpop.permute.xlu0 %20  }
  0x81   :  { %v37_v20 = vpop.permute.xlu1 %36   ;;  %24 = vst.msk [vmem:[#allocation0 + $0x8] sm:$0x1] %vm7_vm0, %v21_v19   ;;  %26 = vst.msk [vmem:[#allocation0 + $0x47] sm:$0x2] %vm7_vm0, %v21_v19  }
  0x82   :  { %40 = vst.msk [vmem:[#allocation0 + $0x10] sm:$0x1] %vm7_vm0, %v37_v20   ;;  %42 = vst.msk [vmem:[#allocation0 + $0x4f] sm:$0x2] %vm7_vm0, %v37_v20  }
  0x84   :  { %v134_v21 = vld [vmem:[#allocation0] sm:$0x3]  ;;  %v45_v23 = vpop.permute.xlu0 %44  }
  0x85   :  { %v179_v22 = vld [vmem:[#allocation0 + $0x40] sm:$0x3]  ;;  %v53_v24 = vpop.permute.xlu1 %52   ;;  %136 = vst [vmem:[%s379_s1] sm:$0x3] %v134_v21  ;;  %48 = vst.msk [vmem:[#allocation0 + $0x11] sm:$0x1] %vm7_vm0, %v45_v23  }
  0x86   :  { %247 = vst [vmem:[%s379_s1 + $0x10] sm:$0x3] %v179_v22  ;;  %50 = vst.msk [vmem:[#allocation0 + $0x50] sm:$0x2] %vm7_vm0, %v45_v23  }
  0x87   :  { %56 = vst.msk [vmem:[#allocation0 + $0x18] sm:$0x1] %vm7_vm0, %v53_v24   ;;  %58 = vst.msk [vmem:[#allocation0 + $0x57] sm:$0x2] %vm7_vm0, %v53_v24  }
  0x88   :  { %v138_v25 = vld [vmem:[#allocation0 + $0x8] sm:$0x3]  ;;  %v61_v27 = vpop.permute.xlu0 %60  }
  0x89   :  { %v185_v26 = vld [vmem:[#allocation0 + $0x48] sm:$0x3]  ;;  %v69_v28 = vpop.permute.xlu1 %68   ;;  %240 = vst [vmem:[%s379_s1 + $0x2] sm:$0x3] %v138_v25  ;;  %64 = vst.msk [vmem:[#allocation0 + $0x19] sm:$0x1] %vm7_vm0, %v61_v27  }
  0x8a   :  { %248 = vst [vmem:[%s379_s1 + $0x12] sm:$0x3] %v185_v26  ;;  %66 = vst.msk [vmem:[#allocation0 + $0x58] sm:$0x2] %vm7_vm0, %v61_v27  }
  0x8b   :  { %72 = vst.msk [vmem:[#allocation0 + $0x20] sm:$0x1] %vm7_vm0, %v69_v28   ;;  %74 = vst.msk [vmem:[#allocation0 + $0x5f] sm:$0x2] %vm7_vm0, %v69_v28  }
  0x8c   :  { %v143_v29 = vld [vmem:[#allocation0 + $0x10] sm:$0x3]  ;;  %v77_v31 = vpop.permute.xlu0 %76  }
  0x8d   :  { %v191_v30 = vld [vmem:[#allocation0 + $0x50] sm:$0x3]  ;;  %v85_v32 = vpop.permute.xlu1 %84   ;;  %241 = vst [vmem:[%s379_s1 + $0x4] sm:$0x3] %v143_v29  ;;  %80 = vst.msk [vmem:[#allocation0 + $0x21] sm:$0x1] %vm7_vm0, %v77_v31  }
  0x8e   :  { %249 = vst [vmem:[%s379_s1 + $0x14] sm:$0x3] %v191_v30  ;;  %82 = vst.msk [vmem:[#allocation0 + $0x60] sm:$0x2] %vm7_vm0, %v77_v31  }
  0x8f   :  { %88 = vst.msk [vmem:[#allocation0 + $0x28] sm:$0x1] %vm7_vm0, %v85_v32   ;;  %90 = vst.msk [vmem:[#allocation0 + $0x67] sm:$0x2] %vm7_vm0, %v85_v32  }
  0x90   :  { %v149_v33 = vld [vmem:[#allocation0 + $0x18] sm:$0x3]  ;;  %v93_v35 = vpop.permute.xlu0 %92  }
  0x91   :  { %v197_v34 = vld [vmem:[#allocation0 + $0x58] sm:$0x3]  ;;  %v101_v36 = vpop.permute.xlu1 %100   ;;  %242 = vst [vmem:[%s379_s1 + $0x6] sm:$0x3] %v149_v33  ;;  %96 = vst.msk [vmem:[#allocation0 + $0x29] sm:$0x1] %vm7_vm0, %v93_v35  }
  0x92   :  { %250 = vst [vmem:[%s379_s1 + $0x16] sm:$0x3] %v197_v34  ;;  %98 = vst.msk [vmem:[#allocation0 + $0x68] sm:$0x2] %vm7_vm0, %v93_v35  }
  0x93   :  { %104 = vst.msk [vmem:[#allocation0 + $0x30] sm:$0x1] %vm7_vm0, %v101_v36   ;;  %106 = vst.msk [vmem:[#allocation0 + $0x6f] sm:$0x2] %vm7_vm0, %v101_v36  }
  0x94   :  { %v155_v37 = vld [vmem:[#allocation0 + $0x20] sm:$0x3]  ;;  %v109_v39 = vpop.permute.xlu0 %108  }
  0x95   :  { %v203_v38 = vld [vmem:[#allocation0 + $0x60] sm:$0x3]  ;;  %v117_v40 = vpop.permute.xlu1 %116   ;;  %243 = vst [vmem:[%s379_s1 + $0x8] sm:$0x3] %v155_v37  ;;  %112 = vst.msk [vmem:[#allocation0 + $0x31] sm:$0x1] %vm7_vm0, %v109_v39  }
  0x96   :  { %251 = vst [vmem:[%s379_s1 + $0x18] sm:$0x3] %v203_v38  ;;  %114 = vst.msk [vmem:[#allocation0 + $0x70] sm:$0x2] %vm7_vm0, %v109_v39  }
  0x97   :  { %120 = vst.msk [vmem:[#allocation0 + $0x38] sm:$0x1] %vm7_vm0, %v117_v40   ;;  %122 = vst.msk [vmem:[#allocation0 + $0x77] sm:$0x2] %vm7_vm0, %v117_v40  }
  0x98   :  { %v161_v41 = vld [vmem:[#allocation0 + $0x28] sm:$0x3]  ;;  %v125_v43 = vpop.permute.xlu0 %124  }
  0x99   :  { %v209_v42 = vld [vmem:[#allocation0 + $0x68] sm:$0x3]  ;;  %244 = vst [vmem:[%s379_s1 + $0xa] sm:$0x3] %v161_v41  ;;  %128 = vst.msk [vmem:[#allocation0 + $0x39] sm:$0x1] %vm7_vm0, %v125_v43  }
  0x9a   :  { %252 = vst [vmem:[%s379_s1 + $0x1a] sm:$0x3] %v209_v42  ;;  %130 = vst.msk [vmem:[#allocation0 + $0x78] sm:$0x2] %vm7_vm0, %v125_v43  }
  0x9c   :  { %v167_v44 = vld [vmem:[#allocation0 + $0x30] sm:$0x3] }
  0x9d   :  { %v215_v45 = vld [vmem:[#allocation0 + $0x70] sm:$0x3]  ;;  %245 = vst [vmem:[%s379_s1 + $0xc] sm:$0x3] %v167_v44 }
  0x9e   :  { %253 = vst [vmem:[%s379_s1 + $0x1c] sm:$0x3] %v215_v45 }
  0xa0   :  { %v173_v46 = vld [vmem:[#allocation0 + $0x38] sm:$0x3] }
  0xa1   :  { %v221_v47 = vld [vmem:[#allocation0 + $0x78] sm:$0x3]  ;;  %246 = vst [vmem:[%s379_s1 + $0xe] sm:$0x3] %v173_v46 }
  0xa2   :  { %254 = vst [vmem:[%s379_s1 + $0x1e] sm:$0x3] %v221_v47 }

// kernel: _lambda_.32
= control target key start
LH: loop header
LB: loop body
LE: loop exit
PB: predicated region body
PF: predicated region fallthrough
CT: control target
= control target key end

     0   :  { %s2215_s15 = smov 0   ;;  %s2217_s16 = smov 0   ;;  %s2630_s0 = inlined_call_operand.vmem [shape: bf16[2,16,1792], index: 0, kind: input, shape index: {}]   ;;  %s2631_s1 = inlined_call_operand.vmem [shape: bf16[1792,64], index: 1, kind: input, shape index: {}]   ;;  %s2632_s2 = inlined_call_operand.vmem [shape: bf16[2,16,64], index: 2, kind: output, shape index: {0}]   ;;  %s2633_s3 = inlined_call_operand.vmem [shape: f32[2,1,64], index: 3, kind: output, shape index: {1}]   ;;  %s2634_s4 = inlined_call_operand.vmem [shape: f32[2,1,64], index: 4, kind: output, shape index: {2}]  }
   0x1   :  { %s2219_s17 = smov 0  }
   0x2 LB: > { %s27_s18 = sadd.s32 1, %s2183_s16  ;;  %p1715_p0 = scmp.ge.s32.totalorder %s2187_s17, 1  ;;  %s2187_s17 = sphi %s2219_s17, %s15_s17   ;;  %s2183_s16 = sphi %s2217_s16, %s2636_s16   ;;  %s2179_s15 = sphi %s2215_s15, %s2635_s15  }
   0x3   : > { %p29_p1 = scmp.ge.s32.totalorder %s27_s18, 2  ;;  %p189_p2 = scmp.lt.s32.totalorder %s2187_s17, 3 }
   0x5   : > { %s2638_s18 = smov (%p29_p1, %s27_s18), 0  ;;  %p190_p3 = pnand %p1715_p0, %p189_p2 }
   0x6   : > { %v2032_v0 = vld [vmem:[%s2631_s1 + $0x40] sm:$0xff] (!%p190_p3)   ;;  %v2036_v4 = vld [vmem:[%s2631_s1 + $0x48] sm:$0xff] (!%p190_p3)   ;;  %v2040_v8 = vld [vmem:[%s2631_s1 + $0x50] sm:$0xff] (!%p190_p3)   ;;  %p231_p4 = scmp.lt.s32.totalorder (!%p190_p3), %s2179_s15, 1  ;;  %vm1540_vm0 = vcmask (!%p190_p3), 516096   ;;  %vm1533_vm1 = vcmask (!%p190_p3), 519168  }
   0x7   : > { %193 = sbr.rel (%p190_p3) target bundleno = 375 (0x177), region = 28  ;;  %v2033_v1 = vld [vmem:[%s2631_s1 + $0xc0] sm:$0xff] (!%p190_p3)   ;;  %1852 = vmatprep.subr.bf16.mxu0 (!%p190_p3), %v2032_v0  ;;  %v2037_v5 = vld [vmem:[%s2631_s1 + $0xc8] sm:$0xff] (!%p190_p3)   ;;  %v2041_v9 = vld [vmem:[%s2631_s1 + $0xd0] sm:$0xff] (!%p190_p3)   ;;  %vm1544_vm2 = vcmask (!%p190_p3), 523264  }
   0x8   : > { %v2034_v2 = vld [vmem:[%s2631_s1] sm:$0xff] (!%p190_p3)   ;;  %1874 = vmatprep.subr.bf16.mxu1 (!%p190_p3), %v2033_v1  ;;  %v2038_v6 = vld [vmem:[%s2631_s1 + $0x8] sm:$0xff] (!%p190_p3)   ;;  %v2042_v10 = vld [vmem:[%s2631_s1 + $0x10] sm:$0xff] (!%p190_p3)  }
   0x9   : > { %v2035_v3 = vld [vmem:[%s2631_s1 + $0x80] sm:$0xff] (!%p190_p3)   ;;  %1853 = vmatpush3.bf16.msra.mxu0 (!%p190_p3), %v2034_v2  ;;  %v2039_v7 = vld [vmem:[%s2631_s1 + $0x88] sm:$0xff] (!%p190_p3)   ;;  %v2043_v11 = vld [vmem:[%s2631_s1 + $0x90] sm:$0xff] (!%p190_p3)  }
   0xa   : > { %1875 = vmatpush3.bf16.msra.mxu1 (!%p190_p3), %v2035_v3  ;;  %1854 = vmatprep.subr.bf16.mxu0 (!%p190_p3), %v2036_v4  ;;  %v2044_v12 = vld [vmem:[%s2631_s1 + $0x58] sm:$0xff] (!%p190_p3)   ;;  %v2048_v16 = vld [vmem:[%s2631_s1 + $0x60] sm:$0xff] (!%p190_p3)   ;;  %v2052_v20 = vld [vmem:[%s2631_s1 + $0x68] sm:$0xff] (!%p190_p3)  }
   0xb   : > { %1876 = vmatprep.subr.bf16.mxu1 (!%p190_p3), %v2037_v5  ;;  %v2045_v13 = vld [vmem:[%s2631_s1 + $0xd8] sm:$0xff] (!%p190_p3)   ;;  %v2049_v17 = vld [vmem:[%s2631_s1 + $0xe0] sm:$0xff] (!%p190_p3)   ;;  %v2053_v21 = vld [vmem:[%s2631_s1 + $0xe8] sm:$0xff] (!%p190_p3)  }
   0xc   : > { %v2046_v14 = vld [vmem:[%s2631_s1 + $0x18] sm:$0xff] (!%p190_p3)   ;;  %v2050_v18 = vld [vmem:[%s2631_s1 + $0x20] sm:$0xff] (!%p190_p3)   ;;  %v2054_v22 = vld [vmem:[%s2631_s1 + $0x28] sm:$0xff] (!%p190_p3)  }
   0xd   : > { %1855 = vmatpush3.bf16.msra.mxu0 (!%p190_p3), %v2038_v6  ;;  %v2047_v15 = vld [vmem:[%s2631_s1 + $0x98] sm:$0xff] (!%p190_p3)   ;;  %v2051_v19 = vld [vmem:[%s2631_s1 + $0xa0] sm:$0xff] (!%p190_p3)   ;;  %v2055_v23 = vld [vmem:[%s2631_s1 + $0xa8] sm:$0xff] (!%p190_p3)  }
   0xe   : > { %1877 = vmatpush3.bf16.msra.mxu1 %v2039_v7  ;;  %1856 = vmatprep.subr.bf16.mxu0 %v2040_v8  ;;  %s2640_s15 = smov (!%p231_p4, %s2179_s15), 1  ;;  %v2056_v24 = vld [vmem:[%s2631_s1 + $0x70] sm:$0xff]   ;;  %v2060_v28 = vld [vmem:[%s2631_s1 + $0x78] sm:$0xff]   ;;  %v2070_v36 = vld [vmem:[%s2631_s1 + $0x140] sm:$0xff]  }
   0xf   : > { %1878 = vmatprep.subr.bf16.mxu1 %v2041_v9  ;;  %v2057_v25 = vld [vmem:[%s2631_s1 + $0xf0] sm:$0xff]   ;;  %s2006_s27 = smul.u32 112, %s2640_s15  ;;  %v2061_v29 = vld [vmem:[%s2631_s1 + $0xf8] sm:$0xff]   ;;  %v2071_v37 = vld [vmem:[%s2631_s1 + $0x100] sm:$0xff]   ;;  %s2599_s10 = scalar_lea.vmem %s2633_s3, %s2640_s15 }
  0x10   : > { %v2058_v26 = vld [vmem:[%s2631_s1 + $0x30] sm:$0xff]   ;;  %v2062_v30 = vld [vmem:[%s2631_s1 + $0x38] sm:$0xff]   ;;  %v2072_v38 = vld [vmem:[%s2631_s1 + $0x1c0] sm:$0xff]   ;;  %s2605_s14 = scalar_lea.vmem %s2634_s4, %s2640_s15 }
  0x11   : > { %1857 = vmatpush3.bf16.msra.mxu0 %v2042_v10  ;;  %v2059_v27 = vld [vmem:[%s2631_s1 + $0xb0] sm:$0xff]   ;;  %s2333_s12 = scalar_lea.vmem %s2630_s0, %s2006_s27  ;;  %v2063_v31 = vld [vmem:[%s2631_s1 + $0xb8] sm:$0xff]   ;;  %v2073_v39 = vld [vmem:[%s2631_s1 + $0x180] sm:$0xff]  }
  0x12   : > { %1879 = vmatpush3.bf16.msra.mxu1 %v2043_v11  ;;  %1858 = vmatprep.subr.bf16.mxu0 %v2044_v12  ;;  %v2064_v32 = vld [vmem:[%s2333_s12] ss:$56 sps:$4 sm:$0xff]   ;;  %v2066_v33 = vld [vmem:[%s2333_s12 + $0x4] ss:$56 sps:$4 sm:$0xff]   ;;  %v2074_v40 = vld [vmem:[%s2631_s1 + $0x148] sm:$0xff]  }
  0x13   : > { %1880 = vmatprep.subr.bf16.mxu1 %v2045_v13  ;;  %v2067_v34 = vld [vmem:[%s2333_s12 + $0x8] ss:$56 sps:$4 sm:$0xff]   ;;  %v2069_v35 = vld [vmem:[%s2333_s12 + $0xc] ss:$56 sps:$4 sm:$0xff]   ;;  %1270 = vmatprep.mubr.bf16.mxu0 %v2066_v33  ;;  %v2078_v44 = vld [vmem:[%s2631_s1 + $0x150] sm:$0xff]  }
  0x14   : > { %1311 = vmatprep.mubr.bf16.mxu1 %v2069_v35  ;;  %v2075_v41 = vld [vmem:[%s2631_s1 + $0x108] sm:$0xff]   ;;  %v2079_v45 = vld [vmem:[%s2631_s1 + $0x110] sm:$0xff]   ;;  %v2082_v48 = vld [vmem:[%s2631_s1 + $0x158] sm:$0xff]  }
  0x15   : > { %1859 = vmatpush3.bf16.msra.mxu0 %v2046_v14  ;;  %v2076_v42 = vld [vmem:[%s2631_s1 + $0x1c8] sm:$0xff]   ;;  %v2080_v46 = vld [vmem:[%s2631_s1 + $0x1d0] sm:$0xff]   ;;  %v2083_v49 = vld [vmem:[%s2631_s1 + $0x118] sm:$0xff]  }
  0x16   : > { %1881 = vmatpush3.bf16.msra.mxu1 %v2047_v15  ;;  %1860 = vmatprep.subr.bf16.mxu0 %v2048_v16  ;;  %v2077_v43 = vld [vmem:[%s2631_s1 + $0x188] sm:$0xff]   ;;  %v2081_v47 = vld [vmem:[%s2631_s1 + $0x190] sm:$0xff]   ;;  %v2084_v50 = vld [vmem:[%s2631_s1 + $0x1d8] sm:$0xff]  }
  0x17   : > { %1882 = vmatprep.subr.bf16.mxu1 %v2049_v17  ;;  %v2085_v51 = vld [vmem:[%s2631_s1 + $0x198] sm:$0xff]   ;;  %v2086_v52 = vld [vmem:[%s2631_s1 + $0x160] sm:$0xff]   ;;  %v2090_v56 = vld [vmem:[%s2631_s1 + $0x168] sm:$0xff]  }
  0x18   : > { %v2087_v53 = vld [vmem:[%s2631_s1 + $0x120] sm:$0xff]   ;;  %v2091_v57 = vld [vmem:[%s2631_s1 + $0x128] sm:$0xff]   ;;  %v2094_v60 = vld [vmem:[%s2631_s1 + $0x170] sm:$0xff]  }
  0x19   : > { %1861 = vmatpush3.bf16.msra.mxu0 %v2050_v18  ;;  %v2088_v54 = vld [vmem:[%s2631_s1 + $0x1e0] sm:$0xff]   ;;  %v2092_v58 = vld [vmem:[%s2631_s1 + $0x1e8] sm:$0xff]   ;;  %v2095_v61 = vld [vmem:[%s2631_s1 + $0x130] sm:$0xff]  }
  0x1a   : > { %1883 = vmatpush3.bf16.msra.mxu1 %v2051_v19  ;;  %1862 = vmatprep.subr.bf16.mxu0 %v2052_v20  ;;  %v2089_v55 = vld [vmem:[%s2631_s1 + $0x1a0] sm:$0xff]   ;;  %v2093_v59 = vld [vmem:[%s2631_s1 + $0x1a8] sm:$0xff]   ;;  %v2096_v62 = vld [vmem:[%s2631_s1 + $0x1f0] sm:$0xff]  }
  0x1b   : > { %1884 = vmatprep.subr.bf16.mxu1 %v2053_v21  ;;  %v2097_v63 = vld [vmem:[%s2631_s1 + $0x1b0] sm:$0xff]   ;;  %v2098_v0 = vld [vmem:[%s2631_s1 + $0x178] sm:$0xff]   ;;  %v2105_v6 = vld [vmem:[%s2631_s1 + $0x240] sm:$0xff]  }
  0x1c   : > { %v2099_v1 = vld [vmem:[%s2631_s1 + $0x138] sm:$0xff]   ;;  %v2101_v3 = vld [vmem:[%s2333_s12 + $0x10] ss:$56 sps:$4 sm:$0xff]   ;;  %v2103_v4 = vld [vmem:[%s2333_s12 + $0x14] ss:$56 sps:$4 sm:$0xff]  }
  0x1d   : > { %1863 = vmatpush3.bf16.msra.mxu0 %v2054_v22  ;;  %v2100_v2 = vld [vmem:[%s2631_s1 + $0x1f8] sm:$0xff]   ;;  %v2109_v9 = vld [vmem:[%s2631_s1 + $0x200] sm:$0xff]   ;;  %v2112_v12 = vld [vmem:[%s2631_s1 + $0x248] sm:$0xff]  }
  0x1e   : > { %1885 = vmatpush3.bf16.msra.mxu1 %v2055_v23  ;;  %1864 = vmatprep.subr.bf16.mxu0 %v2056_v24  ;;  %v2104_v5 = vld [vmem:[%s2631_s1 + $0x1b8] sm:$0xff]   ;;  %v2110_v10 = vld [vmem:[%s2631_s1 + $0x2c0] sm:$0xff]   ;;  %v2113_v13 = vld [vmem:[%s2631_s1 + $0x208] sm:$0xff]  }
  0x1f   : > { %1886 = vmatprep.subr.bf16.mxu1 %v2057_v25  ;;  %v2106_v7 = vld [vmem:[%s2333_s12 + $0x18] ss:$56 sps:$4 sm:$0xff]   ;;  %v2108_v8 = vld [vmem:[%s2333_s12 + $0x1c] ss:$56 sps:$4 sm:$0xff]   ;;  %v2111_v11 = vld [vmem:[%s2631_s1 + $0x280] sm:$0xff]  }
  0x20   : > { %v2114_v14 = vld [vmem:[%s2631_s1 + $0x2c8] sm:$0xff]   ;;  %v2116_v16 = vld [vmem:[%s2631_s1 + $0x250] sm:$0xff]   ;;  %v2120_v20 = vld [vmem:[%s2631_s1 + $0x258] sm:$0xff]  }
  0x21   : > { %1865 = vmatpush3.bf16.msra.mxu0 %v2058_v26  ;;  %v2115_v15 = vld [vmem:[%s2631_s1 + $0x288] sm:$0xff]   ;;  %v2117_v17 = vld [vmem:[%s2631_s1 + $0x210] sm:$0xff]   ;;  %v2121_v21 = vld [vmem:[%s2631_s1 + $0x218] sm:$0xff]  }
  0x22   : > { %1887 = vmatpush3.bf16.msra.mxu1 %v2059_v27  ;;  %1866 = vmatprep.subr.bf16.mxu0 %v2060_v28  ;;  %v2118_v18 = vld [vmem:[%s2631_s1 + $0x2d0] sm:$0xff]   ;;  %v2122_v22 = vld [vmem:[%s2631_s1 + $0x2d8] sm:$0xff]   ;;  %v2124_v24 = vld [vmem:[%s2631_s1 + $0x260] sm:$0xff]  }
  0x23   : > { %1888 = vmatprep.subr.bf16.mxu1 %v2061_v29  ;;  %v2119_v19 = vld [vmem:[%s2631_s1 + $0x290] sm:$0xff]   ;;  %v2123_v23 = vld [vmem:[%s2631_s1 + $0x298] sm:$0xff]   ;;  %v2125_v25 = vld [vmem:[%s2631_s1 + $0x220] sm:$0xff]  }
  0x24   : > { %v2126_v26 = vld [vmem:[%s2631_s1 + $0x2e0] sm:$0xff]   ;;  %v2128_v28 = vld [vmem:[%s2631_s1 + $0x268] sm:$0xff]   ;;  %v2133_v33 = vld [vmem:[%s2631_s1 + $0x230] sm:$0xff]  }
  0x25   : > { %1867 = vmatpush3.bf16.msra.mxu0 %v2062_v30  ;;  %v2127_v27 = vld [vmem:[%s2631_s1 + $0x2a0] sm:$0xff]   ;;  %v2129_v29 = vld [vmem:[%s2631_s1 + $0x228] sm:$0xff]   ;;  %v2135_v35 = vld [vmem:[%s2631_s1 + $0x2b0] sm:$0xff]  }
  0x26   : > { %1889 = vmatpush3.bf16.msra.mxu1 %v2063_v31  ;;  %1896 = vmatprep.subr.bf16.mxu0 %v2070_v36  ;;  %v2130_v30 = vld [vmem:[%s2631_s1 + $0x2e8] sm:$0xff]   ;;  %v2136_v36 = vld [vmem:[%s2631_s1 + $0x278] sm:$0xff]  }
  0x27   : > { %1918 = vmatprep.subr.bf16.mxu1 %v2072_v38  ;;  %v2131_v31 = vld [vmem:[%s2631_s1 + $0x2a8] sm:$0xff]   ;;  %v2138_v38 = vld [vmem:[%s2631_s1 + $0x2f8] sm:$0xff]  }
  0x28   : > { %1271 = vmatmul.mubr.bf16.vlgmr.msra.gmra.mrb[0].mxu0 %v2064_v32  ;;  %v2132_v32 = vld [vmem:[%s2631_s1 + $0x270] sm:$0xff]  }
  0x29   : > { %1312 = vmatmul.mubr.bf16.vlgmr.msra.gmra.mrb[0].mxu1 %v2067_v34  ;;  %1897 = vmatpush3.bf16.msra.mxu0 %v2071_v37  ;;  %v2134_v34 = vld [vmem:[%s2631_s1 + $0x2f0] sm:$0xff]   ;;  %v2137_v37 = vld [vmem:[%s2631_s1 + $0x238] sm:$0xff]  }
  0x2a   : > { %1919 = vmatpush3.bf16.msra.mxu1 %v2073_v39  ;;  %1898 = vmatprep.subr.bf16.mxu0 %v2074_v40  ;;  %v2139_v39 = vld [vmem:[%s2333_s12 + $0x20] ss:$56 sps:$4 sm:$0xff]   ;;  %v2141_v40 = vld [vmem:[%s2333_s12 + $0x24] ss:$56 sps:$4 sm:$0xff]  }
  0x2b   : > { %1920 = vmatprep.subr.bf16.mxu1 %v2076_v42  ;;  %1352 = vmatprep.mubr.bf16.mxu0 %v2103_v4  ;;  %v2143_v42 = vld [vmem:[%s2631_s1 + $0x340] sm:$0xff]  }
  0x2c   : > { %1393 = vmatprep.mubr.bf16.mxu1 %v2108_v8 }
  0x2d   : > { %1899 = vmatpush3.bf16.msra.mxu0 %v2075_v41  ;;  %v2142_v41 = vld [vmem:[%s2631_s1 + $0x2b8] sm:$0xff]  }
  0x2e   : > { %1921 = vmatpush3.bf16.msra.mxu1 %v2077_v43  ;;  %1900 = vmatprep.subr.bf16.mxu0 %v2078_v44  ;;  %v2144_v43 = vld [vmem:[%s2333_s12 + $0x28] ss:$56 sps:$4 sm:$0xff]   ;;  %v2146_v44 = vld [vmem:[%s2333_s12 + $0x2c] ss:$56 sps:$4 sm:$0xff]  }
  0x2f   : > { %1922 = vmatprep.subr.bf16.mxu1 %v2080_v46  ;;  %v2148_v46 = vld [vmem:[%s2631_s1 + $0x348] sm:$0xff]  }
  0x31   : > { %1901 = vmatpush3.bf16.msra.mxu0 %v2079_v45  ;;  %v2147_v45 = vld [vmem:[%s2631_s1 + $0x300] sm:$0xff]  }
  0x32   : > { %1923 = vmatpush3.bf16.msra.mxu1 %v2081_v47  ;;  %1902 = vmatprep.subr.bf16.mxu0 %v2082_v48  ;;  %v2149_v47 = vld [vmem:[%s2631_s1 + $0x308] sm:$0xff]   ;;  %v2150_v48 = vld [vmem:[%s2631_s1 + $0x350] sm:$0xff]  }
  0x33   : > { %1924 = vmatprep.subr.bf16.mxu1 %v2084_v50  ;;  %v2152_v50 = vld [vmem:[%s2631_s1 + $0x358] sm:$0xff]  }
  0x35   : > { %1903 = vmatpush3.bf16.msra.mxu0 %v2083_v49  ;;  %v2151_v49 = vld [vmem:[%s2631_s1 + $0x310] sm:$0xff]  }
  0x36   : > { %1925 = vmatpush3.bf16.msra.mxu1 %v2085_v51  ;;  %1904 = vmatprep.subr.bf16.mxu0 %v2086_v52  ;;  %v2153_v51 = vld [vmem:[%s2631_s1 + $0x318] sm:$0xff]   ;;  %v2154_v52 = vld [vmem:[%s2631_s1 + $0x360] sm:$0xff]  }
  0x37   : > { %1926 = vmatprep.subr.bf16.mxu1 %v2088_v54  ;;  %v2156_v54 = vld [vmem:[%s2631_s1 + $0x368] sm:$0xff]  }
  0x39   : > { %1905 = vmatpush3.bf16.msra.mxu0 %v2087_v53  ;;  %v2155_v53 = vld [vmem:[%s2631_s1 + $0x320] sm:$0xff]  }
  0x3a   : > { %1927 = vmatpush3.bf16.msra.mxu1 %v2089_v55  ;;  %1906 = vmatprep.subr.bf16.mxu0 %v2090_v56  ;;  %v2164_v55 = vld [vmem:[%s2333_s12 + $0x34] ss:$56 sps:$4 sm:$0xff]  }
  0x3b   : > { %1928 = vmatprep.subr.bf16.mxu1 %v2092_v58  ;;  %v2157_v56 = vld [vmem:[%s2631_s1 + $0x328] sm:$0xff]   ;;  %v2159_v58 = vld [vmem:[%s2631_s1 + $0x330] sm:$0xff]  }
  0x3d   : > { %1907 = vmatpush3.bf16.msra.mxu0 %v2091_v57  ;;  %v2158_v57 = vld [vmem:[%s2631_s1 + $0x370] sm:$0xff]  }
  0x3e   : > { %1929 = vmatpush3.bf16.msra.mxu1 %v2093_v59  ;;  %1908 = vmatprep.subr.bf16.mxu0 %v2094_v60  ;;  %v2160_v59 = vld [vmem:[%s2631_s1 + $0x378] sm:$0xff]  }
  0x3f   : > { %1930 = vmatprep.subr.bf16.mxu1 %v2096_v62  ;;  %v2161_v60 = vld [vmem:[%s2631_s1 + $0x338] sm:$0xff]   ;;  %v2189_v62 = vmov 0.0  }
  0x40   : > { %1541 = vst.msk [vmem:[%s2599_s10] sm:$0x1] %vm1540_vm0, %v2189_v62  ;;  %1542 = vst.msk [vmem:[%s2605_s14] sm:$0x1] %vm1540_vm0, %v2189_v62 }
  0x41   : > { %1909 = vmatpush3.bf16.msra.mxu0 %v2095_v61  ;;  %v2162_v61 = vld [vmem:[%s2333_s12 + $0x30] ss:$56 sps:$4 sm:$0xff]   ;;  %s1849_s12 = sshll.u32 %s2640_s15, 3 }
  0x42   : > { %1931 = vmatpush3.bf16.msra.mxu1 %v2097_v63  ;;  %1910 = vmatprep.subr.bf16.mxu0 %v2098_v0  ;;  %s249_s21 = scalar_lea.vmem %s2632_s2, %s1849_s12 }
  0x43   : > { %1932 = vmatprep.subr.bf16.mxu1 %v2100_v2 }
  0x45   : > { %1911 = vmatpush3.bf16.msra.mxu0 %v2099_v1 }
  0x46   : > { %1933 = vmatpush3.bf16.msra.mxu1 %v2104_v5  ;;  %1940 = vmatprep.subr.bf16.mxu0 %v2105_v6 }
  0x47   : > { %1962 = vmatprep.subr.bf16.mxu1 %v2110_v10 }
  0x48   : > { %1353 = vmatmul.mubr.bf16.vlgmr.msra.gmra.mrb[4].mxu0 %v2101_v3 }
  0x49   : > { %1941 = vmatpush3.bf16.msra.mxu0 %v2109_v9  ;;  %1394 = vmatmul.mubr.bf16.vlgmr.msra.gmra.mrb[4].mxu1 %v2106_v7 }
  0x4a   : > { %1963 = vmatpush3.bf16.msra.mxu1 %v2111_v11  ;;  %1942 = vmatprep.subr.bf16.mxu0 %v2112_v12 }
  0x4b   : > { %1964 = vmatprep.subr.bf16.mxu1 %v2114_v14  ;;  %1434 = vmatprep.mubr.bf16.mxu0 %v2141_v40 }
  0x4c   : > { %1475 = vmatprep.mubr.bf16.mxu1 %v2146_v44 }
  0x4d   : > { %1943 = vmatpush3.bf16.msra.mxu0 %v2113_v13 }
  0x4e   : > { %1965 = vmatpush3.bf16.msra.mxu1 %v2115_v15  ;;  %1944 = vmatprep.subr.bf16.mxu0 %v2116_v16 }
  0x4f   : > { %1966 = vmatprep.subr.bf16.mxu1 %v2118_v18 }
  0x51   : > { %1945 = vmatpush3.bf16.msra.mxu0 %v2117_v17 }
  0x52   : > { %1967 = vmatpush3.bf16.msra.mxu1 %v2119_v19  ;;  %1946 = vmatprep.subr.bf16.mxu0 %v2120_v20 }
  0x53   : > { %1968 = vmatprep.subr.bf16.mxu1 %v2122_v22 }
  0x55   : > { %1947 = vmatpush3.bf16.msra.mxu0 %v2121_v21 }
  0x56   : > { %1969 = vmatpush3.bf16.msra.mxu1 %v2123_v23  ;;  %1948 = vmatprep.subr.bf16.mxu0 %v2124_v24 }
  0x57   : > { %1970 = vmatprep.subr.bf16.mxu1 %v2126_v26 }
  0x59   : > { %1949 = vmatpush3.bf16.msra.mxu0 %v2125_v25 }
  0x5a   : > { %1971 = vmatpush3.bf16.msra.mxu1 %v2127_v27  ;;  %1950 = vmatprep.subr.bf16.mxu0 %v2128_v28 }
  0x5b   : > { %1972 = vmatprep.subr.bf16.mxu1 %v2130_v30 }
  0x5d   : > { %1951 = vmatpush3.bf16.msra.mxu0 %v2129_v29 }
  0x5e   : > { %1973 = vmatpush3.bf16.msra.mxu1 %v2131_v31  ;;  %1952 = vmatprep.subr.bf16.mxu0 %v2132_v32 }
  0x5f   : > { %1974 = vmatprep.subr.bf16.mxu1 %v2134_v34 }
  0x61   : > { %1953 = vmatpush3.bf16.msra.mxu0 %v2133_v33 }
  0x62   : > { %1975 = vmatpush3.bf16.msra.mxu1 %v2135_v35  ;;  %1954 = vmatprep.subr.bf16.mxu0 %v2136_v36 }
  0x63   : > { %1976 = vmatprep.subr.bf16.mxu1 %v2138_v38 }
  0x65   : > { %1955 = vmatpush3.bf16.msra.mxu0 %v2137_v37 }
  0x66   : > { %1977 = vmatpush3.bf16.msra.mxu1 %v2142_v41  ;;  %1984 = vmatprep.subr.bf16.mxu0 %v2143_v42 }
  0x68   : > { %1435 = vmatmul.mubr.bf16.vlgmr.msra.gmra.mrb[8].mxu0 %v2139_v39 }
  0x69   : > { %1985 = vmatpush3.bf16.msra.mxu0 %v2147_v45  ;;  %1476 = vmatmul.mubr.bf16.vlgmr.msra.gmra.mrb[8].mxu1 %v2144_v43 }
  0x6a   : > { %1986 = vmatprep.subr.bf16.mxu0 %v2148_v46  ;;  %1516 = vmatprep.mubr.bf16.mxu0 %v2164_v55 }
  0x6d   : > { %1987 = vmatpush3.bf16.msra.mxu0 %v2149_v47 }
  0x6e   : > { %1988 = vmatprep.subr.bf16.mxu0 %v2150_v48 }
  0x71   : > { %1989 = vmatpush3.bf16.msra.mxu0 %v2151_v49 }
  0x72   : > { %1990 = vmatprep.subr.bf16.mxu0 %v2152_v50 }
  0x75   : > { %1991 = vmatpush3.bf16.msra.mxu0 %v2153_v51 }
  0x76   : > { %1992 = vmatprep.subr.bf16.mxu0 %v2154_v52 }
  0x79   : > { %1993 = vmatpush3.bf16.msra.mxu0 %v2155_v53 }
  0x7a   : > { %1994 = vmatprep.subr.bf16.mxu0 %v2156_v54 }
  0x7d   : > { %1995 = vmatpush3.bf16.msra.mxu0 %v2157_v56 }
  0x7e   : > { %1996 = vmatprep.subr.bf16.mxu0 %v2158_v57 }
  0x81   : > { %1997 = vmatpush3.bf16.msra.mxu0 %v2159_v58 }
  0x82   : > { %1998 = vmatprep.subr.bf16.mxu0 %v2160_v59 }
  0x85   : > { %1999 = vmatpush3.bf16.msra.mxu0 %v2161_v60 }
  0x88   : > { %1517 = vmatmul.mubr.bf16.vlgmr.msra.gmra.mrb[12].mxu0 %v2162_v61 }
  0xfb   : > { %v1868_v63 = vpop.f32.mrb[0].mxu0 }
  0xfc   : > { %v1890_v0 = vpop.f32.mrb[0].mxu1  ;;  %v1869_v1 = vpop.f32.mrb[1].mxu0 }
  0xfd   : > { %v1870_v2 = vadd.f32 %v1869_v1, %v1868_v63  ;;  %v1891_v3 = vpop.f32.mrb[1].mxu1  ;;  %v1871_v4 = vpop.f32.mrb[2].mxu0 }
  0xfe   : > { %v1892_v5 = vadd.f32 %v1891_v3, %v1890_v0  ;;  %v1893_v6 = vpop.f32.mrb[2].mxu1  ;;  %v1872_v7 = vpop.f32.mrb[3].mxu0 }
  0xff   : > { %v1873_v8 = vadd.f32 %v1872_v7, %v1871_v4  ;;  %v1894_v9 = vpop.f32.mrb[3].mxu1 }
 0x100   : > { %v1314_v10 = vadd.f32 %v1892_v5, %v1870_v2  ;;  %v1895_v11 = vadd.f32 %v1894_v9, %v1893_v6 }
 0x102   : > { %v1317_v12 = vadd.f32 %v1895_v11, %v1873_v8  ;;  %v1543_v8 = vld [vmem:[%s2599_s10] sm:$0x1] }
 0x103   : > { %v1557_v11 = vld [vmem:[%s2605_s14] sm:$0x1] }
 0x11b   : > { %v1912_v13 = vpop.f32.mrb[4].mxu0 }
 0x11c   : > { %v1913_v14 = vpop.f32.mrb[5].mxu0  ;;  %v1934_v19 = vpop.f32.mrb[4].mxu1 }
 0x11d   : > { %v1914_v15 = vadd.f32 %v1913_v14, %v1912_v13  ;;  %v1915_v16 = vpop.f32.mrb[6].mxu0  ;;  %v1935_v21 = vpop.f32.mrb[5].mxu1 }
 0x11e   : > { %v1916_v17 = vpop.f32.mrb[7].mxu0  ;;  %v1936_v23 = vadd.f32 %v1935_v21, %v1934_v19  ;;  %v1937_v24 = vpop.f32.mrb[6].mxu1 }
 0x11f   : > { %v1355_v18 = vadd.f32 %v1914_v15, %v1314_v10  ;;  %v1917_v20 = vadd.f32 %v1916_v17, %v1915_v16  ;;  %v1938_v25 = vpop.f32.mrb[7].mxu1 }
 0x120   : > { %v1939_v27 = vadd.f32 %v1938_v25, %v1937_v24 }
 0x121   : > { %v1358_v22 = vadd.f32 %v1917_v20, %v1317_v12  ;;  %v1396_v26 = vadd.f32 %v1936_v23, %v1355_v18 }
 0x123   : > { %v1399_v28 = vadd.f32 %v1939_v27, %v1358_v22 }
 0x13b   : > { %v1956_v29 = vpop.f32.mrb[8].mxu0 }
 0x13c   : > { %v1957_v30 = vpop.f32.mrb[9].mxu0  ;;  %v1978_v33 = vpop.f32.mrb[8].mxu1 }
 0x13d   : > { %v1958_v31 = vadd.f32 %v1957_v30, %v1956_v29  ;;  %v1959_v32 = vpop.f32.mrb[10].mxu0  ;;  %v1979_v37 = vpop.f32.mrb[9].mxu1 }
 0x13e   : > { %v1960_v34 = vpop.f32.mrb[11].mxu0  ;;  %v1980_v38 = vadd.f32 %v1979_v37, %v1978_v33  ;;  %v1981_v39 = vpop.f32.mrb[10].mxu1 }
 0x13f   : > { %v1437_v35 = vadd.f32 %v1958_v31, %v1396_v26  ;;  %v1961_v36 = vadd.f32 %v1960_v34, %v1959_v32  ;;  %v1982_v41 = vpop.f32.mrb[11].mxu1 }
 0x140   : > { %v1983_v43 = vadd.f32 %v1982_v41, %v1981_v39 }
 0x141   : > { %v1440_v40 = vadd.f32 %v1961_v36, %v1399_v28  ;;  %v1478_v42 = vadd.f32 %v1980_v38, %v1437_v35 }
 0x143   : > { %v1481_v44 = vadd.f32 %v1983_v43, %v1440_v40 }
 0x15b   : > { %v2000_v45 = vpop.f32.mrb[12].mxu0 }
 0x15c   : > { %v2001_v46 = vpop.f32.mrb[13].mxu0 }
 0x15d   : > { %v2002_v47 = vadd.f32 %v2001_v46, %v2000_v45  ;;  %v2003_v48 = vpop.f32.mrb[14].mxu0 }
 0x15e   : > { %v2004_v49 = vpop.f32.mrb[15].mxu0 }
 0x15f   : > { %v1519_v50 = vadd.f32 %v2002_v47, %v1478_v42  ;;  %v2005_v51 = vadd.f32 %v2004_v49, %v2003_v48 }
 0x161   : > { %v1850_v52 = vpack.c.bf16 %v1519_v50, %v1519_v50  ;;  %v1558_v53 = vmul.f32 %v1519_v50, %v1519_v50  ;;  %v1522_v54 = vadd.f32 %v2005_v51, %v1481_v44  ;;  %v1545_v55 = vsel %vm1544_vm2, %v1519_v50, 0.0 }
 0x163   : > { %1534 = vst.msk [vmem:[%s249_s21] sm:$0xf] %vm1533_vm1, %v1850_v52  ;;  %v1851_v56 = vpack.c.bf16 %v1522_v54, %v1522_v54  ;;  %v1546_v57 = vsel %vm1544_vm2, %v1522_v54, 0.0  ;;  %v1559_v58 = vmul.f32 %v1522_v54, %v1522_v54  ;;  %v1560_v60 = vsel %vm1544_vm2, %v1558_v53, 0.0 }
 0x164   : > { %v1547_v59 = vadd.f32 %v1546_v57, %v1545_v55 }
 0x165   : > { %1535 = vst.msk [vmem:[%s249_s21 + $0x4] sm:$0xf] %vm1533_vm1, %v1851_v56  ;;  %v1561_v61 = vsel %vm1544_vm2, %v1559_v58, 0.0 }
 0x166   : > { %v1548_v62 = vrot.slane %v1547_v59, 4  ;;  %v1562_v63 = vadd.f32 %v1561_v61, %v1560_v60 }
 0x168   : > { %v1549_v0 = vadd.f32 %v1548_v62, %v1547_v59  ;;  %v1563_v1 = vrot.slane %v1562_v63, 4 }
 0x16a   : > { %v1550_v2 = vrot.slane %v1549_v0, 2  ;;  %v1564_v3 = vadd.f32 %v1563_v1, %v1562_v63 }
 0x16c   : > { %v1551_v4 = vadd.f32 %v1550_v2, %v1549_v0  ;;  %v1565_v5 = vrot.slane %v1564_v3, 2 }
 0x16e   : > { %v1552_v6 = vrot.slane %v1551_v4, 1  ;;  %v1566_v7 = vadd.f32 %v1565_v5, %v1564_v3 }
 0x170   : > { %v1553_v9 = vadd.f32 %v1552_v6, %v1551_v4  ;;  %v1567_v10 = vrot.slane %v1566_v7, 1 }
 0x172   : > { %v1554_v12 = vadd.f32 %v1553_v9, %v1543_v8  ;;  %v1568_v13 = vadd.f32 %v1567_v10, %v1566_v7 }
 0x174   : > { %1556 = vst.msk [vmem:[%s2599_s10] sm:$0x1] %vm1540_vm0, %v1554_v12  ;;  %v1569_v14 = vadd.f32 %v1568_v13, %v1557_v11 }
 0x176   : > { %1570 = vst.msk [vmem:[%s2605_s14] sm:$0x1] %vm1540_vm0, %v1569_v14 }
 0x177 PF: > { %s15_s17 = sadd.s32 1, %s2187_s17   ;;  %s2635_s15 = smov %s2183_s16 }
 0x178   : > { %p12_p5 = scmp.ge.s32.totalorder %s15_s17, 4   ;;  %s2636_s16 = smov %s2638_s18 }
 0x17a   :  { %14 = sbr.rel (!%p12_p5) target bundleno = 2 (0x2), region = 86 }

// kernel: _lambda_.36
= control target key start
LH: loop header
LB: loop body
LE: loop exit
PB: predicated region body
PF: predicated region fallthrough
CT: control target
= control target key end

     0   :  { %s773_s15 = smov 0   ;;  %s775_s16 = smov 0   ;;  %s876_s0 = inlined_call_operand.vmem [shape: bf16[2,16,256], index: 0, kind: input, shape index: {}]   ;;  %s877_s1 = inlined_call_operand.vmem [shape: bf16[256,128], index: 1, kind: input, shape index: {}]   ;;  %s878_s2 = inlined_call_operand.vmem [shape: bf16[2,16,128], index: 2, kind: output, shape index: {0}]   ;;  %s879_s3 = inlined_call_operand.vmem [shape: f32[2,1,128], index: 3, kind: output, shape index: {1}]   ;;  %s880_s4 = inlined_call_operand.vmem [shape: f32[2,1,128], index: 4, kind: output, shape index: {2}]  }
   0x1   :  { %s777_s17 = smov 0  }
   0x2 LB: > { %s27_s18 = sadd.s32 1, %s741_s16  ;;  %p621_p0 = scmp.ge.s32.totalorder %s745_s17, 1  ;;  %s745_s17 = sphi %s777_s17, %s15_s17   ;;  %s741_s16 = sphi %s775_s16, %s882_s16   ;;  %s737_s15 = sphi %s773_s15, %s881_s15  }
   0x3   : > { %p29_p1 = scmp.ge.s32.totalorder %s27_s18, 2  ;;  %p189_p2 = scmp.lt.s32.totalorder %s745_s17, 3 }
   0x5   : > { %s884_s18 = smov (%p29_p1, %s27_s18), 0  ;;  %p190_p3 = pnand %p621_p0, %p189_p2 }
   0x6   : > { %v704_v0 = vld [vmem:[%s877_s1 + $0x40] sm:$0xff] (!%p190_p3)   ;;  %v706_v2 = vld [vmem:[%s877_s1 + $0x48] sm:$0xff] (!%p190_p3)   ;;  %p231_p4 = scmp.lt.s32.totalorder (!%p190_p3), %s737_s15, 1  ;;  %v708_v4 = vld [vmem:[%s877_s1 + $0x50] sm:$0xff] (!%p190_p3)   ;;  %v747_v18 = vmov (!%p190_p3), 0.0  }
   0x7   : > { %193 = sbr.rel (%p190_p3) target bundleno = 275 (0x113), region = 28  ;;  %v705_v1 = vld [vmem:[%s877_s1] sm:$0xff] (!%p190_p3)   ;;  %657 = vmatprep.subr.bf16.mxu0 (!%p190_p3), %v704_v0  ;;  %v707_v3 = vld [vmem:[%s877_s1 + $0x8] sm:$0xff] (!%p190_p3)   ;;  %v709_v5 = vld [vmem:[%s877_s1 + $0x10] sm:$0xff] (!%p190_p3)  }
   0x8   : > { %658 = vmatpush3.bf16.msra.mxu0 (!%p190_p3), %v705_v1  ;;  %v710_v6 = vld [vmem:[%s877_s1 + $0x58] sm:$0xff] (!%p190_p3)   ;;  %v712_v8 = vld [vmem:[%s877_s1 + $0x60] sm:$0xff] (!%p190_p3)   ;;  %v714_v10 = vld [vmem:[%s877_s1 + $0x68] sm:$0xff] (!%p190_p3)  }
   0x9   : > { %659 = vmatprep.subr.bf16.mxu0 (!%p190_p3), %v706_v2  ;;  %v711_v7 = vld [vmem:[%s877_s1 + $0x18] sm:$0xff] (!%p190_p3)   ;;  %v713_v9 = vld [vmem:[%s877_s1 + $0x20] sm:$0xff] (!%p190_p3)   ;;  %v715_v12 = vld [vmem:[%s877_s1 + $0x28] sm:$0xff] (!%p190_p3)  }
   0xa   : > { %v716_v13 = vld [vmem:[%s877_s1 + $0x70] sm:$0xff] (!%p190_p3)   ;;  %v718_v15 = vld [vmem:[%s877_s1 + $0x78] sm:$0xff] (!%p190_p3)  }
   0xb   : > { %v717_v14 = vld [vmem:[%s877_s1 + $0x30] sm:$0xff] (!%p190_p3)   ;;  %v719_v16 = vld [vmem:[%s877_s1 + $0x38] sm:$0xff] (!%p190_p3)  }
   0xc   : > { %660 = vmatpush3.bf16.msra.mxu0 (!%p190_p3), %v707_v3 }
   0xd   : > { %661 = vmatprep.subr.bf16.mxu0 (!%p190_p3), %v708_v4 }
   0xe   : > { %s886_s15 = smov (!%p231_p4, %s737_s15), 1 }
   0xf   : > { %s648_s9 = sshll.u32 %s886_s15, 4  ;;  %s855_s12 = scalar_lea.vmem %s880_s4, %s886_s15 }
  0x10   : > { %662 = vmatpush3.bf16.msra.mxu0 %v709_v5  ;;  %s239_s14 = scalar_lea.vmem %s876_s0, %s648_s9  ;;  %s849_s9 = scalar_lea.vmem %s879_s3, %s886_s15  ;;  %454 = vst [vmem:[%s855_s12] sm:$0x1] %v747_v18 }
  0x11   : > { %663 = vmatprep.subr.bf16.mxu0 %v710_v6  ;;  %v722_v11 = vld [vmem:[%s239_s14 + $0x4] ss:$8 sps:$4 sm:$0xff]   ;;  %v720_v17 = vld [vmem:[%s239_s14] ss:$8 sps:$4 sm:$0xff]   ;;  %453 = vst [vmem:[%s849_s9] sm:$0x1] %v747_v18  ;;  %s649_s13 = sshll.u32 %s886_s15, 3 }
  0x12   : > { %430 = vmatprep.mubr.bf16.mxu0 %v722_v11  ;;  %s249_s20 = scalar_lea.vmem %s878_s2, %s649_s13 }
  0x14   : > { %664 = vmatpush3.bf16.msra.mxu0 %v711_v7 }
  0x15   : > { %665 = vmatprep.subr.bf16.mxu0 %v712_v8 }
  0x17   : > { %v465_v42 = vld [vmem:[%s855_s12] sm:$0x1] }
  0x18   : > { %666 = vmatpush3.bf16.msra.mxu0 %v713_v9  ;;  %v455_v39 = vld [vmem:[%s849_s9] sm:$0x1] }
  0x19   : > { %667 = vmatprep.subr.bf16.mxu0 %v714_v10 }
  0x1c   : > { %668 = vmatpush3.bf16.msra.mxu0 %v715_v12 }
  0x1d   : > { %669 = vmatprep.subr.bf16.mxu0 %v716_v13 }
  0x20   : > { %670 = vmatpush3.bf16.msra.mxu0 %v717_v14 }
  0x21   : > { %671 = vmatprep.subr.bf16.mxu0 %v718_v15 }
  0x24   : > { %672 = vmatpush3.bf16.msra.mxu0 %v719_v16 }
  0x27   : > { %431 = vmatmul.mubr.bf16.vlgmr.msra.gmra.mrb[0].mxu0 %v720_v17 }
  0xfa   : > { %v673_v19 = vpop.f32.mrb[0].mxu0 }
  0xfb   : > { %v674_v20 = vpop.f32.mrb[1].mxu0 }
  0xfc   : > { %v675_v21 = vadd.f32 %v674_v20, %v673_v19  ;;  %v676_v22 = vpop.f32.mrb[2].mxu0 }
  0xfd   : > { %v677_v23 = vpop.f32.mrb[3].mxu0 }
  0xfe   : > { %v678_v24 = vadd.f32 %v677_v23, %v676_v22  ;;  %v466_v25 = vmul.f32 %v675_v21, %v675_v21 }
 0x100   : > { %v655_v26 = vpack.c.bf16 %v678_v24, %v675_v21  ;;  %v456_v27 = vadd.f32 %v678_v24, %v675_v21  ;;  %v467_v28 = vmul.f32 %v678_v24, %v678_v24 }
 0x102   : > { %656 = vst [vmem:[%s249_s20] sm:$0xff] %v655_v26   ;;  %v457_v29 = vrot.slane %v456_v27, 4  ;;  %v468_v30 = vadd.f32 %v467_v28, %v466_v25 }
 0x104   : > { %v458_v31 = vadd.f32 %v457_v29, %v456_v27  ;;  %v469_v32 = vrot.slane %v468_v30, 4 }
 0x106   : > { %v459_v33 = vrot.slane %v458_v31, 2  ;;  %v470_v34 = vadd.f32 %v469_v32, %v468_v30 }
 0x108   : > { %v460_v35 = vadd.f32 %v459_v33, %v458_v31  ;;  %v471_v36 = vrot.slane %v470_v34, 2 }
 0x10a   : > { %v461_v37 = vrot.slane %v460_v35, 1  ;;  %v472_v38 = vadd.f32 %v471_v36, %v470_v34 }
 0x10c   : > { %v462_v40 = vadd.f32 %v461_v37, %v460_v35  ;;  %v473_v41 = vrot.slane %v472_v38, 1 }
 0x10e   : > { %v463_v43 = vadd.f32 %v462_v40, %v455_v39  ;;  %v474_v44 = vadd.f32 %v473_v41, %v472_v38 }
 0x110   : > { %464 = vst [vmem:[%s849_s9] sm:$0x1] %v463_v43  ;;  %v475_v45 = vadd.f32 %v474_v44, %v465_v42 }
 0x112   : > { %476 = vst [vmem:[%s855_s12] sm:$0x1] %v475_v45 }
 0x113 PF: > { %s15_s17 = sadd.s32 1, %s745_s17   ;;  %s881_s15 = smov %s741_s16 }
 0x114   : > { %p12_p5 = scmp.ge.s32.totalorder %s15_s17, 4   ;;  %s882_s16 = smov %s884_s18 }
 0x116   :  { %14 = sbr.rel (!%p12_p5) target bundleno = 2 (0x2), region = 86 }

// kernel: _lambda_.24
= control target key start
LH: loop header
LB: loop body
LE: loop exit
PB: predicated region body
PF: predicated region fallthrough
CT: control target
= control target key end

     0   :  { %s1274_s15 = smov 0   ;;  %s1276_s16 = smov 0   ;;  %s1485_s0 = inlined_call_operand.vmem [shape: bf16[2,64,512], index: 0, kind: input, shape index: {}]   ;;  %s1486_s1 = inlined_call_operand.vmem [shape: bf16[512,16], index: 1, kind: input, shape index: {}]   ;;  %s1487_s2 = inlined_call_operand.vmem [shape: bf16[2,64,16], index: 2, kind: output, shape index: {0}]   ;;  %s1488_s3 = inlined_call_operand.vmem [shape: f32[2,1,16], index: 3, kind: output, shape index: {1}]   ;;  %s1489_s4 = inlined_call_operand.vmem [shape: f32[2,1,16], index: 4, kind: output, shape index: {2}]  }
   0x1   :  { %s1278_s17 = smov 0  }
   0x2 LB: > { %s27_s18 = sadd.s32 1, %s1242_s16  ;;  %p990_p0 = scmp.ge.s32.totalorder %s1246_s17, 1  ;;  %s1246_s17 = sphi %s1278_s17, %s15_s17   ;;  %s1242_s16 = sphi %s1276_s16, %s1491_s16   ;;  %s1238_s15 = sphi %s1274_s15, %s1490_s15  }
   0x3   : > { %p29_p1 = scmp.ge.s32.totalorder %s27_s18, 2  ;;  %p189_p2 = scmp.lt.s32.totalorder %s1246_s17, 3 }
   0x5   : > { %s1493_s18 = smov (%p29_p1, %s27_s18), 0  ;;  %p190_p3 = pnand %p990_p0, %p189_p2 }
   0x6   : > { %v1168_v0 = vld [vmem:[%s1486_s1 + $0x40] sm:$0xff] (!%p190_p3)   ;;  %v1172_v4 = vld [vmem:[%s1486_s1 + $0x48] sm:$0xff] (!%p190_p3)   ;;  %v1176_v8 = vld [vmem:[%s1486_s1 + $0x50] sm:$0xff] (!%p190_p3)   ;;  %p231_p4 = scmp.lt.s32.totalorder (!%p190_p3), %s1238_s15, 1  ;;  %vm785_vm0 = vcmask (!%p190_p3), 122880   ;;  %v1248_v48 = vmov (!%p190_p3), 0.0  }
   0x7   : > { %193 = sbr.rel (%p190_p3) target bundleno = 304 (0x130), region = 28  ;;  %v1169_v1 = vld [vmem:[%s1486_s1 + $0xc0] sm:$0xff] (!%p190_p3)   ;;  %1063 = vmatprep.subr.bf16.mxu0 (!%p190_p3), %v1168_v0  ;;  %v1173_v5 = vld [vmem:[%s1486_s1 + $0xc8] sm:$0xff] (!%p190_p3)   ;;  %v1177_v9 = vld [vmem:[%s1486_s1 + $0xd0] sm:$0xff] (!%p190_p3)   ;;  %vm772_vm1 = vcmask (!%p190_p3), 125952   ;;  %vm789_vm2 = vcmask (!%p190_p3), 130048  }
   0x8   : > { %v1170_v2 = vld [vmem:[%s1486_s1] sm:$0xff] (!%p190_p3)   ;;  %1103 = vmatprep.subr.bf16.mxu1 (!%p190_p3), %v1169_v1  ;;  %v1174_v6 = vld [vmem:[%s1486_s1 + $0x8] sm:$0xff] (!%p190_p3)   ;;  %v1178_v10 = vld [vmem:[%s1486_s1 + $0x10] sm:$0xff] (!%p190_p3)  }
   0x9   : > { %v1171_v3 = vld [vmem:[%s1486_s1 + $0x80] sm:$0xff] (!%p190_p3)   ;;  %1064 = vmatpush3.bf16.msra.mxu0 (!%p190_p3), %v1170_v2  ;;  %v1175_v7 = vld [vmem:[%s1486_s1 + $0x88] sm:$0xff] (!%p190_p3)   ;;  %v1179_v11 = vld [vmem:[%s1486_s1 + $0x90] sm:$0xff] (!%p190_p3)  }
   0xa   : > { %1104 = vmatpush3.bf16.msra.mxu1 (!%p190_p3), %v1171_v3  ;;  %1065 = vmatprep.subr.bf16.mxu0 (!%p190_p3), %v1172_v4  ;;  %v1180_v12 = vld [vmem:[%s1486_s1 + $0x58] sm:$0xff] (!%p190_p3)   ;;  %v1184_v16 = vld [vmem:[%s1486_s1 + $0x60] sm:$0xff] (!%p190_p3)   ;;  %v1188_v20 = vld [vmem:[%s1486_s1 + $0x68] sm:$0xff] (!%p190_p3)  }
   0xb   : > { %1105 = vmatprep.subr.bf16.mxu1 (!%p190_p3), %v1173_v5  ;;  %v1181_v13 = vld [vmem:[%s1486_s1 + $0xd8] sm:$0xff] (!%p190_p3)   ;;  %v1185_v17 = vld [vmem:[%s1486_s1 + $0xe0] sm:$0xff] (!%p190_p3)   ;;  %v1189_v21 = vld [vmem:[%s1486_s1 + $0xe8] sm:$0xff] (!%p190_p3)  }
   0xc   : > { %v1182_v14 = vld [vmem:[%s1486_s1 + $0x18] sm:$0xff] (!%p190_p3)   ;;  %v1186_v18 = vld [vmem:[%s1486_s1 + $0x20] sm:$0xff] (!%p190_p3)   ;;  %v1190_v22 = vld [vmem:[%s1486_s1 + $0x28] sm:$0xff] (!%p190_p3)  }
   0xd   : > { %1066 = vmatpush3.bf16.msra.mxu0 (!%p190_p3), %v1174_v6  ;;  %v1183_v15 = vld [vmem:[%s1486_s1 + $0x98] sm:$0xff] (!%p190_p3)   ;;  %v1187_v19 = vld [vmem:[%s1486_s1 + $0xa0] sm:$0xff] (!%p190_p3)   ;;  %v1191_v23 = vld [vmem:[%s1486_s1 + $0xa8] sm:$0xff] (!%p190_p3)  }
   0xe   : > { %1106 = vmatpush3.bf16.msra.mxu1 %v1175_v7  ;;  %1067 = vmatprep.subr.bf16.mxu0 %v1176_v8  ;;  %s1495_s15 = smov (!%p231_p4, %s1238_s15), 1  ;;  %v1192_v24 = vld [vmem:[%s1486_s1 + $0x70] sm:$0xff]   ;;  %v1196_v28 = vld [vmem:[%s1486_s1 + $0x78] sm:$0xff]  }
   0xf   : > { %1107 = vmatprep.subr.bf16.mxu1 %v1177_v9  ;;  %v1193_v25 = vld [vmem:[%s1486_s1 + $0xf0] sm:$0xff]   ;;  %s1053_s29 = sshll.u32 %s1495_s15, 7  ;;  %v1197_v29 = vld [vmem:[%s1486_s1 + $0xf8] sm:$0xff]   ;;  %s1420_s23 = scalar_lea.vmem %s1488_s3, %s1495_s15 }
  0x10   : > { %v1194_v26 = vld [vmem:[%s1486_s1 + $0x30] sm:$0xff]   ;;  %s1392_s12 = scalar_lea.vmem %s1485_s0, %s1053_s29  ;;  %v1198_v30 = vld [vmem:[%s1486_s1 + $0x38] sm:$0xff]   ;;  %s1426_s26 = scalar_lea.vmem %s1489_s4, %s1495_s15  ;;  %786 = vst.msk [vmem:[%s1420_s23] sm:$0x1] %vm785_vm0, %v1248_v48 }
  0x11   : > { %1068 = vmatpush3.bf16.msra.mxu0 %v1178_v10  ;;  %v1195_v27 = vld [vmem:[%s1486_s1 + $0xb0] sm:$0xff]   ;;  %v1199_v31 = vld [vmem:[%s1486_s1 + $0xb8] sm:$0xff]   ;;  %787 = vst.msk [vmem:[%s1426_s26] sm:$0x1] %vm785_vm0, %v1248_v48  ;;  %s1054_s27 = sshll.u32 %s1495_s15, 5 }
  0x12   : > { %1108 = vmatpush3.bf16.msra.mxu1 %v1179_v11  ;;  %1069 = vmatprep.subr.bf16.mxu0 %v1180_v12  ;;  %v1200_v32 = vld [vmem:[%s1392_s12] ss:$16 sps:$4 sm:$0xff]   ;;  %v1202_v33 = vld [vmem:[%s1392_s12 + $0x4] ss:$16 sps:$4 sm:$0xff]   ;;  %v1203_v34 = vld [vmem:[%s1392_s12 + $0x8] ss:$16 sps:$4 sm:$0xff]   ;;  %s1436_s30 = scalar_lea.vmem %s1487_s2, %s1054_s27 }
  0x13   : > { %1109 = vmatprep.subr.bf16.mxu1 %v1181_v13  ;;  %v1205_v35 = vld [vmem:[%s1392_s12 + $0xc] ss:$16 sps:$4 sm:$0xff]   ;;  %642 = vmatprep.mubr.bf16.mxu0 %v1202_v33  ;;  %v1206_v36 = vld [vmem:[%s1392_s12 + $0x24] ss:$16 sps:$4 sm:$0xff]   ;;  %v1210_v38 = vld [vmem:[%s1392_s12 + $0x20] ss:$16 sps:$4 sm:$0xff]  }
  0x14   : > { %707 = vmatprep.mubr.bf16.mxu1 %v1205_v35  ;;  %v1208_v37 = vld [vmem:[%s1392_s12 + $0x2c] ss:$16 sps:$4 sm:$0xff]   ;;  %v1211_v39 = vld [vmem:[%s1392_s12 + $0x28] ss:$16 sps:$4 sm:$0xff]   ;;  %v1212_v40 = vld [vmem:[%s1392_s12 + $0x44] ss:$16 sps:$4 sm:$0xff]  }
  0x15   : > { %1070 = vmatpush3.bf16.msra.mxu0 %v1182_v14  ;;  %v1214_v41 = vld [vmem:[%s1392_s12 + $0x4c] ss:$16 sps:$4 sm:$0xff]   ;;  %v1216_v42 = vld [vmem:[%s1392_s12 + $0x40] ss:$16 sps:$4 sm:$0xff]   ;;  %v1217_v43 = vld [vmem:[%s1392_s12 + $0x48] ss:$16 sps:$4 sm:$0xff]  }
  0x16   : > { %1110 = vmatpush3.bf16.msra.mxu1 %v1183_v15  ;;  %1071 = vmatprep.subr.bf16.mxu0 %v1184_v16  ;;  %v1218_v44 = vld [vmem:[%s1392_s12 + $0x64] ss:$16 sps:$4 sm:$0xff]   ;;  %v1220_v45 = vld [vmem:[%s1392_s12 + $0x6c] ss:$16 sps:$4 sm:$0xff]   ;;  %v1222_v46 = vld [vmem:[%s1392_s12 + $0x60] ss:$16 sps:$4 sm:$0xff]  }
  0x17   : > { %1111 = vmatprep.subr.bf16.mxu1 %v1185_v17  ;;  %v1223_v47 = vld [vmem:[%s1392_s12 + $0x68] ss:$16 sps:$4 sm:$0xff]  }
  0x19   : > { %1072 = vmatpush3.bf16.msra.mxu0 %v1186_v18 }
  0x1a   : > { %1112 = vmatpush3.bf16.msra.mxu1 %v1187_v19  ;;  %1073 = vmatprep.subr.bf16.mxu0 %v1188_v20 }
  0x1b   : > { %1113 = vmatprep.subr.bf16.mxu1 %v1189_v21 }
  0x1d   : > { %1074 = vmatpush3.bf16.msra.mxu0 %v1190_v22 }
  0x1e   : > { %1114 = vmatpush3.bf16.msra.mxu1 %v1191_v23  ;;  %1075 = vmatprep.subr.bf16.mxu0 %v1192_v24 }
  0x1f   : > { %1115 = vmatprep.subr.bf16.mxu1 %v1193_v25 }
  0x21   : > { %1076 = vmatpush3.bf16.msra.mxu0 %v1194_v26 }
  0x22   : > { %1116 = vmatpush3.bf16.msra.mxu1 %v1195_v27  ;;  %1077 = vmatprep.subr.bf16.mxu0 %v1196_v28 }
  0x23   : > { %1117 = vmatprep.subr.bf16.mxu1 %v1197_v29 }
  0x25   : > { %1078 = vmatpush3.bf16.msra.mxu0 %v1198_v30 }
  0x26   : > { %1118 = vmatpush3.bf16.msra.mxu1 %v1199_v31 }
  0x28   : > { %643 = vmatmul.mubr.bf16.vlgmr.msra.gmra.mrb[0].mxu0 %v1200_v32 }
  0x29   : > { %708 = vmatmul.mubr.bf16.vlgmr.msra.gmra.mrb[0].mxu1 %v1203_v34  ;;  %650 = vmatprep.mubr.bf16.mxu0 %v1206_v36 }
  0x2a   : > { %715 = vmatprep.mubr.bf16.mxu1 %v1208_v37 }
  0x30   : > { %651 = vmatmul.mubr.bf16.gmra.mrb[4].mxu0 %v1210_v38 }
  0x31   : > { %716 = vmatmul.mubr.bf16.gmra.mrb[4].mxu1 %v1211_v39  ;;  %658 = vmatprep.mubr.bf16.mxu0 %v1212_v40 }
  0x32   : > { %723 = vmatprep.mubr.bf16.mxu1 %v1214_v41 }
  0x38   : > { %659 = vmatmul.mubr.bf16.gmra.mrb[8].mxu0 %v1216_v42 }
  0x39   : > { %724 = vmatmul.mubr.bf16.gmra.mrb[8].mxu1 %v1217_v43  ;;  %666 = vmatprep.mubr.bf16.mxu0 %v1218_v44 }
  0x3a   : > { %731 = vmatprep.mubr.bf16.mxu1 %v1220_v45 }
  0x40   : > { %667 = vmatmul.mubr.bf16.gmra.mrb[12].mxu0 %v1222_v46 }
  0x41   : > { %732 = vmatmul.mubr.bf16.gmra.mrb[12].mxu1 %v1223_v47 }
  0xfb   : > { %v1079_v49 = vpop.f32.mrb[0].mxu0 }
  0xfc   : > { %v1119_v50 = vpop.f32.mrb[0].mxu1  ;;  %v1080_v51 = vpop.f32.mrb[1].mxu0 }
  0xfd   : > { %v1081_v52 = vadd.f32 %v1080_v51, %v1079_v49  ;;  %v1120_v53 = vpop.f32.mrb[1].mxu1  ;;  %v1082_v54 = vpop.f32.mrb[2].mxu0 }
  0xfe   : > { %v1121_v55 = vadd.f32 %v1120_v53, %v1119_v50  ;;  %v1122_v56 = vpop.f32.mrb[2].mxu1  ;;  %v1083_v57 = vpop.f32.mrb[3].mxu0 }
  0xff   : > { %v1084_v58 = vadd.f32 %v1083_v57, %v1082_v54  ;;  %v1123_v59 = vpop.f32.mrb[3].mxu1 }
 0x100   : > { %v710_v60 = vadd.f32 %v1121_v55, %v1081_v52  ;;  %v1124_v61 = vadd.f32 %v1123_v59, %v1122_v56 }
 0x102   : > { %v1055_v62 = vpack.c.bf16 %v710_v60, %v710_v60  ;;  %v815_v63 = vmul.f32 %v710_v60, %v710_v60  ;;  %v713_v0 = vadd.f32 %v1124_v61, %v1084_v58  ;;  %v790_v2 = vsel %vm789_vm2, %v710_v60, 0.0 }
 0x103   : > { %v1085_v1 = vpop.f32.mrb[4].mxu0 }
 0x104   : > { %773 = vst.msk [vmem:[%s1436_s30] sm:$0xf] %vm772_vm1, %v1055_v62  ;;  %v1056_v3 = vpack.c.bf16 %v713_v0, %v713_v0  ;;  %v791_v4 = vsel %vm789_vm2, %v713_v0, 0.0  ;;  %v816_v5 = vmul.f32 %v713_v0, %v713_v0  ;;  %v1125_v6 = vpop.f32.mrb[4].mxu1  ;;  %v1086_v7 = vpop.f32.mrb[5].mxu0  ;;  %v823_v12 = vsel %vm789_vm2, %v815_v63, 0.0 }
 0x105   : > { %v792_v8 = vadd.f32 %v791_v4, %v790_v2  ;;  %v1087_v9 = vadd.f32 %v1086_v7, %v1085_v1  ;;  %v1126_v10 = vpop.f32.mrb[5].mxu1  ;;  %v1088_v11 = vpop.f32.mrb[6].mxu0 }
 0x106   : > { %774 = vst.msk [vmem:[%s1436_s30 + $0x4] sm:$0xf] %vm772_vm1, %v1056_v3  ;;  %v824_v13 = vsel %vm789_vm2, %v816_v5, 0.0  ;;  %v1127_v14 = vadd.f32 %v1126_v10, %v1125_v6  ;;  %v1128_v15 = vpop.f32.mrb[6].mxu1  ;;  %v1089_v16 = vpop.f32.mrb[7].mxu0 }
 0x107   : > { %v825_v17 = vadd.f32 %v824_v13, %v823_v12  ;;  %v1090_v18 = vadd.f32 %v1089_v16, %v1088_v11  ;;  %v1129_v19 = vpop.f32.mrb[7].mxu1 }
 0x108   : > { %v718_v20 = vadd.f32 %v1127_v14, %v1087_v9  ;;  %v1130_v21 = vadd.f32 %v1129_v19, %v1128_v15 }
 0x10a   : > { %v1057_v22 = vpack.c.bf16 %v718_v20, %v718_v20  ;;  %v793_v23 = vsel %vm789_vm2, %v718_v20, 0.0  ;;  %v817_v24 = vmul.f32 %v718_v20, %v718_v20  ;;  %v721_v25 = vadd.f32 %v1130_v21, %v1090_v18 }
 0x10b   : > { %v794_v26 = vadd.f32 %v793_v23, %v792_v8  ;;  %v1091_v27 = vpop.f32.mrb[8].mxu0 }
 0x10c   : > { %775 = vst.msk [vmem:[%s1436_s30 + $0x8] sm:$0xf] %vm772_vm1, %v1057_v22  ;;  %v826_v28 = vsel %vm789_vm2, %v817_v24, 0.0  ;;  %v1058_v29 = vpack.c.bf16 %v721_v25, %v721_v25  ;;  %v795_v30 = vsel %vm789_vm2, %v721_v25, 0.0  ;;  %v818_v31 = vmul.f32 %v721_v25, %v721_v25  ;;  %v1131_v32 = vpop.f32.mrb[8].mxu1  ;;  %v1092_v33 = vpop.f32.mrb[9].mxu0 }
 0x10d   : > { %v827_v34 = vadd.f32 %v826_v28, %v825_v17  ;;  %v796_v35 = vadd.f32 %v795_v30, %v794_v26  ;;  %v1093_v36 = vadd.f32 %v1092_v33, %v1091_v27  ;;  %v1132_v37 = vpop.f32.mrb[9].mxu1  ;;  %v1094_v38 = vpop.f32.mrb[10].mxu0 }
 0x10e   : > { %776 = vst.msk [vmem:[%s1436_s30 + $0xc] sm:$0xf] %vm772_vm1, %v1058_v29  ;;  %v828_v39 = vsel %vm789_vm2, %v818_v31, 0.0  ;;  %v1133_v40 = vadd.f32 %v1132_v37, %v1131_v32  ;;  %v1134_v41 = vpop.f32.mrb[10].mxu1  ;;  %v1095_v42 = vpop.f32.mrb[11].mxu0 }
 0x10f   : > { %v829_v43 = vadd.f32 %v828_v39, %v827_v34  ;;  %v1096_v44 = vadd.f32 %v1095_v42, %v1094_v38  ;;  %v1135_v45 = vpop.f32.mrb[11].mxu1  ;;  %v788_v32 = vld [vmem:[%s1420_s23] sm:$0x1] }
 0x110   : > { %v726_v46 = vadd.f32 %v1133_v40, %v1093_v36  ;;  %v1136_v47 = vadd.f32 %v1135_v45, %v1134_v41 }
 0x112   : > { %v1059_v48 = vpack.c.bf16 %v726_v46, %v726_v46  ;;  %v797_v49 = vsel %vm789_vm2, %v726_v46, 0.0  ;;  %v819_v50 = vmul.f32 %v726_v46, %v726_v46  ;;  %v729_v51 = vadd.f32 %v1136_v47, %v1096_v44 }
 0x113   : > { %v798_v52 = vadd.f32 %v797_v49, %v796_v35  ;;  %v1097_v53 = vpop.f32.mrb[12].mxu0  ;;  %v814_v35 = vld [vmem:[%s1426_s26] sm:$0x1] }
 0x114   : > { %777 = vst.msk [vmem:[%s1436_s30 + $0x10] sm:$0xf] %vm772_vm1, %v1059_v48  ;;  %v830_v54 = vsel %vm789_vm2, %v819_v50, 0.0  ;;  %v1060_v55 = vpack.c.bf16 %v729_v51, %v729_v51  ;;  %v799_v56 = vsel %vm789_vm2, %v729_v51, 0.0  ;;  %v820_v57 = vmul.f32 %v729_v51, %v729_v51  ;;  %v1137_v58 = vpop.f32.mrb[12].mxu1  ;;  %v1098_v59 = vpop.f32.mrb[13].mxu0 }
 0x115   : > { %v831_v60 = vadd.f32 %v830_v54, %v829_v43  ;;  %v800_v61 = vadd.f32 %v799_v56, %v798_v52  ;;  %v1099_v62 = vadd.f32 %v1098_v59, %v1097_v53  ;;  %v1138_v63 = vpop.f32.mrb[13].mxu1  ;;  %v1100_v0 = vpop.f32.mrb[14].mxu0 }
 0x116   : > { %778 = vst.msk [vmem:[%s1436_s30 + $0x14] sm:$0xf] %vm772_vm1, %v1060_v55  ;;  %v832_v1 = vsel %vm789_vm2, %v820_v57, 0.0  ;;  %v1139_v2 = vadd.f32 %v1138_v63, %v1137_v58  ;;  %v1140_v3 = vpop.f32.mrb[14].mxu1  ;;  %v1101_v4 = vpop.f32.mrb[15].mxu0 }
 0x117   : > { %v833_v5 = vadd.f32 %v832_v1, %v831_v60  ;;  %v1102_v6 = vadd.f32 %v1101_v4, %v1100_v0  ;;  %v1141_v7 = vpop.f32.mrb[15].mxu1 }
 0x118   : > { %v734_v8 = vadd.f32 %v1139_v2, %v1099_v62  ;;  %v1142_v9 = vadd.f32 %v1141_v7, %v1140_v3 }
 0x11a   : > { %v1061_v10 = vpack.c.bf16 %v734_v8, %v734_v8  ;;  %v801_v11 = vsel %vm789_vm2, %v734_v8, 0.0  ;;  %v821_v12 = vmul.f32 %v734_v8, %v734_v8  ;;  %v737_v13 = vadd.f32 %v1142_v9, %v1102_v6 }
 0x11b   : > { %v802_v14 = vadd.f32 %v801_v11, %v800_v61 }
 0x11c   : > { %779 = vst.msk [vmem:[%s1436_s30 + $0x18] sm:$0xf] %vm772_vm1, %v1061_v10  ;;  %v834_v15 = vsel %vm789_vm2, %v821_v12, 0.0  ;;  %v1062_v16 = vpack.c.bf16 %v737_v13, %v737_v13  ;;  %v803_v17 = vsel %vm789_vm2, %v737_v13, 0.0  ;;  %v822_v18 = vmul.f32 %v737_v13, %v737_v13 }
 0x11d   : > { %v835_v19 = vadd.f32 %v834_v15, %v833_v5  ;;  %v804_v20 = vadd.f32 %v803_v17, %v802_v14 }
 0x11e   : > { %780 = vst.msk [vmem:[%s1436_s30 + $0x1c] sm:$0xf] %vm772_vm1, %v1062_v16  ;;  %v836_v21 = vsel %vm789_vm2, %v822_v18, 0.0 }
 0x11f   : > { %v805_v22 = vrot.slane %v804_v20, 4  ;;  %v837_v23 = vadd.f32 %v836_v21, %v835_v19 }
 0x121   : > { %v806_v24 = vadd.f32 %v805_v22, %v804_v20  ;;  %v838_v25 = vrot.slane %v837_v23, 4 }
 0x123   : > { %v807_v26 = vrot.slane %v806_v24, 2  ;;  %v839_v27 = vadd.f32 %v838_v25, %v837_v23 }
 0x125   : > { %v808_v28 = vadd.f32 %v807_v26, %v806_v24  ;;  %v840_v29 = vrot.slane %v839_v27, 2 }
 0x127   : > { %v809_v30 = vrot.slane %v808_v28, 1  ;;  %v841_v31 = vadd.f32 %v840_v29, %v839_v27 }
 0x129   : > { %v810_v33 = vadd.f32 %v809_v30, %v808_v28  ;;  %v842_v34 = vrot.slane %v841_v31, 1 }
 0x12b   : > { %v811_v36 = vadd.f32 %v810_v33, %v788_v32  ;;  %v843_v37 = vadd.f32 %v842_v34, %v841_v31 }
 0x12d   : > { %813 = vst.msk [vmem:[%s1420_s23] sm:$0x1] %vm785_vm0, %v811_v36  ;;  %v844_v38 = vadd.f32 %v843_v37, %v814_v35 }
 0x12f   : > { %845 = vst.msk [vmem:[%s1426_s26] sm:$0x1] %vm785_vm0, %v844_v38 }
 0x130 PF: > { %s15_s17 = sadd.s32 1, %s1246_s17   ;;  %s1490_s15 = smov %s1242_s16 }
 0x131   : > { %p12_p5 = scmp.ge.s32.totalorder %s15_s17, 4   ;;  %s1491_s16 = smov %s1493_s18 }
 0x133   :  { %14 = sbr.rel (!%p12_p5) target bundleno = 2 (0x2), region = 86 }

// kernel: _lambda_.37
= control target key start
LH: loop header
LB: loop body
LE: loop exit
PB: predicated region body
PF: predicated region fallthrough
CT: control target
= control target key end

     0   :  { %s572_s15 = smov 0   ;;  %s574_s16 = smov 0   ;;  %s614_s0 = inlined_call_operand.vmem [shape: bf16[2,16,128], index: 0, kind: input, shape index: {}]   ;;  %s615_s1 = inlined_call_operand.vmem [shape: f32[2,1,128], index: 1, kind: input, shape index: {}]   ;;  %s616_s2 = inlined_call_operand.vmem [shape: f32[2,1,128], index: 2, kind: input, shape index: {}]   ;;  %s617_s3 = inlined_call_operand.vmem [shape: bf16[2,16,128], index: 3, kind: input, shape index: {}]   ;;  %s618_s4 = inlined_call_operand.vmem [shape: bf16[2,16,128], index: 4, kind: output, shape index: {}]  }
   0x1   :  { %s576_s17 = smov 0  }
   0x2 LB: > { %s26_s18 = sadd.s32 1, %s541_s16  ;;  %p468_p0 = scmp.ge.s32.totalorder %s545_s17, 1  ;;  %s545_s17 = sphi %s576_s17, %s14_s17   ;;  %s541_s16 = sphi %s574_s16, %s620_s16   ;;  %s537_s15 = sphi %s572_s15, %s619_s15  }
   0x3   : > { %p28_p1 = scmp.ge.s32.totalorder %s26_s18, 2  ;;  %p216_p2 = scmp.lt.s32.totalorder %s545_s17, 3 }
   0x5   : > { %s622_s18 = smov (%p28_p1, %s26_s18), 0  ;;  %p217_p3 = pnand %p468_p0, %p216_p2 }
   0x6   : > { %p266_p4 = scmp.lt.s32.totalorder (!%p217_p3), %s537_s15, 1 }
   0x7   : > { %220 = sbr.rel (%p217_p3) target bundleno = 31 (0x1f), region = 36 }
   0xe   : > { %s624_s15 = smov (!%p266_p4, %s537_s15), 1 }
   0xf   : > { %s481_s19 = sshll.u32 %s624_s15, 3  ;;  %s277_s22 = scalar_lea.vmem %s615_s1, %s624_s15 }
  0x10   : > { %s273_s25 = scalar_lea.vmem %s614_s0, %s481_s19  ;;  %s280_s28 = scalar_lea.vmem %s616_s2, %s624_s15  ;;  %v475_v1 = vld [vmem:[%s277_s22] ss:$0 sm:$0xff] }
  0x11   : > { %s289_s5 = scalar_lea.vmem %s617_s3, %s481_s19  ;;  %v487_v0 = vld [vmem:[%s273_s25] sm:$0xff]   ;;  %s299_s8 = scalar_lea.vmem %s618_s4, %s481_s19 }
  0x12   : > { %v488_v2 = vunpack.c.l.bf16 %v487_v0  ;;  %v489_v3 = vunpack.c.h.bf16 %v487_v0  ;;  %v476_v4 = vld [vmem:[%s280_s28] ss:$0 sm:$0xff] }
  0x13   : > { %v491_v5 = vld [vmem:[%s289_s5] sm:$0xff]  }
  0x14   : > { %v312_v6 = vmul.f32 %v488_v2, %v475_v1  ;;  %v313_v7 = vmul.f32 %v489_v3, %v475_v1  ;;  %v492_v10 = vunpack.c.l.bf16 %v491_v5  ;;  %v493_v11 = vunpack.c.h.bf16 %v491_v5 }
  0x16   : > { %v321_v8 = vadd.f32 %v476_v4, %v312_v6  ;;  %v322_v9 = vadd.f32 %v476_v4, %v313_v7 }
  0x18   : > { %v323_v12 = vmax.f32 %v321_v8, 0.0  ;;  %v324_v13 = vmax.f32 %v322_v9, 0.0 }
  0x1a   : > { %v329_v14 = vadd.f32 %v492_v10, %v323_v12  ;;  %v330_v15 = vadd.f32 %v493_v11, %v324_v13 }
  0x1c   : > { %v497_v16 = vpack.c.bf16 %v330_v15, %v329_v14 }
  0x1e   : > { %498 = vst [vmem:[%s299_s8] sm:$0xff] %v497_v16  }
  0x1f PF: > { %s14_s17 = sadd.s32 1, %s545_s17   ;;  %s619_s15 = smov %s541_s16 }
  0x20   : > { %p11_p5 = scmp.ge.s32.totalorder %s14_s17, 4   ;;  %s620_s16 = smov %s622_s18 }
  0x22   :  { %13 = sbr.rel (!%p11_p5) target bundleno = 2 (0x2), region = 75 }

// kernel: _lambda_.38
= control target key start
LH: loop header
LB: loop body
LE: loop exit
PB: predicated region body
PF: predicated region fallthrough
CT: control target
= control target key end

     0   :  { %s839_s15 = smov 0   ;;  %s841_s16 = smov 0   ;;  %s965_s0 = inlined_call_operand.vmem [shape: bf16[2,64,128], index: 0, kind: input, shape index: {}]   ;;  %s966_s1 = inlined_call_operand.vmem [shape: bf16[128,64], index: 1, kind: input, shape index: {}]   ;;  %s967_s2 = inlined_call_operand.vmem [shape: bf16[2,64,64], index: 2, kind: output, shape index: {0}]   ;;  %s968_s3 = inlined_call_operand.vmem [shape: f32[2,1,64], index: 3, kind: output, shape index: {1}]   ;;  %s969_s4 = inlined_call_operand.vmem [shape: f32[2,1,64], index: 4, kind: output, shape index: {2}]  }
   0x1   :  { %s843_s17 = smov 0  }
   0x2 LB: > { %s27_s18 = sadd.s32 1, %s807_s16  ;;  %p663_p0 = scmp.ge.s32.totalorder %s811_s17, 1  ;;  %s811_s17 = sphi %s843_s17, %s15_s17   ;;  %s807_s16 = sphi %s841_s16, %s971_s16   ;;  %s803_s15 = sphi %s839_s15, %s970_s15  }
   0x3   : > { %p29_p1 = scmp.ge.s32.totalorder %s27_s18, 2  ;;  %p188_p2 = scmp.lt.s32.totalorder %s811_s17, 3 }
   0x5   : > { %s973_s18 = smov (%p29_p1, %s27_s18), 0  ;;  %p189_p3 = pnand %p663_p0, %p188_p2 }
   0x6   : > { %v777_v0 = vld [vmem:[%s966_s1] sm:$0xff] (!%p189_p3)   ;;  %p229_p4 = scmp.lt.s32.totalorder (!%p189_p3), %s803_s15, 1  ;;  %v778_v1 = vld [vmem:[%s966_s1 + $0x8] sm:$0xff] (!%p189_p3)   ;;  %v779_v2 = vld [vmem:[%s966_s1 + $0x10] sm:$0xff] (!%p189_p3)   ;;  %vm461_vm0 = vcmask (!%p189_p3), 516096   ;;  %v813_v12 = vmov (!%p189_p3), 0.0  }
   0x7   : > { %192 = sbr.rel (%p189_p3) target bundleno = 286 (0x11e), region = 28  ;;  %712 = vmatprep.subr.bf16.mxu0 (!%p189_p3), %v777_v0  ;;  %736 = vmatprep.subr.bf16.mxu1 (!%p189_p3), %v777_v0  ;;  %v780_v3 = vld [vmem:[%s966_s1 + $0x18] sm:$0xff] (!%p189_p3)   ;;  %v781_v6 = vld [vmem:[%s966_s1 + $0x20] sm:$0xff] (!%p189_p3)   ;;  %v782_v7 = vld [vmem:[%s966_s1 + $0x28] sm:$0xff] (!%p189_p3)   ;;  %vm448_vm1 = vcmask (!%p189_p3), 519168   ;;  %vm465_vm2 = vcmask (!%p189_p3), 523264  }
   0x8   : > { %713 = vmatpush3.bf16.msra.mxu0 (!%p189_p3), %v777_v0  ;;  %744 = vmatpush3.bf16.msra.mxu1 (!%p189_p3), %v777_v0  ;;  %v783_v8 = vld [vmem:[%s966_s1 + $0x30] sm:$0xff] (!%p189_p3)   ;;  %v784_v9 = vld [vmem:[%s966_s1 + $0x38] sm:$0xff] (!%p189_p3)  }
   0x9   : > { %714 = vmatprep.subr.bf16.mxu0 (!%p189_p3), %v778_v1  ;;  %737 = vmatprep.subr.bf16.mxu1 (!%p189_p3), %v778_v1 }
   0xc   : > { %715 = vmatpush3.bf16.msra.mxu0 (!%p189_p3), %v778_v1  ;;  %745 = vmatpush3.bf16.msra.mxu1 (!%p189_p3), %v778_v1 }
   0xd   : > { %716 = vmatprep.subr.bf16.mxu0 (!%p189_p3), %v779_v2  ;;  %738 = vmatprep.subr.bf16.mxu1 (!%p189_p3), %v779_v2 }
   0xe   : > { %s975_s15 = smov (!%p229_p4, %s803_s15), 1 }
   0xf   : > { %s690_s25 = sshll.u32 %s975_s15, 5  ;;  %s899_s19 = scalar_lea.vmem %s968_s3, %s975_s15 }
  0x10   : > { %s874_s28 = scalar_lea.vmem %s965_s0, %s690_s25  ;;  %717 = vmatpush3.bf16.msra.mxu0 %v779_v2  ;;  %746 = vmatpush3.bf16.msra.mxu1 %v779_v2  ;;  %s905_s22 = scalar_lea.vmem %s969_s4, %s975_s15  ;;  %462 = vst.msk [vmem:[%s899_s19] sm:$0x1] %vm461_vm0, %v813_v12 }
  0x11   : > { %v785_v4 = vld [vmem:[%s874_s28] sm:$0xff]   ;;  %v787_v5 = vld [vmem:[%s874_s28 + $0x10] sm:$0xff]   ;;  %718 = vmatprep.subr.bf16.mxu0 %v780_v3  ;;  %739 = vmatprep.subr.bf16.mxu1 %v780_v3  ;;  %v786_v10 = vld [vmem:[%s874_s28 + $0x8] sm:$0xff]   ;;  %463 = vst.msk [vmem:[%s905_s22] sm:$0x1] %vm461_vm0, %v813_v12  ;;  %s916_s26 = scalar_lea.vmem %s967_s2, %s690_s25 }
  0x12   : > { %728 = vmatprep.mubr.bf16.mxu0 %v785_v4  ;;  %732 = vmatprep.mubr.bf16.mxu1 %v787_v5  ;;  %v788_v11 = vld [vmem:[%s874_s28 + $0x18] sm:$0xff]  }
  0x14   : > { %719 = vmatpush3.bf16.msra.mxu0 %v780_v3  ;;  %747 = vmatpush3.bf16.msra.mxu1 %v780_v3 }
  0x15   : > { %720 = vmatprep.subr.bf16.mxu0 %v781_v6  ;;  %740 = vmatprep.subr.bf16.mxu1 %v781_v6 }
  0x17   : > { %v464_v12 = vld [vmem:[%s899_s19] sm:$0x1] }
  0x18   : > { %721 = vmatpush3.bf16.msra.mxu0 %v781_v6  ;;  %748 = vmatpush3.bf16.msra.mxu1 %v781_v6 }
  0x19   : > { %722 = vmatprep.subr.bf16.mxu0 %v782_v7  ;;  %741 = vmatprep.subr.bf16.mxu1 %v782_v7 }
  0x1c   : > { %723 = vmatpush3.bf16.msra.mxu0 %v782_v7  ;;  %749 = vmatpush3.bf16.msra.mxu1 %v782_v7 }
  0x1d   : > { %724 = vmatprep.subr.bf16.mxu0 %v783_v8  ;;  %742 = vmatprep.subr.bf16.mxu1 %v783_v8 }
  0x20   : > { %725 = vmatpush3.bf16.msra.mxu0 %v783_v8  ;;  %750 = vmatpush3.bf16.msra.mxu1 %v783_v8 }
  0x21   : > { %726 = vmatprep.subr.bf16.mxu0 %v784_v9  ;;  %743 = vmatprep.subr.bf16.mxu1 %v784_v9 }
  0x24   : > { %727 = vmatpush3.bf16.msra.mxu0 %v784_v9  ;;  %751 = vmatpush3.bf16.msra.mxu1 %v784_v9 }
  0x27   : > { %729 = vmatmul.mubr.bf16.vlgmr.msra.gmra.mrb[0].mxu0 %v786_v10  ;;  %733 = vmatmul.mubr.bf16.vlgmr.msra.gmra.mrb[0].mxu1 %v788_v11 }
  0xfa   : > { %v730_v13 = vpop.f32.mrb[0].mxu0  ;;  %v734_v14 = vpop.f32.mrb[0].mxu1 }
  0xfb   : > { %v694_v15 = vpack.c.bf16 %v730_v13, %v730_v13  ;;  %v385_v16 = vpop.f32.mrb[1].mxu0  ;;  %v698_v17 = vpack.c.bf16 %v734_v14, %v734_v14  ;;  %v401_v18 = vpop.f32.mrb[1].mxu1  ;;  %v493_v23 = vmul.f32 %v730_v13, %v730_v13  ;;  %v469_v31 = vsel %vm465_vm2, %v730_v13, 0.0 }
  0xfc   : > { %v692_v19 = vpack.c.bf16 %v385_v16, %v385_v16  ;;  %v491_v20 = vmul.f32 %v385_v16, %v385_v16  ;;  %v731_v21 = vpop.f32.mrb[2].mxu0  ;;  %v735_v22 = vpop.f32.mrb[2].mxu1  ;;  %v466_v27 = vsel %vm465_vm2, %v385_v16, 0.0  ;;  %v696_v34 = vpack.c.bf16 %v401_v18, %v401_v18 }
  0xfd   : > { %451 = vst.msk [vmem:[%s916_s26 + $0x8] sm:$0xf] %vm448_vm1, %v694_v15  ;;  %v695_v24 = vpack.c.bf16 %v731_v21, %v731_v21  ;;  %v388_v25 = vpop.f32.mrb[3].mxu0  ;;  %455 = vst.msk [vmem:[%s916_s26 + $0x18] sm:$0xf] %vm448_vm1, %v698_v17  ;;  %v404_v26 = vpop.f32.mrb[3].mxu1  ;;  %v494_v32 = vmul.f32 %v731_v21, %v731_v21  ;;  %v495_v37 = vmul.f32 %v401_v18, %v401_v18 }
  0xfe   : > { %449 = vst.msk [vmem:[%s916_s26] sm:$0xf] %vm448_vm1, %v692_v19  ;;  %v693_v28 = vpack.c.bf16 %v388_v25, %v388_v25  ;;  %v467_v29 = vsel %vm465_vm2, %v388_v25, 0.0  ;;  %v492_v30 = vmul.f32 %v388_v25, %v388_v25  ;;  %v499_v35 = vsel %vm465_vm2, %v491_v20, 0.0  ;;  %453 = vst.msk [vmem:[%s916_s26 + $0x10] sm:$0xf] %vm448_vm1, %v696_v34 }
  0xff   : > { %452 = vst.msk [vmem:[%s916_s26 + $0xc] sm:$0xf] %vm448_vm1, %v695_v24  ;;  %v468_v33 = vadd.f32 %v467_v29, %v466_v27  ;;  %v699_v38 = vpack.c.bf16 %v735_v22, %v735_v22  ;;  %v502_v41 = vsel %vm465_vm2, %v493_v23, 0.0  ;;  %v471_v42 = vsel %vm465_vm2, %v731_v21, 0.0  ;;  %v490_v15 = vld [vmem:[%s905_s22] sm:$0x1] }
 0x100   : > { %450 = vst.msk [vmem:[%s916_s26 + $0x4] sm:$0xf] %vm448_vm1, %v693_v28  ;;  %v500_v36 = vsel %vm465_vm2, %v492_v30, 0.0  ;;  %v473_v43 = vsel %vm465_vm2, %v401_v18, 0.0  ;;  %v697_v44 = vpack.c.bf16 %v404_v26, %v404_v26  ;;  %v504_v47 = vsel %vm465_vm2, %v494_v32, 0.0 }
 0x101   : > { %v470_v39 = vadd.f32 %v469_v31, %v468_v33  ;;  %v501_v40 = vadd.f32 %v500_v36, %v499_v35  ;;  %456 = vst.msk [vmem:[%s916_s26 + $0x1c] sm:$0xf] %vm448_vm1, %v699_v38  ;;  %v506_v48 = vsel %vm465_vm2, %v495_v37, 0.0  ;;  %v496_v49 = vmul.f32 %v404_v26, %v404_v26 }
 0x102   : > { %454 = vst.msk [vmem:[%s916_s26 + $0x14] sm:$0xf] %vm448_vm1, %v697_v44  ;;  %v497_v52 = vmul.f32 %v734_v14, %v734_v14  ;;  %v475_v53 = vsel %vm465_vm2, %v404_v26, 0.0  ;;  %v477_v56 = vsel %vm465_vm2, %v734_v14, 0.0  ;;  %v498_v57 = vmul.f32 %v735_v22, %v735_v22 }
 0x103   : > { %v503_v45 = vadd.f32 %v502_v41, %v501_v40  ;;  %v472_v46 = vadd.f32 %v471_v42, %v470_v39  ;;  %v508_v58 = vsel %vm465_vm2, %v496_v49, 0.0  ;;  %v479_v62 = vsel %vm465_vm2, %v735_v22, 0.0 }
 0x104   : > { %v510_v61 = vsel %vm465_vm2, %v497_v52, 0.0  ;;  %v512_v1 = vsel %vm465_vm2, %v498_v57, 0.0 }
 0x105   : > { %v474_v50 = vadd.f32 %v473_v43, %v472_v46  ;;  %v505_v51 = vadd.f32 %v504_v47, %v503_v45 }
 0x107   : > { %v507_v54 = vadd.f32 %v506_v48, %v505_v51  ;;  %v476_v55 = vadd.f32 %v475_v53, %v474_v50 }
 0x109   : > { %v478_v59 = vadd.f32 %v477_v56, %v476_v55  ;;  %v509_v60 = vadd.f32 %v508_v58, %v507_v54 }
 0x10b   : > { %v480_v63 = vadd.f32 %v479_v62, %v478_v59  ;;  %v511_v0 = vadd.f32 %v510_v61, %v509_v60 }
 0x10d   : > { %v481_v2 = vrot.slane %v480_v63, 4  ;;  %v513_v3 = vadd.f32 %v512_v1, %v511_v0 }
 0x10f   : > { %v482_v4 = vadd.f32 %v481_v2, %v480_v63  ;;  %v514_v5 = vrot.slane %v513_v3, 4 }
 0x111   : > { %v483_v6 = vrot.slane %v482_v4, 2  ;;  %v515_v7 = vadd.f32 %v514_v5, %v513_v3 }
 0x113   : > { %v484_v8 = vadd.f32 %v483_v6, %v482_v4  ;;  %v516_v9 = vrot.slane %v515_v7, 2 }
 0x115   : > { %v485_v10 = vrot.slane %v484_v8, 1  ;;  %v517_v11 = vadd.f32 %v516_v9, %v515_v7 }
 0x117   : > { %v486_v13 = vadd.f32 %v485_v10, %v484_v8  ;;  %v518_v14 = vrot.slane %v517_v11, 1 }
 0x119   : > { %v487_v16 = vadd.f32 %v486_v13, %v464_v12  ;;  %v519_v17 = vadd.f32 %v518_v14, %v517_v11 }
 0x11b   : > { %489 = vst.msk [vmem:[%s899_s19] sm:$0x1] %vm461_vm0, %v487_v16  ;;  %v520_v18 = vadd.f32 %v519_v17, %v490_v15 }
 0x11d   : > { %521 = vst.msk [vmem:[%s905_s22] sm:$0x1] %vm461_vm0, %v520_v18 }
 0x11e PF: > { %s15_s17 = sadd.s32 1, %s811_s17   ;;  %s970_s15 = smov %s807_s16 }
 0x11f   : > { %p12_p5 = scmp.ge.s32.totalorder %s15_s17, 4   ;;  %s971_s16 = smov %s973_s18 }
 0x121   :  { %14 = sbr.rel (!%p12_p5) target bundleno = 2 (0x2), region = 86 }

// kernel: _lambda_.20
= control target key start
LH: loop header
LB: loop body
LE: loop exit
PB: predicated region body
PF: predicated region fallthrough
CT: control target
= control target key end

     0   :  { %s3537_s15 = smov 0   ;;  %s3539_s16 = smov 0   ;;  %s4448_s0 = inlined_call_operand.vmem [shape: bf16[2,512,896], index: 0, kind: input, shape index: {}]   ;;  %s4449_s1 = inlined_call_operand.vmem [shape: bf16[896,8], index: 1, kind: input, shape index: {}]   ;;  %s4450_s2 = inlined_call_operand.vmem [shape: bf16[2,512,8], index: 2, kind: output, shape index: {0}]   ;;  %s4451_s3 = inlined_call_operand.vmem [shape: f32[2,1,8], index: 3, kind: output, shape index: {1}]   ;;  %s4452_s4 = inlined_call_operand.vmem [shape: f32[2,1,8], index: 4, kind: output, shape index: {2}]  }
   0x1   :  { %s3541_s17 = smov 0   ;;  %s3543_s18 = smov 0  }
   0x2   :  { %s3545_s19 = smov 0  }
   0x3 LB: > { %s24_s20 = sadd.s32 1, %s3501_s17  ;;  %s27_s21 = sadd.s32 1, %s3505_s18  ;;  %s3509_s19 = sphi %s3545_s19, %s15_s19   ;;  %s3505_s18 = sphi %s3543_s18, %s4456_s18   ;;  %s3501_s17 = sphi %s3541_s17, %s4455_s17   ;;  %s3497_s16 = sphi %s3539_s16, %s4454_s16   ;;  %s3493_s15 = sphi %s3537_s15, %s4453_s15  }
   0x4   : > { %p25_p0 = scmp.ge.s32.totalorder %s24_s20, 2  ;;  %p2547_p1 = scmp.ge.s32.totalorder %s3509_s19, 1 }
   0x5   : > { %p189_p2 = scmp.lt.s32.totalorder %s3509_s19, 5 }
   0x6   : > { %s4458_s20 = smov (%p25_p0, %s24_s20), 0  ;;  %s4460_s21 = smov (!%p25_p0, %s27_s21), %s3505_s18 }
   0x7   : > { %p190_p3 = pnand %p2547_p1, %p189_p2  ;;  %p29_p4 = scmp.ge.s32.totalorder %s4460_s21, 2 }
   0x8   : > { %v3255_v0 = vld [vmem:[%s4449_s1 + $0x40] sm:$0xff] (!%p190_p3)   ;;  %s2548_s24 = sshll.u32 (!%p190_p3), %s3493_s15, 5  ;;  %p231_p5 = scmp.lt.s32.totalorder (!%p190_p3), %s3497_s16, 1  ;;  %v3257_v2 = vld [vmem:[%s4449_s1 + $0x48] sm:$0xff] (!%p190_p3)   ;;  %v3259_v4 = vld [vmem:[%s4449_s1 + $0x50] sm:$0xff] (!%p190_p3)   ;;  %vm2182_vm0 = vcmask (!%p190_p3), 60416  }
   0x9   : > { %s4462_s21 = smov (%p29_p4, %s4460_s21), 0  ;;  %193 = sbr.rel (%p190_p3) target bundleno = 565 (0x235), region = 28 }
   0xa   : > { %v3256_v1 = vld [vmem:[%s4449_s1] sm:$0xff] (!%p190_p3)   ;;  %2788 = vmatprep.subr.bf16.mxu0 (!%p190_p3), %v3255_v0  ;;  %3196 = vmatprep.subr.bf16.mxu1 (!%p190_p3), %v3255_v0  ;;  %p233_p6 = scmp.lt.s32.totalorder (!%p190_p3), %s2548_s24, 63  ;;  %v3258_v3 = vld [vmem:[%s4449_s1 + $0x8] sm:$0xff] (!%p190_p3)   ;;  %v3260_v5 = vld [vmem:[%s4449_s1 + $0x10] sm:$0xff] (!%p190_p3)   ;;  %p2753_p7 = scmp.ne.s32.totalorder (!%p190_p3), %s3493_s15, 0 }
   0xb   : > { %2789 = vmatpush3.bf16.msra.mxu0 (!%p190_p3), %v3256_v1  ;;  %3204 = vmatpush3.bf16.msra.mxu1 (!%p190_p3), %v3256_v1  ;;  %v3261_v6 = vld [vmem:[%s4449_s1 + $0x58] sm:$0xff] (!%p190_p3)   ;;  %v3263_v8 = vld [vmem:[%s4449_s1 + $0x60] sm:$0xff] (!%p190_p3)   ;;  %v3265_v10 = vld [vmem:[%s4449_s1 + $0x68] sm:$0xff] (!%p190_p3)  }
   0xc   : > { %2790 = vmatprep.subr.bf16.mxu0 (!%p190_p3), %v3257_v2  ;;  %3197 = vmatprep.subr.bf16.mxu1 (!%p190_p3), %v3257_v2  ;;  %v3262_v7 = vld [vmem:[%s4449_s1 + $0x18] sm:$0xff] (!%p190_p3)   ;;  %v3264_v9 = vld [vmem:[%s4449_s1 + $0x20] sm:$0xff] (!%p190_p3)   ;;  %v3266_v13 = vld [vmem:[%s4449_s1 + $0x28] sm:$0xff] (!%p190_p3)  }
   0xd   : > { %v3267_v14 = vld [vmem:[%s4449_s1 + $0x70] sm:$0xff] (!%p190_p3)   ;;  %v3269_v16 = vld [vmem:[%s4449_s1 + $0x78] sm:$0xff] (!%p190_p3)   ;;  %v3277_v18 = vld [vmem:[%s4449_s1 + $0xc0] sm:$0xff] (!%p190_p3)  }
   0xe   : > { %v3268_v15 = vld [vmem:[%s4449_s1 + $0x30] sm:$0xff] (!%p190_p3)   ;;  %v3270_v17 = vld [vmem:[%s4449_s1 + $0x38] sm:$0xff] (!%p190_p3)   ;;  %v3278_v21 = vld [vmem:[%s4449_s1 + $0x140] sm:$0xff] (!%p190_p3)  }
   0xf   : > { %2791 = vmatpush3.bf16.msra.mxu0 (!%p190_p3), %v3258_v3  ;;  %3205 = vmatpush3.bf16.msra.mxu1 (!%p190_p3), %v3258_v3  ;;  %v3279_v22 = vld [vmem:[%s4449_s1 + $0x80] sm:$0xff] (!%p190_p3)   ;;  %v3281_v24 = vld [vmem:[%s4449_s1 + $0xc8] sm:$0xff] (!%p190_p3)   ;;  %v3289_v32 = vld [vmem:[%s4449_s1 + $0xd0] sm:$0xff] (!%p190_p3)  }
  0x10   : > { %s4464_s16 = smov (!%p231_p5, %s3497_s16), 1  ;;  %s4466_s24 = smov (!%p233_p6, %s2548_s24), 63  ;;  %2792 = vmatprep.subr.bf16.mxu0 %v3259_v4  ;;  %3198 = vmatprep.subr.bf16.mxu1 %v3259_v4  ;;  %v3280_v23 = vld [vmem:[%s4449_s1 + $0x100] sm:$0xff]   ;;  %v3292_v27 = vld [vmem:[%s4449_s1 + $0x148] sm:$0xff]   ;;  %v3290_v33 = vld [vmem:[%s4449_s1 + $0x90] sm:$0xff]  }
  0x11   : > { %s3213_s7 = smul.u32 448, %s4464_s16  ;;  %s3594_s10 = scalar_lea.vmem %s4451_s3, %s4464_s16  ;;  %v3282_v28 = vld [vmem:[%s4449_s1 + $0x88] sm:$0xff]   ;;  %v3291_v34 = vld [vmem:[%s4449_s1 + $0xd8] sm:$0xff]   ;;  %v3301_v38 = vld [vmem:[%s4449_s1 + $0xe0] sm:$0xff]   ;;  %vm2219_vm1 = vcmask (!%p2753_p7), 57344  }
  0x12   : > { %s3212_s11 = smul.u32 7, %s4466_s24  ;;  %s3601_s14 = scalar_lea.vmem %s4452_s4, %s4464_s16  ;;  %v3294_v29 = vld [vmem:[%s4449_s1 + $0x108] sm:$0xff]   ;;  %v3293_v37 = vld [vmem:[%s4449_s1 + $0x98] sm:$0xff]   ;;  %v3312_v41 = vld [vmem:[%s4449_s1 + $0x150] sm:$0xff]  }
  0x13   : > { %2793 = vmatpush3.bf16.msra.mxu0 %v3260_v5  ;;  %3206 = vmatpush3.bf16.msra.mxu1 %v3260_v5  ;;  %v3302_v42 = vld [vmem:[%s4449_s1 + $0xa0] sm:$0xff]   ;;  %v3303_v43 = vld [vmem:[%s4449_s1 + $0xe8] sm:$0xff]   ;;  %v3314_v44 = vld [vmem:[%s4449_s1 + $0x110] sm:$0xff]  }
  0x14   : > { %s237_s27 = sadd.s32 %s3213_s7, %s3212_s11  ;;  %2794 = vmatprep.subr.bf16.mxu0 %v3261_v6  ;;  %3199 = vmatprep.subr.bf16.mxu1 %v3261_v6  ;;  %v3304_v47 = vld [vmem:[%s4449_s1 + $0xa8] sm:$0xff]   ;;  %v3311_v48 = vld [vmem:[%s4449_s1 + $0xf0] sm:$0xff]   ;;  %v3323_v51 = vld [vmem:[%s4449_s1 + $0x158] sm:$0xff]  }
  0x15   : > { %s2549_s30 = sshll.u32 %s237_s27, 2  ;;  %v3313_v52 = vld [vmem:[%s4449_s1 + $0xb0] sm:$0xff]   ;;  %v3325_v53 = vld [vmem:[%s4449_s1 + $0x118] sm:$0xff]   ;;  %v3324_v58 = vld [vmem:[%s4449_s1 + $0x180] sm:$0xff]  }
  0x16   : > { %s3618_s12 = scalar_lea.vmem %s4448_s0, %s2549_s30  ;;  %v3315_v55 = vld [vmem:[%s4449_s1 + $0xf8] sm:$0xff]   ;;  %v3338_v60 = vld [vmem:[%s4449_s1 + $0x160] sm:$0xff]   ;;  %v3340_v1 = vld [vmem:[%s4449_s1 + $0x188] sm:$0xff]  }
  0x17   : > { %2795 = vmatpush3.bf16.msra.mxu0 %v3262_v7  ;;  %3207 = vmatpush3.bf16.msra.mxu1 %v3262_v7  ;;  %v3273_v11 = vld [vmem:[%s3618_s12 + $0x4] ss:$28 sps:$4 sm:$0xff]   ;;  %v3283_v25 = vld [vmem:[%s3618_s12 + $0x3c] ss:$28 sps:$4 sm:$0xff]   ;;  %v3295_v35 = vld [vmem:[%s3618_s12 + $0x74] ss:$28 sps:$4 sm:$0xff]  }
  0x18   : > { %2796 = vmatprep.subr.bf16.mxu0 %v3263_v8  ;;  %3200 = vmatprep.subr.bf16.mxu1 %v3263_v8  ;;  %v3276_v12 = vld [vmem:[%s3618_s12 + $0x2a4] ss:$28 sps:$4 sm:$0xff]   ;;  %v3285_v26 = vld [vmem:[%s3618_s12 + $0x2dc] ss:$28 sps:$4 sm:$0xff]   ;;  %v3297_v36 = vld [vmem:[%s3618_s12 + $0x314] ss:$28 sps:$4 sm:$0xff]  }
  0x19   : > { %1442 = vmatprep.mubr.bf16.mxu0 %v3273_v11  ;;  %1538 = vmatprep.mubr.bf16.mxu1 %v3276_v12  ;;  %v3271_v19 = vld [vmem:[%s3618_s12] ss:$28 sps:$4 sm:$0xff]   ;;  %v3287_v30 = vld [vmem:[%s3618_s12 + $0x38] ss:$28 sps:$4 sm:$0xff]   ;;  %v3299_v39 = vld [vmem:[%s3618_s12 + $0x70] ss:$28 sps:$4 sm:$0xff]  }
  0x1a   : > { %v3274_v20 = vld [vmem:[%s3618_s12 + $0x2a0] ss:$28 sps:$4 sm:$0xff]   ;;  %v3288_v31 = vld [vmem:[%s3618_s12 + $0x2d8] ss:$28 sps:$4 sm:$0xff]   ;;  %v3300_v40 = vld [vmem:[%s3618_s12 + $0x310] ss:$28 sps:$4 sm:$0xff]  }
  0x1b   : > { %2797 = vmatpush3.bf16.msra.mxu0 %v3264_v9  ;;  %3208 = vmatpush3.bf16.msra.mxu1 %v3264_v9  ;;  %v3305_v45 = vld [vmem:[%s3618_s12 + $0xac] ss:$28 sps:$4 sm:$0xff]   ;;  %v3317_v54 = vld [vmem:[%s3618_s12 + $0xe4] ss:$28 sps:$4 sm:$0xff]   ;;  %v3316_v57 = vld [vmem:[%s4449_s1 + $0xb8] sm:$0xff]  }
  0x1c   : > { %2798 = vmatprep.subr.bf16.mxu0 %v3265_v10  ;;  %3201 = vmatprep.subr.bf16.mxu1 %v3265_v10  ;;  %v3307_v46 = vld [vmem:[%s3618_s12 + $0x34c] ss:$28 sps:$4 sm:$0xff]   ;;  %v3339_v61 = vld [vmem:[%s4449_s1 + $0x120] sm:$0xff]   ;;  %v3326_v63 = vld [vmem:[%s3618_s12 + $0x11c] ss:$28 sps:$4 sm:$0xff]  }
  0x1d   : > { %v3309_v49 = vld [vmem:[%s3618_s12 + $0xa8] ss:$28 sps:$4 sm:$0xff]   ;;  %v3322_v62 = vld [vmem:[%s3618_s12 + $0xe0] ss:$28 sps:$4 sm:$0xff]   ;;  %v3330_v4 = vld [vmem:[%s3618_s12 + $0x118] ss:$28 sps:$4 sm:$0xff]  }
  0x1e   : > { %v3310_v50 = vld [vmem:[%s3618_s12 + $0x348] ss:$28 sps:$4 sm:$0xff]   ;;  %v3331_v5 = vld [vmem:[%s3618_s12 + $0x40] ss:$28 sps:$4 sm:$0xff]   ;;  %v3332_v6 = vld [vmem:[%s3618_s12 + $0x154] ss:$28 sps:$4 sm:$0xff]  }
  0x1f   : > { %2799 = vmatpush3.bf16.msra.mxu0 %v3266_v13  ;;  %3209 = vmatpush3.bf16.msra.mxu1 %v3266_v13  ;;  %v3321_v56 = vld [vmem:[%s3618_s12 + $0xc] ss:$28 sps:$4 sm:$0xff]   ;;  %v3328_v0 = vld [vmem:[%s3618_s12 + $0x44] ss:$28 sps:$4 sm:$0xff]   ;;  %v3355_v7 = vld [vmem:[%s4449_s1 + $0x190] sm:$0xff]  }
  0x20   : > { %2800 = vmatprep.subr.bf16.mxu0 %v3267_v14  ;;  %3202 = vmatprep.subr.bf16.mxu1 %v3267_v14  ;;  %v3319_v59 = vld [vmem:[%s3618_s12 + $0x8] ss:$28 sps:$4 sm:$0xff]   ;;  %v3334_v8 = vld [vmem:[%s3618_s12 + $0x7c] ss:$28 sps:$4 sm:$0xff]   ;;  %v3362_v9 = vld [vmem:[%s4449_s1 + $0x170] sm:$0xff]  }
  0x21   : > { %v3347_v2 = vld [vmem:[%s4449_s1 + $0x168] sm:$0xff]   ;;  %v3363_v10 = vld [vmem:[%s4449_s1 + $0x130] sm:$0xff]  }
  0x22   : > { %v3348_v3 = vld [vmem:[%s4449_s1 + $0x128] sm:$0xff]   ;;  %v3337_v12 = vld [vmem:[%s3618_s12 + $0x78] ss:$28 sps:$4 sm:$0xff]  }
  0x23   : > { %2801 = vmatpush3.bf16.msra.mxu0 %v3268_v15  ;;  %3210 = vmatpush3.bf16.msra.mxu1 %v3268_v15  ;;  %v3336_v11 = vld [vmem:[%s3618_s12 + $0x150] ss:$28 sps:$4 sm:$0xff]   ;;  %v3370_v15 = vld [vmem:[%s4449_s1 + $0x178] sm:$0xff]  }
  0x24   : > { %2802 = vmatprep.subr.bf16.mxu0 %v3269_v16  ;;  %3203 = vmatprep.subr.bf16.mxu1 %v3269_v16  ;;  %v3341_v13 = vld [vmem:[%s3618_s12 + $0x18c] ss:$28 sps:$4 sm:$0xff]   ;;  %v3343_v14 = vld [vmem:[%s3618_s12 + $0xb4] ss:$28 sps:$4 sm:$0xff]   ;;  %v3371_v16 = vld [vmem:[%s4449_s1 + $0x198] sm:$0xff]  }
  0x27   : > { %2803 = vmatpush3.bf16.msra.mxu0 %v3270_v17  ;;  %3211 = vmatpush3.bf16.msra.mxu1 %v3270_v17  ;;  %v3372_v17 = vld [vmem:[%s4449_s1 + $0x138] sm:$0xff]  }
  0x28   : > { %2900 = vmatprep.subr.bf16.mxu1 %v3277_v18  ;;  %3012 = vmatprep.subr.bf16.mxu0 %v3278_v21  ;;  %v3345_v18 = vld [vmem:[%s3618_s12 + $0x188] ss:$28 sps:$4 sm:$0xff]  }
  0x29   : > { %v3351_v21 = vld [vmem:[%s3618_s12 + $0xec] ss:$28 sps:$4 sm:$0xff]  }
  0x2a   : > { %1443 = vmatmul.mubr.bf16.vlgmr.msra.gmra.mrb[0].mxu0 %v3271_v19  ;;  %1539 = vmatmul.mubr.bf16.vlgmr.msra.gmra.mrb[0].mxu1 %v3274_v20  ;;  %v3346_v19 = vld [vmem:[%s3618_s12 + $0xb0] ss:$28 sps:$4 sm:$0xff]   ;;  %v3349_v20 = vld [vmem:[%s3618_s12 + $0x1c4] ss:$28 sps:$4 sm:$0xff]  }
  0x2b   : > { %2901 = vmatpush3.bf16.msra.mxu1 %v3279_v22  ;;  %3013 = vmatpush3.bf16.msra.mxu0 %v3280_v23  ;;  %v3385_v22 = vld [vmem:[%s4449_s1 + $0x1a0] sm:$0xff]  }
  0x2c   : > { %2902 = vmatprep.subr.bf16.mxu1 %v3281_v24  ;;  %1450 = vmatprep.mubr.bf16.mxu0 %v3283_v25  ;;  %v3353_v23 = vld [vmem:[%s3618_s12 + $0x1c0] ss:$28 sps:$4 sm:$0xff]   ;;  %v3354_v24 = vld [vmem:[%s3618_s12 + $0xe8] ss:$28 sps:$4 sm:$0xff]  }
  0x2d   : > { %1546 = vmatprep.mubr.bf16.mxu1 %v3285_v26  ;;  %3014 = vmatprep.subr.bf16.mxu0 %v3292_v27  ;;  %v3398_v25 = vld [vmem:[%s4449_s1 + $0x1a8] sm:$0xff]   ;;  %v3356_v26 = vld [vmem:[%s3618_s12 + $0x1fc] ss:$28 sps:$4 sm:$0xff]   ;;  %v3358_v27 = vld [vmem:[%s3618_s12 + $0x124] ss:$28 sps:$4 sm:$0xff]  }
  0x2f   : > { %2903 = vmatpush3.bf16.msra.mxu1 %v3282_v28  ;;  %3015 = vmatpush3.bf16.msra.mxu0 %v3294_v29  ;;  %v3411_v28 = vld [vmem:[%s4449_s1 + $0x1b0] sm:$0xff]  }
  0x30   : > { %2904 = vmatprep.subr.bf16.mxu1 %v3289_v32  ;;  %3016 = vmatprep.subr.bf16.mxu0 %v3312_v41  ;;  %v3360_v29 = vld [vmem:[%s3618_s12 + $0x1f8] ss:$28 sps:$4 sm:$0xff]  }
  0x31   : > { %v3366_v32 = vld [vmem:[%s3618_s12 + $0x15c] ss:$28 sps:$4 sm:$0xff]   ;;  %v3383_v41 = vld [vmem:[%s3618_s12 + $0x14] ss:$28 sps:$4 sm:$0xff]  }
  0x32   : > { %1451 = vmatmul.mubr.bf16.gmra.mrb[4].mxu0 %v3287_v30  ;;  %1547 = vmatmul.mubr.bf16.gmra.mrb[4].mxu1 %v3288_v31  ;;  %v3361_v30 = vld [vmem:[%s3618_s12 + $0x120] ss:$28 sps:$4 sm:$0xff]   ;;  %v3364_v31 = vld [vmem:[%s3618_s12 + $0x234] ss:$28 sps:$4 sm:$0xff]  }
  0x33   : > { %2905 = vmatpush3.bf16.msra.mxu1 %v3290_v33  ;;  %1458 = vmatprep.mubr.bf16.mxu0 %v3295_v35  ;;  %v3424_v33 = vld [vmem:[%s4449_s1 + $0x1b8] sm:$0xff]  }
  0x34   : > { %2906 = vmatprep.subr.bf16.mxu1 %v3291_v34  ;;  %1554 = vmatprep.mubr.bf16.mxu1 %v3297_v36  ;;  %v3368_v34 = vld [vmem:[%s3618_s12 + $0x230] ss:$28 sps:$4 sm:$0xff]   ;;  %v3369_v35 = vld [vmem:[%s3618_s12 + $0x158] ss:$28 sps:$4 sm:$0xff]  }
  0x35   : > { %3017 = vmatpush3.bf16.msra.mxu0 %v3314_v44  ;;  %v3373_v36 = vld [vmem:[%s3618_s12 + $0x26c] ss:$28 sps:$4 sm:$0xff]   ;;  %v3386_v44 = vld [vmem:[%s3618_s12 + $0x204] ss:$28 sps:$4 sm:$0xff]  }
  0x36   : > { %3018 = vmatprep.subr.bf16.mxu0 %v3323_v51  ;;  %v3397_v51 = vld [vmem:[%s3618_s12 + $0x80] ss:$28 sps:$4 sm:$0xff]  }
  0x37   : > { %2907 = vmatpush3.bf16.msra.mxu1 %v3293_v37  ;;  %v3375_v37 = vld [vmem:[%s3618_s12 + $0x194] ss:$28 sps:$4 sm:$0xff]  }
  0x38   : > { %2908 = vmatprep.subr.bf16.mxu1 %v3301_v38  ;;  %v3377_v38 = vld [vmem:[%s3618_s12 + $0x268] ss:$28 sps:$4 sm:$0xff]  }
  0x39   : > { %3019 = vmatpush3.bf16.msra.mxu0 %v3325_v53  ;;  %v3401_v53 = vld [vmem:[%s3618_s12 + $0xbc] ss:$28 sps:$4 sm:$0xff]  }
  0x3a   : > { %1459 = vmatmul.mubr.bf16.gmra.mrb[8].mxu0 %v3299_v39  ;;  %1555 = vmatmul.mubr.bf16.gmra.mrb[8].mxu1 %v3300_v40  ;;  %v3378_v39 = vld [vmem:[%s3618_s12 + $0x190] ss:$28 sps:$4 sm:$0xff]  }
  0x3b   : > { %2909 = vmatpush3.bf16.msra.mxu1 %v3302_v42  ;;  %1466 = vmatprep.mubr.bf16.mxu0 %v3305_v45  ;;  %v3379_v40 = vld [vmem:[%s3618_s12 + $0x1cc] ss:$28 sps:$4 sm:$0xff]  }
  0x3c   : > { %2910 = vmatprep.subr.bf16.mxu1 %v3303_v43  ;;  %1562 = vmatprep.mubr.bf16.mxu1 %v3307_v46  ;;  %v3381_v42 = vld [vmem:[%s3618_s12 + $0x10] ss:$28 sps:$4 sm:$0xff]   ;;  %v3384_v43 = vld [vmem:[%s3618_s12 + $0x1c8] ss:$28 sps:$4 sm:$0xff]   ;;  %v3390_v46 = vld [vmem:[%s3618_s12 + $0x200] ss:$28 sps:$4 sm:$0xff]  }
  0x3d   : > { %3020 = vmatprep.subr.bf16.mxu0 %v3338_v60  ;;  %v3388_v45 = vld [vmem:[%s3618_s12 + $0x4c] ss:$28 sps:$4 sm:$0xff]   ;;  %v3412_v60 = vld [vmem:[%s3618_s12 + $0x2e4] ss:$28 sps:$4 sm:$0xff]  }
  0x3e   : > { %3021 = vmatpush3.bf16.msra.mxu0 %v3339_v61  ;;  %v3414_v61 = vld [vmem:[%s3618_s12 + $0x12c] ss:$28 sps:$4 sm:$0xff]  }
  0x3f   : > { %2911 = vmatpush3.bf16.msra.mxu1 %v3304_v47  ;;  %3022 = vmatprep.subr.bf16.mxu0 %v3347_v2  ;;  %v3391_v47 = vld [vmem:[%s3618_s12 + $0x48] ss:$28 sps:$4 sm:$0xff]   ;;  %v3422_v2 = vld [vmem:[%s3618_s12 + $0x318] ss:$28 sps:$4 sm:$0xff]  }
  0x40   : > { %2912 = vmatprep.subr.bf16.mxu1 %v3311_v48  ;;  %v3392_v48 = vld [vmem:[%s3618_s12 + $0x23c] ss:$28 sps:$4 sm:$0xff]  }
  0x42   : > { %1467 = vmatmul.mubr.bf16.gmra.mrb[12].mxu0 %v3309_v49  ;;  %1563 = vmatmul.mubr.bf16.gmra.mrb[12].mxu1 %v3310_v50  ;;  %v3394_v49 = vld [vmem:[%s3618_s12 + $0x84] ss:$28 sps:$4 sm:$0xff]   ;;  %v3396_v50 = vld [vmem:[%s3618_s12 + $0x238] ss:$28 sps:$4 sm:$0xff]  }
  0x43   : > { %2913 = vmatpush3.bf16.msra.mxu1 %v3313_v52  ;;  %1474 = vmatprep.mubr.bf16.mxu0 %v3317_v54  ;;  %v3399_v52 = vld [vmem:[%s3618_s12 + $0x274] ss:$28 sps:$4 sm:$0xff]  }
  0x44   : > { %2914 = vmatprep.subr.bf16.mxu1 %v3315_v55  ;;  %1603 = vmatprep.mubr.bf16.mxu1 %v3321_v56  ;;  %v3403_v54 = vld [vmem:[%s3618_s12 + $0x270] ss:$28 sps:$4 sm:$0xff]   ;;  %v3404_v55 = vld [vmem:[%s3618_s12 + $0xb8] ss:$28 sps:$4 sm:$0xff]  }
  0x45   : > { %3023 = vmatpush3.bf16.msra.mxu0 %v3348_v3  ;;  %v3405_v56 = vld [vmem:[%s3618_s12 + $0x2ac] ss:$28 sps:$4 sm:$0xff]   ;;  %v3423_v3 = vld [vmem:[%s3618_s12 + $0x160] ss:$28 sps:$4 sm:$0xff]  }
  0x46   : > { %3024 = vmatprep.subr.bf16.mxu0 %v3362_v9  ;;  %v3433_v9 = vld [vmem:[%s3618_s12 + $0x18] ss:$28 sps:$4 sm:$0xff]  }
  0x47   : > { %2915 = vmatpush3.bf16.msra.mxu1 %v3316_v57  ;;  %v3407_v57 = vld [vmem:[%s3618_s12 + $0xf4] ss:$28 sps:$4 sm:$0xff]  }
  0x48   : > { %3148 = vmatprep.subr.bf16.mxu1 %v3324_v58 }
  0x49   : > { %3025 = vmatpush3.bf16.msra.mxu0 %v3363_v10  ;;  %v3434_v10 = vld [vmem:[%s3618_s12 + $0x1d0] ss:$28 sps:$4 sm:$0xff]  }
  0x4a   : > { %1475 = vmatmul.mubr.bf16.gmra.mrb[16].mxu0 %v3322_v62  ;;  %1604 = vmatmul.mubr.bf16.vlgmr.msra.gmra.mrb[16].mxu1 %v3319_v59  ;;  %v3410_v59 = vld [vmem:[%s3618_s12 + $0xf0] ss:$28 sps:$4 sm:$0xff]   ;;  %v3416_v62 = vld [vmem:[%s3618_s12 + $0x2e0] ss:$28 sps:$4 sm:$0xff]  }
  0x4b   : > { %3149 = vmatpush3.bf16.msra.mxu1 %v3324_v58  ;;  %1482 = vmatprep.mubr.bf16.mxu0 %v3326_v63  ;;  %v3409_v58 = vld [vmem:[%s3618_s12 + $0x2a8] ss:$28 sps:$4 sm:$0xff]  }
  0x4c   : > { %1611 = vmatprep.mubr.bf16.mxu1 %v3328_v0  ;;  %3150 = vmatprep.subr.bf16.mxu1 %v3340_v1  ;;  %v3417_v63 = vld [vmem:[%s3618_s12 + $0x128] ss:$28 sps:$4 sm:$0xff]   ;;  %v3418_v0 = vld [vmem:[%s3618_s12 + $0x31c] ss:$28 sps:$4 sm:$0xff]  }
  0x4d   : > { %3026 = vmatprep.subr.bf16.mxu0 %v3370_v15  ;;  %v3440_v15 = vld [vmem:[%s3618_s12 + $0xc0] ss:$28 sps:$4 sm:$0xff]  }
  0x4e   : > { %3027 = vmatpush3.bf16.msra.mxu0 %v3372_v17  ;;  %v3443_v17 = vld [vmem:[%s3618_s12 + $0xf8] ss:$28 sps:$4 sm:$0xff]  }
  0x4f   : > { %3151 = vmatpush3.bf16.msra.mxu1 %v3340_v1  ;;  %v3420_v1 = vld [vmem:[%s3618_s12 + $0x164] ss:$28 sps:$4 sm:$0xff]  }
  0x50   : > { %3152 = vmatprep.subr.bf16.mxu1 %v3355_v7 }
  0x52   : > { %1483 = vmatmul.mubr.bf16.gmra.mrb[20].mxu0 %v3330_v4  ;;  %1612 = vmatmul.mubr.bf16.gmra.mrb[20].mxu1 %v3331_v5  ;;  %v3425_v4 = vld [vmem:[%s3618_s12 + $0x354] ss:$28 sps:$4 sm:$0xff]   ;;  %v3427_v5 = vld [vmem:[%s3618_s12 + $0x19c] ss:$28 sps:$4 sm:$0xff]  }
  0x53   : > { %1490 = vmatprep.mubr.bf16.mxu0 %v3332_v6  ;;  %1619 = vmatprep.mubr.bf16.mxu1 %v3334_v8  ;;  %v3429_v6 = vld [vmem:[%s3618_s12 + $0x350] ss:$28 sps:$4 sm:$0xff]  }
  0x54   : > { %3153 = vmatpush3.bf16.msra.mxu1 %v3355_v7  ;;  %v3430_v7 = vld [vmem:[%s3618_s12 + $0x198] ss:$28 sps:$4 sm:$0xff]  }
  0x55   : > { %3154 = vmatprep.subr.bf16.mxu1 %v3371_v16  ;;  %v3431_v8 = vld [vmem:[%s3618_s12 + $0x1d4] ss:$28 sps:$4 sm:$0xff]  }
  0x58   : > { %3155 = vmatpush3.bf16.msra.mxu1 %v3371_v16  ;;  %v3441_v16 = vld [vmem:[%s3618_s12 + $0x244] ss:$28 sps:$4 sm:$0xff]  }
  0x59   : > { %3156 = vmatprep.subr.bf16.mxu1 %v3385_v22 }
  0x5a   : > { %1491 = vmatmul.mubr.bf16.gmra.mrb[24].mxu0 %v3336_v11  ;;  %1620 = vmatmul.mubr.bf16.gmra.mrb[24].mxu1 %v3337_v12  ;;  %v3435_v11 = vld [vmem:[%s3618_s12 + $0x50] ss:$28 sps:$4 sm:$0xff]  }
  0x5b   : > { %1498 = vmatprep.mubr.bf16.mxu0 %v3341_v13  ;;  %1627 = vmatprep.mubr.bf16.mxu1 %v3343_v14  ;;  %v3436_v12 = vld [vmem:[%s3618_s12 + $0x20c] ss:$28 sps:$4 sm:$0xff]  }
  0x5c   : > { %3157 = vmatpush3.bf16.msra.mxu1 %v3385_v22  ;;  %v3438_v13 = vld [vmem:[%s3618_s12 + $0x88] ss:$28 sps:$4 sm:$0xff]   ;;  %v3449_v22 = vld [vmem:[%s3618_s12 + $0x278] ss:$28 sps:$4 sm:$0xff]  }
  0x5d   : > { %3158 = vmatprep.subr.bf16.mxu1 %v3398_v25  ;;  %v3439_v14 = vld [vmem:[%s3618_s12 + $0x208] ss:$28 sps:$4 sm:$0xff]  }
  0x60   : > { %3159 = vmatpush3.bf16.msra.mxu1 %v3398_v25  ;;  %v3453_v25 = vld [vmem:[%s3618_s12 + $0x1d8] ss:$28 sps:$4 sm:$0xff]  }
  0x61   : > { %3160 = vmatprep.subr.bf16.mxu1 %v3411_v28 }
  0x62   : > { %1499 = vmatmul.mubr.bf16.gmra.mrb[28].mxu0 %v3345_v18  ;;  %1628 = vmatmul.mubr.bf16.gmra.mrb[28].mxu1 %v3346_v19  ;;  %v3444_v18 = vld [vmem:[%s3618_s12 + $0x240] ss:$28 sps:$4 sm:$0xff]   ;;  %v3445_v19 = vld [vmem:[%s3618_s12 + $0x130] ss:$28 sps:$4 sm:$0xff]  }
  0x63   : > { %1506 = vmatprep.mubr.bf16.mxu0 %v3349_v20  ;;  %1635 = vmatprep.mubr.bf16.mxu1 %v3351_v21  ;;  %v3446_v20 = vld [vmem:[%s3618_s12 + $0x27c] ss:$28 sps:$4 sm:$0xff]   ;;  %v3448_v21 = vld [vmem:[%s3618_s12 + $0x168] ss:$28 sps:$4 sm:$0xff]  }
  0x64   : > { %3161 = vmatpush3.bf16.msra.mxu1 %v3411_v28  ;;  %v3456_v28 = vld [vmem:[%s3618_s12 + $0x2ec] ss:$28 sps:$4 sm:$0xff]  }
  0x65   : > { %3162 = vmatprep.subr.bf16.mxu1 %v3424_v33 }
  0x68   : > { %3163 = vmatpush3.bf16.msra.mxu1 %v3424_v33  ;;  %v3463_v33 = vld [vmem:[%s3618_s12 + $0x2b8] ss:$28 sps:$4 sm:$0xff]  }
  0x6a   : > { %1507 = vmatmul.mubr.bf16.gmra.mrb[32].mxu0 %v3353_v23  ;;  %1636 = vmatmul.mubr.bf16.gmra.mrb[32].mxu1 %v3354_v24  ;;  %v3450_v23 = vld [vmem:[%s3618_s12 + $0x1a0] ss:$28 sps:$4 sm:$0xff]   ;;  %v3451_v24 = vld [vmem:[%s3618_s12 + $0x2b4] ss:$28 sps:$4 sm:$0xff]  }
  0x6b   : > { %1514 = vmatprep.mubr.bf16.mxu0 %v3356_v26  ;;  %1643 = vmatprep.mubr.bf16.mxu1 %v3358_v27  ;;  %v3454_v26 = vld [vmem:[%s3618_s12 + $0x2b0] ss:$28 sps:$4 sm:$0xff]  }
  0x6c   : > { %v3455_v27 = vld [vmem:[%s3618_s12 + $0x210] ss:$28 sps:$4 sm:$0xff]  }
  0x72   : > { %1515 = vmatmul.mubr.bf16.gmra.mrb[36].mxu0 %v3360_v29  ;;  %1644 = vmatmul.mubr.bf16.gmra.mrb[36].mxu1 %v3361_v30  ;;  %v3458_v29 = vld [vmem:[%s3618_s12 + $0x248] ss:$28 sps:$4 sm:$0xff]  }
  0x73   : > { %1522 = vmatprep.mubr.bf16.mxu0 %v3364_v31  ;;  %1651 = vmatprep.mubr.bf16.mxu1 %v3366_v32  ;;  %v3459_v30 = vld [vmem:[%s3618_s12 + $0x2e8] ss:$28 sps:$4 sm:$0xff]   ;;  %v3460_v31 = vld [vmem:[%s3618_s12 + $0x280] ss:$28 sps:$4 sm:$0xff]  }
  0x74   : > { %v3461_v32 = vld [vmem:[%s3618_s12 + $0x324] ss:$28 sps:$4 sm:$0xff]  }
  0x7a   : > { %1523 = vmatmul.mubr.bf16.gmra.mrb[40].mxu0 %v3368_v34  ;;  %1652 = vmatmul.mubr.bf16.gmra.mrb[40].mxu1 %v3369_v35  ;;  %v3464_v34 = vld [vmem:[%s3618_s12 + $0x320] ss:$28 sps:$4 sm:$0xff]   ;;  %v3465_v35 = vld [vmem:[%s3618_s12 + $0x2f0] ss:$28 sps:$4 sm:$0xff]  }
  0x7b   : > { %1530 = vmatprep.mubr.bf16.mxu0 %v3373_v36  ;;  %1659 = vmatprep.mubr.bf16.mxu1 %v3375_v37  ;;  %v3466_v36 = vld [vmem:[%s3618_s12 + $0x35c] ss:$28 sps:$4 sm:$0xff]   ;;  %v3468_v37 = vld [vmem:[%s3618_s12 + $0x328] ss:$28 sps:$4 sm:$0xff]  }
  0x82   : > { %1531 = vmatmul.mubr.bf16.gmra.mrb[44].mxu0 %v3377_v38  ;;  %1660 = vmatmul.mubr.bf16.gmra.mrb[44].mxu1 %v3378_v39 }
  0x83   : > { %1667 = vmatprep.mubr.bf16.mxu1 %v3379_v40  ;;  %1764 = vmatprep.mubr.bf16.mxu0 %v3383_v41 }
  0x8a   : > { %1668 = vmatmul.mubr.bf16.gmra.mrb[48].mxu1 %v3384_v43  ;;  %1765 = vmatmul.mubr.bf16.vlgmr.msra.gmra.mrb[48].mxu0 %v3381_v42  ;;  %v3469_v42 = vld [vmem:[%s3618_s12 + $0x358] ss:$28 sps:$4 sm:$0xff]   ;;  %v3470_v43 = vld [vmem:[%s3618_s12 + $0x360] ss:$28 sps:$4 sm:$0xff]   ;;  %s2551_s12 = sshll.u32 %s4464_s16, 6 }
  0x8b   : > { %1675 = vmatprep.mubr.bf16.mxu1 %v3386_v44  ;;  %1772 = vmatprep.mubr.bf16.mxu0 %v3388_v45  ;;  %s247_s23 = sadd.s32 %s2551_s12, %s4466_s24 }
  0x8c   : > { %s2552_s16 = sshll.u32 %s247_s23, 2 }
  0x8d   : > { %s4032_s24 = scalar_lea.vmem %s4450_s2, %s2552_s16 }
  0x92   : > { %1676 = vmatmul.mubr.bf16.gmra.mrb[52].mxu1 %v3390_v46  ;;  %1773 = vmatmul.mubr.bf16.gmra.mrb[52].mxu0 %v3391_v47 }
  0x93   : > { %1683 = vmatprep.mubr.bf16.mxu1 %v3392_v48  ;;  %1780 = vmatprep.mubr.bf16.mxu0 %v3394_v49 }
  0x9a   : > { %1684 = vmatmul.mubr.bf16.gmra.mrb[56].mxu1 %v3396_v50  ;;  %1781 = vmatmul.mubr.bf16.gmra.mrb[56].mxu0 %v3397_v51 }
  0x9b   : > { %1691 = vmatprep.mubr.bf16.mxu1 %v3399_v52  ;;  %1788 = vmatprep.mubr.bf16.mxu0 %v3401_v53 }
  0xa2   : > { %1692 = vmatmul.mubr.bf16.gmra.mrb[60].mxu1 %v3403_v54  ;;  %1789 = vmatmul.mubr.bf16.gmra.mrb[60].mxu0 %v3404_v55 }
  0xa3   : > { %1699 = vmatprep.mubr.bf16.mxu1 %v3405_v56  ;;  %1796 = vmatprep.mubr.bf16.mxu0 %v3407_v57 }
  0xaa   : > { %1700 = vmatmul.mubr.bf16.gmra.mrb[64].mxu1 %v3409_v58  ;;  %1797 = vmatmul.mubr.bf16.gmra.mrb[64].mxu0 %v3410_v59 }
  0xab   : > { %1707 = vmatprep.mubr.bf16.mxu1 %v3412_v60  ;;  %1804 = vmatprep.mubr.bf16.mxu0 %v3414_v61 }
  0xb2   : > { %1708 = vmatmul.mubr.bf16.gmra.mrb[68].mxu1 %v3416_v62  ;;  %1805 = vmatmul.mubr.bf16.gmra.mrb[68].mxu0 %v3417_v63 }
  0xb3   : > { %1715 = vmatprep.mubr.bf16.mxu1 %v3418_v0  ;;  %1812 = vmatprep.mubr.bf16.mxu0 %v3420_v1 }
  0xba   : > { %1716 = vmatmul.mubr.bf16.gmra.mrb[72].mxu1 %v3422_v2  ;;  %1813 = vmatmul.mubr.bf16.gmra.mrb[72].mxu0 %v3423_v3 }
  0xbb   : > { %1723 = vmatprep.mubr.bf16.mxu1 %v3425_v4  ;;  %1820 = vmatprep.mubr.bf16.mxu0 %v3427_v5 }
  0xc2   : > { %1724 = vmatmul.mubr.bf16.gmra.mrb[76].mxu1 %v3429_v6  ;;  %1821 = vmatmul.mubr.bf16.gmra.mrb[76].mxu0 %v3430_v7 }
  0xc3   : > { %1828 = vmatprep.mubr.bf16.mxu0 %v3431_v8  ;;  %3164 = vmatprep.mubr.bf16.mxu1 %v3433_v9 }
  0xca   : > { %1829 = vmatmul.mubr.bf16.gmra.mrb[80].mxu0 %v3434_v10  ;;  %3165 = vmatmul.mubr.bf16.vlgmr.msra.gmra.mrb[80].mxu1 %v3435_v11 }
  0xcb   : > { %1836 = vmatprep.mubr.bf16.mxu0 %v3436_v12  ;;  %3168 = vmatprep.mubr.bf16.mxu1 %v3438_v13 }
  0xd2   : > { %1837 = vmatmul.mubr.bf16.gmra.mrb[84].mxu0 %v3439_v14  ;;  %3169 = vmatmul.mubr.bf16.gmra.mrb[84].mxu1 %v3440_v15 }
  0xd3   : > { %1844 = vmatprep.mubr.bf16.mxu0 %v3441_v16  ;;  %3172 = vmatprep.mubr.bf16.mxu1 %v3443_v17 }
  0xda   : > { %1845 = vmatmul.mubr.bf16.gmra.mrb[88].mxu0 %v3444_v18  ;;  %3173 = vmatmul.mubr.bf16.gmra.mrb[88].mxu1 %v3445_v19 }
  0xdb   : > { %1852 = vmatprep.mubr.bf16.mxu0 %v3446_v20  ;;  %3176 = vmatprep.mubr.bf16.mxu1 %v3448_v21 }
  0xe2   : > { %1853 = vmatmul.mubr.bf16.gmra.mrb[92].mxu0 %v3449_v22  ;;  %3177 = vmatmul.mubr.bf16.gmra.mrb[92].mxu1 %v3450_v23 }
  0xe3   : > { %1860 = vmatprep.mubr.bf16.mxu0 %v3451_v24  ;;  %3180 = vmatprep.mubr.bf16.mxu1 %v3453_v25 }
  0xea   : > { %1861 = vmatmul.mubr.bf16.gmra.mrb[96].mxu0 %v3454_v26  ;;  %3181 = vmatmul.mubr.bf16.gmra.mrb[96].mxu1 %v3455_v27 }
  0xeb   : > { %1868 = vmatprep.mubr.bf16.mxu0 %v3456_v28  ;;  %3184 = vmatprep.mubr.bf16.mxu1 %v3458_v29 }
  0xf2   : > { %1869 = vmatmul.mubr.bf16.gmra.mrb[100].mxu0 %v3459_v30  ;;  %3185 = vmatmul.mubr.bf16.gmra.mrb[100].mxu1 %v3460_v31 }
  0xf3   : > { %1876 = vmatprep.mubr.bf16.mxu0 %v3461_v32  ;;  %3188 = vmatprep.mubr.bf16.mxu1 %v3463_v33 }
  0xfa   : > { %1877 = vmatmul.mubr.bf16.gmra.mrb[104].mxu0 %v3464_v34  ;;  %3189 = vmatmul.mubr.bf16.gmra.mrb[104].mxu1 %v3465_v35 }
  0xfb   : > { %1884 = vmatprep.mubr.bf16.mxu0 %v3466_v36  ;;  %3192 = vmatprep.mubr.bf16.mxu1 %v3468_v37 }
  0xfd   : > { %v2804_v38 = vpop.f32.mrb[0].mxu0  ;;  %v2876_v39 = vpop.f32.mrb[0].mxu1 }
  0xfe   : > { %v2805_v40 = vpop.f32.mrb[1].mxu0  ;;  %v2877_v41 = vpop.f32.mrb[1].mxu1 }
  0xff   : > { %v2806_v44 = vadd.f32 %v2805_v40, %v2804_v38  ;;  %v2807_v45 = vpop.f32.mrb[2].mxu0  ;;  %v3873_v46 = vadd.f32 %v2877_v41, %v2876_v39  ;;  %v2879_v47 = vpop.f32.mrb[2].mxu1 }
 0x100   : > { %v2808_v48 = vpop.f32.mrb[3].mxu0  ;;  %v2880_v49 = vpop.f32.mrb[3].mxu1 }
 0x101   : > { %v2809_v50 = vadd.f32 %v2808_v48, %v2807_v45  ;;  %v3875_v51 = vadd.f32 %v2880_v49, %v2879_v47 }
 0x102   : > { %1885 = vmatmul.mubr.bf16.gmra.mrb[108].mxu0 %v3469_v42  ;;  %3193 = vmatmul.mubr.bf16.gmra.mrb[108].mxu1 %v3470_v43 }
 0x105   : > { %v2810_v52 = vpop.f32.mrb[4].mxu0  ;;  %v2882_v53 = vpop.f32.mrb[4].mxu1 }
 0x106   : > { %v2811_v54 = vpop.f32.mrb[5].mxu0  ;;  %v2883_v55 = vpop.f32.mrb[5].mxu1 }
 0x107   : > { %v2812_v56 = vadd.f32 %v2811_v54, %v2810_v52  ;;  %v2813_v57 = vpop.f32.mrb[6].mxu0  ;;  %v3877_v58 = vadd.f32 %v2883_v55, %v2882_v53  ;;  %v2885_v59 = vpop.f32.mrb[6].mxu1 }
 0x108   : > { %v2814_v60 = vpop.f32.mrb[7].mxu0  ;;  %v2886_v61 = vpop.f32.mrb[7].mxu1 }
 0x109   : > { %v2815_v62 = vadd.f32 %v2814_v60, %v2813_v57  ;;  %v3879_v63 = vadd.f32 %v2886_v61, %v2885_v59 }
 0x10d   : > { %v2816_v0 = vpop.f32.mrb[8].mxu0  ;;  %v2888_v1 = vpop.f32.mrb[8].mxu1 }
 0x10e   : > { %v2817_v2 = vpop.f32.mrb[9].mxu0  ;;  %v2889_v3 = vpop.f32.mrb[9].mxu1 }
 0x10f   : > { %v2818_v4 = vadd.f32 %v2817_v2, %v2816_v0  ;;  %v2819_v5 = vpop.f32.mrb[10].mxu0  ;;  %v3881_v6 = vadd.f32 %v2889_v3, %v2888_v1  ;;  %v2891_v7 = vpop.f32.mrb[10].mxu1 }
 0x110   : > { %v2820_v8 = vpop.f32.mrb[11].mxu0  ;;  %v2892_v9 = vpop.f32.mrb[11].mxu1 }
 0x111   : > { %v2821_v10 = vadd.f32 %v2820_v8, %v2819_v5  ;;  %v3883_v11 = vadd.f32 %v2892_v9, %v2891_v7 }
 0x115   : > { %v2822_v12 = vpop.f32.mrb[12].mxu0  ;;  %v2894_v13 = vpop.f32.mrb[12].mxu1 }
 0x116   : > { %v2823_v14 = vpop.f32.mrb[13].mxu0  ;;  %v2895_v15 = vpop.f32.mrb[13].mxu1 }
 0x117   : > { %v2824_v16 = vadd.f32 %v2823_v14, %v2822_v12  ;;  %v2825_v17 = vpop.f32.mrb[14].mxu0  ;;  %v3885_v18 = vadd.f32 %v2895_v15, %v2894_v13  ;;  %v2897_v19 = vpop.f32.mrb[14].mxu1 }
 0x118   : > { %v2826_v20 = vpop.f32.mrb[15].mxu0  ;;  %v2898_v21 = vpop.f32.mrb[15].mxu1 }
 0x119   : > { %v2827_v22 = vadd.f32 %v2826_v20, %v2825_v17  ;;  %v3887_v23 = vadd.f32 %v2898_v21, %v2897_v19 }
 0x11d   : > { %v2828_v24 = vpop.f32.mrb[16].mxu0  ;;  %v2916_v25 = vpop.f32.mrb[16].mxu1 }
 0x11e   : > { %v2829_v26 = vpop.f32.mrb[17].mxu0  ;;  %v2917_v27 = vpop.f32.mrb[17].mxu1 }
 0x11f   : > { %v2830_v28 = vadd.f32 %v2829_v26, %v2828_v24  ;;  %v2918_v29 = vadd.f32 %v2917_v27, %v2916_v25  ;;  %v2831_v30 = vpop.f32.mrb[18].mxu0  ;;  %v2919_v31 = vpop.f32.mrb[18].mxu1 }
 0x120   : > { %v2832_v32 = vpop.f32.mrb[19].mxu0  ;;  %v2920_v33 = vpop.f32.mrb[19].mxu1 }
 0x121   : > { %v3889_v34 = vadd.f32 %v2918_v29, %v2806_v44  ;;  %v2833_v35 = vadd.f32 %v2832_v32, %v2831_v30  ;;  %v2921_v36 = vadd.f32 %v2920_v33, %v2919_v31 }
 0x123   : > { %v3891_v37 = vadd.f32 %v2921_v36, %v2809_v50 }
 0x125   : > { %v2834_v38 = vpop.f32.mrb[20].mxu0  ;;  %v2922_v39 = vpop.f32.mrb[20].mxu1 }
 0x126   : > { %v2835_v40 = vpop.f32.mrb[21].mxu0  ;;  %v2923_v41 = vpop.f32.mrb[21].mxu1 }
 0x127   : > { %v2836_v42 = vadd.f32 %v2835_v40, %v2834_v38  ;;  %v2924_v43 = vadd.f32 %v2923_v41, %v2922_v39  ;;  %v2837_v45 = vpop.f32.mrb[22].mxu0  ;;  %v2925_v47 = vpop.f32.mrb[22].mxu1 }
 0x128   : > { %v2838_v48 = vpop.f32.mrb[23].mxu0  ;;  %v2926_v49 = vpop.f32.mrb[23].mxu1 }
 0x129   : > { %v3893_v52 = vadd.f32 %v2924_v43, %v2812_v56  ;;  %v2839_v53 = vadd.f32 %v2838_v48, %v2837_v45  ;;  %v2927_v54 = vadd.f32 %v2926_v49, %v2925_v47 }
 0x12b   : > { %v3895_v44 = vadd.f32 %v2927_v54, %v2815_v62 }
 0x12d   : > { %v2840_v55 = vpop.f32.mrb[24].mxu0  ;;  %v2928_v57 = vpop.f32.mrb[24].mxu1 }
 0x12e   : > { %v2841_v50 = vpop.f32.mrb[25].mxu0  ;;  %v2929_v59 = vpop.f32.mrb[25].mxu1 }
 0x12f   : > { %v2842_v60 = vadd.f32 %v2841_v50, %v2840_v55  ;;  %v2930_v61 = vadd.f32 %v2929_v59, %v2928_v57  ;;  %v2843_v0 = vpop.f32.mrb[26].mxu0  ;;  %v2931_v1 = vpop.f32.mrb[26].mxu1 }
 0x130   : > { %v2844_v2 = vpop.f32.mrb[27].mxu0  ;;  %v2932_v3 = vpop.f32.mrb[27].mxu1 }
 0x131   : > { %v3897_v5 = vadd.f32 %v2930_v61, %v2818_v4  ;;  %v2845_v7 = vadd.f32 %v2844_v2, %v2843_v0  ;;  %v2933_v8 = vadd.f32 %v2932_v3, %v2931_v1 }
 0x133   : > { %v3899_v56 = vadd.f32 %v2933_v8, %v2821_v10 }
 0x135   : > { %v2846_v9 = vpop.f32.mrb[28].mxu0  ;;  %v2934_v12 = vpop.f32.mrb[28].mxu1 }
 0x136   : > { %v2847_v62 = vpop.f32.mrb[29].mxu0  ;;  %v2935_v13 = vpop.f32.mrb[29].mxu1 }
 0x137   : > { %v2848_v14 = vadd.f32 %v2847_v62, %v2846_v9  ;;  %v2936_v15 = vadd.f32 %v2935_v13, %v2934_v12  ;;  %v2849_v17 = vpop.f32.mrb[30].mxu0  ;;  %v2937_v19 = vpop.f32.mrb[30].mxu1 }
 0x138   : > { %v2850_v20 = vpop.f32.mrb[31].mxu0  ;;  %v2938_v21 = vpop.f32.mrb[31].mxu1 }
 0x139   : > { %v3901_v24 = vadd.f32 %v2936_v15, %v2824_v16  ;;  %v2851_v25 = vadd.f32 %v2850_v20, %v2849_v17  ;;  %v2939_v26 = vadd.f32 %v2938_v21, %v2937_v19 }
 0x13b   : > { %v3903_v4 = vadd.f32 %v2939_v26, %v2827_v22 }
 0x13d   : > { %v2852_v27 = vpop.f32.mrb[32].mxu0  ;;  %v2940_v29 = vpop.f32.mrb[32].mxu1 }
 0x13e   : > { %v2853_v10 = vpop.f32.mrb[33].mxu0  ;;  %v2941_v30 = vpop.f32.mrb[33].mxu1 }
 0x13f   : > { %v2854_v31 = vadd.f32 %v2853_v10, %v2852_v27  ;;  %v2942_v32 = vadd.f32 %v2941_v30, %v2940_v29  ;;  %v2855_v33 = vpop.f32.mrb[34].mxu0  ;;  %v2943_v36 = vpop.f32.mrb[34].mxu1 }
 0x140   : > { %v2856_v38 = vpop.f32.mrb[35].mxu0  ;;  %v2944_v39 = vpop.f32.mrb[35].mxu1 }
 0x141   : > { %v3905_v40 = vadd.f32 %v2942_v32, %v2830_v28  ;;  %v2857_v41 = vadd.f32 %v2856_v38, %v2855_v33  ;;  %v2945_v43 = vadd.f32 %v2944_v39, %v2943_v36 }
 0x143   : > { %v3907_v16 = vadd.f32 %v2945_v43, %v2833_v35 }
 0x145   : > { %v2858_v45 = vpop.f32.mrb[36].mxu0  ;;  %v2946_v47 = vpop.f32.mrb[36].mxu1 }
 0x146   : > { %v2859_v22 = vpop.f32.mrb[37].mxu0  ;;  %v2947_v48 = vpop.f32.mrb[37].mxu1 }
 0x147   : > { %v3909_v49 = vadd.f32 %v2859_v22, %v2858_v45  ;;  %v2948_v54 = vadd.f32 %v2947_v48, %v2946_v47  ;;  %v2861_v55 = vpop.f32.mrb[38].mxu0  ;;  %v2949_v57 = vpop.f32.mrb[38].mxu1 }
 0x148   : > { %v2862_v50 = vpop.f32.mrb[39].mxu0  ;;  %v2950_v59 = vpop.f32.mrb[39].mxu1 }
 0x149   : > { %v3911_v61 = vadd.f32 %v2948_v54, %v2836_v42  ;;  %v2863_v0 = vadd.f32 %v2862_v50, %v2861_v55  ;;  %v2951_v28 = vadd.f32 %v2950_v59, %v2949_v57 }
 0x14b   : > { %v3913_v1 = vadd.f32 %v2951_v28, %v2839_v53 }
 0x14d   : > { %v2864_v2 = vpop.f32.mrb[40].mxu0  ;;  %v2952_v35 = vpop.f32.mrb[40].mxu1 }
 0x14e   : > { %v2865_v3 = vpop.f32.mrb[41].mxu0  ;;  %v2953_v8 = vpop.f32.mrb[41].mxu1 }
 0x14f   : > { %v3915_v9 = vadd.f32 %v2865_v3, %v2864_v2  ;;  %v2954_v12 = vadd.f32 %v2953_v8, %v2952_v35  ;;  %v2867_v62 = vpop.f32.mrb[42].mxu0  ;;  %v2955_v13 = vpop.f32.mrb[42].mxu1 }
 0x150   : > { %v2868_v15 = vpop.f32.mrb[43].mxu0  ;;  %v2956_v17 = vpop.f32.mrb[43].mxu1 }
 0x151   : > { %v3917_v19 = vadd.f32 %v2954_v12, %v2842_v60  ;;  %v3919_v20 = vadd.f32 %v2868_v15, %v2867_v62  ;;  %v2957_v42 = vadd.f32 %v2956_v17, %v2955_v13 }
 0x153   : > { %v3921_v21 = vadd.f32 %v2957_v42, %v2845_v7 }
 0x155   : > { %v2870_v53 = vpop.f32.mrb[44].mxu0  ;;  %v2958_v26 = vpop.f32.mrb[44].mxu1 }
 0x156   : > { %v2871_v27 = vpop.f32.mrb[45].mxu0  ;;  %v2959_v29 = vpop.f32.mrb[45].mxu1 }
 0x157   : > { %v3923_v10 = vadd.f32 %v2871_v27, %v2870_v53  ;;  %v2960_v30 = vadd.f32 %v2959_v29, %v2958_v26  ;;  %v2873_v32 = vpop.f32.mrb[46].mxu0  ;;  %v2961_v33 = vpop.f32.mrb[46].mxu1 }
 0x158   : > { %v2874_v36 = vpop.f32.mrb[47].mxu0  ;;  %v2962_v38 = vpop.f32.mrb[47].mxu1 }
 0x159   : > { %v3925_v39 = vadd.f32 %v2960_v30, %v2848_v14  ;;  %v3927_v60 = vadd.f32 %v2874_v36, %v2873_v32  ;;  %v2963_v43 = vadd.f32 %v2962_v38, %v2961_v33 }
 0x15b   : > { %v3929_v45 = vadd.f32 %v2963_v43, %v2851_v25 }
 0x15d   : > { %v2964_v7 = vpop.f32.mrb[48].mxu1  ;;  %v3028_v47 = vpop.f32.mrb[48].mxu0 }
 0x15e   : > { %v2965_v22 = vpop.f32.mrb[49].mxu1  ;;  %v3029_v48 = vpop.f32.mrb[49].mxu0 }
 0x15f   : > { %v2966_v54 = vadd.f32 %v2965_v22, %v2964_v7  ;;  %v3030_v55 = vadd.f32 %v3029_v48, %v3028_v47  ;;  %v2967_v57 = vpop.f32.mrb[50].mxu1  ;;  %v3031_v50 = vpop.f32.mrb[50].mxu0 }
 0x160   : > { %v2968_v59 = vpop.f32.mrb[51].mxu1  ;;  %v3032_v28 = vpop.f32.mrb[51].mxu0 }
 0x161   : > { %v3931_v2 = vadd.f32 %v2966_v54, %v2854_v31  ;;  %v2969_v35 = vadd.f32 %v2968_v59, %v2967_v57  ;;  %v3033_v14 = vadd.f32 %v3032_v28, %v3031_v50  ;;  %v3934_v3 = vadd.f32 %v3030_v55, %v3889_v34 }
 0x163   : > { %v3936_v8 = vadd.f32 %v2969_v35, %v2857_v41  ;;  %v3939_v25 = vadd.f32 %v3033_v14, %v3891_v37 }
 0x165   : > { %v2970_v12 = vpop.f32.mrb[52].mxu1  ;;  %v3034_v62 = vpop.f32.mrb[52].mxu0 }
 0x166   : > { %v2971_v13 = vpop.f32.mrb[53].mxu1  ;;  %v3035_v15 = vpop.f32.mrb[53].mxu0 }
 0x167   : > { %v2972_v17 = vadd.f32 %v2971_v13, %v2970_v12  ;;  %v3036_v42 = vadd.f32 %v3035_v15, %v3034_v62  ;;  %v2973_v53 = vpop.f32.mrb[54].mxu1  ;;  %v3037_v26 = vpop.f32.mrb[54].mxu0 }
 0x168   : > { %v2974_v31 = vpop.f32.mrb[55].mxu1  ;;  %v3038_v27 = vpop.f32.mrb[55].mxu0 }
 0x169   : > { %v3942_v29 = vadd.f32 %v2972_v17, %v3909_v49  ;;  %v2975_v34 = vadd.f32 %v2974_v31, %v2973_v53  ;;  %v3039_v30 = vadd.f32 %v3038_v27, %v3037_v26  ;;  %v3945_v41 = vadd.f32 %v3036_v42, %v3893_v52 }
 0x16b   : > { %v3947_v37 = vadd.f32 %v2975_v34, %v2863_v0  ;;  %v3950_v32 = vadd.f32 %v3039_v30, %v3895_v44 }
 0x16d   : > { %v2976_v33 = vpop.f32.mrb[56].mxu1  ;;  %v3040_v36 = vpop.f32.mrb[56].mxu0 }
 0x16e   : > { %v2977_v38 = vpop.f32.mrb[57].mxu1  ;;  %v3041_v43 = vpop.f32.mrb[57].mxu0 }
 0x16f   : > { %v2978_v7 = vadd.f32 %v2977_v38, %v2976_v33  ;;  %v3042_v47 = vadd.f32 %v3041_v43, %v3040_v36  ;;  %v2979_v22 = vpop.f32.mrb[58].mxu1  ;;  %v3043_v48 = vpop.f32.mrb[58].mxu0 }
 0x170   : > { %v2980_v49 = vpop.f32.mrb[59].mxu1  ;;  %v3044_v54 = vpop.f32.mrb[59].mxu0 }
 0x171   : > { %v3953_v55 = vadd.f32 %v2978_v7, %v3915_v9  ;;  %v2981_v52 = vadd.f32 %v2980_v49, %v2979_v22  ;;  %v3045_v57 = vadd.f32 %v3044_v54, %v3043_v48  ;;  %v3956_v0 = vadd.f32 %v3042_v47, %v3897_v5 }
 0x173   : > { %v3959_v44 = vadd.f32 %v2981_v52, %v3919_v20  ;;  %v3962_v50 = vadd.f32 %v3045_v57, %v3899_v56 }
 0x175   : > { %v2982_v59 = vpop.f32.mrb[60].mxu1  ;;  %v3046_v28 = vpop.f32.mrb[60].mxu0 }
 0x176   : > { %v2983_v35 = vpop.f32.mrb[61].mxu1  ;;  %v3047_v14 = vpop.f32.mrb[61].mxu0 }
 0x177   : > { %v2984_v12 = vadd.f32 %v2983_v35, %v2982_v59  ;;  %v3048_v62 = vadd.f32 %v3047_v14, %v3046_v28  ;;  %v2985_v13 = vpop.f32.mrb[62].mxu1  ;;  %v3049_v9 = vpop.f32.mrb[62].mxu0 }
 0x178   : > { %v2986_v15 = vpop.f32.mrb[63].mxu1  ;;  %v3050_v17 = vpop.f32.mrb[63].mxu0 }
 0x179   : > { %v3965_v42 = vadd.f32 %v2984_v12, %v3923_v10  ;;  %v2987_v5 = vadd.f32 %v2986_v15, %v2985_v13  ;;  %v3051_v53 = vadd.f32 %v3050_v17, %v3049_v9  ;;  %v3968_v20 = vadd.f32 %v3048_v62, %v3901_v24 }
 0x17b   : > { %v3971_v56 = vadd.f32 %v2987_v5, %v3927_v60  ;;  %v3974_v26 = vadd.f32 %v3051_v53, %v3903_v4 }
 0x17d   : > { %v2988_v31 = vpop.f32.mrb[64].mxu1  ;;  %v3052_v27 = vpop.f32.mrb[64].mxu0 }
 0x17e   : > { %v2989_v34 = vpop.f32.mrb[65].mxu1  ;;  %v3053_v30 = vpop.f32.mrb[65].mxu0 }
 0x17f   : > { %v2990_v33 = vadd.f32 %v2989_v34, %v2988_v31  ;;  %v3054_v36 = vadd.f32 %v3053_v30, %v3052_v27  ;;  %v2991_v38 = vpop.f32.mrb[66].mxu1  ;;  %v3055_v10 = vpop.f32.mrb[66].mxu0 }
 0x180   : > { %v2992_v43 = vpop.f32.mrb[67].mxu1  ;;  %v3056_v7 = vpop.f32.mrb[67].mxu0 }
 0x181   : > { %v3977_v47 = vadd.f32 %v2990_v33, %v3873_v46  ;;  %v2993_v24 = vadd.f32 %v2992_v43, %v2991_v38  ;;  %v3057_v22 = vadd.f32 %v3056_v7, %v3055_v10  ;;  %v3980_v60 = vadd.f32 %v3054_v36, %v3905_v40 }
 0x183   : > { %v3983_v4 = vadd.f32 %v2993_v24, %v3875_v51  ;;  %v3986_v48 = vadd.f32 %v3057_v22, %v3907_v16 }
 0x185   : > { %v2994_v49 = vpop.f32.mrb[68].mxu1  ;;  %v3058_v54 = vpop.f32.mrb[68].mxu0 }
 0x186   : > { %v2995_v52 = vpop.f32.mrb[69].mxu1  ;;  %v3059_v57 = vpop.f32.mrb[69].mxu0 }
 0x187   : > { %v2996_v59 = vadd.f32 %v2995_v52, %v2994_v49  ;;  %v3060_v28 = vadd.f32 %v3059_v57, %v3058_v54  ;;  %v2997_v35 = vpop.f32.mrb[70].mxu1  ;;  %v3061_v46 = vpop.f32.mrb[70].mxu0 }
 0x188   : > { %v2998_v14 = vpop.f32.mrb[71].mxu1  ;;  %v3062_v12 = vpop.f32.mrb[71].mxu0 }
 0x189   : > { %v3989_v62 = vadd.f32 %v2996_v59, %v3877_v58  ;;  %v2999_v40 = vadd.f32 %v2998_v14, %v2997_v35  ;;  %v3063_v13 = vadd.f32 %v3062_v12, %v3061_v46  ;;  %v3992_v51 = vadd.f32 %v3060_v28, %v3911_v61 }
 0x18b   : > { %v3995_v16 = vadd.f32 %v2999_v40, %v3879_v63  ;;  %v3998_v9 = vadd.f32 %v3063_v13, %v3913_v1 }
 0x18d   : > { %v3000_v15 = vpop.f32.mrb[72].mxu1  ;;  %v3064_v17 = vpop.f32.mrb[72].mxu0 }
 0x18e   : > { %v3001_v5 = vpop.f32.mrb[73].mxu1  ;;  %v3065_v53 = vpop.f32.mrb[73].mxu0 }
 0x18f   : > { %v3002_v31 = vadd.f32 %v3001_v5, %v3000_v15  ;;  %v3066_v27 = vadd.f32 %v3065_v53, %v3064_v17  ;;  %v3003_v58 = vpop.f32.mrb[74].mxu1  ;;  %v3067_v34 = vpop.f32.mrb[74].mxu0 }
 0x190   : > { %v3004_v30 = vpop.f32.mrb[75].mxu1  ;;  %v3068_v33 = vpop.f32.mrb[75].mxu0 }
 0x191   : > { %v4001_v61 = vadd.f32 %v3002_v31, %v3881_v6  ;;  %v3005_v36 = vadd.f32 %v3004_v30, %v3003_v58  ;;  %v3069_v63 = vadd.f32 %v3068_v33, %v3067_v34  ;;  %v4004_v38 = vadd.f32 %v3066_v27, %v3917_v19 }
 0x193   : > { %v4007_v1 = vadd.f32 %v3005_v36, %v3883_v11  ;;  %v4010_v10 = vadd.f32 %v3069_v63, %v3921_v21 }
 0x195   : > { %v3006_v43 = vpop.f32.mrb[76].mxu1  ;;  %v3070_v7 = vpop.f32.mrb[76].mxu0 }
 0x196   : > { %v3007_v24 = vpop.f32.mrb[77].mxu1  ;;  %v3071_v22 = vpop.f32.mrb[77].mxu0 }
 0x197   : > { %v3008_v49 = vadd.f32 %v3007_v24, %v3006_v43  ;;  %v3072_v6 = vadd.f32 %v3071_v22, %v3070_v7  ;;  %v3009_v54 = vpop.f32.mrb[78].mxu1  ;;  %v3073_v52 = vpop.f32.mrb[78].mxu0 }
 0x198   : > { %v3010_v57 = vpop.f32.mrb[79].mxu1  ;;  %v3074_v59 = vpop.f32.mrb[79].mxu0 }
 0x199   : > { %v4014_v19 = vadd.f32 %v3008_v49, %v3885_v18  ;;  %v3011_v11 = vadd.f32 %v3010_v57, %v3009_v54  ;;  %v3075_v28 = vadd.f32 %v3074_v59, %v3073_v52  ;;  %v4018_v21 = vadd.f32 %v3072_v6, %v3925_v39 }
 0x19b   : > { %v4021_v35 = vadd.f32 %v3011_v11, %v3887_v23  ;;  %v4024_v46 = vadd.f32 %v3075_v28, %v3929_v45 }
 0x19d   : > { %v3076_v14 = vpop.f32.mrb[80].mxu0  ;;  %v3166_v12 = vpop.f32.mrb[80].mxu1 }
 0x19e   : > { %v4027_v40 = vadd.f32 %v3166_v12, %v3945_v41  ;;  %v3077_v18 = vpop.f32.mrb[81].mxu0  ;;  %v1927_v13 = vpop.f32.mrb[81].mxu1 }
 0x19f   : > { %v3078_v23 = vadd.f32 %v3077_v18, %v3076_v14  ;;  %v4035_v39 = vadd.f32 %v1927_v13, %v3934_v3  ;;  %v3079_v45 = vpop.f32.mrb[82].mxu0  ;;  %v3167_v15 = vpop.f32.mrb[82].mxu1 }
 0x1a0   : > { %v2758_v41 = vpack.c.bf16 %v4027_v40, %v4027_v40  ;;  %v4040_v17 = vadd.f32 %v3167_v15, %v3950_v32  ;;  %v3080_v5 = vpop.f32.mrb[83].mxu0  ;;  %v1930_v53 = vpop.f32.mrb[83].mxu1 }
 0x1a1   : > { %v2756_v31 = vpack.c.bf16 %v4035_v39, %v4035_v39  ;;  %v3081_v27 = vadd.f32 %v3080_v5, %v3079_v45  ;;  %v4045_v58 = vadd.f32 %v1930_v53, %v3939_v25  ;;  %v4048_v3 = vadd.f32 %v3078_v23, %v3931_v2 }
 0x1a2   : > { %2185 = vst.msk [vmem:[%s4032_s24 + $0x8] sm:$0xf] %vm2182_vm0, %v2758_v41  ;;  %v2759_v34 = vpack.c.bf16 %v4040_v17, %v4040_v17 }
 0x1a3   : > { %2183 = vst.msk [vmem:[%s4032_s24] sm:$0xf] %vm2182_vm0, %v2756_v31  ;;  %v2757_v32 = vpack.c.bf16 %v4045_v58, %v4045_v58  ;;  %v4059_v30 = vadd.f32 %v3081_v27, %v3936_v8 }
 0x1a4   : > { %2186 = vst.msk [vmem:[%s4032_s24 + $0xc] sm:$0xf] %vm2182_vm0, %v2759_v34 }
 0x1a5   : > { %2184 = vst.msk [vmem:[%s4032_s24 + $0x4] sm:$0xf] %vm2182_vm0, %v2757_v32  ;;  %v3082_v25 = vpop.f32.mrb[84].mxu0  ;;  %v3170_v2 = vpop.f32.mrb[84].mxu1 }
 0x1a6   : > { %v4066_v33 = vadd.f32 %v3170_v2, %v3968_v20  ;;  %v3083_v36 = vpop.f32.mrb[85].mxu0  ;;  %v1943_v63 = vpop.f32.mrb[85].mxu1 }
 0x1a7   : > { %v3084_v43 = vadd.f32 %v3083_v36, %v3082_v25  ;;  %v4069_v7 = vadd.f32 %v1943_v63, %v3956_v0  ;;  %v3085_v8 = vpop.f32.mrb[86].mxu0  ;;  %v3171_v24 = vpop.f32.mrb[86].mxu1 }
 0x1a8   : > { %v2762_v22 = vpack.c.bf16 %v4066_v33, %v4066_v33  ;;  %v4074_v49 = vadd.f32 %v3171_v24, %v3974_v26  ;;  %v3086_v6 = vpop.f32.mrb[87].mxu0  ;;  %v1946_v20 = vpop.f32.mrb[87].mxu1 }
 0x1a9   : > { %v2760_v54 = vpack.c.bf16 %v4069_v7, %v4069_v7  ;;  %v3087_v52 = vadd.f32 %v3086_v6, %v3085_v8  ;;  %v4079_v57 = vadd.f32 %v1946_v20, %v3962_v50  ;;  %v1839_v0 = vadd.f32 %v3084_v43, %v3942_v29 }
 0x1aa   : > { %2189 = vst.msk [vmem:[%s4032_s24 + $0x18] sm:$0xf] %vm2182_vm0, %v2762_v22  ;;  %v2763_v59 = vpack.c.bf16 %v4074_v49, %v4074_v49 }
 0x1ab   : > { %2187 = vst.msk [vmem:[%s4032_s24 + $0x10] sm:$0xf] %vm2182_vm0, %v2760_v54  ;;  %v2761_v26 = vpack.c.bf16 %v4079_v57, %v4079_v57  ;;  %v1842_v11 = vadd.f32 %v3087_v52, %v3947_v37 }
 0x1ac   : > { %2190 = vst.msk [vmem:[%s4032_s24 + $0x1c] sm:$0xf] %vm2182_vm0, %v2763_v59 }
 0x1ad   : > { %2188 = vst.msk [vmem:[%s4032_s24 + $0x14] sm:$0xf] %vm2182_vm0, %v2761_v26  ;;  %v3088_v50 = vpop.f32.mrb[88].mxu0  ;;  %v3174_v28 = vpop.f32.mrb[88].mxu1 }
 0x1ae   : > { %v4096_v29 = vadd.f32 %v3174_v28, %v3992_v51  ;;  %v3089_v14 = vpop.f32.mrb[89].mxu0  ;;  %v1959_v12 = vpop.f32.mrb[89].mxu1 }
 0x1af   : > { %v3090_v18 = vadd.f32 %v3089_v14, %v3088_v50  ;;  %v4099_v13 = vadd.f32 %v1959_v12, %v3980_v60  ;;  %v3091_v23 = vpop.f32.mrb[90].mxu0  ;;  %v3175_v37 = vpop.f32.mrb[90].mxu1 }
 0x1b0   : > { %v2766_v45 = vpack.c.bf16 %v4096_v29, %v4096_v29  ;;  %v4104_v15 = vadd.f32 %v3175_v37, %v3998_v9  ;;  %v3092_v41 = vpop.f32.mrb[91].mxu0  ;;  %v1962_v51 = vpop.f32.mrb[91].mxu1 }
 0x1b1   : > { %v2764_v5 = vpack.c.bf16 %v4099_v13, %v4099_v13  ;;  %v3093_v53 = vadd.f32 %v3092_v41, %v3091_v23  ;;  %v4109_v31 = vadd.f32 %v1962_v51, %v3986_v48  ;;  %v1847_v60 = vadd.f32 %v3090_v18, %v3953_v55 }
 0x1b2   : > { %2193 = vst.msk [vmem:[%s4032_s24 + $0x28] sm:$0xf] %vm2182_vm0, %v2766_v45  ;;  %v2767_v27 = vpack.c.bf16 %v4104_v15, %v4104_v15 }
 0x1b3   : > { %2191 = vst.msk [vmem:[%s4032_s24 + $0x20] sm:$0xf] %vm2182_vm0, %v2764_v5  ;;  %v2765_v9 = vpack.c.bf16 %v4109_v31, %v4109_v31  ;;  %v4121_v34 = vadd.f32 %v3093_v53, %v3959_v44 }
 0x1b4   : > { %2194 = vst.msk [vmem:[%s4032_s24 + $0x2c] sm:$0xf] %vm2182_vm0, %v2767_v27 }
 0x1b5   : > { %2192 = vst.msk [vmem:[%s4032_s24 + $0x24] sm:$0xf] %vm2182_vm0, %v2765_v9  ;;  %v3094_v48 = vpop.f32.mrb[92].mxu0  ;;  %v3178_v32 = vpop.f32.mrb[92].mxu1 }
 0x1b6   : > { %v4128_v55 = vadd.f32 %v3178_v32, %v4018_v21  ;;  %v3095_v25 = vpop.f32.mrb[93].mxu0  ;;  %v1975_v2 = vpop.f32.mrb[93].mxu1 }
 0x1b7   : > { %v3096_v36 = vadd.f32 %v3095_v25, %v3094_v48  ;;  %v4131_v63 = vadd.f32 %v1975_v2, %v4004_v38  ;;  %v3097_v44 = vpop.f32.mrb[94].mxu0  ;;  %v3179_v43 = vpop.f32.mrb[94].mxu1 }
 0x1b8   : > { %v2770_v8 = vpack.c.bf16 %v4128_v55, %v4128_v55  ;;  %v4136_v24 = vadd.f32 %v3179_v43, %v4024_v46  ;;  %v3098_v22 = vpop.f32.mrb[95].mxu0  ;;  %v1978_v21 = vpop.f32.mrb[95].mxu1 }
 0x1b9   : > { %v2768_v6 = vpack.c.bf16 %v4131_v63, %v4131_v63  ;;  %v3099_v20 = vadd.f32 %v3098_v22, %v3097_v44  ;;  %v4141_v54 = vadd.f32 %v1978_v21, %v4010_v10  ;;  %v1855_v38 = vadd.f32 %v3096_v36, %v3965_v42 }
 0x1ba   : > { %2197 = vst.msk [vmem:[%s4032_s24 + $0x38] sm:$0xf] %vm2182_vm0, %v2770_v8  ;;  %v2771_v52 = vpack.c.bf16 %v4136_v24, %v4136_v24 }
 0x1bb   : > { %2195 = vst.msk [vmem:[%s4032_s24 + $0x30] sm:$0xf] %vm2182_vm0, %v2768_v6  ;;  %v2769_v46 = vpack.c.bf16 %v4141_v54, %v4141_v54  ;;  %v1858_v59 = vadd.f32 %v3099_v20, %v3971_v56 }
 0x1bc   : > { %2198 = vst.msk [vmem:[%s4032_s24 + $0x3c] sm:$0xf] %vm2182_vm0, %v2771_v52 }
 0x1bd   : > { %2196 = vst.msk [vmem:[%s4032_s24 + $0x34] sm:$0xf] %vm2182_vm0, %v2769_v46  ;;  %v3100_v10 = vpop.f32.mrb[96].mxu0  ;;  %v3182_v26 = vpop.f32.mrb[96].mxu1 }
 0x1be   : > { %v4157_v42 = vadd.f32 %v3182_v26, %v1839_v0  ;;  %v3101_v50 = vpop.f32.mrb[97].mxu0  ;;  %v1991_v28 = vpop.f32.mrb[97].mxu1 }
 0x1bf   : > { %v3102_v14 = vadd.f32 %v3101_v50, %v3100_v10  ;;  %v4160_v12 = vadd.f32 %v1991_v28, %v4048_v3  ;;  %v3103_v18 = vpop.f32.mrb[98].mxu0  ;;  %v3183_v56 = vpop.f32.mrb[98].mxu1 }
 0x1c0   : > { %v2774_v23 = vpack.c.bf16 %v4157_v42, %v4157_v42  ;;  %v4164_v37 = vadd.f32 %v3183_v56, %v1842_v11  ;;  %v3104_v45 = vpop.f32.mrb[99].mxu0  ;;  %v1994_v41 = vpop.f32.mrb[99].mxu1 }
 0x1c1   : > { %v2772_v0 = vpack.c.bf16 %v4160_v12, %v4160_v12  ;;  %v3105_v51 = vadd.f32 %v3104_v45, %v3103_v18  ;;  %v4169_v5 = vadd.f32 %v1994_v41, %v4059_v30  ;;  %v1863_v3 = vadd.f32 %v3102_v14, %v3977_v47 }
 0x1c2   : > { %2201 = vst.msk [vmem:[%s4032_s24 + $0x48] sm:$0xf] %vm2182_vm0, %v2774_v23  ;;  %v2775_v53 = vpack.c.bf16 %v4164_v37, %v4164_v37 }
 0x1c3   : > { %2199 = vst.msk [vmem:[%s4032_s24 + $0x40] sm:$0xf] %vm2182_vm0, %v2772_v0  ;;  %v2773_v11 = vpack.c.bf16 %v4169_v5, %v4169_v5  ;;  %v1866_v27 = vadd.f32 %v3105_v51, %v3983_v4 }
 0x1c4   : > { %2202 = vst.msk [vmem:[%s4032_s24 + $0x4c] sm:$0xf] %vm2182_vm0, %v2775_v53 }
 0x1c5   : > { %2200 = vst.msk [vmem:[%s4032_s24 + $0x44] sm:$0xf] %vm2182_vm0, %v2773_v11  ;;  %v3106_v30 = vpop.f32.mrb[100].mxu0  ;;  %v3186_v9 = vpop.f32.mrb[100].mxu1 }
 0x1c6   : > { %v4185_v47 = vadd.f32 %v3186_v9, %v1855_v38  ;;  %v3107_v48 = vpop.f32.mrb[101].mxu0  ;;  %v2007_v32 = vpop.f32.mrb[101].mxu1 }
 0x1c7   : > { %v3108_v25 = vadd.f32 %v3107_v48, %v3106_v30  ;;  %v4187_v2 = vadd.f32 %v2007_v32, %v1847_v60  ;;  %v3109_v36 = vpop.f32.mrb[102].mxu0  ;;  %v3187_v44 = vpop.f32.mrb[102].mxu1 }
 0x1c8   : > { %v2778_v4 = vpack.c.bf16 %v4185_v47, %v4185_v47  ;;  %v4191_v43 = vadd.f32 %v3187_v44, %v1858_v59  ;;  %v3110_v8 = vpop.f32.mrb[103].mxu0  ;;  %v2010_v22 = vpop.f32.mrb[103].mxu1 }
 0x1c9   : > { %v2776_v21 = vpack.c.bf16 %v4187_v2, %v4187_v2  ;;  %v3111_v6 = vadd.f32 %v3110_v8, %v3109_v36  ;;  %v4196_v20 = vadd.f32 %v2010_v22, %v4121_v34  ;;  %v1871_v60 = vadd.f32 %v3108_v25, %v3989_v62 }
 0x1ca   : > { %2205 = vst.msk [vmem:[%s4032_s24 + $0x58] sm:$0xf] %vm2182_vm0, %v2778_v4  ;;  %v2779_v38 = vpack.c.bf16 %v4191_v43, %v4191_v43 }
 0x1cb   : > { %2203 = vst.msk [vmem:[%s4032_s24 + $0x50] sm:$0xf] %vm2182_vm0, %v2776_v21  ;;  %v2777_v52 = vpack.c.bf16 %v4196_v20, %v4196_v20  ;;  %v1874_v46 = vadd.f32 %v3111_v6, %v3995_v16 }
 0x1cc   : > { %2206 = vst.msk [vmem:[%s4032_s24 + $0x5c] sm:$0xf] %vm2182_vm0, %v2779_v38 }
 0x1cd   : > { %2204 = vst.msk [vmem:[%s4032_s24 + $0x54] sm:$0xf] %vm2182_vm0, %v2777_v52  ;;  %v3112_v34 = vpop.f32.mrb[104].mxu0  ;;  %v3190_v59 = vpop.f32.mrb[104].mxu1 }
 0x1ce   : > { %v4212_v62 = vadd.f32 %v3190_v59, %v1871_v60  ;;  %v3113_v10 = vpop.f32.mrb[105].mxu0  ;;  %v2023_v26 = vpop.f32.mrb[105].mxu1 }
 0x1cf   : > { %v3114_v50 = vadd.f32 %v3113_v10, %v3112_v34  ;;  %v4214_v28 = vadd.f32 %v2023_v26, %v1863_v3  ;;  %v3115_v14 = vpop.f32.mrb[106].mxu0  ;;  %v3191_v18 = vpop.f32.mrb[106].mxu1 }
 0x1d0   : > { %v2782_v16 = vpack.c.bf16 %v4212_v62, %v4212_v62  ;;  %v4218_v56 = vadd.f32 %v3191_v18, %v1874_v46  ;;  %v3116_v23 = vpop.f32.mrb[107].mxu0  ;;  %v2026_v45 = vpop.f32.mrb[107].mxu1 }
 0x1d1   : > { %v2780_v41 = vpack.c.bf16 %v4214_v28, %v4214_v28  ;;  %v3117_v0 = vadd.f32 %v3116_v23, %v3115_v14  ;;  %v4222_v51 = vadd.f32 %v2026_v45, %v1866_v27  ;;  %v1879_v3 = vadd.f32 %v3114_v50, %v4001_v61 }
 0x1d2   : > { %2209 = vst.msk [vmem:[%s4032_s24 + $0x68] sm:$0xf] %vm2182_vm0, %v2782_v16  ;;  %v2783_v53 = vpack.c.bf16 %v4218_v56, %v4218_v56 }
 0x1d3   : > { %2207 = vst.msk [vmem:[%s4032_s24 + $0x60] sm:$0xf] %vm2182_vm0, %v2780_v41  ;;  %v2781_v11 = vpack.c.bf16 %v4222_v51, %v4222_v51  ;;  %v1882_v30 = vadd.f32 %v3117_v0, %v4007_v1 }
 0x1d4   : > { %2210 = vst.msk [vmem:[%s4032_s24 + $0x6c] sm:$0xf] %vm2182_vm0, %v2783_v53 }
 0x1d5   : > { %2208 = vst.msk [vmem:[%s4032_s24 + $0x64] sm:$0xf] %vm2182_vm0, %v2781_v11  ;;  %v3118_v27 = vpop.f32.mrb[108].mxu0  ;;  %v3194_v9 = vpop.f32.mrb[108].mxu1 }
 0x1d6   : > { %v3119_v61 = vpop.f32.mrb[109].mxu0  ;;  %v2039_v48 = vpop.f32.mrb[109].mxu1 }
 0x1d7   : > { %v3120_v32 = vadd.f32 %v3119_v61, %v3118_v27  ;;  %v4238_v25 = vadd.f32 %v2039_v48, %v1879_v3  ;;  %v3121_v36 = vpop.f32.mrb[110].mxu0  ;;  %v3195_v44 = vpop.f32.mrb[110].mxu1 }
 0x1d8   : > { %v3122_v4 = vpop.f32.mrb[111].mxu0  ;;  %v2042_v8 = vpop.f32.mrb[111].mxu1 }
 0x1d9   : > { %v1887_v1 = vadd.f32 %v3120_v32, %v4014_v19  ;;  %v2784_v22 = vpack.c.bf16 %v4238_v25, %v4238_v25  ;;  %v3123_v21 = vadd.f32 %v3122_v4, %v3121_v36  ;;  %v4243_v6 = vadd.f32 %v2042_v8, %v1882_v30 }
 0x1db   : > { %v4245_v60 = vadd.f32 %v3194_v9, %v1887_v1  ;;  %2211 = vst.msk [vmem:[%s4032_s24 + $0x70] sm:$0xf] %vm2182_vm0, %v2784_v22  ;;  %v1890_v38 = vadd.f32 %v3123_v21, %v4021_v35  ;;  %v2785_v52 = vpack.c.bf16 %v4243_v6, %v4243_v6  ;;  %2218 = sbr.rel (%p2753_p7) target bundleno = 482 (0x1e2), region = 32  ;;  %v3511_v35 = vmov (!%p2753_p7), 0.0  }
 0x1dc   : > { %2220 = vst.msk [vmem:[%s3594_s10] sm:$0x1] (!%p2753_p7), %vm2219_vm1, %v3511_v35  ;;  %2221 = vst.msk [vmem:[%s3601_s14] sm:$0x1] (!%p2753_p7), %vm2219_vm1, %v3511_v35 }
 0x1dd   : > { %v2786_v46 = vpack.c.bf16 %v4245_v60, %v4245_v60  ;;  %v4254_v34 = vadd.f32 %v3195_v44, %v1890_v38  ;;  %2212 = vst.msk [vmem:[%s4032_s24 + $0x74] sm:$0xf] %vm2182_vm0, %v2785_v52 }
 0x1df   : > { %2213 = vst.msk [vmem:[%s4032_s24 + $0x78] sm:$0xf] %vm2182_vm0, %v2786_v46  ;;  %v2787_v19 = vpack.c.bf16 %v4254_v34, %v4254_v34 }
 0x1e1   : > { %2214 = vst.msk [vmem:[%s4032_s24 + $0x7c] sm:$0xf] %vm2182_vm0, %v2787_v19 }
 0x1e2 PF: > { %vm2223_vm2 = vcmask 64512   ;;  %v2297_v9 = vmul.f32 %v4035_v39, %v4035_v39  ;;  %v2298_v48 = vmul.f32 %v4045_v58, %v4045_v58  ;;  %v2299_v32 = vmul.f32 %v4027_v40, %v4027_v40 }
 0x1e3   : > { %v2224_v59 = vsel %vm2223_vm2, %v4035_v39, 0.0  ;;  %v2225_v10 = vsel %vm2223_vm2, %v4045_v58, 0.0  ;;  %v2227_v26 = vsel %vm2223_vm2, %v4027_v40, 0.0  ;;  %v2229_v14 = vsel %vm2223_vm2, %v4040_v17, 0.0 }
 0x1e4   : > { %v2226_v50 = vadd.f32 %v2225_v10, %v2224_v59  ;;  %v2231_v16 = vsel %vm2223_vm2, %v4069_v7, 0.0  ;;  %v2233_v45 = vsel %vm2223_vm2, %v4079_v57, 0.0  ;;  %v2235_v0 = vsel %vm2223_vm2, %v4066_v33, 0.0 }
 0x1e5   : > { %v2237_v53 = vsel %vm2223_vm2, %v4074_v49, 0.0  ;;  %v2239_v30 = vsel %vm2223_vm2, %v4099_v13, 0.0  ;;  %v2241_v61 = vsel %vm2223_vm2, %v4109_v31, 0.0  ;;  %v2243_v44 = vsel %vm2223_vm2, %v4096_v29, 0.0 }
 0x1e6   : > { %v2228_v18 = vadd.f32 %v2227_v26, %v2226_v50  ;;  %v2300_v4 = vmul.f32 %v4040_v17, %v4040_v17  ;;  %v2329_v1 = vsel %vm2223_vm2, %v2297_v9, 0.0  ;;  %v2245_v39 = vsel %vm2223_vm2, %v4104_v15, 0.0 }
 0x1e7   : > { %v2301_v22 = vmul.f32 %v4069_v7, %v4069_v7  ;;  %v2330_v58 = vsel %vm2223_vm2, %v2298_v48, 0.0  ;;  %v2332_v40 = vsel %vm2223_vm2, %v2299_v32, 0.0  ;;  %v2247_v52 = vsel %vm2223_vm2, %v4131_v63, 0.0 }
 0x1e8   : > { %v2230_v23 = vadd.f32 %v2229_v14, %v2228_v18  ;;  %v2331_v38 = vadd.f32 %v2330_v58, %v2329_v1  ;;  %v2302_v17 = vmul.f32 %v4079_v57, %v4079_v57  ;;  %v2334_v46 = vsel %vm2223_vm2, %v2300_v4, 0.0 }
 0x1e9   : > { %v2249_v59 = vsel %vm2223_vm2, %v4141_v54, 0.0  ;;  %v2303_v7 = vmul.f32 %v4066_v33, %v4066_v33  ;;  %v2336_v10 = vsel %vm2223_vm2, %v2301_v22, 0.0  ;;  %v2251_v14 = vsel %vm2223_vm2, %v4128_v55, 0.0 }
 0x1ea   : > { %v2232_v41 = vadd.f32 %v2231_v16, %v2230_v23  ;;  %v2333_v35 = vadd.f32 %v2332_v40, %v2331_v38  ;;  %v2304_v57 = vmul.f32 %v4074_v49, %v4074_v49  ;;  %v2338_v18 = vsel %vm2223_vm2, %v2302_v17, 0.0 }
 0x1eb   : > { %v2305_v33 = vmul.f32 %v4099_v13, %v4099_v13  ;;  %v2306_v49 = vmul.f32 %v4109_v31, %v4109_v31  ;;  %v2257_v9 = vsel %vm2223_vm2, %v4169_v5, 0.0  ;;  %v2307_v13 = vmul.f32 %v4096_v29, %v4096_v29 }
 0x1ec   : > { %v2234_v3 = vadd.f32 %v2233_v45, %v2232_v41  ;;  %v2335_v50 = vadd.f32 %v2334_v46, %v2333_v35  ;;  %v2253_v45 = vsel %vm2223_vm2, %v4136_v24, 0.0  ;;  %v2340_v41 = vsel %vm2223_vm2, %v2303_v7, 0.0 }
 0x1ed   : > { %v2308_v31 = vmul.f32 %v4104_v15, %v4104_v15  ;;  %v2261_v1 = vsel %vm2223_vm2, %v4164_v37, 0.0  ;;  %v2309_v29 = vmul.f32 %v4131_v63, %v4131_v63  ;;  %v2263_v40 = vsel %vm2223_vm2, %v4187_v2, 0.0 }
 0x1ee   : > { %v2236_v11 = vadd.f32 %v2235_v0, %v2234_v3  ;;  %v2337_v23 = vadd.f32 %v2336_v10, %v2335_v50  ;;  %v2310_v15 = vmul.f32 %v4141_v54, %v4141_v54  ;;  %v2265_v17 = vsel %vm2223_vm2, %v4196_v20, 0.0 }
 0x1ef   : > { %v2311_v63 = vmul.f32 %v4128_v55, %v4128_v55  ;;  %v2352_v46 = vsel %vm2223_vm2, %v2309_v29, 0.0  ;;  %v2312_v54 = vmul.f32 %v4136_v24, %v4136_v24  ;;  %v2269_v50 = vsel %vm2223_vm2, %v4191_v43, 0.0 }
 0x1f0   : > { %v2238_v27 = vadd.f32 %v2237_v53, %v2236_v11  ;;  %v2339_v3 = vadd.f32 %v2338_v18, %v2337_v23  ;;  %v2255_v53 = vsel %vm2223_vm2, %v4160_v12, 0.0  ;;  %v2342_v11 = vsel %vm2223_vm2, %v2304_v57, 0.0 }
 0x1f1   : > { %v2354_v7 = vsel %vm2223_vm2, %v2310_v15, 0.0  ;;  %v2313_v55 = vmul.f32 %v4160_v12, %v4160_v12  ;;  %v2314_v24 = vmul.f32 %v4169_v5, %v4169_v5  ;;  %v2358_v23 = vsel %vm2223_vm2, %v2312_v54, 0.0 }
 0x1f2   : > { %v2240_v36 = vadd.f32 %v2239_v30, %v2238_v27  ;;  %v2341_v27 = vadd.f32 %v2340_v41, %v2339_v3  ;;  %v2273_v41 = vsel %vm2223_vm2, %v4222_v51, 0.0  ;;  %v2315_v12 = vmul.f32 %v4157_v42, %v4157_v42 }
 0x1f3   : > { %v2316_v5 = vmul.f32 %v4164_v37, %v4164_v37  ;;  %v2318_v37 = vmul.f32 %v4196_v20, %v4196_v20  ;;  %v2320_v20 = vmul.f32 %v4191_v43, %v4191_v43  ;;  %v2285_v15 = vsel %vm2223_vm2, %v4254_v34, 0.0 }
 0x1f4   : > { %v2242_v8 = vadd.f32 %v2241_v61, %v2240_v36  ;;  %v2344_v61 = vsel %vm2223_vm2, %v2305_v33, 0.0  ;;  %v2343_v32 = vadd.f32 %v2342_v11, %v2341_v27  ;;  %v2259_v36 = vsel %vm2223_vm2, %v4157_v42, 0.0 }
 0x1f5   : > { %v2362_v11 = vsel %vm2223_vm2, %v2314_v24, 0.0  ;;  %v2317_v42 = vmul.f32 %v4187_v2, %v4187_v2  ;;  %v2319_v2 = vmul.f32 %v4185_v47, %v4185_v47  ;;  %vm2294_vm3 = vcmask 57344  }
 0x1f6   : > { %v2244_v21 = vadd.f32 %v2243_v44, %v2242_v8  ;;  %v2346_v44 = vsel %vm2223_vm2, %v2306_v49, 0.0  ;;  %v2345_v8 = vadd.f32 %v2344_v61, %v2343_v32  ;;  %v2275_v49 = vsel %vm2223_vm2, %v4212_v62, 0.0 }
 0x1f7   : > { %v2279_v32 = vsel %vm2223_vm2, %v4238_v25, 0.0 }
 0x1f8   : > { %v2246_v19 = vadd.f32 %v2245_v39, %v2244_v21  ;;  %v2348_v39 = vsel %vm2223_vm2, %v2307_v13, 0.0  ;;  %v2347_v58 = vadd.f32 %v2346_v44, %v2345_v8  ;;  %v2350_v21 = vsel %vm2223_vm2, %v2308_v31, 0.0 }
 0x1f9   : > { %v2364_v13 = vsel %vm2223_vm2, %v2315_v12, 0.0  ;;  %v2368_v8 = vsel %vm2223_vm2, %v2317_v42, 0.0  ;;  %v2296_v42 = vld [vmem:[%s3601_s14] sm:$0x1] }
 0x1fa   : > { %v2248_v26 = vadd.f32 %v2247_v52, %v2246_v19  ;;  %v2349_v52 = vadd.f32 %v2348_v39, %v2347_v58  ;;  %v2283_v39 = vsel %vm2223_vm2, %v4245_v60, 0.0 }
 0x1fc   : > { %v2250_v16 = vadd.f32 %v2249_v59, %v2248_v26  ;;  %v2351_v35 = vadd.f32 %v2350_v21, %v2349_v52  ;;  %v2267_v59 = vsel %vm2223_vm2, %v4185_v47, 0.0  ;;  %v2321_v47 = vmul.f32 %v4214_v28, %v4214_v28 }
 0x1fd   : > { %v2372_v21 = vsel %vm2223_vm2, %v2319_v2, 0.0 }
 0x1fe   : > { %v2252_v0 = vadd.f32 %v2251_v14, %v2250_v16  ;;  %v2353_v26 = vadd.f32 %v2352_v46, %v2351_v35  ;;  %v2356_v14 = vsel %vm2223_vm2, %v2311_v63, 0.0  ;;  %v2271_v16 = vsel %vm2223_vm2, %v4214_v28, 0.0 }
 0x1ff   : > { %v2374_v63 = vsel %vm2223_vm2, %v2320_v20, 0.0  ;;  %v2376_v35 = vsel %vm2223_vm2, %v2321_v47, 0.0  ;;  %v2324_v28 = vmul.f32 %v4218_v56, %v4218_v56 }
 0x200   : > { %v2254_v30 = vadd.f32 %v2253_v45, %v2252_v0  ;;  %v2355_v18 = vadd.f32 %v2354_v7, %v2353_v26  ;;  %v2360_v0 = vsel %vm2223_vm2, %v2313_v55, 0.0 }
 0x202   : > { %v2256_v48 = vadd.f32 %v2255_v53, %v2254_v30  ;;  %v2357_v33 = vadd.f32 %v2356_v14, %v2355_v18 }
 0x204   : > { %v2258_v4 = vadd.f32 %v2257_v9, %v2256_v48  ;;  %v2359_v53 = vadd.f32 %v2358_v23, %v2357_v33  ;;  %v2277_v9 = vsel %vm2223_vm2, %v4218_v56, 0.0  ;;  %v2328_v33 = vmul.f32 %v4254_v34, %v4254_v34 }
 0x206   : > { %v2260_v22 = vadd.f32 %v2259_v36, %v2258_v4  ;;  %v2361_v27 = vadd.f32 %v2360_v0, %v2359_v53  ;;  %v2366_v36 = vsel %vm2223_vm2, %v2316_v5, 0.0  ;;  %v2281_v4 = vsel %vm2223_vm2, %v4243_v6, 0.0 }
 0x208   : > { %v2262_v38 = vadd.f32 %v2261_v1, %v2260_v22  ;;  %v2363_v48 = vadd.f32 %v2362_v11, %v2361_v27  ;;  %v2370_v22 = vsel %vm2223_vm2, %v2318_v37, 0.0 }
 0x20a   : > { %v2264_v19 = vadd.f32 %v2263_v40, %v2262_v38  ;;  %v2365_v44 = vadd.f32 %v2364_v13, %v2363_v48 }
 0x20c   : > { %v2266_v10 = vadd.f32 %v2265_v17, %v2264_v19  ;;  %v2367_v29 = vadd.f32 %v2366_v36, %v2365_v44  ;;  %v2322_v17 = vmul.f32 %v4222_v51, %v4222_v51  ;;  %v2323_v19 = vmul.f32 %v4212_v62, %v4212_v62 }
 0x20d   : > { %v2325_v51 = vmul.f32 %v4238_v25, %v4238_v25  ;;  %v2326_v62 = vmul.f32 %v4243_v6, %v4243_v6  ;;  %v2222_v25 = vld [vmem:[%s3594_s10] sm:$0x1] }
 0x20e   : > { %v2268_v57 = vadd.f32 %v2267_v59, %v2266_v10  ;;  %v2369_v40 = vadd.f32 %v2368_v8, %v2367_v29  ;;  %v2378_v7 = vsel %vm2223_vm2, %v2322_v17, 0.0 }
 0x20f   : > { %v2384_v24 = vsel %vm2223_vm2, %v2325_v51, 0.0 }
 0x210   : > { %v2270_v45 = vadd.f32 %v2269_v50, %v2268_v57  ;;  %v2371_v52 = vadd.f32 %v2370_v22, %v2369_v40  ;;  %v2380_v50 = vsel %vm2223_vm2, %v2323_v19, 0.0  ;;  %v2382_v57 = vsel %vm2223_vm2, %v2324_v28, 0.0 }
 0x212   : > { %v2272_v3 = vadd.f32 %v2271_v16, %v2270_v45  ;;  %v2373_v46 = vadd.f32 %v2372_v21, %v2371_v52  ;;  %v2327_v16 = vmul.f32 %v4245_v60, %v4245_v60  ;;  %v2390_v60 = vsel %vm2223_vm2, %v2328_v33, 0.0 }
 0x214   : > { %v2274_v30 = vadd.f32 %v2273_v41, %v2272_v3  ;;  %v2375_v54 = vadd.f32 %v2374_v63, %v2373_v46  ;;  %v2386_v41 = vsel %vm2223_vm2, %v2326_v62, 0.0  ;;  %v2388_v0 = vsel %vm2223_vm2, %v2327_v16, 0.0 }
 0x216   : > { %v2276_v61 = vadd.f32 %v2275_v49, %v2274_v30  ;;  %v2377_v26 = vadd.f32 %v2376_v35, %v2375_v54 }
 0x218   : > { %v2278_v31 = vadd.f32 %v2277_v9, %v2276_v61  ;;  %v2379_v14 = vadd.f32 %v2378_v7, %v2377_v26 }
 0x21a   : > { %v2280_v1 = vadd.f32 %v2279_v32, %v2278_v31  ;;  %v2381_v56 = vadd.f32 %v2380_v50, %v2379_v14 }
 0x21c   : > { %v2282_v58 = vadd.f32 %v2281_v4, %v2280_v1  ;;  %v2383_v45 = vadd.f32 %v2382_v57, %v2381_v56 }
 0x21e   : > { %v2284_v38 = vadd.f32 %v2283_v39, %v2282_v58  ;;  %v2385_v12 = vadd.f32 %v2384_v24, %v2383_v45 }
 0x220   : > { %v2286_v43 = vadd.f32 %v2285_v15, %v2284_v38  ;;  %v2387_v53 = vadd.f32 %v2386_v41, %v2385_v12 }
 0x222   : > { %v2287_v59 = vrot.slane %v2286_v43, 4  ;;  %v2389_v49 = vadd.f32 %v2388_v0, %v2387_v53 }
 0x224   : > { %v2288_v10 = vadd.f32 %v2287_v59, %v2286_v43  ;;  %v2391_v5 = vadd.f32 %v2390_v60, %v2389_v49 }
 0x226   : > { %v2289_v55 = vrot.slane %v2288_v10, 2  ;;  %v2392_v11 = vrot.slane %v2391_v5, 4 }
 0x228   : > { %v2290_v18 = vadd.f32 %v2289_v55, %v2288_v10  ;;  %v2393_v30 = vadd.f32 %v2392_v11, %v2391_v5 }
 0x22a   : > { %v2291_v23 = vrot.slane %v2290_v18, 1  ;;  %v2394_v34 = vrot.slane %v2393_v30, 2 }
 0x22c   : > { %v2292_v6 = vadd.f32 %v2291_v23, %v2290_v18  ;;  %v2395_v27 = vadd.f32 %v2394_v34, %v2393_v30 }
 0x22e   : > { %v2293_v3 = vadd.f32 %v2292_v6, %v2222_v25  ;;  %v2396_v9 = vrot.slane %v2395_v27, 1 }
 0x230   : > { %2295 = vst.msk [vmem:[%s3594_s10] sm:$0x1] %vm2294_vm3, %v2293_v3  ;;  %v2397_v13 = vadd.f32 %v2396_v9, %v2395_v27 }
 0x232   : > { %v2398_v61 = vadd.f32 %v2397_v13, %v2296_v42 }
 0x234   : > { %2399 = vst.msk [vmem:[%s3601_s14] sm:$0x1] %vm2294_vm3, %v2398_v61 }
 0x235 PF: > { %s15_s19 = sadd.s32 1, %s3509_s19   ;;  %s4453_s15 = smov %s3501_s17 }
 0x236   : > { %p12_p8 = scmp.ge.s32.totalorder %s15_s19, 6   ;;  %s4454_s16 = smov %s3505_s18 }
 0x237   : > { %s4455_s17 = smov %s4458_s20  ;;  %s4456_s18 = smov %s4462_s21 }
 0x238   :  { %14 = sbr.rel (!%p12_p8) target bundleno = 3 (0x3), region = 86 }

// kernel: _lambda_.21
= control target key start
LH: loop header
LB: loop body
LE: loop exit
PB: predicated region body
PF: predicated region fallthrough
CT: control target
= control target key end

     0   :  { %s508_s12 = smov 0   ;;  %s510_s13 = smov 0   ;;  %s565_s0 = inlined_call_operand.vmem [shape: bf16[2,32,128], index: 0, kind: input, shape index: {}]   ;;  %s566_s1 = inlined_call_operand.vmem [shape: f32[2,1,128], index: 1, kind: input, shape index: {}]   ;;  %s567_s2 = inlined_call_operand.vmem [shape: f32[2,1,128], index: 2, kind: input, shape index: {}]   ;;  %s568_s3 = inlined_call_operand.vmem [shape: bf16[2,32,128], index: 3, kind: output, shape index: {}]  }
   0x1   :  { %s512_s14 = smov 0   ;;  %s514_s15 = smov 0  }
   0x2   :  { %s516_s16 = smov 0  }
   0x3 LB: > { %s22_s17 = sadd.s32 1, %s478_s14  ;;  %s25_s18 = sadd.s32 1, %s482_s15  ;;  %s486_s16 = sphi %s516_s16, %s13_s16   ;;  %s482_s15 = sphi %s514_s15, %s572_s15   ;;  %s478_s14 = sphi %s512_s14, %s571_s14   ;;  %s474_s13 = sphi %s510_s13, %s570_s13   ;;  %s470_s12 = sphi %s508_s12, %s569_s12  }
   0x4   : > { %p23_p0 = scmp.ge.s32.totalorder %s22_s17, 2  ;;  %p384_p1 = scmp.ge.s32.totalorder %s486_s16, 1 }
   0x5   : > { %p174_p2 = scmp.lt.s32.totalorder %s486_s16, 5 }
   0x6   : > { %s574_s17 = smov (%p23_p0, %s22_s17), 0  ;;  %s576_s18 = smov (!%p23_p0, %s25_s18), %s482_s15 }
   0x7   : > { %p175_p3 = pnand %p384_p1, %p174_p2  ;;  %p27_p4 = scmp.ge.s32.totalorder %s576_s18, 2 }
   0x8   : > { %s385_s19 = sshll.u32 (!%p175_p3), %s470_s12, 1  ;;  %p213_p5 = scmp.lt.s32.totalorder (!%p175_p3), %s474_s13, 1 }
   0x9   : > { %s578_s18 = smov (%p27_p4, %s576_s18), 0  ;;  %178 = sbr.rel (%p175_p3) target bundleno = 33 (0x21), region = 32 }
   0xa   : > { %p215_p6 = scmp.lt.s32.totalorder (!%p175_p3), %s385_s19, 3 }
  0x10   : > { %s580_s13 = smov (!%p213_p5, %s474_s13), 1  ;;  %s582_s19 = smov (!%p215_p6, %s385_s19), 3 }
  0x11   : > { %s386_s20 = sshll.u32 %s580_s13, 2  ;;  %s224_s24 = scalar_lea.vmem %s566_s1, %s580_s13 }
  0x12   : > { %s218_s21 = sadd.s32 %s386_s20, %s582_s19  ;;  %s227_s4 = scalar_lea.vmem %s567_s2, %s580_s13  ;;  %v391_v1 = vld [vmem:[%s224_s24] ss:$0 sm:$0xff] }
  0x13   : > { %s387_s25 = sshll.u32 %s218_s21, 2  ;;  %v392_v4 = vld [vmem:[%s227_s4] ss:$0 sm:$0xff] }
  0x14   : > { %s220_s28 = scalar_lea.vmem %s565_s0, %s387_s25  ;;  %s236_s7 = scalar_lea.vmem %s568_s3, %s387_s25 }
  0x15   : > { %v400_v0 = vld [vmem:[%s220_s28] sm:$0xff]  }
  0x16   : > { %v401_v2 = vunpack.c.l.bf16 %v400_v0  ;;  %v402_v3 = vunpack.c.h.bf16 %v400_v0 }
  0x18   : > { %v249_v5 = vmul.f32 %v401_v2, %v391_v1  ;;  %v250_v6 = vmul.f32 %v402_v3, %v391_v1 }
  0x1a   : > { %v258_v7 = vadd.f32 %v392_v4, %v249_v5  ;;  %v259_v8 = vadd.f32 %v392_v4, %v250_v6 }
  0x1c   : > { %v260_v9 = vmax.f32 %v258_v7, 0.0  ;;  %v261_v10 = vmax.f32 %v259_v8, 0.0 }
  0x1e   : > { %v406_v11 = vpack.c.bf16 %v261_v10, %v260_v9 }
  0x20   : > { %407 = vst [vmem:[%s236_s7] sm:$0xff] %v406_v11  }
  0x21 PF: > { %s13_s16 = sadd.s32 1, %s486_s16   ;;  %s569_s12 = smov %s478_s14 }
  0x22   : > { %p10_p7 = scmp.ge.s32.totalorder %s13_s16, 6   ;;  %s570_s13 = smov %s482_s15 }
  0x23   : > { %s571_s14 = smov %s574_s17  ;;  %s572_s15 = smov %s578_s18 }
  0x24   :  { %12 = sbr.rel (!%p10_p7) target bundleno = 3 (0x3), region = 68 }

// kernel: _lambda_.39
= control target key start
LH: loop header
LB: loop body
LE: loop exit
PB: predicated region body
PF: predicated region fallthrough
CT: control target
= control target key end

     0   :  { %s886_s18 = smov 0   ;;  %s888_s19 = smov 0   ;;  %s984_s0 = inlined_call_operand.vmem [shape: bf16[2,64,64], index: 0, kind: input, shape index: {}]   ;;  %s985_s1 = inlined_call_operand.vmem [shape: f32[2,1,64], index: 1, kind: input, shape index: {}]   ;;  %s986_s2 = inlined_call_operand.vmem [shape: f32[2,1,64], index: 2, kind: input, shape index: {}]   ;;  %s987_s3 = inlined_call_operand.vmem [shape: bf16[2,64,64], index: 3, kind: input, shape index: {}]   ;;  %s988_s4 = inlined_call_operand.vmem [shape: f32[64,8], index: 4, kind: input, shape index: {}]   ;;  %s989_s5 = inlined_call_operand.vmem [shape: f32[2,64,8], index: 5, kind: output, shape index: {}]  }
   0x1   :  { %s890_s20 = smov 0  }
   0x2 LB: > { %s27_s21 = sadd.s32 1, %s850_s19  ;;  %p680_p0 = scmp.ge.s32.totalorder %s854_s20, 1  ;;  %s854_s20 = sphi %s890_s20, %s15_s20   ;;  %s850_s19 = sphi %s888_s19, %s991_s19   ;;  %s846_s18 = sphi %s886_s18, %s990_s18  }
   0x3   : > { %p29_p1 = scmp.ge.s32.totalorder %s27_s21, 2  ;;  %p241_p2 = scmp.lt.s32.totalorder %s854_s20, 3 }
   0x5   : > { %s993_s21 = smov (%p29_p1, %s27_s21), 0  ;;  %p242_p3 = pnand %p680_p0, %p241_p2 }
   0x6   : > { %v406_v0 = vld [vmem:[%s988_s4] sm:$0xff] (!%p242_p3)  ;;  %v407_v1 = vld [vmem:[%s988_s4 + $0x8] sm:$0xff] (!%p242_p3)  ;;  %v408_v2 = vld [vmem:[%s988_s4 + $0x10] sm:$0xff] (!%p242_p3)  ;;  %p293_p4 = scmp.lt.s32.totalorder (!%p242_p3), %s846_s18, 1  ;;  %vm414_vm0 = vcmask (!%p242_p3), 523264   ;;  %vm544_vm1 = vcmask (!%p242_p3), 64512  }
   0x7   : > { %245 = sbr.rel (%p242_p3) target bundleno = 250 (0xfa), region = 40  ;;  %v784_v3 = vpack.c.bf16 (!%p242_p3), %v407_v1, %v406_v0  ;;  %v409_v4 = vld [vmem:[%s988_s4 + $0x18] sm:$0xff] (!%p242_p3)  ;;  %v410_v6 = vld [vmem:[%s988_s4 + $0x20] sm:$0xff] (!%p242_p3)  ;;  %v411_v7 = vld [vmem:[%s988_s4 + $0x28] sm:$0xff] (!%p242_p3) }
   0x8   : > { %v788_v5 = vpack.c.bf16 (!%p242_p3), %v409_v4, %v408_v2  ;;  %v792_v8 = vpack.c.bf16 (!%p242_p3), %v411_v7, %v410_v6  ;;  %v412_v9 = vld [vmem:[%s988_s4 + $0x30] sm:$0xff] (!%p242_p3)  ;;  %v413_v10 = vld [vmem:[%s988_s4 + $0x38] sm:$0xff] (!%p242_p3) }
   0x9   : > { %785 = vmatprep.subr.bf16.mxu0 (!%p242_p3), %v784_v3  ;;  %800 = vmatprep.subr.bf16.mxu1 (!%p242_p3), %v784_v3  ;;  %v796_v21 = vpack.c.bf16 (!%p242_p3), %v413_v10, %v412_v9 }
   0xa   : > { %787 = vmatpush3.bf16.msra.mxu0 (!%p242_p3), %v784_v3  ;;  %804 = vmatpush3.bf16.msra.mxu1 (!%p242_p3), %v784_v3 }
   0xb   : > { %789 = vmatprep.subr.bf16.mxu0 (!%p242_p3), %v788_v5  ;;  %801 = vmatprep.subr.bf16.mxu1 (!%p242_p3), %v788_v5 }
   0xe   : > { %s995_s18 = smov (!%p293_p4, %s846_s18), 1  ;;  %791 = vmatpush3.bf16.msra.mxu0 %v788_v5  ;;  %805 = vmatpush3.bf16.msra.mxu1 %v788_v5 }
   0xf   : > { %s699_s9 = sshll.u32 %s995_s18, 5  ;;  %s304_s12 = scalar_lea.vmem %s985_s1, %s995_s18  ;;  %793 = vmatprep.subr.bf16.mxu0 %v792_v8  ;;  %802 = vmatprep.subr.bf16.mxu1 %v792_v8 }
  0x10   : > { %s300_s23 = scalar_lea.vmem %s984_s0, %s699_s9  ;;  %s307_s26 = scalar_lea.vmem %s986_s2, %s995_s18  ;;  %v942_v11 = vld [vmem:[%s304_s12] ss:$0 sm:$0xff] }
  0x11   : > { %s316_s29 = scalar_lea.vmem %s987_s3, %s699_s9  ;;  %v703_v12 = vld [vmem:[%s300_s23] sm:$0xff]   ;;  %v734_v13 = vld [vmem:[%s300_s23 + $0x8] sm:$0xff]   ;;  %v736_v14 = vld [vmem:[%s300_s23 + $0x18] sm:$0xff]   ;;  %s701_s30 = sshll.u32 %s995_s18, 6 }
  0x12   : > { %v704_v15 = vunpack.c.l.bf16 %v703_v12  ;;  %v705_v16 = vunpack.c.h.bf16 %v703_v12  ;;  %v719_v17 = vld [vmem:[%s316_s29] sm:$0xff]   ;;  %v735_v18 = vld [vmem:[%s300_s23 + $0x10] sm:$0xff]   ;;  %v708_v19 = vunpack.c.l.bf16 %v734_v13  ;;  %v716_v20 = vunpack.c.l.bf16 %v736_v14  ;;  %v737_v27 = vld [vmem:[%s316_s29 + $0x8] sm:$0xff]   ;;  %795 = vmatpush3.bf16.msra.mxu0 %v792_v8  ;;  %806 = vmatpush3.bf16.msra.mxu1 %v792_v8  ;;  %s326_s8 = scalar_lea.vmem %s989_s5, %s701_s30 }
  0x13   : > { %v688_v22 = vld [vmem:[%s307_s26] ss:$0 sm:$0xff]  ;;  %v720_v23 = vunpack.c.l.bf16 %v719_v17  ;;  %v712_v24 = vunpack.c.l.bf16 %v735_v18  ;;  %v713_v25 = vunpack.c.h.bf16 %v735_v18  ;;  %v738_v26 = vld [vmem:[%s316_s29 + $0x10] sm:$0xff]   ;;  %v721_v29 = vunpack.c.h.bf16 %v719_v17  ;;  %v739_v36 = vld [vmem:[%s316_s29 + $0x18] sm:$0xff]   ;;  %797 = vmatprep.subr.bf16.mxu0 %v796_v21  ;;  %803 = vmatprep.subr.bf16.mxu1 %v796_v21 }
  0x14   : > { %v351_v28 = vmul.f32 %v704_v15, %v942_v11  ;;  %v728_v30 = vunpack.c.l.bf16 %v738_v26  ;;  %v352_v31 = vmul.f32 %v705_v16, %v942_v11  ;;  %v729_v33 = vunpack.c.h.bf16 %v738_v26 }
  0x15   : > { %v355_v32 = vmul.f32 %v712_v24, %v942_v11  ;;  %v356_v34 = vmul.f32 %v713_v25, %v942_v11  ;;  %v353_v35 = vmul.f32 %v708_v19, %v942_v11  ;;  %v724_v39 = vunpack.c.l.bf16 %v737_v27 }
  0x16   : > { %v366_v37 = vadd.f32 %v688_v22, %v351_v28  ;;  %v367_v38 = vadd.f32 %v688_v22, %v352_v31  ;;  %v357_v40 = vmul.f32 %v716_v20, %v942_v11  ;;  %v709_v44 = vunpack.c.h.bf16 %v734_v13  ;;  %799 = vmatpush3.bf16.msra.mxu0 %v796_v21  ;;  %807 = vmatpush3.bf16.msra.mxu1 %v796_v21 }
  0x17   : > { %v370_v41 = vadd.f32 %v688_v22, %v355_v32  ;;  %v371_v42 = vadd.f32 %v688_v22, %v356_v34  ;;  %v368_v43 = vadd.f32 %v688_v22, %v353_v35  ;;  %v732_v48 = vunpack.c.l.bf16 %v739_v36 }
  0x18   : > { %v374_v45 = vmax.f32 %v366_v37, 0.0  ;;  %v375_v46 = vmax.f32 %v367_v38, 0.0  ;;  %v372_v47 = vadd.f32 %v688_v22, %v357_v40  ;;  %v354_v52 = vmul.f32 %v709_v44, %v942_v11 }
  0x19   : > { %v378_v49 = vmax.f32 %v370_v41, 0.0  ;;  %v379_v50 = vmax.f32 %v371_v42, 0.0  ;;  %v376_v51 = vmax.f32 %v368_v43, 0.0  ;;  %v717_v56 = vunpack.c.h.bf16 %v736_v14 }
  0x1a   : > { %v398_v53 = vadd.f32 %v720_v23, %v374_v45  ;;  %v399_v54 = vadd.f32 %v721_v29, %v375_v46  ;;  %v380_v55 = vmax.f32 %v372_v47, 0.0  ;;  %v369_v61 = vadd.f32 %v688_v22, %v354_v52 }
  0x1b   : > { %v402_v57 = vadd.f32 %v728_v30, %v378_v49  ;;  %v403_v58 = vadd.f32 %v729_v33, %v379_v50  ;;  %v400_v59 = vadd.f32 %v724_v39, %v376_v51  ;;  %v725_v62 = vunpack.c.h.bf16 %v737_v27 }
  0x1c   : > { %772 = vmatprep.mubr.msk.f32.mxu0 %vm414_vm0, %v398_v53  ;;  %v404_v60 = vadd.f32 %v732_v48, %v380_v55  ;;  %v358_v63 = vmul.f32 %v717_v56, %v942_v11  ;;  %v377_v0 = vmax.f32 %v369_v61, 0.0  ;;  %v733_v2 = vunpack.c.h.bf16 %v739_v36 }
  0x1d   : > { %778 = vmatprep.mubr.msk.f32.mxu1 %vm414_vm0, %v402_v57  ;;  %773 = vmatmul.mubr.msk.f32.vlgmr.msra.gmra.mrb[0].mxu0 %vm414_vm0, %v399_v54 }
  0x1e   : > { %779 = vmatmul.mubr.msk.f32.vlgmr.msra.gmra.mrb[0].mxu1 %vm414_vm0, %v403_v58  ;;  %v373_v1 = vadd.f32 %v688_v22, %v358_v63  ;;  %775 = vmatprep.mubr.msk.f32.mxu0 %vm414_vm0, %v400_v59  ;;  %v401_v3 = vadd.f32 %v725_v62, %v377_v0 }
  0x1f   : > { %781 = vmatprep.mubr.msk.f32.mxu1 %vm414_vm0, %v404_v60 }
  0x20   : > { %v381_v4 = vmax.f32 %v373_v1, 0.0 }
  0x21   : > { %776 = vmatmul.mubr.msk.f32.gmra.mrb[2].mxu0 %vm414_vm0, %v401_v3 }
  0x22   : > { %v405_v5 = vadd.f32 %v733_v2, %v381_v4 }
  0x24   : > { %782 = vmatmul.mubr.msk.f32.gmra.mrb[2].mxu1 %vm414_vm0, %v405_v5 }
  0xf0   : > { %v774_v6 = vpop.f32.mrb[0].mxu0 }
  0xf1   : > { %v780_v7 = vpop.f32.mrb[0].mxu1  ;;  %546 = vst.msk [vmem:[%s326_s8 + $0x8] sm:$0xff] %vm544_vm1, %v774_v6  ;;  %v505_v8 = vpop.f32.mrb[1].mxu0 }
  0xf2   : > { %550 = vst.msk [vmem:[%s326_s8 + $0x28] sm:$0xff] %vm544_vm1, %v780_v7  ;;  %v525_v9 = vpop.f32.mrb[1].mxu1  ;;  %545 = vst.msk [vmem:[%s326_s8] sm:$0xff] %vm544_vm1, %v505_v8 }
  0xf3   : > { %549 = vst.msk [vmem:[%s326_s8 + $0x20] sm:$0xff] %vm544_vm1, %v525_v9 }
  0xf4   : > { %v777_v10 = vpop.f32.mrb[2].mxu0 }
  0xf5   : > { %548 = vst.msk [vmem:[%s326_s8 + $0x18] sm:$0xff] %vm544_vm1, %v777_v10  ;;  %v515_v11 = vpop.f32.mrb[3].mxu0 }
  0xf6   : > { %547 = vst.msk [vmem:[%s326_s8 + $0x10] sm:$0xff] %vm544_vm1, %v515_v11 }
  0xf7   : > { %v783_v12 = vpop.f32.mrb[2].mxu1 }
  0xf8   : > { %552 = vst.msk [vmem:[%s326_s8 + $0x38] sm:$0xff] %vm544_vm1, %v783_v12  ;;  %v535_v13 = vpop.f32.mrb[3].mxu1 }
  0xf9   : > { %551 = vst.msk [vmem:[%s326_s8 + $0x30] sm:$0xff] %vm544_vm1, %v535_v13 }
  0xfa PF: > { %s15_s20 = sadd.s32 1, %s854_s20   ;;  %s990_s18 = smov %s850_s19 }
  0xfb   : > { %p12_p5 = scmp.ge.s32.totalorder %s15_s20, 4   ;;  %s991_s19 = smov %s993_s21 }
  0xfd   :  { %14 = sbr.rel (!%p12_p5) target bundleno = 2 (0x2), region = 79 }

</bundles_post_ra>
